<compile_context>
chip_gen: v7x
topology: tpu7x:2x2x1
jax: 0.10.0
libtpu: 0.0.40
codegen_flags: <defaults>
</compile_context>

<pallas_src>
import functools

import numpy as np
import jax
import jax.numpy as jnp
from jax import lax
from jax.experimental import pallas as pl
from jax.experimental.pallas import tpu as pltpu

BN_EPS = 1e-5
LEAKY_SLOPE = 0.2
OUT_LANES = 128


# ----------------------------------------------------------------------------
# Trace-time helpers (static shapes / constants)
# ----------------------------------------------------------------------------
def _conv_out_hw(h, w, stride):
    return (h + 2 - 3) // stride + 1, (w + 2 - 3) // stride + 1


def _round_up(x, m):
    return ((x + m - 1) // m) * m


def _make_gather(h, w, stride, n_cols):
    """Per-image 0/1 gather matrix for a 3x3 / pad-1 conv: shape [9*opp, n_cols].

    Row block t (= kh*3+kw) occupies rows [t*opp, t*opp + op); row (t*opp + p)
    has a single 1 at the flat input position feeding output position p for tap
    t (all-zero rows implement the conv's zero padding and the op->opp row pad).
    opp is op rounded up to 16 so bf16 ref-slices at t*opp stay packing-aligned;
    columns >= h*w are zero, so pad rows of the previous activation are never read.
    """
    oh, ow = _conv_out_hw(h, w, stride)
    op = oh * ow
    opp = _round_up(op, 16)
    g = np.zeros((9 * opp, n_cols), np.float32)
    for oy in range(oh):
        for ox in range(ow):
            r_out = oy * ow + ox
            for kh in range(3):
                for kw in range(3):
                    iy = stride * oy + kh - 1
                    ix = stride * ox + kw - 1
                    if 0 <= iy < h and 0 <= ix < w:
                        g[(kh * 3 + kw) * opp + r_out, iy * w + ix] = 1.0
    return g, oh, ow, op, opp


def _pack_w(w):
    """PyTorch [C_out, C_in, 3, 3] -> [9*C_in, C_out], rows ordered (tap, c_in)."""
    c_out, c_in = w.shape[0], w.shape[1]
    return jnp.asarray(w).transpose(2, 3, 1, 0).reshape(9 * c_in, c_out).astype(jnp.float32)


def _affine(v):
    return jnp.asarray(v).reshape(1, -1).astype(jnp.float32)


# ----------------------------------------------------------------------------
# Fused whole-network Pallas kernel
# ----------------------------------------------------------------------------
def _disc_kernel(x_ref,
                 gt1_ref, w1_ref,
                 gt2_ref, w2_ref, g2_ref, b2_ref,
                 gt3_ref, w3_ref, g3_ref, b3_ref,
                 gt4_ref, w4_ref, g4_ref, b4_ref,
                 gt5_ref, w5_ref,
                 out_ref, *, n_img, hw_in, opps, ops):
    f32 = jnp.float32

    def conv(acts, gt_ref, w_ref, opp):
        # acts:   per-image [rows_in, c_in] f32 values
        # gt_ref: [9*opp, rows_in] bf16 per-image 0/1 gather (shared by all images)
        # w_ref:  [9*c_in, c_out] f32, rows ordered (tap, c_in)
        w = w_ref[...]
        outs = []
        for a in acts:
            taps = [
                jnp.dot(gt_ref[t * opp:(t + 1) * opp, :].astype(f32), a,
                        preferred_element_type=f32)                    # [opp, c_in]
                for t in range(9)
            ]
            patches = jnp.concatenate(taps, axis=1)                    # [opp, 9*c_in]
            outs.append(jnp.dot(patches, w, preferred_element_type=f32))
        return outs                                                    # [opp, c_out] each

    def leaky(v):
        return jnp.maximum(v, LEAKY_SLOPE * v)

    def bn_leaky(ys, g_ref, b_ref, valid_rows):
        # Folded train-mode BatchNorm (stats over the whole batch) + fused LeakyReLU.
        # Pad rows (>= valid_rows) of every conv output are exactly zero, so they
        # contribute nothing to the sums; the divisor is the true element count.
        inv_cnt = 1.0 / float(len(ys) * valid_rows)
        s1 = ys[0].sum(axis=0, keepdims=True)
        s2 = (ys[0] * ys[0]).sum(axis=0, keepdims=True)
        for y in ys[1:]:
            s1 = s1 + y.sum(axis=0, keepdims=True)
            s2 = s2 + (y * y).sum(axis=0, keepdims=True)
        mean = s1 * inv_cnt
        var = jnp.maximum(s2 * inv_cnt - mean * mean, 0.0)
        scale = g_ref[...] * lax.rsqrt(var + BN_EPS)
        shift = b_ref[...] - mean * scale
        return [leaky(y * scale + shift) for y in ys]

    # Split the channel-last input into per-image blocks (8-aligned row offsets).
    acts = [x_ref[i * hw_in:(i + 1) * hw_in, :] for i in range(n_img)]

    a1 = [leaky(y) for y in conv(acts, gt1_ref, w1_ref, opps[0])]
    a2 = bn_leaky(conv(a1, gt2_ref, w2_ref, opps[1]), g2_ref, b2_ref, ops[1])
    a3 = bn_leaky(conv(a2, gt3_ref, w3_ref, opps[2]), g3_ref, b3_ref, ops[2])
    a4 = bn_leaky(conv(a3, gt4_ref, w4_ref, opps[3]), g4_ref, b4_ref, ops[3])
    a5 = conv(a4, gt5_ref, w5_ref, opps[4])            # per-image [opp5, 1]

    # Lane-dense (opp5, 128) output block, fully (unmasked) stored.  The logit
    # for image i sits at [0, i]; everything else is padding.
    probs = jax.nn.sigmoid(jnp.concatenate(a5, axis=1))                # [opp5, n_img]
    pad = jnp.zeros((opps[4], OUT_LANES - n_img), f32)
    out_ref[...] = jnp.concatenate([probs, pad], axis=1).astype(out_ref.dtype)


# ----------------------------------------------------------------------------
# Full Discriminator forward (single pallas_call)
# ----------------------------------------------------------------------------
@jax.jit
def discriminator_forward(x, p):
    N, C, H, W = x.shape

    # Single boundary op: NCHW -> channel-last rows (n, y, x) x lanes (c).
    x_cl = jnp.transpose(x.astype(jnp.float32), (0, 2, 3, 1)).reshape(N * H * W, C)

    # Per-image constant gather matrices (O(1) in batch), stored bf16 (exact 0/1).
    g1, oh1, ow1, op1, opp1 = _make_gather(H, W, 2, H * W)
    g2, oh2, ow2, op2, opp2 = _make_gather(oh1, ow1, 2, opp1)
    g3, oh3, ow3, op3, opp3 = _make_gather(oh2, ow2, 2, opp2)
    g4, oh4, ow4, op4, opp4 = _make_gather(oh3, ow3, 2, opp3)
    g5, oh5, ow5, op5, opp5 = _make_gather(oh4, ow4, 1, opp4)

    gts = tuple(jnp.asarray(g, dtype=jnp.bfloat16) for g in (g1, g2, g3, g4, g5))
    ws = tuple(_pack_w(p[f"w{i}"]) for i in range(1, 6))

    args = (
        x_cl,
        gts[0], ws[0],
        gts[1], ws[1], _affine(p["g2"]), _affine(p["b2"]),
        gts[2], ws[2], _affine(p["g3"]), _affine(p["b3"]),
        gts[3], ws[3], _affine(p["g4"]), _affine(p["b4"]),
        gts[4], ws[4],
    )

    opps = (opp1, opp2, opp3, opp4, opp5)
    ops = (op1, op2, op3, op4, op5)

    # Advisory cost estimate: 9 gather dots + 1 merged weight dot per image per layer.
    flops = 0
    for gt, w, opp in zip(gts, ws, opps):
        c_in = w.shape[0] // 9
        flops += 2 * N * (gt.shape[0] * gt.shape[1] * c_in
                          + opp * w.shape[0] * w.shape[1])
    bytes_accessed = sum(int(np.prod(a.shape)) * np.dtype(a.dtype).itemsize for a in args)
    bytes_accessed += opp5 * OUT_LANES * 4

    vmem = pl.BlockSpec(memory_space=pltpu.MemorySpace.VMEM)
    out = pl.pallas_call(
        functools.partial(_disc_kernel, n_img=N, hw_in=H * W, opps=opps, ops=ops),
        out_shape=jax.ShapeDtypeStruct((opp5, OUT_LANES), jnp.float32),
        in_specs=[vmem] * len(args),
        out_specs=vmem,
        compiler_params=pltpu.CompilerParams(vmem_limit_bytes=16 * 1024 * 1024),
        cost_estimate=pl.CostEstimate(flops=int(flops), transcendentals=256,
                                      bytes_accessed=int(bytes_accessed)),
    )(*args)

    return out[0, :N].reshape(N, 1, oh5, ow5)          # NCHW [N, 1, 1, 1]


# ----------------------------------------------------------------------------
# Pure-JAX reference (correctness check only)
# ----------------------------------------------------------------------------
def _ref_conv(x, w, stride):
    return lax.conv_general_dilated(
        x, w, window_strides=(stride, stride), padding=((1, 1), (1, 1)),
        dimension_numbers=("NCHW", "OIHW", "NCHW"),
        precision=lax.Precision.HIGHEST)


def _ref_bn_train(x, gamma, beta):
    mean = jnp.mean(x, axis=(0, 2, 3), keepdims=True)
    var = jnp.mean((x - mean) ** 2, axis=(0, 2, 3), keepdims=True)
    xn = (x - mean) * lax.rsqrt(var + BN_EPS)
    return xn * gamma.reshape(1, -1, 1, 1) + beta.reshape(1, -1, 1, 1)


def _ref_lrelu(x):
    return jnp.where(x >= 0, x, LEAKY_SLOPE * x)


def reference_forward(x, p):
    x = _ref_lrelu(_ref_conv(x, p["w1"], 2))
    x = _ref_lrelu(_ref_bn_train(_ref_conv(x, p["w2"], 2), p["g2"], p["b2"]))
    x = _ref_lrelu(_ref_bn_train(_ref_conv(x, p["w3"], 2), p["g3"], p["b3"]))
    x = _ref_lrelu(_ref_bn_train(_ref_conv(x, p["w4"], 2), p["g4"], p["b4"]))
    x = jax.nn.sigmoid(_ref_conv(x, p["w5"], 1))
    return x


# ----------------------------------------------------------------------------
# Deterministic parameter init (matches module shapes)
# ----------------------------------------------------------------------------
def init_params(key):
    ks = jax.random.split(key, 5)
    shapes = [(8, 2, 3, 3), (16, 8, 3, 3), (32, 16, 3, 3), (8, 32, 3, 3), (1, 8, 3, 3)]
    p = {}
    for i, (k, s) in enumerate(zip(ks, shapes), start=1):
        fan_in = s[1] * s[2] * s[3]
        p[f"w{i}"] = jax.random.normal(k, s, jnp.float32) / jnp.sqrt(fan_in)
        c_out = s[0]
        # BN affine params (PyTorch default init); layers 1 & 5 have no BN and
        # their gamma/beta are never passed to the kernel.
        p[f"g{i}"] = jnp.ones((c_out,), jnp.float32)
        p[f"b{i}"] = jnp.zeros((c_out,), jnp.float32)
    return p


if __name__ == "__main__":
    key = jax.random.PRNGKey(0)
    kx, kp = jax.random.split(key)
    # Input consistent with nn.Conv2d(2, 8, ...): [N=2, C=2, H=16, W=16]
    x = jax.random.normal(kx, (2, 2, 16, 16), jnp.float32)
    params = init_params(kp)

    out = jax.block_until_ready(discriminator_forward(x, params))
    ref = jax.block_until_ready(reference_forward(x, params))

    assert out.shape == (2, 1, 1, 1), out.shape
    assert jnp.allclose(out, ref, atol=2e-3, rtol=2e-3), (out, ref)
    print("KERNEL_OK")
</pallas_src>

<mosaic_0001>
module attributes {stable_mosaic.version = 11 : i64} {
  func.func @_disc_kernel(%arg0: memref<512x2xf32, #tpu.memory_space<vmem>>, %arg1: memref<576x256xbf16, #tpu.memory_space<vmem>>, %arg2: memref<18x8xf32, #tpu.memory_space<vmem>>, %arg3: memref<144x64xbf16, #tpu.memory_space<vmem>>, %arg4: memref<72x16xf32, #tpu.memory_space<vmem>>, %arg5: memref<1x16xf32, #tpu.memory_space<vmem>>, %arg6: memref<1x16xf32, #tpu.memory_space<vmem>>, %arg7: memref<144x16xbf16, #tpu.memory_space<vmem>>, %arg8: memref<144x32xf32, #tpu.memory_space<vmem>>, %arg9: memref<1x32xf32, #tpu.memory_space<vmem>>, %arg10: memref<1x32xf32, #tpu.memory_space<vmem>>, %arg11: memref<144x16xbf16, #tpu.memory_space<vmem>>, %arg12: memref<288x8xf32, #tpu.memory_space<vmem>>, %arg13: memref<1x8xf32, #tpu.memory_space<vmem>>, %arg14: memref<1x8xf32, #tpu.memory_space<vmem>>, %arg15: memref<144x16xbf16, #tpu.memory_space<vmem>>, %arg16: memref<72x1xf32, #tpu.memory_space<vmem>>, %arg17: memref<16x128xf32, #tpu.memory_space<vmem>>) attributes {dimension_semantics = [], scalar_prefetch = 0 : i64, scratch_operands = 0 : i64, tpu.core_type = #tpu.core_type<tc>} {
    %c0 = arith.constant 0 : index
    %c0_0 = arith.constant 0 : index
    %0 = vector.load %arg0[%c0, %c0_0] : memref<512x2xf32, #tpu.memory_space<vmem>>, vector<256x2xf32>
    %c256 = arith.constant 256 : index
    %c0_1 = arith.constant 0 : index
    %1 = vector.load %arg0[%c256, %c0_1] : memref<512x2xf32, #tpu.memory_space<vmem>>, vector<256x2xf32>
    %c0_2 = arith.constant 0 : index
    %c0_3 = arith.constant 0 : index
    %2 = vector.load %arg2[%c0_2, %c0_3] : memref<18x8xf32, #tpu.memory_space<vmem>>, vector<18x8xf32>
    %c0_4 = arith.constant 0 : index
    %c0_5 = arith.constant 0 : index
    %3 = vector.load %arg1[%c0_4, %c0_5] : memref<576x256xbf16, #tpu.memory_space<vmem>>, vector<64x256xbf16>
    %4 = arith.extf %3 : vector<64x256xbf16> to vector<64x256xf32>
    %cst = arith.constant dense<0.000000e+00> : vector<64x2xf32>
    %5 = tpu.matmul %4, %0, %cst {dimension_numbers = #tpu.dot_dimension_numbers<[1], [0], [0], [1], [0, 0, 1, 1], [], []>} : vector<64x256xf32>, vector<256x2xf32>, vector<64x2xf32> -> vector<64x2xf32>
    %c64 = arith.constant 64 : index
    %c0_6 = arith.constant 0 : index
    %6 = vector.load %arg1[%c64, %c0_6] : memref<576x256xbf16, #tpu.memory_space<vmem>>, vector<64x256xbf16>
    %7 = arith.extf %6 : vector<64x256xbf16> to vector<64x256xf32>
    %cst_7 = arith.constant dense<0.000000e+00> : vector<64x2xf32>
    %8 = tpu.matmul %7, %0, %cst_7 {dimension_numbers = #tpu.dot_dimension_numbers<[1], [0], [0], [1], [0, 0, 1, 1], [], []>} : vector<64x256xf32>, vector<256x2xf32>, vector<64x2xf32> -> vector<64x2xf32>
    %c128 = arith.constant 128 : index
    %c0_8 = arith.constant 0 : index
    %9 = vector.load %arg1[%c128, %c0_8] : memref<576x256xbf16, #tpu.memory_space<vmem>>, vector<64x256xbf16>
    %10 = arith.extf %9 : vector<64x256xbf16> to vector<64x256xf32>
    %cst_9 = arith.constant dense<0.000000e+00> : vector<64x2xf32>
    %11 = tpu.matmul %10, %0, %cst_9 {dimension_numbers = #tpu.dot_dimension_numbers<[1], [0], [0], [1], [0, 0, 1, 1], [], []>} : vector<64x256xf32>, vector<256x2xf32>, vector<64x2xf32> -> vector<64x2xf32>
    %c192 = arith.constant 192 : index
    %c0_10 = arith.constant 0 : index
    %12 = vector.load %arg1[%c192, %c0_10] : memref<576x256xbf16, #tpu.memory_space<vmem>>, vector<64x256xbf16>
    %13 = arith.extf %12 : vector<64x256xbf16> to vector<64x256xf32>
    %cst_11 = arith.constant dense<0.000000e+00> : vector<64x2xf32>
    %14 = tpu.matmul %13, %0, %cst_11 {dimension_numbers = #tpu.dot_dimension_numbers<[1], [0], [0], [1], [0, 0, 1, 1], [], []>} : vector<64x256xf32>, vector<256x2xf32>, vector<64x2xf32> -> vector<64x2xf32>
    %c256_12 = arith.constant 256 : index
    %c0_13 = arith.constant 0 : index
    %15 = vector.load %arg1[%c256_12, %c0_13] : memref<576x256xbf16, #tpu.memory_space<vmem>>, vector<64x256xbf16>
    %16 = arith.extf %15 : vector<64x256xbf16> to vector<64x256xf32>
    %cst_14 = arith.constant dense<0.000000e+00> : vector<64x2xf32>
    %17 = tpu.matmul %16, %0, %cst_14 {dimension_numbers = #tpu.dot_dimension_numbers<[1], [0], [0], [1], [0, 0, 1, 1], [], []>} : vector<64x256xf32>, vector<256x2xf32>, vector<64x2xf32> -> vector<64x2xf32>
    %c320 = arith.constant 320 : index
    %c0_15 = arith.constant 0 : index
    %18 = vector.load %arg1[%c320, %c0_15] : memref<576x256xbf16, #tpu.memory_space<vmem>>, vector<64x256xbf16>
    %19 = arith.extf %18 : vector<64x256xbf16> to vector<64x256xf32>
    %cst_16 = arith.constant dense<0.000000e+00> : vector<64x2xf32>
    %20 = tpu.matmul %19, %0, %cst_16 {dimension_numbers = #tpu.dot_dimension_numbers<[1], [0], [0], [1], [0, 0, 1, 1], [], []>} : vector<64x256xf32>, vector<256x2xf32>, vector<64x2xf32> -> vector<64x2xf32>
    %c384 = arith.constant 384 : index
    %c0_17 = arith.constant 0 : index
    %21 = vector.load %arg1[%c384, %c0_17] : memref<576x256xbf16, #tpu.memory_space<vmem>>, vector<64x256xbf16>
    %22 = arith.extf %21 : vector<64x256xbf16> to vector<64x256xf32>
    %cst_18 = arith.constant dense<0.000000e+00> : vector<64x2xf32>
    %23 = tpu.matmul %22, %0, %cst_18 {dimension_numbers = #tpu.dot_dimension_numbers<[1], [0], [0], [1], [0, 0, 1, 1], [], []>} : vector<64x256xf32>, vector<256x2xf32>, vector<64x2xf32> -> vector<64x2xf32>
    %c448 = arith.constant 448 : index
    %c0_19 = arith.constant 0 : index
    %24 = vector.load %arg1[%c448, %c0_19] : memref<576x256xbf16, #tpu.memory_space<vmem>>, vector<64x256xbf16>
    %25 = arith.extf %24 : vector<64x256xbf16> to vector<64x256xf32>
    %cst_20 = arith.constant dense<0.000000e+00> : vector<64x2xf32>
    %26 = tpu.matmul %25, %0, %cst_20 {dimension_numbers = #tpu.dot_dimension_numbers<[1], [0], [0], [1], [0, 0, 1, 1], [], []>} : vector<64x256xf32>, vector<256x2xf32>, vector<64x2xf32> -> vector<64x2xf32>
    %c512 = arith.constant 512 : index
    %c0_21 = arith.constant 0 : index
    %27 = vector.load %arg1[%c512, %c0_21] : memref<576x256xbf16, #tpu.memory_space<vmem>>, vector<64x256xbf16>
    %28 = arith.extf %27 : vector<64x256xbf16> to vector<64x256xf32>
    %cst_22 = arith.constant dense<0.000000e+00> : vector<64x2xf32>
    %29 = tpu.matmul %28, %0, %cst_22 {dimension_numbers = #tpu.dot_dimension_numbers<[1], [0], [0], [1], [0, 0, 1, 1], [], []>} : vector<64x256xf32>, vector<256x2xf32>, vector<64x2xf32> -> vector<64x2xf32>
    %30 = tpu.concatenate %5, %8, %11, %14, %17, %20, %23, %26, %29 in 1 : vector<64x2xf32>, vector<64x2xf32>, vector<64x2xf32>, vector<64x2xf32>, vector<64x2xf32>, vector<64x2xf32>, vector<64x2xf32>, vector<64x2xf32>, vector<64x2xf32> -> vector<64x18xf32>
    %cst_23 = arith.constant dense<0.000000e+00> : vector<64x8xf32>
    %31 = tpu.matmul %30, %2, %cst_23 {dimension_numbers = #tpu.dot_dimension_numbers<[1], [0], [0], [1], [0, 0, 1, 1], [], []>} : vector<64x18xf32>, vector<18x8xf32>, vector<64x8xf32> -> vector<64x8xf32>
    %c0_24 = arith.constant 0 : index
    %c0_25 = arith.constant 0 : index
    %32 = vector.load %arg1[%c0_24, %c0_25] : memref<576x256xbf16, #tpu.memory_space<vmem>>, vector<64x256xbf16>
    %33 = arith.extf %32 : vector<64x256xbf16> to vector<64x256xf32>
    %cst_26 = arith.constant dense<0.000000e+00> : vector<64x2xf32>
    %34 = tpu.matmul %33, %1, %cst_26 {dimension_numbers = #tpu.dot_dimension_numbers<[1], [0], [0], [1], [0, 0, 1, 1], [], []>} : vector<64x256xf32>, vector<256x2xf32>, vector<64x2xf32> -> vector<64x2xf32>
    %c64_27 = arith.constant 64 : index
    %c0_28 = arith.constant 0 : index
    %35 = vector.load %arg1[%c64_27, %c0_28] : memref<576x256xbf16, #tpu.memory_space<vmem>>, vector<64x256xbf16>
    %36 = arith.extf %35 : vector<64x256xbf16> to vector<64x256xf32>
    %cst_29 = arith.constant dense<0.000000e+00> : vector<64x2xf32>
    %37 = tpu.matmul %36, %1, %cst_29 {dimension_numbers = #tpu.dot_dimension_numbers<[1], [0], [0], [1], [0, 0, 1, 1], [], []>} : vector<64x256xf32>, vector<256x2xf32>, vector<64x2xf32> -> vector<64x2xf32>
    %c128_30 = arith.constant 128 : index
    %c0_31 = arith.constant 0 : index
    %38 = vector.load %arg1[%c128_30, %c0_31] : memref<576x256xbf16, #tpu.memory_space<vmem>>, vector<64x256xbf16>
    %39 = arith.extf %38 : vector<64x256xbf16> to vector<64x256xf32>
    %cst_32 = arith.constant dense<0.000000e+00> : vector<64x2xf32>
    %40 = tpu.matmul %39, %1, %cst_32 {dimension_numbers = #tpu.dot_dimension_numbers<[1], [0], [0], [1], [0, 0, 1, 1], [], []>} : vector<64x256xf32>, vector<256x2xf32>, vector<64x2xf32> -> vector<64x2xf32>
    %c192_33 = arith.constant 192 : index
    %c0_34 = arith.constant 0 : index
    %41 = vector.load %arg1[%c192_33, %c0_34] : memref<576x256xbf16, #tpu.memory_space<vmem>>, vector<64x256xbf16>
    %42 = arith.extf %41 : vector<64x256xbf16> to vector<64x256xf32>
    %cst_35 = arith.constant dense<0.000000e+00> : vector<64x2xf32>
    %43 = tpu.matmul %42, %1, %cst_35 {dimension_numbers = #tpu.dot_dimension_numbers<[1], [0], [0], [1], [0, 0, 1, 1], [], []>} : vector<64x256xf32>, vector<256x2xf32>, vector<64x2xf32> -> vector<64x2xf32>
    %c256_36 = arith.constant 256 : index
    %c0_37 = arith.constant 0 : index
    %44 = vector.load %arg1[%c256_36, %c0_37] : memref<576x256xbf16, #tpu.memory_space<vmem>>, vector<64x256xbf16>
    %45 = arith.extf %44 : vector<64x256xbf16> to vector<64x256xf32>
    %cst_38 = arith.constant dense<0.000000e+00> : vector<64x2xf32>
    %46 = tpu.matmul %45, %1, %cst_38 {dimension_numbers = #tpu.dot_dimension_numbers<[1], [0], [0], [1], [0, 0, 1, 1], [], []>} : vector<64x256xf32>, vector<256x2xf32>, vector<64x2xf32> -> vector<64x2xf32>
    %c320_39 = arith.constant 320 : index
    %c0_40 = arith.constant 0 : index
    %47 = vector.load %arg1[%c320_39, %c0_40] : memref<576x256xbf16, #tpu.memory_space<vmem>>, vector<64x256xbf16>
    %48 = arith.extf %47 : vector<64x256xbf16> to vector<64x256xf32>
    %cst_41 = arith.constant dense<0.000000e+00> : vector<64x2xf32>
    %49 = tpu.matmul %48, %1, %cst_41 {dimension_numbers = #tpu.dot_dimension_numbers<[1], [0], [0], [1], [0, 0, 1, 1], [], []>} : vector<64x256xf32>, vector<256x2xf32>, vector<64x2xf32> -> vector<64x2xf32>
    %c384_42 = arith.constant 384 : index
    %c0_43 = arith.constant 0 : index
    %50 = vector.load %arg1[%c384_42, %c0_43] : memref<576x256xbf16, #tpu.memory_space<vmem>>, vector<64x256xbf16>
    %51 = arith.extf %50 : vector<64x256xbf16> to vector<64x256xf32>
    %cst_44 = arith.constant dense<0.000000e+00> : vector<64x2xf32>
    %52 = tpu.matmul %51, %1, %cst_44 {dimension_numbers = #tpu.dot_dimension_numbers<[1], [0], [0], [1], [0, 0, 1, 1], [], []>} : vector<64x256xf32>, vector<256x2xf32>, vector<64x2xf32> -> vector<64x2xf32>
    %c448_45 = arith.constant 448 : index
    %c0_46 = arith.constant 0 : index
    %53 = vector.load %arg1[%c448_45, %c0_46] : memref<576x256xbf16, #tpu.memory_space<vmem>>, vector<64x256xbf16>
    %54 = arith.extf %53 : vector<64x256xbf16> to vector<64x256xf32>
    %cst_47 = arith.constant dense<0.000000e+00> : vector<64x2xf32>
    %55 = tpu.matmul %54, %1, %cst_47 {dimension_numbers = #tpu.dot_dimension_numbers<[1], [0], [0], [1], [0, 0, 1, 1], [], []>} : vector<64x256xf32>, vector<256x2xf32>, vector<64x2xf32> -> vector<64x2xf32>
    %c512_48 = arith.constant 512 : index
    %c0_49 = arith.constant 0 : index
    %56 = vector.load %arg1[%c512_48, %c0_49] : memref<576x256xbf16, #tpu.memory_space<vmem>>, vector<64x256xbf16>
    %57 = arith.extf %56 : vector<64x256xbf16> to vector<64x256xf32>
    %cst_50 = arith.constant dense<0.000000e+00> : vector<64x2xf32>
    %58 = tpu.matmul %57, %1, %cst_50 {dimension_numbers = #tpu.dot_dimension_numbers<[1], [0], [0], [1], [0, 0, 1, 1], [], []>} : vector<64x256xf32>, vector<256x2xf32>, vector<64x2xf32> -> vector<64x2xf32>
    %59 = tpu.concatenate %34, %37, %40, %43, %46, %49, %52, %55, %58 in 1 : vector<64x2xf32>, vector<64x2xf32>, vector<64x2xf32>, vector<64x2xf32>, vector<64x2xf32>, vector<64x2xf32>, vector<64x2xf32>, vector<64x2xf32>, vector<64x2xf32> -> vector<64x18xf32>
    %cst_51 = arith.constant dense<0.000000e+00> : vector<64x8xf32>
    %60 = tpu.matmul %59, %2, %cst_51 {dimension_numbers = #tpu.dot_dimension_numbers<[1], [0], [0], [1], [0, 0, 1, 1], [], []>} : vector<64x18xf32>, vector<18x8xf32>, vector<64x8xf32> -> vector<64x8xf32>
    %cst_52 = arith.constant 2.000000e-01 : f32
    %61 = vector.broadcast %cst_52 : f32 to vector<64x8xf32>
    %62 = arith.mulf %61, %31 : vector<64x8xf32>
    %63 = arith.maximumf %31, %62 : vector<64x8xf32>
    %cst_53 = arith.constant 2.000000e-01 : f32
    %64 = vector.broadcast %cst_53 : f32 to vector<64x8xf32>
    %65 = arith.mulf %64, %60 : vector<64x8xf32>
    %66 = arith.maximumf %60, %65 : vector<64x8xf32>
    %c0_54 = arith.constant 0 : index
    %c0_55 = arith.constant 0 : index
    %67 = vector.load %arg4[%c0_54, %c0_55] : memref<72x16xf32, #tpu.memory_space<vmem>>, vector<72x16xf32>
    %c0_56 = arith.constant 0 : index
    %c0_57 = arith.constant 0 : index
    %68 = vector.load %arg3[%c0_56, %c0_57] : memref<144x64xbf16, #tpu.memory_space<vmem>>, vector<16x64xbf16>
    %69 = arith.extf %68 : vector<16x64xbf16> to vector<16x64xf32>
    %cst_58 = arith.constant dense<0.000000e+00> : vector<16x8xf32>
    %70 = tpu.matmul %69, %63, %cst_58 {dimension_numbers = #tpu.dot_dimension_numbers<[1], [0], [0], [1], [0, 0, 1, 1], [], []>} : vector<16x64xf32>, vector<64x8xf32>, vector<16x8xf32> -> vector<16x8xf32>
    %c16 = arith.constant 16 : index
    %c0_59 = arith.constant 0 : index
    %71 = vector.load %arg3[%c16, %c0_59] : memref<144x64xbf16, #tpu.memory_space<vmem>>, vector<16x64xbf16>
    %72 = arith.extf %71 : vector<16x64xbf16> to vector<16x64xf32>
    %cst_60 = arith.constant dense<0.000000e+00> : vector<16x8xf32>
    %73 = tpu.matmul %72, %63, %cst_60 {dimension_numbers = #tpu.dot_dimension_numbers<[1], [0], [0], [1], [0, 0, 1, 1], [], []>} : vector<16x64xf32>, vector<64x8xf32>, vector<16x8xf32> -> vector<16x8xf32>
    %c32 = arith.constant 32 : index
    %c0_61 = arith.constant 0 : index
    %74 = vector.load %arg3[%c32, %c0_61] : memref<144x64xbf16, #tpu.memory_space<vmem>>, vector<16x64xbf16>
    %75 = arith.extf %74 : vector<16x64xbf16> to vector<16x64xf32>
    %cst_62 = arith.constant dense<0.000000e+00> : vector<16x8xf32>
    %76 = tpu.matmul %75, %63, %cst_62 {dimension_numbers = #tpu.dot_dimension_numbers<[1], [0], [0], [1], [0, 0, 1, 1], [], []>} : vector<16x64xf32>, vector<64x8xf32>, vector<16x8xf32> -> vector<16x8xf32>
    %c48 = arith.constant 48 : index
    %c0_63 = arith.constant 0 : index
    %77 = vector.load %arg3[%c48, %c0_63] : memref<144x64xbf16, #tpu.memory_space<vmem>>, vector<16x64xbf16>
    %78 = arith.extf %77 : vector<16x64xbf16> to vector<16x64xf32>
    %cst_64 = arith.constant dense<0.000000e+00> : vector<16x8xf32>
    %79 = tpu.matmul %78, %63, %cst_64 {dimension_numbers = #tpu.dot_dimension_numbers<[1], [0], [0], [1], [0, 0, 1, 1], [], []>} : vector<16x64xf32>, vector<64x8xf32>, vector<16x8xf32> -> vector<16x8xf32>
    %c64_65 = arith.constant 64 : index
    %c0_66 = arith.constant 0 : index
    %80 = vector.load %arg3[%c64_65, %c0_66] : memref<144x64xbf16, #tpu.memory_space<vmem>>, vector<16x64xbf16>
    %81 = arith.extf %80 : vector<16x64xbf16> to vector<16x64xf32>
    %cst_67 = arith.constant dense<0.000000e+00> : vector<16x8xf32>
    %82 = tpu.matmul %81, %63, %cst_67 {dimension_numbers = #tpu.dot_dimension_numbers<[1], [0], [0], [1], [0, 0, 1, 1], [], []>} : vector<16x64xf32>, vector<64x8xf32>, vector<16x8xf32> -> vector<16x8xf32>
    %c80 = arith.constant 80 : index
    %c0_68 = arith.constant 0 : index
    %83 = vector.load %arg3[%c80, %c0_68] : memref<144x64xbf16, #tpu.memory_space<vmem>>, vector<16x64xbf16>
    %84 = arith.extf %83 : vector<16x64xbf16> to vector<16x64xf32>
    %cst_69 = arith.constant dense<0.000000e+00> : vector<16x8xf32>
    %85 = tpu.matmul %84, %63, %cst_69 {dimension_numbers = #tpu.dot_dimension_numbers<[1], [0], [0], [1], [0, 0, 1, 1], [], []>} : vector<16x64xf32>, vector<64x8xf32>, vector<16x8xf32> -> vector<16x8xf32>
    %c96 = arith.constant 96 : index
    %c0_70 = arith.constant 0 : index
    %86 = vector.load %arg3[%c96, %c0_70] : memref<144x64xbf16, #tpu.memory_space<vmem>>, vector<16x64xbf16>
    %87 = arith.extf %86 : vector<16x64xbf16> to vector<16x64xf32>
    %cst_71 = arith.constant dense<0.000000e+00> : vector<16x8xf32>
    %88 = tpu.matmul %87, %63, %cst_71 {dimension_numbers = #tpu.dot_dimension_numbers<[1], [0], [0], [1], [0, 0, 1, 1], [], []>} : vector<16x64xf32>, vector<64x8xf32>, vector<16x8xf32> -> vector<16x8xf32>
    %c112 = arith.constant 112 : index
    %c0_72 = arith.constant 0 : index
    %89 = vector.load %arg3[%c112, %c0_72] : memref<144x64xbf16, #tpu.memory_space<vmem>>, vector<16x64xbf16>
    %90 = arith.extf %89 : vector<16x64xbf16> to vector<16x64xf32>
    %cst_73 = arith.constant dense<0.000000e+00> : vector<16x8xf32>
    %91 = tpu.matmul %90, %63, %cst_73 {dimension_numbers = #tpu.dot_dimension_numbers<[1], [0], [0], [1], [0, 0, 1, 1], [], []>} : vector<16x64xf32>, vector<64x8xf32>, vector<16x8xf32> -> vector<16x8xf32>
    %c128_74 = arith.constant 128 : index
    %c0_75 = arith.constant 0 : index
    %92 = vector.load %arg3[%c128_74, %c0_75] : memref<144x64xbf16, #tpu.memory_space<vmem>>, vector<16x64xbf16>
    %93 = arith.extf %92 : vector<16x64xbf16> to vector<16x64xf32>
    %cst_76 = arith.constant dense<0.000000e+00> : vector<16x8xf32>
    %94 = tpu.matmul %93, %63, %cst_76 {dimension_numbers = #tpu.dot_dimension_numbers<[1], [0], [0], [1], [0, 0, 1, 1], [], []>} : vector<16x64xf32>, vector<64x8xf32>, vector<16x8xf32> -> vector<16x8xf32>
    %95 = tpu.concatenate %70, %73, %76, %79, %82, %85, %88, %91, %94 in 1 : vector<16x8xf32>, vector<16x8xf32>, vector<16x8xf32>, vector<16x8xf32>, vector<16x8xf32>, vector<16x8xf32>, vector<16x8xf32>, vector<16x8xf32>, vector<16x8xf32> -> vector<16x72xf32>
    %cst_77 = arith.constant dense<0.000000e+00> : vector<16x16xf32>
    %96 = tpu.matmul %95, %67, %cst_77 {dimension_numbers = #tpu.dot_dimension_numbers<[1], [0], [0], [1], [0, 0, 1, 1], [], []>} : vector<16x72xf32>, vector<72x16xf32>, vector<16x16xf32> -> vector<16x16xf32>
    %c0_78 = arith.constant 0 : index
    %c0_79 = arith.constant 0 : index
    %97 = vector.load %arg3[%c0_78, %c0_79] : memref<144x64xbf16, #tpu.memory_space<vmem>>, vector<16x64xbf16>
    %98 = arith.extf %97 : vector<16x64xbf16> to vector<16x64xf32>
    %cst_80 = arith.constant dense<0.000000e+00> : vector<16x8xf32>
    %99 = tpu.matmul %98, %66, %cst_80 {dimension_numbers = #tpu.dot_dimension_numbers<[1], [0], [0], [1], [0, 0, 1, 1], [], []>} : vector<16x64xf32>, vector<64x8xf32>, vector<16x8xf32> -> vector<16x8xf32>
    %c16_81 = arith.constant 16 : index
    %c0_82 = arith.constant 0 : index
    %100 = vector.load %arg3[%c16_81, %c0_82] : memref<144x64xbf16, #tpu.memory_space<vmem>>, vector<16x64xbf16>
    %101 = arith.extf %100 : vector<16x64xbf16> to vector<16x64xf32>
    %cst_83 = arith.constant dense<0.000000e+00> : vector<16x8xf32>
    %102 = tpu.matmul %101, %66, %cst_83 {dimension_numbers = #tpu.dot_dimension_numbers<[1], [0], [0], [1], [0, 0, 1, 1], [], []>} : vector<16x64xf32>, vector<64x8xf32>, vector<16x8xf32> -> vector<16x8xf32>
    %c32_84 = arith.constant 32 : index
    %c0_85 = arith.constant 0 : index
    %103 = vector.load %arg3[%c32_84, %c0_85] : memref<144x64xbf16, #tpu.memory_space<vmem>>, vector<16x64xbf16>
    %104 = arith.extf %103 : vector<16x64xbf16> to vector<16x64xf32>
    %cst_86 = arith.constant dense<0.000000e+00> : vector<16x8xf32>
    %105 = tpu.matmul %104, %66, %cst_86 {dimension_numbers = #tpu.dot_dimension_numbers<[1], [0], [0], [1], [0, 0, 1, 1], [], []>} : vector<16x64xf32>, vector<64x8xf32>, vector<16x8xf32> -> vector<16x8xf32>
    %c48_87 = arith.constant 48 : index
    %c0_88 = arith.constant 0 : index
    %106 = vector.load %arg3[%c48_87, %c0_88] : memref<144x64xbf16, #tpu.memory_space<vmem>>, vector<16x64xbf16>
    %107 = arith.extf %106 : vector<16x64xbf16> to vector<16x64xf32>
    %cst_89 = arith.constant dense<0.000000e+00> : vector<16x8xf32>
    %108 = tpu.matmul %107, %66, %cst_89 {dimension_numbers = #tpu.dot_dimension_numbers<[1], [0], [0], [1], [0, 0, 1, 1], [], []>} : vector<16x64xf32>, vector<64x8xf32>, vector<16x8xf32> -> vector<16x8xf32>
    %c64_90 = arith.constant 64 : index
    %c0_91 = arith.constant 0 : index
    %109 = vector.load %arg3[%c64_90, %c0_91] : memref<144x64xbf16, #tpu.memory_space<vmem>>, vector<16x64xbf16>
    %110 = arith.extf %109 : vector<16x64xbf16> to vector<16x64xf32>
    %cst_92 = arith.constant dense<0.000000e+00> : vector<16x8xf32>
    %111 = tpu.matmul %110, %66, %cst_92 {dimension_numbers = #tpu.dot_dimension_numbers<[1], [0], [0], [1], [0, 0, 1, 1], [], []>} : vector<16x64xf32>, vector<64x8xf32>, vector<16x8xf32> -> vector<16x8xf32>
    %c80_93 = arith.constant 80 : index
    %c0_94 = arith.constant 0 : index
    %112 = vector.load %arg3[%c80_93, %c0_94] : memref<144x64xbf16, #tpu.memory_space<vmem>>, vector<16x64xbf16>
    %113 = arith.extf %112 : vector<16x64xbf16> to vector<16x64xf32>
    %cst_95 = arith.constant dense<0.000000e+00> : vector<16x8xf32>
    %114 = tpu.matmul %113, %66, %cst_95 {dimension_numbers = #tpu.dot_dimension_numbers<[1], [0], [0], [1], [0, 0, 1, 1], [], []>} : vector<16x64xf32>, vector<64x8xf32>, vector<16x8xf32> -> vector<16x8xf32>
    %c96_96 = arith.constant 96 : index
    %c0_97 = arith.constant 0 : index
    %115 = vector.load %arg3[%c96_96, %c0_97] : memref<144x64xbf16, #tpu.memory_space<vmem>>, vector<16x64xbf16>
    %116 = arith.extf %115 : vector<16x64xbf16> to vector<16x64xf32>
    %cst_98 = arith.constant dense<0.000000e+00> : vector<16x8xf32>
    %117 = tpu.matmul %116, %66, %cst_98 {dimension_numbers = #tpu.dot_dimension_numbers<[1], [0], [0], [1], [0, 0, 1, 1], [], []>} : vector<16x64xf32>, vector<64x8xf32>, vector<16x8xf32> -> vector<16x8xf32>
    %c112_99 = arith.constant 112 : index
    %c0_100 = arith.constant 0 : index
    %118 = vector.load %arg3[%c112_99, %c0_100] : memref<144x64xbf16, #tpu.memory_space<vmem>>, vector<16x64xbf16>
    %119 = arith.extf %118 : vector<16x64xbf16> to vector<16x64xf32>
    %cst_101 = arith.constant dense<0.000000e+00> : vector<16x8xf32>
    %120 = tpu.matmul %119, %66, %cst_101 {dimension_numbers = #tpu.dot_dimension_numbers<[1], [0], [0], [1], [0, 0, 1, 1], [], []>} : vector<16x64xf32>, vector<64x8xf32>, vector<16x8xf32> -> vector<16x8xf32>
    %c128_102 = arith.constant 128 : index
    %c0_103 = arith.constant 0 : index
    %121 = vector.load %arg3[%c128_102, %c0_103] : memref<144x64xbf16, #tpu.memory_space<vmem>>, vector<16x64xbf16>
    %122 = arith.extf %121 : vector<16x64xbf16> to vector<16x64xf32>
    %cst_104 = arith.constant dense<0.000000e+00> : vector<16x8xf32>
    %123 = tpu.matmul %122, %66, %cst_104 {dimension_numbers = #tpu.dot_dimension_numbers<[1], [0], [0], [1], [0, 0, 1, 1], [], []>} : vector<16x64xf32>, vector<64x8xf32>, vector<16x8xf32> -> vector<16x8xf32>
    %124 = tpu.concatenate %99, %102, %105, %108, %111, %114, %117, %120, %123 in 1 : vector<16x8xf32>, vector<16x8xf32>, vector<16x8xf32>, vector<16x8xf32>, vector<16x8xf32>, vector<16x8xf32>, vector<16x8xf32>, vector<16x8xf32>, vector<16x8xf32> -> vector<16x72xf32>
    %cst_105 = arith.constant dense<0.000000e+00> : vector<16x16xf32>
    %125 = tpu.matmul %124, %67, %cst_105 {dimension_numbers = #tpu.dot_dimension_numbers<[1], [0], [0], [1], [0, 0, 1, 1], [], []>} : vector<16x72xf32>, vector<72x16xf32>, vector<16x16xf32> -> vector<16x16xf32>
    %cst_106 = arith.constant dense<0.000000e+00> : vector<16xf32>
    %126 = vector.multi_reduction <add>, %96, %cst_106 [0] : vector<16x16xf32> to vector<16xf32>
    %127 = vector.shape_cast %126 : vector<16xf32> to vector<1x16xf32>
    %128 = arith.mulf %96, %96 : vector<16x16xf32>
    %cst_107 = arith.constant dense<0.000000e+00> : vector<16xf32>
    %129 = vector.multi_reduction <add>, %128, %cst_107 [0] : vector<16x16xf32> to vector<16xf32>
    %130 = vector.shape_cast %129 : vector<16xf32> to vector<1x16xf32>
    %cst_108 = arith.constant dense<0.000000e+00> : vector<16xf32>
    %131 = vector.multi_reduction <add>, %125, %cst_108 [0] : vector<16x16xf32> to vector<16xf32>
    %132 = vector.shape_cast %131 : vector<16xf32> to vector<1x16xf32>
    %133 = arith.addf %127, %132 : vector<1x16xf32>
    %134 = arith.mulf %125, %125 : vector<16x16xf32>
    %cst_109 = arith.constant dense<0.000000e+00> : vector<16xf32>
    %135 = vector.multi_reduction <add>, %134, %cst_109 [0] : vector<16x16xf32> to vector<16xf32>
    %136 = vector.shape_cast %135 : vector<16xf32> to vector<1x16xf32>
    %137 = arith.addf %130, %136 : vector<1x16xf32>
    %cst_110 = arith.constant 3.125000e-02 : f32
    %138 = vector.broadcast %cst_110 : f32 to vector<1x16xf32>
    %139 = arith.mulf %133, %138 : vector<1x16xf32>
    %cst_111 = arith.constant 3.125000e-02 : f32
    %140 = vector.broadcast %cst_111 : f32 to vector<1x16xf32>
    %141 = arith.mulf %137, %140 : vector<1x16xf32>
    %142 = arith.mulf %139, %139 : vector<1x16xf32>
    %143 = arith.subf %141, %142 : vector<1x16xf32>
    %cst_112 = arith.constant 0.000000e+00 : f32
    %144 = vector.broadcast %cst_112 : f32 to vector<1x16xf32>
    %145 = arith.maximumf %143, %144 : vector<1x16xf32>
    %c0_113 = arith.constant 0 : index
    %c0_114 = arith.constant 0 : index
    %146 = vector.load %arg5[%c0_113, %c0_114] : memref<1x16xf32, #tpu.memory_space<vmem>>, vector<1x16xf32>
    %cst_115 = arith.constant 9.99999974E-6 : f32
    %147 = vector.broadcast %cst_115 : f32 to vector<1x16xf32>
    %148 = arith.addf %145, %147 : vector<1x16xf32>
    %149 = math.rsqrt %148 : vector<1x16xf32>
    %150 = arith.mulf %146, %149 : vector<1x16xf32>
    %c0_116 = arith.constant 0 : index
    %c0_117 = arith.constant 0 : index
    %151 = vector.load %arg6[%c0_116, %c0_117] : memref<1x16xf32, #tpu.memory_space<vmem>>, vector<1x16xf32>
    %152 = arith.mulf %139, %150 : vector<1x16xf32>
    %153 = arith.subf %151, %152 : vector<1x16xf32>
    %154 = vector.broadcast %150 : vector<1x16xf32> to vector<16x16xf32>
    %155 = arith.mulf %96, %154 : vector<16x16xf32>
    %156 = vector.broadcast %153 : vector<1x16xf32> to vector<16x16xf32>
    %157 = arith.addf %155, %156 : vector<16x16xf32>
    %cst_118 = arith.constant 2.000000e-01 : f32
    %158 = vector.broadcast %cst_118 : f32 to vector<16x16xf32>
    %159 = arith.mulf %158, %157 : vector<16x16xf32>
    %160 = arith.maximumf %157, %159 : vector<16x16xf32>
    %161 = vector.broadcast %150 : vector<1x16xf32> to vector<16x16xf32>
    %162 = arith.mulf %125, %161 : vector<16x16xf32>
    %163 = vector.broadcast %153 : vector<1x16xf32> to vector<16x16xf32>
    %164 = arith.addf %162, %163 : vector<16x16xf32>
    %cst_119 = arith.constant 2.000000e-01 : f32
    %165 = vector.broadcast %cst_119 : f32 to vector<16x16xf32>
    %166 = arith.mulf %165, %164 : vector<16x16xf32>
    %167 = arith.maximumf %164, %166 : vector<16x16xf32>
    %c0_120 = arith.constant 0 : index
    %c0_121 = arith.constant 0 : index
    %168 = vector.load %arg8[%c0_120, %c0_121] : memref<144x32xf32, #tpu.memory_space<vmem>>, vector<144x32xf32>
    %c0_122 = arith.constant 0 : index
    %c0_123 = arith.constant 0 : index
    %169 = vector.load %arg7[%c0_122, %c0_123] : memref<144x16xbf16, #tpu.memory_space<vmem>>, vector<16x16xbf16>
    %170 = arith.extf %169 : vector<16x16xbf16> to vector<16x16xf32>
    %cst_124 = arith.constant dense<0.000000e+00> : vector<16x16xf32>
    %171 = tpu.matmul %170, %160, %cst_124 {dimension_numbers = #tpu.dot_dimension_numbers<[1], [0], [0], [1], [0, 0, 1, 1], [], []>} : vector<16x16xf32>, vector<16x16xf32>, vector<16x16xf32> -> vector<16x16xf32>
    %c16_125 = arith.constant 16 : index
    %c0_126 = arith.constant 0 : index
    %172 = vector.load %arg7[%c16_125, %c0_126] : memref<144x16xbf16, #tpu.memory_space<vmem>>, vector<16x16xbf16>
    %173 = arith.extf %172 : vector<16x16xbf16> to vector<16x16xf32>
    %cst_127 = arith.constant dense<0.000000e+00> : vector<16x16xf32>
    %174 = tpu.matmul %173, %160, %cst_127 {dimension_numbers = #tpu.dot_dimension_numbers<[1], [0], [0], [1], [0, 0, 1, 1], [], []>} : vector<16x16xf32>, vector<16x16xf32>, vector<16x16xf32> -> vector<16x16xf32>
    %c32_128 = arith.constant 32 : index
    %c0_129 = arith.constant 0 : index
    %175 = vector.load %arg7[%c32_128, %c0_129] : memref<144x16xbf16, #tpu.memory_space<vmem>>, vector<16x16xbf16>
    %176 = arith.extf %175 : vector<16x16xbf16> to vector<16x16xf32>
    %cst_130 = arith.constant dense<0.000000e+00> : vector<16x16xf32>
    %177 = tpu.matmul %176, %160, %cst_130 {dimension_numbers = #tpu.dot_dimension_numbers<[1], [0], [0], [1], [0, 0, 1, 1], [], []>} : vector<16x16xf32>, vector<16x16xf32>, vector<16x16xf32> -> vector<16x16xf32>
    %c48_131 = arith.constant 48 : index
    %c0_132 = arith.constant 0 : index
    %178 = vector.load %arg7[%c48_131, %c0_132] : memref<144x16xbf16, #tpu.memory_space<vmem>>, vector<16x16xbf16>
    %179 = arith.extf %178 : vector<16x16xbf16> to vector<16x16xf32>
    %cst_133 = arith.constant dense<0.000000e+00> : vector<16x16xf32>
    %180 = tpu.matmul %179, %160, %cst_133 {dimension_numbers = #tpu.dot_dimension_numbers<[1], [0], [0], [1], [0, 0, 1, 1], [], []>} : vector<16x16xf32>, vector<16x16xf32>, vector<16x16xf32> -> vector<16x16xf32>
    %c64_134 = arith.constant 64 : index
    %c0_135 = arith.constant 0 : index
    %181 = vector.load %arg7[%c64_134, %c0_135] : memref<144x16xbf16, #tpu.memory_space<vmem>>, vector<16x16xbf16>
    %182 = arith.extf %181 : vector<16x16xbf16> to vector<16x16xf32>
    %cst_136 = arith.constant dense<0.000000e+00> : vector<16x16xf32>
    %183 = tpu.matmul %182, %160, %cst_136 {dimension_numbers = #tpu.dot_dimension_numbers<[1], [0], [0], [1], [0, 0, 1, 1], [], []>} : vector<16x16xf32>, vector<16x16xf32>, vector<16x16xf32> -> vector<16x16xf32>
    %c80_137 = arith.constant 80 : index
    %c0_138 = arith.constant 0 : index
    %184 = vector.load %arg7[%c80_137, %c0_138] : memref<144x16xbf16, #tpu.memory_space<vmem>>, vector<16x16xbf16>
    %185 = arith.extf %184 : vector<16x16xbf16> to vector<16x16xf32>
    %cst_139 = arith.constant dense<0.000000e+00> : vector<16x16xf32>
    %186 = tpu.matmul %185, %160, %cst_139 {dimension_numbers = #tpu.dot_dimension_numbers<[1], [0], [0], [1], [0, 0, 1, 1], [], []>} : vector<16x16xf32>, vector<16x16xf32>, vector<16x16xf32> -> vector<16x16xf32>
    %c96_140 = arith.constant 96 : index
    %c0_141 = arith.constant 0 : index
    %187 = vector.load %arg7[%c96_140, %c0_141] : memref<144x16xbf16, #tpu.memory_space<vmem>>, vector<16x16xbf16>
    %188 = arith.extf %187 : vector<16x16xbf16> to vector<16x16xf32>
    %cst_142 = arith.constant dense<0.000000e+00> : vector<16x16xf32>
    %189 = tpu.matmul %188, %160, %cst_142 {dimension_numbers = #tpu.dot_dimension_numbers<[1], [0], [0], [1], [0, 0, 1, 1], [], []>} : vector<16x16xf32>, vector<16x16xf32>, vector<16x16xf32> -> vector<16x16xf32>
    %c112_143 = arith.constant 112 : index
    %c0_144 = arith.constant 0 : index
    %190 = vector.load %arg7[%c112_143, %c0_144] : memref<144x16xbf16, #tpu.memory_space<vmem>>, vector<16x16xbf16>
    %191 = arith.extf %190 : vector<16x16xbf16> to vector<16x16xf32>
    %cst_145 = arith.constant dense<0.000000e+00> : vector<16x16xf32>
    %192 = tpu.matmul %191, %160, %cst_145 {dimension_numbers = #tpu.dot_dimension_numbers<[1], [0], [0], [1], [0, 0, 1, 1], [], []>} : vector<16x16xf32>, vector<16x16xf32>, vector<16x16xf32> -> vector<16x16xf32>
    %c128_146 = arith.constant 128 : index
    %c0_147 = arith.constant 0 : index
    %193 = vector.load %arg7[%c128_146, %c0_147] : memref<144x16xbf16, #tpu.memory_space<vmem>>, vector<16x16xbf16>
    %194 = arith.extf %193 : vector<16x16xbf16> to vector<16x16xf32>
    %cst_148 = arith.constant dense<0.000000e+00> : vector<16x16xf32>
    %195 = tpu.matmul %194, %160, %cst_148 {dimension_numbers = #tpu.dot_dimension_numbers<[1], [0], [0], [1], [0, 0, 1, 1], [], []>} : vector<16x16xf32>, vector<16x16xf32>, vector<16x16xf32> -> vector<16x16xf32>
    %196 = tpu.concatenate %171, %174, %177, %180, %183, %186, %189, %192, %195 in 1 : vector<16x16xf32>, vector<16x16xf32>, vector<16x16xf32>, vector<16x16xf32>, vector<16x16xf32>, vector<16x16xf32>, vector<16x16xf32>, vector<16x16xf32>, vector<16x16xf32> -> vector<16x144xf32>
    %cst_149 = arith.constant dense<0.000000e+00> : vector<16x32xf32>
    %197 = tpu.matmul %196, %168, %cst_149 {dimension_numbers = #tpu.dot_dimension_numbers<[1], [0], [0], [1], [0, 0, 1, 1], [], []>} : vector<16x144xf32>, vector<144x32xf32>, vector<16x32xf32> -> vector<16x32xf32>
    %c0_150 = arith.constant 0 : index
    %c0_151 = arith.constant 0 : index
    %198 = vector.load %arg7[%c0_150, %c0_151] : memref<144x16xbf16, #tpu.memory_space<vmem>>, vector<16x16xbf16>
    %199 = arith.extf %198 : vector<16x16xbf16> to vector<16x16xf32>
    %cst_152 = arith.constant dense<0.000000e+00> : vector<16x16xf32>
    %200 = tpu.matmul %199, %167, %cst_152 {dimension_numbers = #tpu.dot_dimension_numbers<[1], [0], [0], [1], [0, 0, 1, 1], [], []>} : vector<16x16xf32>, vector<16x16xf32>, vector<16x16xf32> -> vector<16x16xf32>
    %c16_153 = arith.constant 16 : index
    %c0_154 = arith.constant 0 : index
    %201 = vector.load %arg7[%c16_153, %c0_154] : memref<144x16xbf16, #tpu.memory_space<vmem>>, vector<16x16xbf16>
    %202 = arith.extf %201 : vector<16x16xbf16> to vector<16x16xf32>
    %cst_155 = arith.constant dense<0.000000e+00> : vector<16x16xf32>
    %203 = tpu.matmul %202, %167, %cst_155 {dimension_numbers = #tpu.dot_dimension_numbers<[1], [0], [0], [1], [0, 0, 1, 1], [], []>} : vector<16x16xf32>, vector<16x16xf32>, vector<16x16xf32> -> vector<16x16xf32>
    %c32_156 = arith.constant 32 : index
    %c0_157 = arith.constant 0 : index
    %204 = vector.load %arg7[%c32_156, %c0_157] : memref<144x16xbf16, #tpu.memory_space<vmem>>, vector<16x16xbf16>
    %205 = arith.extf %204 : vector<16x16xbf16> to vector<16x16xf32>
    %cst_158 = arith.constant dense<0.000000e+00> : vector<16x16xf32>
    %206 = tpu.matmul %205, %167, %cst_158 {dimension_numbers = #tpu.dot_dimension_numbers<[1], [0], [0], [1], [0, 0, 1, 1], [], []>} : vector<16x16xf32>, vector<16x16xf32>, vector<16x16xf32> -> vector<16x16xf32>
    %c48_159 = arith.constant 48 : index
    %c0_160 = arith.constant 0 : index
    %207 = vector.load %arg7[%c48_159, %c0_160] : memref<144x16xbf16, #tpu.memory_space<vmem>>, vector<16x16xbf16>
    %208 = arith.extf %207 : vector<16x16xbf16> to vector<16x16xf32>
    %cst_161 = arith.constant dense<0.000000e+00> : vector<16x16xf32>
    %209 = tpu.matmul %208, %167, %cst_161 {dimension_numbers = #tpu.dot_dimension_numbers<[1], [0], [0], [1], [0, 0, 1, 1], [], []>} : vector<16x16xf32>, vector<16x16xf32>, vector<16x16xf32> -> vector<16x16xf32>
    %c64_162 = arith.constant 64 : index
    %c0_163 = arith.constant 0 : index
    %210 = vector.load %arg7[%c64_162, %c0_163] : memref<144x16xbf16, #tpu.memory_space<vmem>>, vector<16x16xbf16>
    %211 = arith.extf %210 : vector<16x16xbf16> to vector<16x16xf32>
    %cst_164 = arith.constant dense<0.000000e+00> : vector<16x16xf32>
    %212 = tpu.matmul %211, %167, %cst_164 {dimension_numbers = #tpu.dot_dimension_numbers<[1], [0], [0], [1], [0, 0, 1, 1], [], []>} : vector<16x16xf32>, vector<16x16xf32>, vector<16x16xf32> -> vector<16x16xf32>
    %c80_165 = arith.constant 80 : index
    %c0_166 = arith.constant 0 : index
    %213 = vector.load %arg7[%c80_165, %c0_166] : memref<144x16xbf16, #tpu.memory_space<vmem>>, vector<16x16xbf16>
    %214 = arith.extf %213 : vector<16x16xbf16> to vector<16x16xf32>
    %cst_167 = arith.constant dense<0.000000e+00> : vector<16x16xf32>
    %215 = tpu.matmul %214, %167, %cst_167 {dimension_numbers = #tpu.dot_dimension_numbers<[1], [0], [0], [1], [0, 0, 1, 1], [], []>} : vector<16x16xf32>, vector<16x16xf32>, vector<16x16xf32> -> vector<16x16xf32>
    %c96_168 = arith.constant 96 : index
    %c0_169 = arith.constant 0 : index
    %216 = vector.load %arg7[%c96_168, %c0_169] : memref<144x16xbf16, #tpu.memory_space<vmem>>, vector<16x16xbf16>
    %217 = arith.extf %216 : vector<16x16xbf16> to vector<16x16xf32>
    %cst_170 = arith.constant dense<0.000000e+00> : vector<16x16xf32>
    %218 = tpu.matmul %217, %167, %cst_170 {dimension_numbers = #tpu.dot_dimension_numbers<[1], [0], [0], [1], [0, 0, 1, 1], [], []>} : vector<16x16xf32>, vector<16x16xf32>, vector<16x16xf32> -> vector<16x16xf32>
    %c112_171 = arith.constant 112 : index
    %c0_172 = arith.constant 0 : index
    %219 = vector.load %arg7[%c112_171, %c0_172] : memref<144x16xbf16, #tpu.memory_space<vmem>>, vector<16x16xbf16>
    %220 = arith.extf %219 : vector<16x16xbf16> to vector<16x16xf32>
    %cst_173 = arith.constant dense<0.000000e+00> : vector<16x16xf32>
    %221 = tpu.matmul %220, %167, %cst_173 {dimension_numbers = #tpu.dot_dimension_numbers<[1], [0], [0], [1], [0, 0, 1, 1], [], []>} : vector<16x16xf32>, vector<16x16xf32>, vector<16x16xf32> -> vector<16x16xf32>
    %c128_174 = arith.constant 128 : index
    %c0_175 = arith.constant 0 : index
    %222 = vector.load %arg7[%c128_174, %c0_175] : memref<144x16xbf16, #tpu.memory_space<vmem>>, vector<16x16xbf16>
    %223 = arith.extf %222 : vector<16x16xbf16> to vector<16x16xf32>
    %cst_176 = arith.constant dense<0.000000e+00> : vector<16x16xf32>
    %224 = tpu.matmul %223, %167, %cst_176 {dimension_numbers = #tpu.dot_dimension_numbers<[1], [0], [0], [1], [0, 0, 1, 1], [], []>} : vector<16x16xf32>, vector<16x16xf32>, vector<16x16xf32> -> vector<16x16xf32>
    %225 = tpu.concatenate %200, %203, %206, %209, %212, %215, %218, %221, %224 in 1 : vector<16x16xf32>, vector<16x16xf32>, vector<16x16xf32>, vector<16x16xf32>, vector<16x16xf32>, vector<16x16xf32>, vector<16x16xf32>, vector<16x16xf32>, vector<16x16xf32> -> vector<16x144xf32>
    %cst_177 = arith.constant dense<0.000000e+00> : vector<16x32xf32>
    %226 = tpu.matmul %225, %168, %cst_177 {dimension_numbers = #tpu.dot_dimension_numbers<[1], [0], [0], [1], [0, 0, 1, 1], [], []>} : vector<16x144xf32>, vector<144x32xf32>, vector<16x32xf32> -> vector<16x32xf32>
    %cst_178 = arith.constant dense<0.000000e+00> : vector<32xf32>
    %227 = vector.multi_reduction <add>, %197, %cst_178 [0] : vector<16x32xf32> to vector<32xf32>
    %228 = vector.shape_cast %227 : vector<32xf32> to vector<1x32xf32>
    %229 = arith.mulf %197, %197 : vector<16x32xf32>
    %cst_179 = arith.constant dense<0.000000e+00> : vector<32xf32>
    %230 = vector.multi_reduction <add>, %229, %cst_179 [0] : vector<16x32xf32> to vector<32xf32>
    %231 = vector.shape_cast %230 : vector<32xf32> to vector<1x32xf32>
    %cst_180 = arith.constant dense<0.000000e+00> : vector<32xf32>
    %232 = vector.multi_reduction <add>, %226, %cst_180 [0] : vector<16x32xf32> to vector<32xf32>
    %233 = vector.shape_cast %232 : vector<32xf32> to vector<1x32xf32>
    %234 = arith.addf %228, %233 : vector<1x32xf32>
    %235 = arith.mulf %226, %226 : vector<16x32xf32>
    %cst_181 = arith.constant dense<0.000000e+00> : vector<32xf32>
    %236 = vector.multi_reduction <add>, %235, %cst_181 [0] : vector<16x32xf32> to vector<32xf32>
    %237 = vector.shape_cast %236 : vector<32xf32> to vector<1x32xf32>
    %238 = arith.addf %231, %237 : vector<1x32xf32>
    %cst_182 = arith.constant 1.250000e-01 : f32
    %239 = vector.broadcast %cst_182 : f32 to vector<1x32xf32>
    %240 = arith.mulf %234, %239 : vector<1x32xf32>
    %cst_183 = arith.constant 1.250000e-01 : f32
    %241 = vector.broadcast %cst_183 : f32 to vector<1x32xf32>
    %242 = arith.mulf %238, %241 : vector<1x32xf32>
    %243 = arith.mulf %240, %240 : vector<1x32xf32>
    %244 = arith.subf %242, %243 : vector<1x32xf32>
    %cst_184 = arith.constant 0.000000e+00 : f32
    %245 = vector.broadcast %cst_184 : f32 to vector<1x32xf32>
    %246 = arith.maximumf %244, %245 : vector<1x32xf32>
    %c0_185 = arith.constant 0 : index
    %c0_186 = arith.constant 0 : index
    %247 = vector.load %arg9[%c0_185, %c0_186] : memref<1x32xf32, #tpu.memory_space<vmem>>, vector<1x32xf32>
    %cst_187 = arith.constant 9.99999974E-6 : f32
    %248 = vector.broadcast %cst_187 : f32 to vector<1x32xf32>
    %249 = arith.addf %246, %248 : vector<1x32xf32>
    %250 = math.rsqrt %249 : vector<1x32xf32>
    %251 = arith.mulf %247, %250 : vector<1x32xf32>
    %c0_188 = arith.constant 0 : index
    %c0_189 = arith.constant 0 : index
    %252 = vector.load %arg10[%c0_188, %c0_189] : memref<1x32xf32, #tpu.memory_space<vmem>>, vector<1x32xf32>
    %253 = arith.mulf %240, %251 : vector<1x32xf32>
    %254 = arith.subf %252, %253 : vector<1x32xf32>
    %255 = vector.broadcast %251 : vector<1x32xf32> to vector<16x32xf32>
    %256 = arith.mulf %197, %255 : vector<16x32xf32>
    %257 = vector.broadcast %254 : vector<1x32xf32> to vector<16x32xf32>
    %258 = arith.addf %256, %257 : vector<16x32xf32>
    %cst_190 = arith.constant 2.000000e-01 : f32
    %259 = vector.broadcast %cst_190 : f32 to vector<16x32xf32>
    %260 = arith.mulf %259, %258 : vector<16x32xf32>
    %261 = arith.maximumf %258, %260 : vector<16x32xf32>
    %262 = vector.broadcast %251 : vector<1x32xf32> to vector<16x32xf32>
    %263 = arith.mulf %226, %262 : vector<16x32xf32>
    %264 = vector.broadcast %254 : vector<1x32xf32> to vector<16x32xf32>
    %265 = arith.addf %263, %264 : vector<16x32xf32>
    %cst_191 = arith.constant 2.000000e-01 : f32
    %266 = vector.broadcast %cst_191 : f32 to vector<16x32xf32>
    %267 = arith.mulf %266, %265 : vector<16x32xf32>
    %268 = arith.maximumf %265, %267 : vector<16x32xf32>
    %c0_192 = arith.constant 0 : index
    %c0_193 = arith.constant 0 : index
    %269 = vector.load %arg12[%c0_192, %c0_193] : memref<288x8xf32, #tpu.memory_space<vmem>>, vector<288x8xf32>
    %c0_194 = arith.constant 0 : index
    %c0_195 = arith.constant 0 : index
    %270 = vector.load %arg11[%c0_194, %c0_195] : memref<144x16xbf16, #tpu.memory_space<vmem>>, vector<16x16xbf16>
    %271 = arith.extf %270 : vector<16x16xbf16> to vector<16x16xf32>
    %cst_196 = arith.constant dense<0.000000e+00> : vector<16x32xf32>
    %272 = tpu.matmul %271, %261, %cst_196 {dimension_numbers = #tpu.dot_dimension_numbers<[1], [0], [0], [1], [0, 0, 1, 1], [], []>} : vector<16x16xf32>, vector<16x32xf32>, vector<16x32xf32> -> vector<16x32xf32>
    %c16_197 = arith.constant 16 : index
    %c0_198 = arith.constant 0 : index
    %273 = vector.load %arg11[%c16_197, %c0_198] : memref<144x16xbf16, #tpu.memory_space<vmem>>, vector<16x16xbf16>
    %274 = arith.extf %273 : vector<16x16xbf16> to vector<16x16xf32>
    %cst_199 = arith.constant dense<0.000000e+00> : vector<16x32xf32>
    %275 = tpu.matmul %274, %261, %cst_199 {dimension_numbers = #tpu.dot_dimension_numbers<[1], [0], [0], [1], [0, 0, 1, 1], [], []>} : vector<16x16xf32>, vector<16x32xf32>, vector<16x32xf32> -> vector<16x32xf32>
    %c32_200 = arith.constant 32 : index
    %c0_201 = arith.constant 0 : index
    %276 = vector.load %arg11[%c32_200, %c0_201] : memref<144x16xbf16, #tpu.memory_space<vmem>>, vector<16x16xbf16>
    %277 = arith.extf %276 : vector<16x16xbf16> to vector<16x16xf32>
    %cst_202 = arith.constant dense<0.000000e+00> : vector<16x32xf32>
    %278 = tpu.matmul %277, %261, %cst_202 {dimension_numbers = #tpu.dot_dimension_numbers<[1], [0], [0], [1], [0, 0, 1, 1], [], []>} : vector<16x16xf32>, vector<16x32xf32>, vector<16x32xf32> -> vector<16x32xf32>
    %c48_203 = arith.constant 48 : index
    %c0_204 = arith.constant 0 : index
    %279 = vector.load %arg11[%c48_203, %c0_204] : memref<144x16xbf16, #tpu.memory_space<vmem>>, vector<16x16xbf16>
    %280 = arith.extf %279 : vector<16x16xbf16> to vector<16x16xf32>
    %cst_205 = arith.constant dense<0.000000e+00> : vector<16x32xf32>
    %281 = tpu.matmul %280, %261, %cst_205 {dimension_numbers = #tpu.dot_dimension_numbers<[1], [0], [0], [1], [0, 0, 1, 1], [], []>} : vector<16x16xf32>, vector<16x32xf32>, vector<16x32xf32> -> vector<16x32xf32>
    %c64_206 = arith.constant 64 : index
    %c0_207 = arith.constant 0 : index
    %282 = vector.load %arg11[%c64_206, %c0_207] : memref<144x16xbf16, #tpu.memory_space<vmem>>, vector<16x16xbf16>
    %283 = arith.extf %282 : vector<16x16xbf16> to vector<16x16xf32>
    %cst_208 = arith.constant dense<0.000000e+00> : vector<16x32xf32>
    %284 = tpu.matmul %283, %261, %cst_208 {dimension_numbers = #tpu.dot_dimension_numbers<[1], [0], [0], [1], [0, 0, 1, 1], [], []>} : vector<16x16xf32>, vector<16x32xf32>, vector<16x32xf32> -> vector<16x32xf32>
    %c80_209 = arith.constant 80 : index
    %c0_210 = arith.constant 0 : index
    %285 = vector.load %arg11[%c80_209, %c0_210] : memref<144x16xbf16, #tpu.memory_space<vmem>>, vector<16x16xbf16>
    %286 = arith.extf %285 : vector<16x16xbf16> to vector<16x16xf32>
    %cst_211 = arith.constant dense<0.000000e+00> : vector<16x32xf32>
    %287 = tpu.matmul %286, %261, %cst_211 {dimension_numbers = #tpu.dot_dimension_numbers<[1], [0], [0], [1], [0, 0, 1, 1], [], []>} : vector<16x16xf32>, vector<16x32xf32>, vector<16x32xf32> -> vector<16x32xf32>
    %c96_212 = arith.constant 96 : index
    %c0_213 = arith.constant 0 : index
    %288 = vector.load %arg11[%c96_212, %c0_213] : memref<144x16xbf16, #tpu.memory_space<vmem>>, vector<16x16xbf16>
    %289 = arith.extf %288 : vector<16x16xbf16> to vector<16x16xf32>
    %cst_214 = arith.constant dense<0.000000e+00> : vector<16x32xf32>
    %290 = tpu.matmul %289, %261, %cst_214 {dimension_numbers = #tpu.dot_dimension_numbers<[1], [0], [0], [1], [0, 0, 1, 1], [], []>} : vector<16x16xf32>, vector<16x32xf32>, vector<16x32xf32> -> vector<16x32xf32>
    %c112_215 = arith.constant 112 : index
    %c0_216 = arith.constant 0 : index
    %291 = vector.load %arg11[%c112_215, %c0_216] : memref<144x16xbf16, #tpu.memory_space<vmem>>, vector<16x16xbf16>
    %292 = arith.extf %291 : vector<16x16xbf16> to vector<16x16xf32>
    %cst_217 = arith.constant dense<0.000000e+00> : vector<16x32xf32>
    %293 = tpu.matmul %292, %261, %cst_217 {dimension_numbers = #tpu.dot_dimension_numbers<[1], [0], [0], [1], [0, 0, 1, 1], [], []>} : vector<16x16xf32>, vector<16x32xf32>, vector<16x32xf32> -> vector<16x32xf32>
    %c128_218 = arith.constant 128 : index
    %c0_219 = arith.constant 0 : index
    %294 = vector.load %arg11[%c128_218, %c0_219] : memref<144x16xbf16, #tpu.memory_space<vmem>>, vector<16x16xbf16>
    %295 = arith.extf %294 : vector<16x16xbf16> to vector<16x16xf32>
    %cst_220 = arith.constant dense<0.000000e+00> : vector<16x32xf32>
    %296 = tpu.matmul %295, %261, %cst_220 {dimension_numbers = #tpu.dot_dimension_numbers<[1], [0], [0], [1], [0, 0, 1, 1], [], []>} : vector<16x16xf32>, vector<16x32xf32>, vector<16x32xf32> -> vector<16x32xf32>
    %297 = tpu.concatenate %272, %275, %278, %281, %284, %287, %290, %293, %296 in 1 : vector<16x32xf32>, vector<16x32xf32>, vector<16x32xf32>, vector<16x32xf32>, vector<16x32xf32>, vector<16x32xf32>, vector<16x32xf32>, vector<16x32xf32>, vector<16x32xf32> -> vector<16x288xf32>
    %cst_221 = arith.constant dense<0.000000e+00> : vector<16x8xf32>
    %298 = tpu.matmul %297, %269, %cst_221 {dimension_numbers = #tpu.dot_dimension_numbers<[1], [0], [0], [1], [0, 0, 1, 1], [], []>} : vector<16x288xf32>, vector<288x8xf32>, vector<16x8xf32> -> vector<16x8xf32>
    %c0_222 = arith.constant 0 : index
    %c0_223 = arith.constant 0 : index
    %299 = vector.load %arg11[%c0_222, %c0_223] : memref<144x16xbf16, #tpu.memory_space<vmem>>, vector<16x16xbf16>
    %300 = arith.extf %299 : vector<16x16xbf16> to vector<16x16xf32>
    %cst_224 = arith.constant dense<0.000000e+00> : vector<16x32xf32>
    %301 = tpu.matmul %300, %268, %cst_224 {dimension_numbers = #tpu.dot_dimension_numbers<[1], [0], [0], [1], [0, 0, 1, 1], [], []>} : vector<16x16xf32>, vector<16x32xf32>, vector<16x32xf32> -> vector<16x32xf32>
    %c16_225 = arith.constant 16 : index
    %c0_226 = arith.constant 0 : index
    %302 = vector.load %arg11[%c16_225, %c0_226] : memref<144x16xbf16, #tpu.memory_space<vmem>>, vector<16x16xbf16>
    %303 = arith.extf %302 : vector<16x16xbf16> to vector<16x16xf32>
    %cst_227 = arith.constant dense<0.000000e+00> : vector<16x32xf32>
    %304 = tpu.matmul %303, %268, %cst_227 {dimension_numbers = #tpu.dot_dimension_numbers<[1], [0], [0], [1], [0, 0, 1, 1], [], []>} : vector<16x16xf32>, vector<16x32xf32>, vector<16x32xf32> -> vector<16x32xf32>
    %c32_228 = arith.constant 32 : index
    %c0_229 = arith.constant 0 : index
    %305 = vector.load %arg11[%c32_228, %c0_229] : memref<144x16xbf16, #tpu.memory_space<vmem>>, vector<16x16xbf16>
    %306 = arith.extf %305 : vector<16x16xbf16> to vector<16x16xf32>
    %cst_230 = arith.constant dense<0.000000e+00> : vector<16x32xf32>
    %307 = tpu.matmul %306, %268, %cst_230 {dimension_numbers = #tpu.dot_dimension_numbers<[1], [0], [0], [1], [0, 0, 1, 1], [], []>} : vector<16x16xf32>, vector<16x32xf32>, vector<16x32xf32> -> vector<16x32xf32>
    %c48_231 = arith.constant 48 : index
    %c0_232 = arith.constant 0 : index
    %308 = vector.load %arg11[%c48_231, %c0_232] : memref<144x16xbf16, #tpu.memory_space<vmem>>, vector<16x16xbf16>
    %309 = arith.extf %308 : vector<16x16xbf16> to vector<16x16xf32>
    %cst_233 = arith.constant dense<0.000000e+00> : vector<16x32xf32>
    %310 = tpu.matmul %309, %268, %cst_233 {dimension_numbers = #tpu.dot_dimension_numbers<[1], [0], [0], [1], [0, 0, 1, 1], [], []>} : vector<16x16xf32>, vector<16x32xf32>, vector<16x32xf32> -> vector<16x32xf32>
    %c64_234 = arith.constant 64 : index
    %c0_235 = arith.constant 0 : index
    %311 = vector.load %arg11[%c64_234, %c0_235] : memref<144x16xbf16, #tpu.memory_space<vmem>>, vector<16x16xbf16>
    %312 = arith.extf %311 : vector<16x16xbf16> to vector<16x16xf32>
    %cst_236 = arith.constant dense<0.000000e+00> : vector<16x32xf32>
    %313 = tpu.matmul %312, %268, %cst_236 {dimension_numbers = #tpu.dot_dimension_numbers<[1], [0], [0], [1], [0, 0, 1, 1], [], []>} : vector<16x16xf32>, vector<16x32xf32>, vector<16x32xf32> -> vector<16x32xf32>
    %c80_237 = arith.constant 80 : index
    %c0_238 = arith.constant 0 : index
    %314 = vector.load %arg11[%c80_237, %c0_238] : memref<144x16xbf16, #tpu.memory_space<vmem>>, vector<16x16xbf16>
    %315 = arith.extf %314 : vector<16x16xbf16> to vector<16x16xf32>
    %cst_239 = arith.constant dense<0.000000e+00> : vector<16x32xf32>
    %316 = tpu.matmul %315, %268, %cst_239 {dimension_numbers = #tpu.dot_dimension_numbers<[1], [0], [0], [1], [0, 0, 1, 1], [], []>} : vector<16x16xf32>, vector<16x32xf32>, vector<16x32xf32> -> vector<16x32xf32>
    %c96_240 = arith.constant 96 : index
    %c0_241 = arith.constant 0 : index
    %317 = vector.load %arg11[%c96_240, %c0_241] : memref<144x16xbf16, #tpu.memory_space<vmem>>, vector<16x16xbf16>
    %318 = arith.extf %317 : vector<16x16xbf16> to vector<16x16xf32>
    %cst_242 = arith.constant dense<0.000000e+00> : vector<16x32xf32>
    %319 = tpu.matmul %318, %268, %cst_242 {dimension_numbers = #tpu.dot_dimension_numbers<[1], [0], [0], [1], [0, 0, 1, 1], [], []>} : vector<16x16xf32>, vector<16x32xf32>, vector<16x32xf32> -> vector<16x32xf32>
    %c112_243 = arith.constant 112 : index
    %c0_244 = arith.constant 0 : index
    %320 = vector.load %arg11[%c112_243, %c0_244] : memref<144x16xbf16, #tpu.memory_space<vmem>>, vector<16x16xbf16>
    %321 = arith.extf %320 : vector<16x16xbf16> to vector<16x16xf32>
    %cst_245 = arith.constant dense<0.000000e+00> : vector<16x32xf32>
    %322 = tpu.matmul %321, %268, %cst_245 {dimension_numbers = #tpu.dot_dimension_numbers<[1], [0], [0], [1], [0, 0, 1, 1], [], []>} : vector<16x16xf32>, vector<16x32xf32>, vector<16x32xf32> -> vector<16x32xf32>
    %c128_246 = arith.constant 128 : index
    %c0_247 = arith.constant 0 : index
    %323 = vector.load %arg11[%c128_246, %c0_247] : memref<144x16xbf16, #tpu.memory_space<vmem>>, vector<16x16xbf16>
    %324 = arith.extf %323 : vector<16x16xbf16> to vector<16x16xf32>
    %cst_248 = arith.constant dense<0.000000e+00> : vector<16x32xf32>
    %325 = tpu.matmul %324, %268, %cst_248 {dimension_numbers = #tpu.dot_dimension_numbers<[1], [0], [0], [1], [0, 0, 1, 1], [], []>} : vector<16x16xf32>, vector<16x32xf32>, vector<16x32xf32> -> vector<16x32xf32>
    %326 = tpu.concatenate %301, %304, %307, %310, %313, %316, %319, %322, %325 in 1 : vector<16x32xf32>, vector<16x32xf32>, vector<16x32xf32>, vector<16x32xf32>, vector<16x32xf32>, vector<16x32xf32>, vector<16x32xf32>, vector<16x32xf32>, vector<16x32xf32> -> vector<16x288xf32>
    %cst_249 = arith.constant dense<0.000000e+00> : vector<16x8xf32>
    %327 = tpu.matmul %326, %269, %cst_249 {dimension_numbers = #tpu.dot_dimension_numbers<[1], [0], [0], [1], [0, 0, 1, 1], [], []>} : vector<16x288xf32>, vector<288x8xf32>, vector<16x8xf32> -> vector<16x8xf32>
    %cst_250 = arith.constant dense<0.000000e+00> : vector<8xf32>
    %328 = vector.multi_reduction <add>, %298, %cst_250 [0] : vector<16x8xf32> to vector<8xf32>
    %329 = vector.shape_cast %328 : vector<8xf32> to vector<1x8xf32>
    %330 = arith.mulf %298, %298 : vector<16x8xf32>
    %cst_251 = arith.constant dense<0.000000e+00> : vector<8xf32>
    %331 = vector.multi_reduction <add>, %330, %cst_251 [0] : vector<16x8xf32> to vector<8xf32>
    %332 = vector.shape_cast %331 : vector<8xf32> to vector<1x8xf32>
    %cst_252 = arith.constant dense<0.000000e+00> : vector<8xf32>
    %333 = vector.multi_reduction <add>, %327, %cst_252 [0] : vector<16x8xf32> to vector<8xf32>
    %334 = vector.shape_cast %333 : vector<8xf32> to vector<1x8xf32>
    %335 = arith.addf %329, %334 : vector<1x8xf32>
    %336 = arith.mulf %327, %327 : vector<16x8xf32>
    %cst_253 = arith.constant dense<0.000000e+00> : vector<8xf32>
    %337 = vector.multi_reduction <add>, %336, %cst_253 [0] : vector<16x8xf32> to vector<8xf32>
    %338 = vector.shape_cast %337 : vector<8xf32> to vector<1x8xf32>
    %339 = arith.addf %332, %338 : vector<1x8xf32>
    %cst_254 = arith.constant 5.000000e-01 : f32
    %340 = vector.broadcast %cst_254 : f32 to vector<1x8xf32>
    %341 = arith.mulf %335, %340 : vector<1x8xf32>
    %cst_255 = arith.constant 5.000000e-01 : f32
    %342 = vector.broadcast %cst_255 : f32 to vector<1x8xf32>
    %343 = arith.mulf %339, %342 : vector<1x8xf32>
    %344 = arith.mulf %341, %341 : vector<1x8xf32>
    %345 = arith.subf %343, %344 : vector<1x8xf32>
    %cst_256 = arith.constant 0.000000e+00 : f32
    %346 = vector.broadcast %cst_256 : f32 to vector<1x8xf32>
    %347 = arith.maximumf %345, %346 : vector<1x8xf32>
    %c0_257 = arith.constant 0 : index
    %c0_258 = arith.constant 0 : index
    %348 = vector.load %arg13[%c0_257, %c0_258] : memref<1x8xf32, #tpu.memory_space<vmem>>, vector<1x8xf32>
    %cst_259 = arith.constant 9.99999974E-6 : f32
    %349 = vector.broadcast %cst_259 : f32 to vector<1x8xf32>
    %350 = arith.addf %347, %349 : vector<1x8xf32>
    %351 = math.rsqrt %350 : vector<1x8xf32>
    %352 = arith.mulf %348, %351 : vector<1x8xf32>
    %c0_260 = arith.constant 0 : index
    %c0_261 = arith.constant 0 : index
    %353 = vector.load %arg14[%c0_260, %c0_261] : memref<1x8xf32, #tpu.memory_space<vmem>>, vector<1x8xf32>
    %354 = arith.mulf %341, %352 : vector<1x8xf32>
    %355 = arith.subf %353, %354 : vector<1x8xf32>
    %356 = vector.broadcast %352 : vector<1x8xf32> to vector<16x8xf32>
    %357 = arith.mulf %298, %356 : vector<16x8xf32>
    %358 = vector.broadcast %355 : vector<1x8xf32> to vector<16x8xf32>
    %359 = arith.addf %357, %358 : vector<16x8xf32>
    %cst_262 = arith.constant 2.000000e-01 : f32
    %360 = vector.broadcast %cst_262 : f32 to vector<16x8xf32>
    %361 = arith.mulf %360, %359 : vector<16x8xf32>
    %362 = arith.maximumf %359, %361 : vector<16x8xf32>
    %363 = vector.broadcast %352 : vector<1x8xf32> to vector<16x8xf32>
    %364 = arith.mulf %327, %363 : vector<16x8xf32>
    %365 = vector.broadcast %355 : vector<1x8xf32> to vector<16x8xf32>
    %366 = arith.addf %364, %365 : vector<16x8xf32>
    %cst_263 = arith.constant 2.000000e-01 : f32
    %367 = vector.broadcast %cst_263 : f32 to vector<16x8xf32>
    %368 = arith.mulf %367, %366 : vector<16x8xf32>
    %369 = arith.maximumf %366, %368 : vector<16x8xf32>
    %c0_264 = arith.constant 0 : index
    %c0_265 = arith.constant 0 : index
    %370 = vector.load %arg16[%c0_264, %c0_265] : memref<72x1xf32, #tpu.memory_space<vmem>>, vector<72x1xf32>
    %c0_266 = arith.constant 0 : index
    %c0_267 = arith.constant 0 : index
    %371 = vector.load %arg15[%c0_266, %c0_267] : memref<144x16xbf16, #tpu.memory_space<vmem>>, vector<16x16xbf16>
    %372 = arith.extf %371 : vector<16x16xbf16> to vector<16x16xf32>
    %cst_268 = arith.constant dense<0.000000e+00> : vector<16x8xf32>
    %373 = tpu.matmul %372, %362, %cst_268 {dimension_numbers = #tpu.dot_dimension_numbers<[1], [0], [0], [1], [0, 0, 1, 1], [], []>} : vector<16x16xf32>, vector<16x8xf32>, vector<16x8xf32> -> vector<16x8xf32>
    %c16_269 = arith.constant 16 : index
    %c0_270 = arith.constant 0 : index
    %374 = vector.load %arg15[%c16_269, %c0_270] : memref<144x16xbf16, #tpu.memory_space<vmem>>, vector<16x16xbf16>
    %375 = arith.extf %374 : vector<16x16xbf16> to vector<16x16xf32>
    %cst_271 = arith.constant dense<0.000000e+00> : vector<16x8xf32>
    %376 = tpu.matmul %375, %362, %cst_271 {dimension_numbers = #tpu.dot_dimension_numbers<[1], [0], [0], [1], [0, 0, 1, 1], [], []>} : vector<16x16xf32>, vector<16x8xf32>, vector<16x8xf32> -> vector<16x8xf32>
    %c32_272 = arith.constant 32 : index
    %c0_273 = arith.constant 0 : index
    %377 = vector.load %arg15[%c32_272, %c0_273] : memref<144x16xbf16, #tpu.memory_space<vmem>>, vector<16x16xbf16>
    %378 = arith.extf %377 : vector<16x16xbf16> to vector<16x16xf32>
    %cst_274 = arith.constant dense<0.000000e+00> : vector<16x8xf32>
    %379 = tpu.matmul %378, %362, %cst_274 {dimension_numbers = #tpu.dot_dimension_numbers<[1], [0], [0], [1], [0, 0, 1, 1], [], []>} : vector<16x16xf32>, vector<16x8xf32>, vector<16x8xf32> -> vector<16x8xf32>
    %c48_275 = arith.constant 48 : index
    %c0_276 = arith.constant 0 : index
    %380 = vector.load %arg15[%c48_275, %c0_276] : memref<144x16xbf16, #tpu.memory_space<vmem>>, vector<16x16xbf16>
    %381 = arith.extf %380 : vector<16x16xbf16> to vector<16x16xf32>
    %cst_277 = arith.constant dense<0.000000e+00> : vector<16x8xf32>
    %382 = tpu.matmul %381, %362, %cst_277 {dimension_numbers = #tpu.dot_dimension_numbers<[1], [0], [0], [1], [0, 0, 1, 1], [], []>} : vector<16x16xf32>, vector<16x8xf32>, vector<16x8xf32> -> vector<16x8xf32>
    %c64_278 = arith.constant 64 : index
    %c0_279 = arith.constant 0 : index
    %383 = vector.load %arg15[%c64_278, %c0_279] : memref<144x16xbf16, #tpu.memory_space<vmem>>, vector<16x16xbf16>
    %384 = arith.extf %383 : vector<16x16xbf16> to vector<16x16xf32>
    %cst_280 = arith.constant dense<0.000000e+00> : vector<16x8xf32>
    %385 = tpu.matmul %384, %362, %cst_280 {dimension_numbers = #tpu.dot_dimension_numbers<[1], [0], [0], [1], [0, 0, 1, 1], [], []>} : vector<16x16xf32>, vector<16x8xf32>, vector<16x8xf32> -> vector<16x8xf32>
    %c80_281 = arith.constant 80 : index
    %c0_282 = arith.constant 0 : index
    %386 = vector.load %arg15[%c80_281, %c0_282] : memref<144x16xbf16, #tpu.memory_space<vmem>>, vector<16x16xbf16>
    %387 = arith.extf %386 : vector<16x16xbf16> to vector<16x16xf32>
    %cst_283 = arith.constant dense<0.000000e+00> : vector<16x8xf32>
    %388 = tpu.matmul %387, %362, %cst_283 {dimension_numbers = #tpu.dot_dimension_numbers<[1], [0], [0], [1], [0, 0, 1, 1], [], []>} : vector<16x16xf32>, vector<16x8xf32>, vector<16x8xf32> -> vector<16x8xf32>
    %c96_284 = arith.constant 96 : index
    %c0_285 = arith.constant 0 : index
    %389 = vector.load %arg15[%c96_284, %c0_285] : memref<144x16xbf16, #tpu.memory_space<vmem>>, vector<16x16xbf16>
    %390 = arith.extf %389 : vector<16x16xbf16> to vector<16x16xf32>
    %cst_286 = arith.constant dense<0.000000e+00> : vector<16x8xf32>
    %391 = tpu.matmul %390, %362, %cst_286 {dimension_numbers = #tpu.dot_dimension_numbers<[1], [0], [0], [1], [0, 0, 1, 1], [], []>} : vector<16x16xf32>, vector<16x8xf32>, vector<16x8xf32> -> vector<16x8xf32>
    %c112_287 = arith.constant 112 : index
    %c0_288 = arith.constant 0 : index
    %392 = vector.load %arg15[%c112_287, %c0_288] : memref<144x16xbf16, #tpu.memory_space<vmem>>, vector<16x16xbf16>
    %393 = arith.extf %392 : vector<16x16xbf16> to vector<16x16xf32>
    %cst_289 = arith.constant dense<0.000000e+00> : vector<16x8xf32>
    %394 = tpu.matmul %393, %362, %cst_289 {dimension_numbers = #tpu.dot_dimension_numbers<[1], [0], [0], [1], [0, 0, 1, 1], [], []>} : vector<16x16xf32>, vector<16x8xf32>, vector<16x8xf32> -> vector<16x8xf32>
    %c128_290 = arith.constant 128 : index
    %c0_291 = arith.constant 0 : index
    %395 = vector.load %arg15[%c128_290, %c0_291] : memref<144x16xbf16, #tpu.memory_space<vmem>>, vector<16x16xbf16>
    %396 = arith.extf %395 : vector<16x16xbf16> to vector<16x16xf32>
    %cst_292 = arith.constant dense<0.000000e+00> : vector<16x8xf32>
    %397 = tpu.matmul %396, %362, %cst_292 {dimension_numbers = #tpu.dot_dimension_numbers<[1], [0], [0], [1], [0, 0, 1, 1], [], []>} : vector<16x16xf32>, vector<16x8xf32>, vector<16x8xf32> -> vector<16x8xf32>
    %398 = tpu.concatenate %373, %376, %379, %382, %385, %388, %391, %394, %397 in 1 : vector<16x8xf32>, vector<16x8xf32>, vector<16x8xf32>, vector<16x8xf32>, vector<16x8xf32>, vector<16x8xf32>, vector<16x8xf32>, vector<16x8xf32>, vector<16x8xf32> -> vector<16x72xf32>
    %cst_293 = arith.constant dense<0.000000e+00> : vector<16x1xf32>
    %399 = tpu.matmul %398, %370, %cst_293 {dimension_numbers = #tpu.dot_dimension_numbers<[1], [0], [0], [1], [0, 0, 1, 1], [], []>} : vector<16x72xf32>, vector<72x1xf32>, vector<16x1xf32> -> vector<16x1xf32>
    %c0_294 = arith.constant 0 : index
    %c0_295 = arith.constant 0 : index
    %400 = vector.load %arg15[%c0_294, %c0_295] : memref<144x16xbf16, #tpu.memory_space<vmem>>, vector<16x16xbf16>
    %401 = arith.extf %400 : vector<16x16xbf16> to vector<16x16xf32>
    %cst_296 = arith.constant dense<0.000000e+00> : vector<16x8xf32>
    %402 = tpu.matmul %401, %369, %cst_296 {dimension_numbers = #tpu.dot_dimension_numbers<[1], [0], [0], [1], [0, 0, 1, 1], [], []>} : vector<16x16xf32>, vector<16x8xf32>, vector<16x8xf32> -> vector<16x8xf32>
    %c16_297 = arith.constant 16 : index
    %c0_298 = arith.constant 0 : index
    %403 = vector.load %arg15[%c16_297, %c0_298] : memref<144x16xbf16, #tpu.memory_space<vmem>>, vector<16x16xbf16>
    %404 = arith.extf %403 : vector<16x16xbf16> to vector<16x16xf32>
    %cst_299 = arith.constant dense<0.000000e+00> : vector<16x8xf32>
    %405 = tpu.matmul %404, %369, %cst_299 {dimension_numbers = #tpu.dot_dimension_numbers<[1], [0], [0], [1], [0, 0, 1, 1], [], []>} : vector<16x16xf32>, vector<16x8xf32>, vector<16x8xf32> -> vector<16x8xf32>
    %c32_300 = arith.constant 32 : index
    %c0_301 = arith.constant 0 : index
    %406 = vector.load %arg15[%c32_300, %c0_301] : memref<144x16xbf16, #tpu.memory_space<vmem>>, vector<16x16xbf16>
    %407 = arith.extf %406 : vector<16x16xbf16> to vector<16x16xf32>
    %cst_302 = arith.constant dense<0.000000e+00> : vector<16x8xf32>
    %408 = tpu.matmul %407, %369, %cst_302 {dimension_numbers = #tpu.dot_dimension_numbers<[1], [0], [0], [1], [0, 0, 1, 1], [], []>} : vector<16x16xf32>, vector<16x8xf32>, vector<16x8xf32> -> vector<16x8xf32>
    %c48_303 = arith.constant 48 : index
    %c0_304 = arith.constant 0 : index
    %409 = vector.load %arg15[%c48_303, %c0_304] : memref<144x16xbf16, #tpu.memory_space<vmem>>, vector<16x16xbf16>
    %410 = arith.extf %409 : vector<16x16xbf16> to vector<16x16xf32>
    %cst_305 = arith.constant dense<0.000000e+00> : vector<16x8xf32>
    %411 = tpu.matmul %410, %369, %cst_305 {dimension_numbers = #tpu.dot_dimension_numbers<[1], [0], [0], [1], [0, 0, 1, 1], [], []>} : vector<16x16xf32>, vector<16x8xf32>, vector<16x8xf32> -> vector<16x8xf32>
    %c64_306 = arith.constant 64 : index
    %c0_307 = arith.constant 0 : index
    %412 = vector.load %arg15[%c64_306, %c0_307] : memref<144x16xbf16, #tpu.memory_space<vmem>>, vector<16x16xbf16>
    %413 = arith.extf %412 : vector<16x16xbf16> to vector<16x16xf32>
    %cst_308 = arith.constant dense<0.000000e+00> : vector<16x8xf32>
    %414 = tpu.matmul %413, %369, %cst_308 {dimension_numbers = #tpu.dot_dimension_numbers<[1], [0], [0], [1], [0, 0, 1, 1], [], []>} : vector<16x16xf32>, vector<16x8xf32>, vector<16x8xf32> -> vector<16x8xf32>
    %c80_309 = arith.constant 80 : index
    %c0_310 = arith.constant 0 : index
    %415 = vector.load %arg15[%c80_309, %c0_310] : memref<144x16xbf16, #tpu.memory_space<vmem>>, vector<16x16xbf16>
    %416 = arith.extf %415 : vector<16x16xbf16> to vector<16x16xf32>
    %cst_311 = arith.constant dense<0.000000e+00> : vector<16x8xf32>
    %417 = tpu.matmul %416, %369, %cst_311 {dimension_numbers = #tpu.dot_dimension_numbers<[1], [0], [0], [1], [0, 0, 1, 1], [], []>} : vector<16x16xf32>, vector<16x8xf32>, vector<16x8xf32> -> vector<16x8xf32>
    %c96_312 = arith.constant 96 : index
    %c0_313 = arith.constant 0 : index
    %418 = vector.load %arg15[%c96_312, %c0_313] : memref<144x16xbf16, #tpu.memory_space<vmem>>, vector<16x16xbf16>
    %419 = arith.extf %418 : vector<16x16xbf16> to vector<16x16xf32>
    %cst_314 = arith.constant dense<0.000000e+00> : vector<16x8xf32>
    %420 = tpu.matmul %419, %369, %cst_314 {dimension_numbers = #tpu.dot_dimension_numbers<[1], [0], [0], [1], [0, 0, 1, 1], [], []>} : vector<16x16xf32>, vector<16x8xf32>, vector<16x8xf32> -> vector<16x8xf32>
    %c112_315 = arith.constant 112 : index
    %c0_316 = arith.constant 0 : index
    %421 = vector.load %arg15[%c112_315, %c0_316] : memref<144x16xbf16, #tpu.memory_space<vmem>>, vector<16x16xbf16>
    %422 = arith.extf %421 : vector<16x16xbf16> to vector<16x16xf32>
    %cst_317 = arith.constant dense<0.000000e+00> : vector<16x8xf32>
    %423 = tpu.matmul %422, %369, %cst_317 {dimension_numbers = #tpu.dot_dimension_numbers<[1], [0], [0], [1], [0, 0, 1, 1], [], []>} : vector<16x16xf32>, vector<16x8xf32>, vector<16x8xf32> -> vector<16x8xf32>
    %c128_318 = arith.constant 128 : index
    %c0_319 = arith.constant 0 : index
    %424 = vector.load %arg15[%c128_318, %c0_319] : memref<144x16xbf16, #tpu.memory_space<vmem>>, vector<16x16xbf16>
    %425 = arith.extf %424 : vector<16x16xbf16> to vector<16x16xf32>
    %cst_320 = arith.constant dense<0.000000e+00> : vector<16x8xf32>
    %426 = tpu.matmul %425, %369, %cst_320 {dimension_numbers = #tpu.dot_dimension_numbers<[1], [0], [0], [1], [0, 0, 1, 1], [], []>} : vector<16x16xf32>, vector<16x8xf32>, vector<16x8xf32> -> vector<16x8xf32>
    %427 = tpu.concatenate %402, %405, %408, %411, %414, %417, %420, %423, %426 in 1 : vector<16x8xf32>, vector<16x8xf32>, vector<16x8xf32>, vector<16x8xf32>, vector<16x8xf32>, vector<16x8xf32>, vector<16x8xf32>, vector<16x8xf32>, vector<16x8xf32> -> vector<16x72xf32>
    %cst_321 = arith.constant dense<0.000000e+00> : vector<16x1xf32>
    %428 = tpu.matmul %427, %370, %cst_321 {dimension_numbers = #tpu.dot_dimension_numbers<[1], [0], [0], [1], [0, 0, 1, 1], [], []>} : vector<16x72xf32>, vector<72x1xf32>, vector<16x1xf32> -> vector<16x1xf32>
    %429 = tpu.concatenate %399, %428 in 1 : vector<16x1xf32>, vector<16x1xf32> -> vector<16x2xf32>
    %430 = arith.negf %429 : vector<16x2xf32>
    %431 = math.exp %430 : vector<16x2xf32>
    %cst_322 = arith.constant 1.000000e+00 : f32
    %432 = vector.broadcast %cst_322 : f32 to vector<16x2xf32>
    %433 = arith.addf %432, %431 : vector<16x2xf32>
    %434 = arith.divf %432, %433 : vector<16x2xf32>
    %cst_323 = arith.constant 0.000000e+00 : f32
    %435 = vector.broadcast %cst_323 : f32 to vector<16x126xf32>
    %436 = tpu.concatenate %434, %435 in 1 : vector<16x2xf32>, vector<16x126xf32> -> vector<16x128xf32>
    %c0_324 = arith.constant 0 : index
    %c0_325 = arith.constant 0 : index
    %437 = vector.load %arg17[%c0_324, %c0_325] : memref<16x128xf32, #tpu.memory_space<vmem>>, vector<16x128xf32>
    tpu.vector_store %arg17[%c0_324, %c0_325], %436 {strides = array<i32>} : memref<16x128xf32, #tpu.memory_space<vmem>>, vector<16x128xf32>,
    return
  }
}

</mosaic_0001>

<bundles_post_ra>
// kernel: discriminator_forward.1
= control target key start
LH: loop header
LB: loop body
LE: loop exit
PB: predicated region body
PF: predicated region fallthrough
CT: control target
= control target key end

     0   :  { %s14878_s30 = smov 6   ;;  %s14879_s18 = smov 8   ;;  %vm1637_vm0 = vcmask 1041408   ;;  %vm1540_vm1 = vcmask 15360   ;;  %vm1549_vm2 = vcmask 31744   ;;  %vm1558_vm3 = vcmask 48128   ;;  %s18838_s0 = inlined_call_operand.vmem [shape: f32[512,2], index: 0, kind: input, shape index: {}]   ;;  %s18839_s1 = inlined_call_operand.vmem [shape: bf16[576,256], index: 1, kind: input, shape index: {}]   ;;  %s18840_s2 = inlined_call_operand.vmem [shape: f32[18,8], index: 2, kind: input, shape index: {}]   ;;  %s18841_s3 = inlined_call_operand.vmem [shape: bf16[144,64], index: 3, kind: input, shape index: {}]   ;;  %s18842_s4 = inlined_call_operand.vmem [shape: f32[72,16], index: 4, kind: input, shape index: {}]   ;;  %s18843_s7 = inlined_call_operand.vmem [shape: bf16[144,16], index: 7, kind: input, shape index: {}]   ;;  %s18844_s5 = inlined_call_operand.vmem [shape: f32[1,16], index: 5, kind: input, shape index: {}]   ;;  %s18845_s6 = inlined_call_operand.vmem [shape: f32[1,16], index: 6, kind: input, shape index: {}]   ;;  %s18846_s8 = inlined_call_operand.vmem [shape: f32[144,32], index: 8, kind: input, shape index: {}]   ;;  %s18847_s12 = inlined_call_operand.vmem [shape: f32[288,8], index: 12, kind: input, shape index: {}]   ;;  %s18848_s11 = inlined_call_operand.vmem [shape: bf16[144,16], index: 11, kind: input, shape index: {}]   ;;  %s18849_s9 = inlined_call_operand.vmem [shape: f32[1,32], index: 9, kind: input, shape index: {}]   ;;  %s18850_s10 = inlined_call_operand.vmem [shape: f32[1,32], index: 10, kind: input, shape index: {}]   ;;  %s18851_s15 = inlined_call_operand.vmem [shape: bf16[144,16], index: 15, kind: input, shape index: {}]   ;;  %s18852_s13 = inlined_call_operand.vmem [shape: f32[1,8], index: 13, kind: input, shape index: {}]   ;;  %s18853_s14 = inlined_call_operand.vmem [shape: f32[1,8], index: 14, kind: input, shape index: {}]   ;;  %s18854_s16 = inlined_call_operand.vmem [shape: f32[72,1], index: 16, kind: input, shape index: {}]   ;;  %s18855_s17 = inlined_call_operand.vmem [shape: f32[16,128], index: 17, kind: output, shape index: {}]  }
   0x1   :  { %19080 = sst [smem:[#allocation50_spill]] %s18838_s0  ;;  %s14876_s0 = smov 2   ;;  %vm1567_vm4 = vcmask 64512   ;;  %vm1576_vm5 = vcmask 80896   ;;  %vm1585_vm6 = vcmask 97280   ;;  %vm1594_vm7 = vcmask 113664  }
   0x2   :  { %19081 = sst [smem:[#allocation51_spill]] %s18839_s1  ;;  %s19082_s26 = sld [smem:[#allocation50_spill]]  ;;  %vm1603_vm8 = vcmask 130048   ;;  %vm1612_vm9 = vcmask 146432   ;;  %vm3185_vm10 = vcmask 523264   ;;  %vm4015_vm11 = vcmask 195584  }
   0x3   :  { %s19083_s20 = sld [smem:[#allocation51_spill]]  ;;  %s14880_s19 = smov 10   ;;  %vm4018_vm12 = vcmask 261120   ;;  %vm4021_vm13 = vcmask 326656   ;;  %vm4024_vm14 = vcmask 392192   ;;  %vm4027_vm15 = vcmask 457728  }
   0x4   :  { %s14881_s23 = smov 12   ;;  %s14882_s24 = smov 14  }
   0x5   :  { %s14883_s28 = smov 16   ;;  %s14888_s25 = smov 48  }
   0x6   :  { %s14889_s27 = smov 64   ;;  %s14891_s21 = smov 80  }
   0x8   :  { %v72_v0 = vld [vmem:[%s19082_s26 + $0x80] sm:$0xff]  ;;  %v73_v1 = vld [vmem:[%s19082_s26 + $0x88] sm:$0xff]  ;;  %v74_v5 = vld [vmem:[%s19082_s26 + $0x90] sm:$0xff] }
   0x9   :  { %v56_v2 = vld [vmem:[%s19082_s26] sm:$0xff]  ;;  %v14994_v3 = vpack.c.bf16 %v73_v1, %v72_v0  ;;  %v57_v4 = vld [vmem:[%s19082_s26 + $0x8] sm:$0xff]  ;;  %v75_v6 = vld [vmem:[%s19082_s26 + $0x98] sm:$0xff] }
   0xa   :  { %v15005_v7 = vpack.c.bf16 %v57_v4, %v56_v2  ;;  %v15007_v8 = vpack.c.bf16 %v75_v6, %v74_v5  ;;  %v58_v9 = vld [vmem:[%s19082_s26 + $0x10] sm:$0xff]  ;;  %v59_v10 = vld [vmem:[%s19082_s26 + $0x18] sm:$0xff]  ;;  %v76_v11 = vld [vmem:[%s19082_s26 + $0xa0] sm:$0xff] }
   0xb   :  { %13446 = vmatprep.subr.bf16.mxu0 %v14994_v3  ;;  %13478 = vmatprep.subr.bf16.mxu1 %v14994_v3  ;;  %v77_v12 = vld [vmem:[%s19082_s26 + $0xa8] sm:$0xff]  ;;  %v15025_v13 = vpack.c.bf16 %v59_v10, %v58_v9  ;;  %v60_v15 = vld [vmem:[%s19082_s26 + $0x20] sm:$0xff]  ;;  %v78_v17 = vld [vmem:[%s19082_s26 + $0xb0] sm:$0xff] }
   0xc   :  { %13448 = vmatpush3.bf16.msra.mxu0 %v15005_v7  ;;  %13480 = vmatpush3.bf16.msra.mxu1 %v15005_v7  ;;  %v15029_v14 = vpack.c.bf16 %v77_v12, %v76_v11  ;;  %v61_v16 = vld [vmem:[%s19082_s26 + $0x28] sm:$0xff]  ;;  %v79_v18 = vld [vmem:[%s19082_s26 + $0xb8] sm:$0xff]  ;;  %v62_v21 = vld [vmem:[%s19082_s26 + $0x30] sm:$0xff] }
   0xd   :  { %13450 = vmatprep.subr.bf16.mxu0 %v15007_v8  ;;  %13482 = vmatprep.subr.bf16.mxu1 %v15007_v8  ;;  %v15045_v19 = vpack.c.bf16 %v61_v16, %v60_v15  ;;  %v15049_v20 = vpack.c.bf16 %v79_v18, %v78_v17  ;;  %v63_v22 = vld [vmem:[%s19082_s26 + $0x38] sm:$0xff]  ;;  %v80_v23 = vld [vmem:[%s19082_s26 + $0xc0] sm:$0xff]  ;;  %v81_v24 = vld [vmem:[%s19082_s26 + $0xc8] sm:$0xff] }
   0xe   :  { %v15066_v25 = vld [vmem:[%s19083_s20] sm:$0xff]  ;;  %v15076_v28 = vpack.c.bf16 %v63_v22, %v62_v21  ;;  %v15081_v30 = vpack.c.bf16 %v81_v24, %v80_v23  ;;  %v65_v32 = vld [vmem:[%s19082_s26 + $0x48] sm:$0xff]  ;;  %v82_v33 = vld [vmem:[%s19082_s26 + $0xd0] sm:$0xff] }
   0xf   :  { %v18930_v26 = vunpack.c.h.bf16 %v15066_v25  ;;  %v15072_v27 = vld [vmem:[%s19083_s20 + $0x40] sm:$0xff]  ;;  %v83_v34 = vld [vmem:[%s19082_s26 + $0xd8] sm:$0xff]  ;;  %v66_v37 = vld [vmem:[%s19082_s26 + $0x50] sm:$0xff]  ;;  %v18927_v54 = vunpack.c.l.bf16 %v15066_v25 }
  0x10   :  { %13452 = vmatpush3.bf16.msra.mxu0 %v15025_v13  ;;  %13484 = vmatpush3.bf16.msra.mxu1 %v15025_v13  ;;  %19084 = vst [vmem:[#allocation2_spill] sm:$0xff] %v15072_v27  ;;  %v18875_v29 = vunpack.c.h.bf16 %v15072_v27  ;;  %v64_v31 = vld [vmem:[%s19082_s26 + $0x40] sm:$0xff]  ;;  %v15105_v36 = vpack.c.bf16 %v83_v34, %v82_v33  ;;  %v67_v38 = vld [vmem:[%s19082_s26 + $0x58] sm:$0xff]  ;;  %v85_v40 = vld [vmem:[%s19082_s26 + $0xe8] sm:$0xff]  ;;  %v18874_v55 = vunpack.c.l.bf16 %v15072_v27 }
  0x11   :  { %13454 = vmatprep.subr.bf16.mxu0 %v15029_v14  ;;  %13486 = vmatprep.subr.bf16.mxu1 %v15029_v14  ;;  %v15101_v35 = vpack.c.bf16 %v65_v32, %v64_v31  ;;  %v84_v39 = vld [vmem:[%s19082_s26 + $0xe0] sm:$0xff]  ;;  %v15121_v41 = vpack.c.bf16 %v67_v38, %v66_v37  ;;  %v69_v44 = vld [vmem:[%s19082_s26 + $0x68] sm:$0xff]  ;;  %v86_v45 = vld [vmem:[%s19082_s26 + $0xf0] sm:$0xff] }
  0x12   :  { %211 = vmatprep.mubr.f32.mxu0 %v18930_v26  ;;  %340 = vmatprep.mubr.f32.mxu1 %v18875_v29  ;;  %v15125_v42 = vpack.c.bf16 %v85_v40, %v84_v39  ;;  %v68_v43 = vld [vmem:[%s19082_s26 + $0x60] sm:$0xff]  ;;  %v87_v46 = vld [vmem:[%s19082_s26 + $0xf8] sm:$0xff]  ;;  %v70_v49 = vld [vmem:[%s19082_s26 + $0x70] sm:$0xff] }
  0x13   :  { %v15141_v47 = vpack.c.bf16 %v69_v44, %v68_v43  ;;  %v15145_v48 = vpack.c.bf16 %v87_v46, %v86_v45  ;;  %v71_v50 = vld [vmem:[%s19082_s26 + $0x78] sm:$0xff]  ;;  %v15162_v52 = vld [vmem:[%s19083_s20 + $0x8] sm:$0xff]  ;;  %v15180_v58 = vld [vmem:[%s19083_s20 + $0x10] sm:$0xff] }
  0x14   :  { %13456 = vmatpush3.bf16.msra.mxu0 %v15045_v19  ;;  %13488 = vmatpush3.bf16.msra.mxu1 %v15045_v19  ;;  %v15155_v51 = vpack.c.bf16 %v71_v50, %v70_v49  ;;  %v15167_v53 = vld [vmem:[%s19083_s20 + $0x48] sm:$0xff]  ;;  %v18924_v56 = vunpack.c.h.bf16 %v15162_v52  ;;  %v15185_v59 = vld [vmem:[%s19083_s20 + $0x50] sm:$0xff]  ;;  %v18921_v60 = vunpack.c.l.bf16 %v15162_v52  ;;  %v18918_v62 = vunpack.c.h.bf16 %v15180_v58  ;;  %v15206_v0 = vld [vmem:[%s19083_s20 + $0x18] sm:$0xff] }
  0x15   :  { %13458 = vmatprep.subr.bf16.mxu0 %v15049_v20  ;;  %13490 = vmatprep.subr.bf16.mxu1 %v15049_v20  ;;  %19085 = vst [vmem:[#allocation3_spill] sm:$0xff] %v15167_v53  ;;  %v18872_v57 = vunpack.c.h.bf16 %v15167_v53  ;;  %19086 = vst [vmem:[#allocation4_spill] sm:$0xff] %v15185_v59  ;;  %v18871_v61 = vunpack.c.l.bf16 %v15167_v53  ;;  %v18869_v63 = vunpack.c.h.bf16 %v15185_v59  ;;  %v15211_v1 = vld [vmem:[%s19083_s20 + $0x58] sm:$0xff]  ;;  %v18917_v2 = vunpack.c.l.bf16 %v15180_v58  ;;  %v15232_v9 = vld [vmem:[%s19083_s20 + $0x20] sm:$0xff] }
  0x16   :  { %19087 = vst [vmem:[#allocation5_spill] sm:$0xff] %v15211_v1  ;;  %v18868_v4 = vunpack.c.l.bf16 %v15185_v59  ;;  %v18912_v5 = vunpack.c.h.bf16 %v15206_v0  ;;  %v18866_v6 = vunpack.c.h.bf16 %v15211_v1  ;;  %v15237_v10 = vld [vmem:[%s19083_s20 + $0x60] sm:$0xff]  ;;  %v18907_v11 = vunpack.c.l.bf16 %v15206_v0  ;;  %v15258_v17 = vld [vmem:[%s19083_s20 + $0x28] sm:$0xff]  ;;  %v15284_v31 = vld [vmem:[%s19083_s20 + $0x30] sm:$0xff] }
  0x17   :  { %19088 = vst [vmem:[#allocation6_spill] sm:$0xff] %v15237_v10  ;;  %v18865_v12 = vunpack.c.l.bf16 %v15211_v1  ;;  %v18906_v15 = vunpack.c.h.bf16 %v15232_v9  ;;  %v18864_v16 = vunpack.c.h.bf16 %v15237_v10  ;;  %v15263_v18 = vld [vmem:[%s19083_s20 + $0x68] sm:$0xff]  ;;  %v18901_v21 = vunpack.c.l.bf16 %v15232_v9  ;;  %v15289_v32 = vld [vmem:[%s19083_s20 + $0x70] sm:$0xff]  ;;  %v15310_v39 = vld [vmem:[%s19083_s20 + $0x38] sm:$0xff] }
  0x18   :  { %13460 = vmatpush3.bf16.msra.mxu0 %v15076_v28  ;;  %13492 = vmatpush3.bf16.msra.mxu1 %v15076_v28  ;;  %19089 = vst [vmem:[#allocation7_spill] sm:$0xff] %v15263_v18  ;;  %v18861_v22 = vunpack.c.l.bf16 %v15237_v10  ;;  %v18900_v23 = vunpack.c.h.bf16 %v15258_v17  ;;  %v18860_v24 = vunpack.c.h.bf16 %v15263_v18  ;;  %19090 = vst [vmem:[#allocation8_spill] sm:$0xff] %v15289_v32  ;;  %v18895_v33 = vunpack.c.l.bf16 %v15258_v17  ;;  %v15315_v40 = vld [vmem:[%s19083_s20 + $0x78] sm:$0xff]  ;;  %v15336_v49 = vld [vmem:[%s19083_s20 + $0x80] sm:$0xff] }
  0x19   :  { %13462 = vmatprep.subr.bf16.mxu0 %v15081_v30  ;;  %13494 = vmatprep.subr.bf16.mxu1 %v15081_v30  ;;  %v18859_v34 = vunpack.c.l.bf16 %v15263_v18  ;;  %v18894_v37 = vunpack.c.h.bf16 %v15284_v31  ;;  %v18858_v38 = vunpack.c.h.bf16 %v15289_v32  ;;  %19091 = vst [vmem:[#allocation9_spill] sm:$0xff] %v15315_v40  ;;  %v18889_v43 = vunpack.c.l.bf16 %v15284_v31  ;;  %v15341_v50 = vld [vmem:[%s19083_s20 + $0xc0] sm:$0xff] }
  0x1a   :  { %v18862_v44 = vunpack.c.l.bf16 %v15289_v32  ;;  %v18888_v45 = vunpack.c.h.bf16 %v15310_v39  ;;  %v18863_v46 = vunpack.c.h.bf16 %v15315_v40  ;;  %19092 = vst [vmem:[#allocation10_spill] sm:$0xff] %v15341_v50  ;;  %v15656_v26 = vld [vmem:[%s19083_s20 + $0x160] sm:$0xff]  ;;  %v102_v32 = vld [vmem:[%s19082_s26 + $0x170] sm:$0xff] }
  0x1b   :  { %19104 = vst [vmem:[#allocation22_spill] sm:$0xff] %v15656_v26 }
  0x1c   :  { %13464 = vmatpush3.bf16.msra.mxu0 %v15101_v35  ;;  %13496 = vmatpush3.bf16.msra.mxu1 %v15101_v35 }
  0x1d   :  { %13466 = vmatprep.subr.bf16.mxu0 %v15105_v36  ;;  %13498 = vmatprep.subr.bf16.mxu1 %v15105_v36 }
  0x20   :  { %13468 = vmatpush3.bf16.msra.mxu0 %v15121_v41  ;;  %13500 = vmatpush3.bf16.msra.mxu1 %v15121_v41 }
  0x21   :  { %13470 = vmatprep.subr.bf16.mxu0 %v15125_v42  ;;  %13502 = vmatprep.subr.bf16.mxu1 %v15125_v42 }
  0x24   :  { %13472 = vmatpush3.bf16.msra.mxu0 %v15141_v47  ;;  %13504 = vmatpush3.bf16.msra.mxu1 %v15141_v47 }
  0x25   :  { %13474 = vmatprep.subr.bf16.mxu0 %v15145_v48  ;;  %13506 = vmatprep.subr.bf16.mxu1 %v15145_v48 }
  0x28   :  { %13476 = vmatpush3.bf16.msra.mxu0 %v15155_v51  ;;  %13508 = vmatpush3.bf16.msra.mxu1 %v15155_v51 }
  0x29   :  { %13510 = vmatprep.subr.bf16.mxu0 %v14994_v3  ;;  %13542 = vmatprep.subr.bf16.mxu1 %v14994_v3 }
  0x2b   :  { %212 = vmatmul.mubr.f32.vlgmr.msra.gmra.mrb[0].mxu0 %v18927_v54  ;;  %341 = vmatmul.mubr.f32.vlgmr.msra.gmra.mrb[0].mxu1 %v18874_v55  ;;  %v15643_v54 = vld [vmem:[%s19083_s20 + $0x120] sm:$0xff] }
  0x2c   :  { %13512 = vmatpush3.bf16.msra.mxu0 %v15005_v7  ;;  %13544 = vmatpush3.bf16.msra.mxu1 %v15005_v7 }
  0x2d   :  { %216 = vmatprep.mubr.f32.mxu0 %v18924_v56  ;;  %345 = vmatprep.mubr.f32.mxu1 %v18872_v57  ;;  %v15630_v56 = vld [vmem:[%s19083_s20 + $0x158] sm:$0xff] }
  0x2e   :  { %13514 = vmatprep.subr.bf16.mxu0 %v15007_v8  ;;  %13546 = vmatprep.subr.bf16.mxu1 %v15007_v8  ;;  %19103 = vst [vmem:[#allocation21_spill] sm:$0xff] %v15630_v56 }
  0x2f   :  { %217 = vmatmul.mubr.f32.gmra.mrb[2].mxu0 %v18921_v60  ;;  %346 = vmatmul.mubr.f32.gmra.mrb[2].mxu1 %v18871_v61  ;;  %v15399_v61 = vld [vmem:[%s19083_s20 + $0xd0] sm:$0xff]  ;;  %v15617_v60 = vld [vmem:[%s19083_s20 + $0x118] sm:$0xff] }
  0x30   :  { %13516 = vmatpush3.bf16.msra.mxu0 %v15025_v13  ;;  %13548 = vmatpush3.bf16.msra.mxu1 %v15025_v13  ;;  %19094 = vst [vmem:[#allocation12_spill] sm:$0xff] %v15399_v61  ;;  %v18884_v55 = vunpack.c.h.bf16 %v15399_v61 }
  0x31   :  { %221 = vmatprep.mubr.f32.mxu0 %v18918_v62  ;;  %350 = vmatprep.mubr.f32.mxu1 %v18869_v63  ;;  %v15604_v62 = vld [vmem:[%s19083_s20 + $0x150] sm:$0xff] }
  0x32   :  { %13518 = vmatprep.subr.bf16.mxu0 %v15029_v14  ;;  %13550 = vmatprep.subr.bf16.mxu1 %v15029_v14  ;;  %19102 = vst [vmem:[#allocation20_spill] sm:$0xff] %v15604_v62 }
  0x33   :  { %222 = vmatmul.mubr.f32.gmra.mrb[4].mxu0 %v18917_v2  ;;  %351 = vmatmul.mubr.f32.gmra.mrb[4].mxu1 %v18868_v4 }
  0x34   :  { %13520 = vmatpush3.bf16.msra.mxu0 %v15045_v19  ;;  %13552 = vmatpush3.bf16.msra.mxu1 %v15045_v19 }
  0x35   :  { %226 = vmatprep.mubr.f32.mxu0 %v18912_v5  ;;  %355 = vmatprep.mubr.f32.mxu1 %v18866_v6  ;;  %v15580_v5 = vld [vmem:[%s19083_s20 + $0x148] sm:$0xff] }
  0x36   :  { %13522 = vmatprep.subr.bf16.mxu0 %v15049_v20  ;;  %13554 = vmatprep.subr.bf16.mxu1 %v15049_v20  ;;  %19101 = vst [vmem:[#allocation19_spill] sm:$0xff] %v15580_v5 }
  0x37   :  { %227 = vmatmul.mubr.f32.gmra.mrb[6].mxu0 %v18907_v11  ;;  %356 = vmatmul.mubr.f32.gmra.mrb[6].mxu1 %v18865_v12  ;;  %v15373_v12 = vld [vmem:[%s19083_s20 + $0xc8] sm:$0xff]  ;;  %v15555_v11 = vld [vmem:[%s19083_s20 + $0x140] sm:$0xff] }
  0x38   :  { %13524 = vmatpush3.bf16.msra.mxu0 %v15076_v28  ;;  %13556 = vmatpush3.bf16.msra.mxu1 %v15076_v28  ;;  %19093 = vst [vmem:[#allocation11_spill] sm:$0xff] %v15373_v12  ;;  %v18878_v4 = vunpack.c.h.bf16 %v15373_v12  ;;  %19100 = vst [vmem:[#allocation18_spill] sm:$0xff] %v15555_v11 }
  0x39   :  { %231 = vmatprep.mubr.f32.mxu0 %v18906_v15  ;;  %360 = vmatprep.mubr.f32.mxu1 %v18864_v16  ;;  %v18873_v16 = vunpack.c.l.bf16 %v15341_v50 }
  0x3a   :  { %13526 = vmatprep.subr.bf16.mxu0 %v15081_v30  ;;  %13558 = vmatprep.subr.bf16.mxu1 %v15081_v30 }
  0x3b   :  { %232 = vmatmul.mubr.f32.gmra.mrb[8].mxu0 %v18901_v21  ;;  %361 = vmatmul.mubr.f32.gmra.mrb[8].mxu1 %v18861_v22  ;;  %v18870_v22 = vunpack.c.h.bf16 %v15341_v50  ;;  %v15529_v21 = vld [vmem:[%s19083_s20 + $0xf8] sm:$0xff]  ;;  %v100_v50 = vld [vmem:[%s19082_s26 + $0x160] sm:$0xff] }
  0x3c   :  { %13528 = vmatpush3.bf16.msra.mxu0 %v15101_v35  ;;  %13560 = vmatpush3.bf16.msra.mxu1 %v15101_v35  ;;  %19099 = vst [vmem:[#allocation17_spill] sm:$0xff] %v15529_v21  ;;  %v18914_v15 = vunpack.c.l.bf16 %v15529_v21 }
  0x3d   :  { %236 = vmatprep.mubr.f32.mxu0 %v18900_v23  ;;  %365 = vmatprep.mubr.f32.mxu1 %v18860_v24  ;;  %v18882_v24 = vunpack.c.h.bf16 %v15336_v49 }
  0x3e   :  { %13530 = vmatprep.subr.bf16.mxu0 %v15105_v36  ;;  %13562 = vmatprep.subr.bf16.mxu1 %v15105_v36 }
  0x3f   :  { %237 = vmatmul.mubr.f32.gmra.mrb[10].mxu0 %v18895_v33  ;;  %366 = vmatmul.mubr.f32.gmra.mrb[10].mxu1 %v18859_v34  ;;  %v18867_v34 = vunpack.c.l.bf16 %v15315_v40  ;;  %v15503_v33 = vld [vmem:[%s19083_s20 + $0xf0] sm:$0xff] }
  0x40   :  { %13532 = vmatpush3.bf16.msra.mxu0 %v15121_v41  ;;  %13564 = vmatpush3.bf16.msra.mxu1 %v15121_v41  ;;  %19098 = vst [vmem:[#allocation16_spill] sm:$0xff] %v15503_v33  ;;  %v18909_v23 = vunpack.c.l.bf16 %v15503_v33  ;;  %v118_v40 = vld [vmem:[%s19082_s26 + $0x1f0] sm:$0xff] }
  0x41   :  { %241 = vmatprep.mubr.f32.mxu0 %v18894_v37  ;;  %370 = vmatprep.mubr.f32.mxu1 %v18858_v38  ;;  %v18883_v38 = vunpack.c.l.bf16 %v15310_v39 }
  0x42   :  { %13534 = vmatprep.subr.bf16.mxu0 %v15125_v42  ;;  %13566 = vmatprep.subr.bf16.mxu1 %v15125_v42 }
  0x43   :  { %242 = vmatmul.mubr.f32.gmra.mrb[12].mxu0 %v18889_v43  ;;  %371 = vmatmul.mubr.f32.gmra.mrb[12].mxu1 %v18862_v44  ;;  %v15360_v44 = vld [vmem:[%s19083_s20 + $0x88] sm:$0xff] }
  0x44   :  { %13536 = vmatpush3.bf16.msra.mxu0 %v15141_v47  ;;  %13568 = vmatpush3.bf16.msra.mxu1 %v15141_v47  ;;  %v18876_v6 = vunpack.c.h.bf16 %v15360_v44  ;;  %v18880_v63 = vunpack.c.l.bf16 %v15360_v44  ;;  %v15477_v43 = vld [vmem:[%s19083_s20 + $0xe8] sm:$0xff] }
  0x45   :  { %246 = vmatprep.mubr.f32.mxu0 %v18888_v45  ;;  %375 = vmatprep.mubr.f32.mxu1 %v18863_v46  ;;  %v18877_v46 = vunpack.c.l.bf16 %v15336_v49  ;;  %19097 = vst [vmem:[#allocation15_spill] sm:$0xff] %v15477_v43  ;;  %v18903_v37 = vunpack.c.l.bf16 %v15477_v43 }
  0x46   :  { %13538 = vmatprep.subr.bf16.mxu0 %v15145_v48  ;;  %13570 = vmatprep.subr.bf16.mxu1 %v15145_v48 }
  0x47   :  { %247 = vmatmul.mubr.f32.gmra.mrb[14].mxu0 %v18883_v38  ;;  %376 = vmatmul.mubr.f32.gmra.mrb[14].mxu1 %v18867_v34  ;;  %v15385_v34 = vld [vmem:[%s19083_s20 + $0x90] sm:$0xff]  ;;  %v15451_v38 = vld [vmem:[%s19083_s20 + $0xe0] sm:$0xff] }
  0x48   :  { %13540 = vmatpush3.bf16.msra.mxu0 %v15155_v51  ;;  %13572 = vmatpush3.bf16.msra.mxu1 %v15155_v51  ;;  %v18881_v57 = vunpack.c.h.bf16 %v15385_v34  ;;  %v18886_v29 = vunpack.c.l.bf16 %v15385_v34  ;;  %19096 = vst [vmem:[#allocation14_spill] sm:$0xff] %v15451_v38  ;;  %v18897_v45 = vunpack.c.l.bf16 %v15451_v38 }
  0x49   :  { %469 = vmatprep.mubr.f32.mxu0 %v18882_v24  ;;  %598 = vmatprep.mubr.f32.mxu1 %v18870_v22  ;;  %v18879_v22 = vunpack.c.l.bf16 %v15373_v12  ;;  %v116_v12 = vld [vmem:[%s19082_s26 + $0x1e0] sm:$0xff] }
  0x4a   :  { %13574 = vmatprep.subr.bf16.mxu0 %v14994_v3  ;;  %13606 = vmatprep.subr.bf16.mxu1 %v14994_v3 }
  0x4b   :  { %470 = vmatmul.mubr.f32.vlgmr.msra.gmra.mrb[16].mxu0 %v18877_v46  ;;  %599 = vmatmul.mubr.f32.vlgmr.msra.gmra.mrb[16].mxu1 %v18873_v16  ;;  %v15410_v16 = vld [vmem:[%s19083_s20 + $0x98] sm:$0xff] }
  0x4c   :  { %13576 = vmatpush3.bf16.msra.mxu0 %v15005_v7  ;;  %474 = vmatprep.mubr.f32.mxu0 %v18876_v6  ;;  %v18885_v6 = vunpack.c.l.bf16 %v15399_v61  ;;  %v15425_v46 = vld [vmem:[%s19083_s20 + $0xd8] sm:$0xff]  ;;  %v98_v61 = vld [vmem:[%s19082_s26 + $0x150] sm:$0xff] }
  0x4d   :  { %13578 = vmatprep.subr.bf16.mxu0 %v15007_v8  ;;  %13608 = vmatpush3.bf16.msra.mxu1 %v15005_v7  ;;  %19095 = vst [vmem:[#allocation13_spill] sm:$0xff] %v15425_v46  ;;  %v18891_v24 = vunpack.c.l.bf16 %v15425_v46 }
  0x4e   :  { %603 = vmatprep.mubr.f32.mxu1 %v18878_v4  ;;  %13610 = vmatprep.subr.bf16.mxu1 %v15007_v8  ;;  %v18887_v4 = vunpack.c.h.bf16 %v15410_v16 }
  0x4f   :  { %475 = vmatmul.mubr.f32.gmra.mrb[18].mxu0 %v18880_v63  ;;  %604 = vmatmul.mubr.f32.gmra.mrb[18].mxu1 %v18879_v22  ;;  %v15436_v22 = vld [vmem:[%s19083_s20 + $0xa0] sm:$0xff]  ;;  %v18890_v63 = vunpack.c.h.bf16 %v15425_v46  ;;  %v114_v46 = vld [vmem:[%s19082_s26 + $0x1d0] sm:$0xff] }
  0x50   :  { %13580 = vmatpush3.bf16.msra.mxu0 %v15025_v13  ;;  %479 = vmatprep.mubr.f32.mxu0 %v18881_v57  ;;  %v18892_v57 = vunpack.c.l.bf16 %v15410_v16 }
  0x51   :  { %13582 = vmatprep.subr.bf16.mxu0 %v15029_v14  ;;  %13612 = vmatpush3.bf16.msra.mxu1 %v15025_v13 }
  0x52   :  { %608 = vmatprep.mubr.f32.mxu1 %v18884_v55  ;;  %13614 = vmatprep.subr.bf16.mxu1 %v15029_v14  ;;  %v18893_v55 = vunpack.c.h.bf16 %v15436_v22 }
  0x53   :  { %480 = vmatmul.mubr.f32.gmra.mrb[20].mxu0 %v18886_v29  ;;  %609 = vmatmul.mubr.f32.gmra.mrb[20].mxu1 %v18885_v6  ;;  %v15462_v6 = vld [vmem:[%s19083_s20 + $0xa8] sm:$0xff]  ;;  %v18896_v29 = vunpack.c.h.bf16 %v15451_v38  ;;  %v96_v38 = vld [vmem:[%s19082_s26 + $0x140] sm:$0xff] }
  0x54   :  { %13584 = vmatpush3.bf16.msra.mxu0 %v15045_v19  ;;  %484 = vmatprep.mubr.f32.mxu0 %v18887_v4  ;;  %v18898_v4 = vunpack.c.l.bf16 %v15436_v22 }
  0x55   :  { %13586 = vmatprep.subr.bf16.mxu0 %v15049_v20  ;;  %13616 = vmatpush3.bf16.msra.mxu1 %v15045_v19 }
  0x56   :  { %613 = vmatprep.mubr.f32.mxu1 %v18890_v63  ;;  %13618 = vmatprep.subr.bf16.mxu1 %v15049_v20  ;;  %v18899_v63 = vunpack.c.h.bf16 %v15462_v6 }
  0x57   :  { %485 = vmatmul.mubr.f32.gmra.mrb[22].mxu0 %v18892_v57  ;;  %614 = vmatmul.mubr.f32.gmra.mrb[22].mxu1 %v18891_v24  ;;  %v15488_v24 = vld [vmem:[%s19083_s20 + $0xb0] sm:$0xff]  ;;  %v18902_v57 = vunpack.c.h.bf16 %v15477_v43 }
  0x58   :  { %13588 = vmatpush3.bf16.msra.mxu0 %v15076_v28  ;;  %489 = vmatprep.mubr.f32.mxu0 %v18893_v55  ;;  %v18904_v55 = vunpack.c.l.bf16 %v15462_v6 }
  0x59   :  { %13590 = vmatprep.subr.bf16.mxu0 %v15081_v30  ;;  %13620 = vmatpush3.bf16.msra.mxu1 %v15076_v28 }
  0x5a   :  { %618 = vmatprep.mubr.f32.mxu1 %v18896_v29  ;;  %13622 = vmatprep.subr.bf16.mxu1 %v15081_v30  ;;  %v18905_v29 = vunpack.c.h.bf16 %v15488_v24 }
  0x5b   :  { %490 = vmatmul.mubr.f32.gmra.mrb[24].mxu0 %v18898_v4  ;;  %619 = vmatmul.mubr.f32.gmra.mrb[24].mxu1 %v18897_v45  ;;  %v15514_v45 = vld [vmem:[%s19083_s20 + $0xb8] sm:$0xff]  ;;  %v18908_v4 = vunpack.c.h.bf16 %v15503_v33 }
  0x5c   :  { %13592 = vmatpush3.bf16.msra.mxu0 %v15101_v35  ;;  %494 = vmatprep.mubr.f32.mxu0 %v18899_v63  ;;  %v18910_v63 = vunpack.c.l.bf16 %v15488_v24 }
  0x5d   :  { %13594 = vmatprep.subr.bf16.mxu0 %v15105_v36  ;;  %13624 = vmatpush3.bf16.msra.mxu1 %v15101_v35 }
  0x5e   :  { %623 = vmatprep.mubr.f32.mxu1 %v18902_v57  ;;  %13626 = vmatprep.subr.bf16.mxu1 %v15105_v36  ;;  %v18911_v57 = vunpack.c.h.bf16 %v15514_v45 }
  0x5f   :  { %495 = vmatmul.mubr.f32.gmra.mrb[26].mxu0 %v18904_v55  ;;  %624 = vmatmul.mubr.f32.gmra.mrb[26].mxu1 %v18903_v37  ;;  %v15540_v37 = vld [vmem:[%s19083_s20 + $0x100] sm:$0xff]  ;;  %v18913_v55 = vunpack.c.h.bf16 %v15529_v21 }
  0x60   :  { %13596 = vmatpush3.bf16.msra.mxu0 %v15121_v41  ;;  %499 = vmatprep.mubr.f32.mxu0 %v18905_v29  ;;  %v18915_v29 = vunpack.c.l.bf16 %v15514_v45 }
  0x61   :  { %13598 = vmatprep.subr.bf16.mxu0 %v15125_v42  ;;  %13628 = vmatpush3.bf16.msra.mxu1 %v15121_v41 }
  0x62   :  { %628 = vmatprep.mubr.f32.mxu1 %v18908_v4  ;;  %13630 = vmatprep.subr.bf16.mxu1 %v15125_v42  ;;  %v18916_v4 = vunpack.c.h.bf16 %v15540_v37 }
  0x63   :  { %500 = vmatmul.mubr.f32.gmra.mrb[28].mxu0 %v18910_v63  ;;  %629 = vmatmul.mubr.f32.gmra.mrb[28].mxu1 %v18909_v23  ;;  %v15566_v23 = vld [vmem:[%s19083_s20 + $0x108] sm:$0xff]  ;;  %v18919_v63 = vunpack.c.h.bf16 %v15555_v11 }
  0x64   :  { %13600 = vmatpush3.bf16.msra.mxu0 %v15141_v47  ;;  %504 = vmatprep.mubr.f32.mxu0 %v18911_v57  ;;  %v18920_v57 = vunpack.c.l.bf16 %v15540_v37  ;;  %v18926_v2 = vunpack.c.l.bf16 %v15566_v23 }
  0x65   :  { %13602 = vmatprep.subr.bf16.mxu0 %v15145_v48  ;;  %13632 = vmatpush3.bf16.msra.mxu1 %v15141_v47 }
  0x66   :  { %633 = vmatprep.mubr.f32.mxu1 %v18913_v55  ;;  %13634 = vmatprep.subr.bf16.mxu1 %v15145_v48  ;;  %v18922_v55 = vunpack.c.h.bf16 %v15566_v23 }
  0x67   :  { %505 = vmatmul.mubr.f32.gmra.mrb[30].mxu0 %v18915_v29  ;;  %634 = vmatmul.mubr.f32.gmra.mrb[30].mxu1 %v18914_v15  ;;  %v18923_v15 = vunpack.c.l.bf16 %v15555_v11  ;;  %v15592_v29 = vld [vmem:[%s19083_s20 + $0x110] sm:$0xff] }
  0x68   :  { %13604 = vmatpush3.bf16.msra.mxu0 %v15155_v51  ;;  %727 = vmatprep.mubr.f32.mxu0 %v18916_v4  ;;  %v18925_v4 = vunpack.c.h.bf16 %v15580_v5 }
  0x69   :  { %13636 = vmatpush3.bf16.msra.mxu1 %v15155_v51  ;;  %13638 = vmatprep.subr.bf16.mxu0 %v14994_v3 }
  0x6a   :  { %856 = vmatprep.mubr.f32.mxu1 %v18919_v63  ;;  %13670 = vmatprep.subr.bf16.mxu1 %v14994_v3  ;;  %v18928_v63 = vunpack.c.h.bf16 %v15592_v29 }
  0x6b   :  { %728 = vmatmul.mubr.f32.vlgmr.msra.gmra.mrb[32].mxu0 %v18920_v57  ;;  %v18929_v57 = vunpack.c.l.bf16 %v15580_v5  ;;  %v19109_v5 = vunpack.c.h.bf16 %v15656_v26 }
  0x6c   :  { %13640 = vmatpush3.bf16.msra.mxu0 %v15005_v7  ;;  %732 = vmatprep.mubr.f32.mxu0 %v18922_v55  ;;  %v18931_v55 = vunpack.c.h.bf16 %v15604_v62 }
  0x6d   :  { %857 = vmatmul.mubr.f32.vlgmr.msra.gmra.mrb[32].mxu1 %v18923_v15  ;;  %13642 = vmatprep.subr.bf16.mxu0 %v15007_v8  ;;  %v18932_v15 = vunpack.c.l.bf16 %v15592_v29 }
  0x6e   :  { %13672 = vmatpush3.bf16.msra.mxu1 %v15005_v7  ;;  %861 = vmatprep.mubr.f32.mxu1 %v18925_v4  ;;  %v18933_v4 = vunpack.c.h.bf16 %v15617_v60 }
  0x6f   :  { %733 = vmatmul.mubr.f32.gmra.mrb[34].mxu0 %v18926_v2  ;;  %13674 = vmatprep.subr.bf16.mxu1 %v15007_v8  ;;  %v18934_v2 = vunpack.c.l.bf16 %v15604_v62  ;;  %v19107_v62 = vunpack.c.h.bf16 %v15643_v54 }
  0x70   :  { %13644 = vmatpush3.bf16.msra.mxu0 %v15025_v13  ;;  %737 = vmatprep.mubr.f32.mxu0 %v18928_v63  ;;  %v18937_v63 = vunpack.c.h.bf16 %v15630_v56 }
  0x71   :  { %862 = vmatmul.mubr.f32.gmra.mrb[34].mxu1 %v18929_v57  ;;  %13646 = vmatprep.subr.bf16.mxu0 %v15029_v14  ;;  %v15669_v57 = vld [vmem:[%s19083_s20 + $0x128] sm:$0xff] }
  0x72   :  { %13676 = vmatpush3.bf16.msra.mxu1 %v15025_v13  ;;  %866 = vmatprep.mubr.f32.mxu1 %v18931_v55  ;;  %v19105_v55 = vunpack.c.l.bf16 %v15617_v60 }
  0x73   :  { %738 = vmatmul.mubr.f32.gmra.mrb[36].mxu0 %v18932_v15  ;;  %13678 = vmatprep.subr.bf16.mxu1 %v15029_v14  ;;  %v15682_v15 = vld [vmem:[%s19083_s20 + $0x168] sm:$0xff] }
  0x74   :  { %13648 = vmatpush3.bf16.msra.mxu0 %v15045_v19  ;;  %742 = vmatprep.mubr.f32.mxu0 %v18933_v4  ;;  %19106 = vst [vmem:[#allocation23_spill] sm:$0xff] %v15682_v15  ;;  %v19108_v4 = vunpack.c.l.bf16 %v15630_v56  ;;  %v19112_v56 = vunpack.c.h.bf16 %v15669_v57  ;;  %v19114_v11 = vunpack.c.h.bf16 %v15682_v15 }
  0x75   :  { %867 = vmatmul.mubr.f32.gmra.mrb[36].mxu1 %v18934_v2  ;;  %13650 = vmatprep.subr.bf16.mxu0 %v15049_v20  ;;  %v15695_v2 = vld [vmem:[%s19083_s20 + $0x130] sm:$0xff] }
  0x76   :  { %13680 = vmatpush3.bf16.msra.mxu1 %v15045_v19  ;;  %871 = vmatprep.mubr.f32.mxu1 %v18937_v63  ;;  %v19110_v63 = vunpack.c.l.bf16 %v15643_v54 }
  0x77   :  { %743 = vmatmul.mubr.f32.gmra.mrb[38].mxu0 %v19105_v55  ;;  %13682 = vmatprep.subr.bf16.mxu1 %v15049_v20  ;;  %v15708_v55 = vld [vmem:[%s19083_s20 + $0x170] sm:$0xff] }
  0x78   :  { %13652 = vmatpush3.bf16.msra.mxu0 %v15076_v28  ;;  %747 = vmatprep.mubr.f32.mxu0 %v19107_v62  ;;  %19111 = vst [vmem:[#allocation24_spill] sm:$0xff] %v15708_v55  ;;  %v19113_v62 = vunpack.c.l.bf16 %v15656_v26  ;;  %v19117_v26 = vunpack.c.h.bf16 %v15695_v2  ;;  %v19119_v21 = vunpack.c.h.bf16 %v15708_v55 }
  0x79   :  { %872 = vmatmul.mubr.f32.gmra.mrb[38].mxu1 %v19108_v4  ;;  %13654 = vmatprep.subr.bf16.mxu0 %v15081_v30  ;;  %v15721_v4 = vld [vmem:[%s19083_s20 + $0x138] sm:$0xff] }
  0x7a   :  { %13684 = vmatpush3.bf16.msra.mxu1 %v15076_v28  ;;  %876 = vmatprep.mubr.f32.mxu1 %v19109_v5  ;;  %v19115_v5 = vunpack.c.l.bf16 %v15669_v57 }
  0x7b   :  { %748 = vmatmul.mubr.f32.gmra.mrb[40].mxu0 %v19110_v63  ;;  %13686 = vmatprep.subr.bf16.mxu1 %v15081_v30  ;;  %v15734_v63 = vld [vmem:[%s19083_s20 + $0x178] sm:$0xff] }
  0x7c   :  { %13656 = vmatpush3.bf16.msra.mxu0 %v15101_v35  ;;  %752 = vmatprep.mubr.f32.mxu0 %v19112_v56  ;;  %19116 = vst [vmem:[#allocation25_spill] sm:$0xff] %v15734_v63  ;;  %v19118_v56 = vunpack.c.l.bf16 %v15682_v15  ;;  %v19122_v15 = vunpack.c.h.bf16 %v15721_v4  ;;  %v19124_v33 = vunpack.c.h.bf16 %v15734_v63 }
  0x7d   :  { %877 = vmatmul.mubr.f32.gmra.mrb[40].mxu1 %v19113_v62  ;;  %13658 = vmatprep.subr.bf16.mxu0 %v15105_v36  ;;  %v15747_v62 = vld [vmem:[%s19083_s20 + $0x180] sm:$0xff] }
  0x7e   :  { %13688 = vmatpush3.bf16.msra.mxu1 %v15101_v35  ;;  %881 = vmatprep.mubr.f32.mxu1 %v19114_v11  ;;  %v19120_v11 = vunpack.c.l.bf16 %v15695_v2 }
  0x7f   :  { %753 = vmatmul.mubr.f32.gmra.mrb[42].mxu0 %v19115_v5  ;;  %13690 = vmatprep.subr.bf16.mxu1 %v15105_v36  ;;  %v15760_v5 = vld [vmem:[%s19083_s20 + $0x1c0] sm:$0xff] }
  0x80   :  { %13660 = vmatpush3.bf16.msra.mxu0 %v15121_v41  ;;  %757 = vmatprep.mubr.f32.mxu0 %v19117_v26  ;;  %19121 = vst [vmem:[#allocation26_spill] sm:$0xff] %v15760_v5  ;;  %v19123_v26 = vunpack.c.l.bf16 %v15708_v55  ;;  %v19127_v55 = vunpack.c.h.bf16 %v15747_v62  ;;  %v19129_v43 = vunpack.c.h.bf16 %v15760_v5 }
  0x81   :  { %882 = vmatmul.mubr.f32.gmra.mrb[42].mxu1 %v19118_v56  ;;  %13662 = vmatprep.subr.bf16.mxu0 %v15125_v42  ;;  %v15773_v56 = vld [vmem:[%s19083_s20 + $0x188] sm:$0xff] }
  0x82   :  { %13692 = vmatpush3.bf16.msra.mxu1 %v15121_v41  ;;  %886 = vmatprep.mubr.f32.mxu1 %v19119_v21  ;;  %v19125_v21 = vunpack.c.l.bf16 %v15721_v4 }
  0x83   :  { %758 = vmatmul.mubr.f32.gmra.mrb[44].mxu0 %v19120_v11  ;;  %13694 = vmatprep.subr.bf16.mxu1 %v15125_v42  ;;  %v15786_v11 = vld [vmem:[%s19083_s20 + $0x1c8] sm:$0xff] }
  0x84   :  { %13664 = vmatpush3.bf16.msra.mxu0 %v15141_v47  ;;  %762 = vmatprep.mubr.f32.mxu0 %v19122_v15  ;;  %19126 = vst [vmem:[#allocation27_spill] sm:$0xff] %v15786_v11  ;;  %v19128_v15 = vunpack.c.l.bf16 %v15734_v63  ;;  %v15848_v63 = vld [vmem:[%s19083_s20 + $0x1a0] sm:$0xff] }
  0x85   :  { %887 = vmatmul.mubr.f32.gmra.mrb[44].mxu1 %v19123_v26  ;;  %13666 = vmatprep.subr.bf16.mxu0 %v15145_v48  ;;  %v15799_v26 = vld [vmem:[%s19083_s20 + $0x190] sm:$0xff] }
  0x86   :  { %13696 = vmatpush3.bf16.msra.mxu1 %v15141_v47  ;;  %891 = vmatprep.mubr.f32.mxu1 %v19124_v33  ;;  %v19130_v33 = vunpack.c.l.bf16 %v15747_v62 }
  0x87   :  { %763 = vmatmul.mubr.f32.gmra.mrb[46].mxu0 %v19125_v21  ;;  %13698 = vmatprep.subr.bf16.mxu1 %v15145_v48  ;;  %v19132_v21 = vunpack.c.h.bf16 %v15773_v56 }
  0x88   :  { %13668 = vmatpush3.bf16.msra.mxu0 %v15155_v51  ;;  %985 = vmatprep.mubr.f32.mxu0 %v19127_v55  ;;  %v18958_v55 = vunpack.c.h.bf16 %v15786_v11 }
  0x89   :  { %892 = vmatmul.mubr.f32.gmra.mrb[46].mxu1 %v19128_v15  ;;  %13702 = vmatprep.subr.bf16.mxu0 %v14994_v3  ;;  %v15811_v3 = vld [vmem:[%s19083_s20 + $0x1d0] sm:$0xff]  ;;  %v15824_v15 = vld [vmem:[%s19083_s20 + $0x198] sm:$0xff] }
  0x8a   :  { %13700 = vmatpush3.bf16.msra.mxu1 %v15155_v51  ;;  %1114 = vmatprep.mubr.f32.mxu1 %v19129_v43  ;;  %19131 = vst [vmem:[#allocation28_spill] sm:$0xff] %v15811_v3  ;;  %v19133_v43 = vunpack.c.l.bf16 %v15760_v5  ;;  %v112_v5 = vld [vmem:[%s19082_s26 + $0x1c0] sm:$0xff] }
  0x8b   :  { %986 = vmatmul.mubr.f32.vlgmr.msra.gmra.mrb[48].mxu0 %v19130_v33  ;;  %v15872_v33 = vld [vmem:[%s19083_s20 + $0x1a8] sm:$0xff] }
  0x8c   :  { %13704 = vmatpush3.bf16.msra.mxu0 %v15005_v7  ;;  %990 = vmatprep.mubr.f32.mxu0 %v19132_v21  ;;  %v18959_v7 = vunpack.c.h.bf16 %v15811_v3  ;;  %v19134_v21 = vunpack.c.l.bf16 %v15773_v56 }
  0x8d   :  { %1115 = vmatmul.mubr.f32.vlgmr.msra.gmra.mrb[48].mxu1 %v19133_v43  ;;  %13706 = vmatprep.subr.bf16.mxu0 %v15007_v8  ;;  %v15835_v8 = vld [vmem:[%s19083_s20 + $0x1d8] sm:$0xff]  ;;  %v19136_v43 = vunpack.c.h.bf16 %v15799_v26 }
  0x8e   :  { %1119 = vmatprep.mubr.f32.mxu1 %v18958_v55  ;;  %19135 = vst [vmem:[#allocation29_spill] sm:$0xff] %v15835_v8  ;;  %v19137_v55 = vunpack.c.l.bf16 %v15786_v11  ;;  %v94_v11 = vld [vmem:[%s19082_s26 + $0x130] sm:$0xff] }
  0x8f   :  { %991 = vmatmul.mubr.f32.gmra.mrb[50].mxu0 %v19134_v21 }
  0x90   :  { %13708 = vmatpush3.bf16.msra.mxu0 %v15025_v13  ;;  %995 = vmatprep.mubr.f32.mxu0 %v19136_v43  ;;  %v18960_v13 = vunpack.c.h.bf16 %v15835_v8  ;;  %v19138_v43 = vunpack.c.l.bf16 %v15799_v26 }
  0x91   :  { %1120 = vmatmul.mubr.f32.gmra.mrb[50].mxu1 %v19137_v55  ;;  %13710 = vmatprep.subr.bf16.mxu0 %v15029_v14  ;;  %v15859_v14 = vld [vmem:[%s19083_s20 + $0x1e0] sm:$0xff]  ;;  %v19140_v55 = vunpack.c.h.bf16 %v15824_v15 }
  0x92   :  { %1124 = vmatprep.mubr.f32.mxu1 %v18959_v7  ;;  %19139 = vst [vmem:[#allocation30_spill] sm:$0xff] %v15859_v14  ;;  %v19141_v7 = vunpack.c.l.bf16 %v15811_v3  ;;  %v110_v3 = vld [vmem:[%s19082_s26 + $0x1b0] sm:$0xff] }
  0x93   :  { %996 = vmatmul.mubr.f32.gmra.mrb[52].mxu0 %v19138_v43 }
  0x94   :  { %13712 = vmatpush3.bf16.msra.mxu0 %v15045_v19  ;;  %1000 = vmatprep.mubr.f32.mxu0 %v19140_v55  ;;  %v18961_v19 = vunpack.c.h.bf16 %v15859_v14  ;;  %v19142_v55 = vunpack.c.l.bf16 %v15824_v15 }
  0x95   :  { %1125 = vmatmul.mubr.f32.gmra.mrb[52].mxu1 %v19141_v7  ;;  %13714 = vmatprep.subr.bf16.mxu0 %v15049_v20  ;;  %v15883_v20 = vld [vmem:[%s19083_s20 + $0x1e8] sm:$0xff]  ;;  %v19144_v7 = vunpack.c.h.bf16 %v15848_v63 }
  0x96   :  { %1129 = vmatprep.mubr.f32.mxu1 %v18960_v13  ;;  %19143 = vst [vmem:[#allocation31_spill] sm:$0xff] %v15883_v20  ;;  %v19145_v13 = vunpack.c.l.bf16 %v15835_v8  ;;  %v92_v8 = vld [vmem:[%s19082_s26 + $0x120] sm:$0xff] }
  0x97   :  { %1001 = vmatmul.mubr.f32.gmra.mrb[54].mxu0 %v19142_v55  ;;  %v15895_v55 = vld [vmem:[%s19083_s20 + $0x1b0] sm:$0xff] }
  0x98   :  { %13716 = vmatpush3.bf16.msra.mxu0 %v15076_v28  ;;  %1005 = vmatprep.mubr.f32.mxu0 %v19144_v7  ;;  %v18962_v28 = vunpack.c.h.bf16 %v15883_v20  ;;  %v19146_v7 = vunpack.c.l.bf16 %v15848_v63  ;;  %v18963_v21 = vunpack.c.h.bf16 %v15895_v55 }
  0x99   :  { %1130 = vmatmul.mubr.f32.gmra.mrb[54].mxu1 %v19145_v13  ;;  %13718 = vmatprep.subr.bf16.mxu0 %v15081_v30  ;;  %v15907_v30 = vld [vmem:[%s19083_s20 + $0x1f0] sm:$0xff]  ;;  %v19148_v13 = vunpack.c.h.bf16 %v15872_v33 }
  0x9a   :  { %1134 = vmatprep.mubr.f32.mxu1 %v18961_v19  ;;  %19147 = vst [vmem:[#allocation32_spill] sm:$0xff] %v15907_v30  ;;  %v19149_v19 = vunpack.c.l.bf16 %v15859_v14  ;;  %v108_v14 = vld [vmem:[%s19082_s26 + $0x1a0] sm:$0xff] }
  0x9b   :  { %1006 = vmatmul.mubr.f32.gmra.mrb[56].mxu0 %v19146_v7  ;;  %v15919_v7 = vld [vmem:[%s19083_s20 + $0x1b8] sm:$0xff] }
  0x9c   :  { %13720 = vmatpush3.bf16.msra.mxu0 %v15101_v35  ;;  %1010 = vmatprep.mubr.f32.mxu0 %v19148_v13  ;;  %v18968_v35 = vunpack.c.h.bf16 %v15907_v30  ;;  %v19150_v13 = vunpack.c.l.bf16 %v15872_v33  ;;  %v18978_v43 = vunpack.c.h.bf16 %v15919_v7 }
  0x9d   :  { %13722 = vmatprep.subr.bf16.mxu0 %v15105_v36  ;;  %1135 = vmatmul.mubr.f32.gmra.mrb[56].mxu1 %v19149_v19  ;;  %v15931_v19 = vld [vmem:[%s19083_s20 + $0x1f8] sm:$0xff]  ;;  %v18966_v36 = vunpack.c.l.bf16 %v15907_v30  ;;  %v90_v30 = vld [vmem:[%s19082_s26 + $0x110] sm:$0xff] }
  0x9e   :  { %1139 = vmatprep.mubr.f32.mxu1 %v18962_v28  ;;  %19151 = vst [vmem:[#allocation33_spill] sm:$0xff] %v15931_v19  ;;  %v19152_v28 = vunpack.c.l.bf16 %v15883_v20 }
  0x9f   :  { %1011 = vmatmul.mubr.f32.gmra.mrb[58].mxu0 %v19150_v13  ;;  %v15941_v13 = vld [vmem:[%s19083_s20 + $0x200] sm:$0xff] }
  0xa0   :  { %13724 = vmatpush3.bf16.msra.mxu0 %v15121_v41  ;;  %1015 = vmatprep.mubr.f32.mxu0 %v18963_v21  ;;  %v18967_v41 = vunpack.c.h.bf16 %v15931_v19  ;;  %v19153_v21 = vunpack.c.l.bf16 %v15895_v55  ;;  %v18972_v20 = vunpack.c.h.bf16 %v15941_v13 }
  0xa1   :  { %13726 = vmatprep.subr.bf16.mxu0 %v15125_v42  ;;  %1140 = vmatmul.mubr.f32.gmra.mrb[58].mxu1 %v19152_v28  ;;  %v18975_v42 = vunpack.c.l.bf16 %v15919_v7  ;;  %v15960_v28 = vld [vmem:[%s19083_s20 + $0x208] sm:$0xff] }
  0xa2   :  { %1144 = vmatprep.mubr.f32.mxu1 %v18968_v35  ;;  %v15990_v35 = vld [vmem:[%s19083_s20 + $0x218] sm:$0xff] }
  0xa3   :  { %1016 = vmatmul.mubr.f32.gmra.mrb[60].mxu0 %v19153_v21  ;;  %v18969_v21 = vunpack.c.l.bf16 %v15931_v19 }
  0xa4   :  { %13728 = vmatpush3.bf16.msra.mxu0 %v15141_v47  ;;  %1020 = vmatprep.mubr.f32.mxu0 %v18978_v43  ;;  %v18970_v47 = vunpack.c.l.bf16 %v15941_v13 }
  0xa5   :  { %13730 = vmatprep.subr.bf16.mxu0 %v15145_v48  ;;  %1145 = vmatmul.mubr.f32.gmra.mrb[60].mxu1 %v18966_v36  ;;  %v18971_v48 = vunpack.c.h.bf16 %v15960_v28  ;;  %v15977_v36 = vld [vmem:[%s19083_s20 + $0x210] sm:$0xff] }
  0xa6   :  { %1149 = vmatprep.mubr.f32.mxu1 %v18967_v41  ;;  %v18973_v41 = vunpack.c.l.bf16 %v15960_v28 }
  0xa7   :  { %1021 = vmatmul.mubr.f32.gmra.mrb[62].mxu0 %v18975_v42 }
  0xa8   :  { %13732 = vmatpush3.bf16.msra.mxu0 %v15155_v51  ;;  %1243 = vmatprep.mubr.f32.mxu0 %v18972_v20  ;;  %v18974_v51 = vunpack.c.h.bf16 %v15977_v36  ;;  %v18979_v20 = vunpack.c.l.bf16 %v15990_v35 }
  0xa9   :  { %1150 = vmatmul.mubr.f32.gmra.mrb[62].mxu1 %v18969_v21  ;;  %v18976_v21 = vunpack.c.l.bf16 %v15977_v36 }
  0xab   :  { %1244 = vmatmul.mubr.f32.vlgmr.msra.gmra.mrb[64].mxu0 %v18970_v47  ;;  %v18977_v47 = vunpack.c.h.bf16 %v15990_v35 }
  0xac   :  { %1248 = vmatprep.mubr.f32.mxu0 %v18971_v48  ;;  %v16001_v48 = vld [vmem:[%s19083_s20 + $0x220] sm:$0xff] }
  0xad   :  { %19154 = vst [vmem:[#allocation34_spill] sm:$0xff] %v16001_v48  ;;  %v18983_v42 = vunpack.c.l.bf16 %v16001_v48 }
  0xaf   :  { %1249 = vmatmul.mubr.f32.gmra.mrb[66].mxu0 %v18973_v41  ;;  %v18980_v41 = vunpack.c.h.bf16 %v16001_v48  ;;  %v19169_v48 = vunpack.c.h.bf16 %v15162_v52 }
  0xb0   :  { %1253 = vmatprep.mubr.f32.mxu0 %v18974_v51  ;;  %v16012_v51 = vld [vmem:[%s19083_s20 + $0x228] sm:$0xff] }
  0xb1   :  { %19155 = vst [vmem:[#allocation35_spill] sm:$0xff] %v16012_v51  ;;  %v18985_v43 = vunpack.c.l.bf16 %v16012_v51 }
  0xb3   :  { %1254 = vmatmul.mubr.f32.gmra.mrb[68].mxu0 %v18976_v21  ;;  %v18984_v21 = vunpack.c.h.bf16 %v16012_v51 }
  0xb4   :  { %1258 = vmatprep.mubr.f32.mxu0 %v18977_v47  ;;  %v16023_v47 = vld [vmem:[%s19083_s20 + $0x230] sm:$0xff] }
  0xb5   :  { %19156 = vst [vmem:[#allocation36_spill] sm:$0xff] %v16023_v47  ;;  %v18989_v19 = vunpack.c.l.bf16 %v16023_v47 }
  0xb7   :  { %1259 = vmatmul.mubr.f32.gmra.mrb[70].mxu0 %v18979_v20  ;;  %v18986_v20 = vunpack.c.h.bf16 %v16023_v47  ;;  %v105_v47 = vld [vmem:[%s19082_s26 + $0x188] sm:$0xff] }
  0xb8   :  { %1263 = vmatprep.mubr.f32.mxu0 %v18980_v41  ;;  %v16034_v41 = vld [vmem:[%s19083_s20 + $0x238] sm:$0xff] }
  0xb9   :  { %19157 = vst [vmem:[#allocation37_spill] sm:$0xff] %v16034_v41 }
  0xbb   :  { %1264 = vmatmul.mubr.f32.gmra.mrb[72].mxu0 %v18983_v42  ;;  %v18990_v42 = vunpack.c.h.bf16 %v16034_v41 }
  0xbc   :  { %1268 = vmatprep.mubr.f32.mxu0 %v18984_v21  ;;  %v18991_v21 = vunpack.c.l.bf16 %v16034_v41 }
  0xbf   :  { %1269 = vmatmul.mubr.f32.gmra.mrb[74].mxu0 %v18985_v43  ;;  %v19158_v43 = vunpack.c.h.bf16 %v15066_v25 }
  0xc0   :  { %1273 = vmatprep.mubr.f32.mxu0 %v18986_v20  ;;  %v104_v20 = vld [vmem:[%s19082_s26 + $0x180] sm:$0xff] }
  0xc3   :  { %1274 = vmatmul.mubr.f32.gmra.mrb[76].mxu0 %v18989_v19  ;;  %v16057_v19 = vpack.c.bf16 %v105_v47, %v104_v20  ;;  %v107_v20 = vld [vmem:[%s19082_s26 + $0x198] sm:$0xff] }
  0xc4   :  { %1278 = vmatprep.mubr.f32.mxu0 %v18990_v42  ;;  %v88_v42 = vld [vmem:[%s19082_s26 + $0x100] sm:$0xff] }
  0xc5   :  { %19159 = vst [vmem:[#allocation38_spill] sm:$0xff] %v16057_v19  ;;  %13738 = vmatprep.subr.bf16.mxu0 %v16057_v19 }
  0xc7   :  { %1279 = vmatmul.mubr.f32.gmra.mrb[78].mxu0 %v18991_v21  ;;  %v89_v21 = vld [vmem:[%s19082_s26 + $0x108] sm:$0xff] }
  0xc8   :  { %1810 = vmatprep.mubr.f32.mxu0 %v19158_v43  ;;  %v16065_v41 = vpack.c.bf16 %v89_v21, %v88_v42  ;;  %v106_v43 = vld [vmem:[%s19082_s26 + $0x190] sm:$0xff]  ;;  %v91_v42 = vld [vmem:[%s19082_s26 + $0x118] sm:$0xff] }
  0xc9   :  { %v16075_v47 = vpack.c.bf16 %v107_v20, %v106_v43  ;;  %v16083_v21 = vpack.c.bf16 %v91_v42, %v90_v30  ;;  %v109_v43 = vld [vmem:[%s19082_s26 + $0x1a8] sm:$0xff] }
  0xca   :  { %13740 = vmatpush3.bf16.msra.mxu0 %v16065_v41  ;;  %v16093_v20 = vpack.c.bf16 %v109_v43, %v108_v14  ;;  %v93_v30 = vld [vmem:[%s19082_s26 + $0x128] sm:$0xff]  ;;  %v111_v14 = vld [vmem:[%s19082_s26 + $0x1b8] sm:$0xff] }
  0xcb   :  { %13742 = vmatprep.subr.bf16.mxu0 %v16075_v47  ;;  %v16101_v42 = vpack.c.bf16 %v93_v30, %v92_v8  ;;  %v16111_v43 = vpack.c.bf16 %v111_v14, %v110_v3  ;;  %v95_v8 = vld [vmem:[%s19082_s26 + $0x138] sm:$0xff]  ;;  %v113_v3 = vld [vmem:[%s19082_s26 + $0x1c8] sm:$0xff] }
  0xcc   :  { %v16119_v30 = vpack.c.bf16 %v95_v8, %v94_v11  ;;  %v16129_v14 = vpack.c.bf16 %v113_v3, %v112_v5  ;;  %v97_v11 = vld [vmem:[%s19082_s26 + $0x148] sm:$0xff]  ;;  %v115_v5 = vld [vmem:[%s19082_s26 + $0x1d8] sm:$0xff] }
  0xcd   :  { %v16137_v8 = vpack.c.bf16 %v97_v11, %v96_v38  ;;  %v16147_v3 = vpack.c.bf16 %v115_v5, %v114_v46  ;;  %v99_v38 = vld [vmem:[%s19082_s26 + $0x158] sm:$0xff]  ;;  %v117_v46 = vld [vmem:[%s19082_s26 + $0x1e8] sm:$0xff] }
  0xce   :  { %13744 = vmatpush3.bf16.msra.mxu0 %v16083_v21  ;;  %v16155_v11 = vpack.c.bf16 %v99_v38, %v98_v61  ;;  %v16165_v5 = vpack.c.bf16 %v117_v46, %v116_v12  ;;  %v101_v61 = vld [vmem:[%s19082_s26 + $0x168] sm:$0xff]  ;;  %v119_v12 = vld [vmem:[%s19082_s26 + $0x1f8] sm:$0xff] }
  0xcf   :  { %13746 = vmatprep.subr.bf16.mxu0 %v16093_v20  ;;  %19160 = vst [vmem:[#allocation39_spill] sm:$0xff] %v16137_v8  ;;  %19161 = vst [vmem:[#allocation40_spill] sm:$0xff] %v16147_v3  ;;  %v16173_v38 = vpack.c.bf16 %v101_v61, %v100_v50  ;;  %v16183_v46 = vpack.c.bf16 %v119_v12, %v118_v40  ;;  %v103_v50 = vld [vmem:[%s19082_s26 + $0x178] sm:$0xff]  ;;  %s14877_s26 = smov 4  }
  0xd0   :  { %19162 = vst [vmem:[#allocation41_spill] sm:$0xff] %v16155_v11  ;;  %19163 = vst [vmem:[#allocation42_spill] sm:$0xff] %v16165_v5  ;;  %v16191_v61 = vpack.c.bf16 %v103_v50, %v102_v32  ;;  %v19168_v32 = vunpack.c.l.bf16 %v15066_v25 }
  0xd1   :  { %19164 = vst [vmem:[#allocation43_spill] sm:$0xff] %v16173_v38  ;;  %19165 = vst [vmem:[#allocation44_spill] sm:$0xff] %v16183_v46 }
  0xd2   :  { %13748 = vmatpush3.bf16.msra.mxu0 %v16101_v42  ;;  %19166 = vst [vmem:[#allocation45_spill] sm:$0xff] %v16191_v61 }
  0xd3   :  { %13750 = vmatprep.subr.bf16.mxu0 %v16111_v43 }
  0xd6   :  { %13752 = vmatpush3.bf16.msra.mxu0 %v16119_v30 }
  0xd7   :  { %13754 = vmatprep.subr.bf16.mxu0 %v16129_v14 }
  0xda   :  { %13756 = vmatpush3.bf16.msra.mxu0 %v16137_v8 }
  0xdb   :  { %13758 = vmatprep.subr.bf16.mxu0 %v16147_v3 }
  0xde   :  { %13760 = vmatpush3.bf16.msra.mxu0 %v16155_v11 }
  0xdf   :  { %13762 = vmatprep.subr.bf16.mxu0 %v16165_v5 }
  0xe2   :  { %13764 = vmatpush3.bf16.msra.mxu0 %v16173_v38 }
  0xe3   :  { %13766 = vmatprep.subr.bf16.mxu0 %v16183_v46 }
  0xe6   :  { %13768 = vmatpush3.bf16.msra.mxu0 %v16191_v61 }
  0xe7   :  { %13802 = vmatprep.subr.bf16.mxu0 %v16057_v19 }
  0xe9   :  { %1811 = vmatmul.mubr.f32.vlgmr.msra.gmra.mrb[80].mxu0 %v19168_v32 }
  0xea   :  { %13804 = vmatpush3.bf16.msra.mxu0 %v16065_v41  ;;  %1815 = vmatprep.mubr.f32.mxu0 %v19169_v48 }
  0xeb   :  { %13806 = vmatprep.subr.bf16.mxu0 %v16075_v47 }
  0xee   :  { %13808 = vmatpush3.bf16.msra.mxu0 %v16083_v21 }
  0xef   :  { %13810 = vmatprep.subr.bf16.mxu0 %v16093_v20 }
  0xf2   :  { %13812 = vmatpush3.bf16.msra.mxu0 %v16101_v42 }
  0xf3   :  { %13814 = vmatprep.subr.bf16.mxu0 %v16111_v43 }
  0xf6   :  { %13816 = vmatpush3.bf16.msra.mxu0 %v16119_v30 }
  0xf7   :  { %13818 = vmatprep.subr.bf16.mxu0 %v16129_v14 }
  0xfa   :  { %13820 = vmatpush3.bf16.msra.mxu0 %v16137_v8 }
  0xfb   :  { %13822 = vmatprep.subr.bf16.mxu0 %v16147_v3 }
  0xfe   :  { %v11057_v18 = vpop.f32.mrb[0].mxu0  ;;  %v11113_v10 = vpop.f32.mrb[0].mxu1  ;;  %13824 = vmatpush3.bf16.msra.mxu0 %v16155_v11 }
  0xff   :  { %v11058_v1 = vpop.f32.mrb[1].mxu0  ;;  %v11114_v59 = vpop.f32.mrb[1].mxu1  ;;  %13826 = vmatprep.subr.bf16.mxu0 %v16165_v5 }
 0x100   :  { %v16195_v40 = vadd.f32 %v11058_v1, %v11057_v18  ;;  %v11115_v12 = vadd.f32 %v11114_v59, %v11113_v10 }
 0x102   :  { %19167 = vst [vmem:[#allocation46_spill] sm:$0xff] %v16195_v40  ;;  %v11116_v53 = vpop.f32.mrb[2].mxu1  ;;  %1292 = vrot.lane.b32.xlu0 %v11115_v12, %s14876_s0  ;;  %v11060_v27 = vpop.f32.mrb[2].mxu0  ;;  %v19170_v12 = vunpack.c.l.bf16 %v15162_v52  ;;  %v19171_v40 = vunpack.c.h.bf16 %v15180_v58  ;;  %13828 = vmatpush3.bf16.msra.mxu0 %v16173_v38 }
 0x103   :  { %v11061_v50 = vpop.f32.mrb[3].mxu0  ;;  %v11117_v51 = vpop.f32.mrb[3].mxu1  ;;  %13830 = vmatprep.subr.bf16.mxu0 %v16183_v46 }
 0x104   :  { %v16204_v1 = vadd.f32 %v11061_v50, %v11060_v27  ;;  %v11118_v59 = vadd.f32 %v11117_v51, %v11116_v53  ;;  %1816 = vmatmul.mubr.f32.gmra.mrb[82].mxu0 %v19170_v12  ;;  %v19172_v50 = vunpack.c.l.bf16 %v15180_v58  ;;  %v19173_v12 = vunpack.c.h.bf16 %v15206_v0 }
 0x105   :  { %1820 = vmatprep.mubr.f32.mxu0 %v19171_v40 }
 0x106   :  { %v11119_v10 = vpop.f32.mrb[4].mxu1  ;;  %1294 = vrot.lane.b32.xlu0 %v11118_v59, %s14876_s0  ;;  %v11063_v18 = vpop.f32.mrb[4].mxu0  ;;  %13832 = vmatpush3.bf16.msra.mxu0 %v16191_v61 }
 0x107   :  { %v11064_v25 = vpop.f32.mrb[5].mxu0  ;;  %v11120_v32 = vpop.f32.mrb[5].mxu1  ;;  %13866 = vmatprep.subr.bf16.mxu0 %v16057_v19 }
 0x108   :  { %v16213_v48 = vadd.f32 %v11064_v25, %v11063_v18  ;;  %v11121_v27 = vadd.f32 %v11120_v32, %v11119_v10  ;;  %1821 = vmatmul.mubr.f32.gmra.mrb[84].mxu0 %v19172_v50  ;;  %v19174_v32 = vunpack.c.l.bf16 %v15206_v0  ;;  %v19175_v50 = vunpack.c.h.bf16 %v15232_v9 }
 0x109   :  { %1825 = vmatprep.mubr.f32.mxu0 %v19173_v12 }
 0x10a   :  { %v11122_v53 = vpop.f32.mrb[6].mxu1  ;;  %1296 = vrot.lane.b32.xlu0 %v11121_v27, %s14876_s0  ;;  %v11066_v51 = vpop.f32.mrb[6].mxu0 }
 0x10b   :  { %v11067_v52 = vpop.f32.mrb[7].mxu0  ;;  %v11123_v59 = vpop.f32.mrb[7].mxu1 }
 0x10c   :  { %v16222_v40 = vadd.f32 %v11067_v52, %v11066_v51  ;;  %v11124_v18 = vadd.f32 %v11123_v59, %v11122_v53  ;;  %1826 = vmatmul.mubr.f32.gmra.mrb[86].mxu0 %v19174_v32  ;;  %v19176_v59 = vunpack.c.l.bf16 %v15232_v9  ;;  %v19177_v32 = vunpack.c.h.bf16 %v15258_v17 }
 0x10d   :  { %1830 = vmatprep.mubr.f32.mxu0 %v19175_v50 }
 0x10e   :  { %v11125_v10 = vpop.f32.mrb[8].mxu1  ;;  %1298 = vrot.lane.b32.xlu1 %v11124_v18, %s14876_s0  ;;  %v11069_v25 = vpop.f32.mrb[8].mxu0 }
 0x10f   :  { %v11070_v58 = vpop.f32.mrb[9].mxu0  ;;  %v11126_v27 = vpop.f32.mrb[9].mxu1 }
 0x110   :  { %v16231_v12 = vadd.f32 %v11070_v58, %v11069_v25  ;;  %v11127_v51 = vadd.f32 %v11126_v27, %v11125_v10  ;;  %1831 = vmatmul.mubr.f32.gmra.mrb[88].mxu0 %v19176_v59  ;;  %v19178_v27 = vunpack.c.l.bf16 %v15258_v17  ;;  %v19179_v59 = vunpack.c.h.bf16 %v15284_v31 }
 0x111   :  { %1835 = vmatprep.mubr.f32.mxu0 %v19177_v32 }
 0x112   :  { %v11128_v53 = vpop.f32.mrb[10].mxu1  ;;  %1300 = vrot.lane.b32.xlu1 %v11127_v51, %s14876_s0  ;;  %v11072_v52 = vpop.f32.mrb[10].mxu0 }
 0x113   :  { %v11073_v0 = vpop.f32.mrb[11].mxu0  ;;  %v11129_v18 = vpop.f32.mrb[11].mxu1 }
 0x114   :  { %v16240_v50 = vadd.f32 %v11073_v0, %v11072_v52  ;;  %v11130_v25 = vadd.f32 %v11129_v18, %v11128_v53  ;;  %1836 = vmatmul.mubr.f32.gmra.mrb[90].mxu0 %v19178_v27  ;;  %v19180_v18 = vunpack.c.l.bf16 %v15284_v31  ;;  %v19181_v27 = vunpack.c.h.bf16 %v15310_v39 }
 0x115   :  { %1840 = vmatprep.mubr.f32.mxu0 %v19179_v59 }
 0x116   :  { %v11131_v10 = vpop.f32.mrb[12].mxu1  ;;  %1302 = vrot.lane.b32.xlu0 %v11130_v25, %s14876_s0  ;;  %v11075_v58 = vpop.f32.mrb[12].mxu0 }
 0x117   :  { %v11076_v9 = vpop.f32.mrb[13].mxu0  ;;  %v11132_v51 = vpop.f32.mrb[13].mxu1 }
 0x118   :  { %v16249_v32 = vadd.f32 %v11076_v9, %v11075_v58  ;;  %v11133_v52 = vadd.f32 %v11132_v51, %v11131_v10  ;;  %1841 = vmatmul.mubr.f32.gmra.mrb[92].mxu0 %v19180_v18  ;;  %v19183_v51 = vunpack.c.l.bf16 %v15310_v39  ;;  %v19184_v18 = vunpack.c.h.bf16 %v15336_v49 }
 0x119   :  { %1845 = vmatprep.mubr.f32.mxu0 %v19181_v27 }
 0x11a   :  { %v11134_v53 = vpop.f32.mrb[14].mxu1  ;;  %1304 = vrot.lane.b32.xlu0 %v11133_v52, %s14876_s0  ;;  %v11078_v0 = vpop.f32.mrb[14].mxu0 }
 0x11b   :  { %v11079_v17 = vpop.f32.mrb[15].mxu0  ;;  %v11135_v25 = vpop.f32.mrb[15].mxu1 }
 0x11c   :  { %v16258_v59 = vadd.f32 %v11079_v17, %v11078_v0  ;;  %v11136_v58 = vadd.f32 %v11135_v25, %v11134_v53  ;;  %1846 = vmatmul.mubr.f32.gmra.mrb[94].mxu0 %v19183_v51 }
 0x11d   :  { %2020 = vmatprep.mubr.f32.mxu0 %v19184_v18 }
 0x11e   :  { %19182 = vst [vmem:[#allocation47_spill] sm:$0xff] %v16258_v59  ;;  %1306 = vrot.lane.b32.xlu0 %v11136_v58, %s14876_s0  ;;  %v11169_v10 = vpop.f32.mrb[16].mxu0  ;;  %v11225_v9 = vpop.f32.mrb[16].mxu1  ;;  %v19185_v58 = vunpack.c.l.bf16 %v15336_v49 }
 0x11f   :  { %v11170_v31 = vpop.f32.mrb[17].mxu0  ;;  %v11226_v52 = vpop.f32.mrb[17].mxu1 }
 0x120   :  { %v11171_v27 = vadd.f32 %v11170_v31, %v11169_v10  ;;  %v11227_v0 = vadd.f32 %v11226_v52, %v11225_v9  ;;  %2021 = vmatmul.mubr.f32.vlgmr.msra.gmra.mrb[96].mxu0 %v19185_v58  ;;  %v19186_v10 = vunpack.c.h.bf16 %v15360_v44 }
 0x121   :  { %13868 = vmatpush3.bf16.msra.mxu0 %v16065_v41 }
 0x122   :  { %v11172_v53 = vpop.f32.mrb[18].mxu0  ;;  %1324 = vrot.lane.b32.xlu1 %v11171_v27, %s14877_s26  ;;  %1356 = vrot.lane.b32.xlu0 %v11227_v0, %s14878_s30  ;;  %v11228_v39 = vpop.f32.mrb[18].mxu1  ;;  %v19187_v27 = vunpack.c.l.bf16 %v15360_v44  ;;  %v19189_v44 = vunpack.c.l.bf16 %v15385_v34 }
 0x123   :  { %v11173_v17 = vpop.f32.mrb[19].mxu0  ;;  %v11229_v25 = vpop.f32.mrb[19].mxu1  ;;  %2025 = vmatprep.mubr.f32.mxu0 %v19186_v10  ;;  %13870 = vmatprep.subr.bf16.mxu0 %v16075_v47 }
 0x124   :  { %v11174_v51 = vadd.f32 %v11173_v17, %v11172_v53  ;;  %v11230_v59 = vadd.f32 %v11229_v25, %v11228_v39  ;;  %2026 = vmatmul.mubr.f32.gmra.mrb[98].mxu0 %v19187_v27  ;;  %v19188_v53 = vunpack.c.h.bf16 %v15385_v34  ;;  %v19191_v34 = vunpack.c.l.bf16 %v15410_v16 }
 0x125   :  { %13872 = vmatpush3.bf16.msra.mxu0 %v16083_v21 }
 0x126   :  { %v11175_v9 = vpop.f32.mrb[20].mxu0  ;;  %1326 = vrot.lane.b32.xlu1 %v11174_v51, %s14877_s26  ;;  %v11231_v31 = vpop.f32.mrb[20].mxu1  ;;  %2030 = vmatprep.mubr.f32.mxu0 %v19188_v53  ;;  %v19192_v53 = vunpack.c.h.bf16 %v15436_v22 }
 0x127   :  { %v11176_v52 = vpop.f32.mrb[21].mxu0  ;;  %v11232_v18 = vpop.f32.mrb[21].mxu1  ;;  %13874 = vmatprep.subr.bf16.mxu0 %v16093_v20 }
 0x128   :  { %v11177_v49 = vadd.f32 %v11176_v52, %v11175_v9  ;;  %v11233_v0 = vadd.f32 %v11232_v18, %v11231_v31  ;;  %2031 = vmatmul.mubr.f32.gmra.mrb[100].mxu0 %v19189_v44  ;;  %v19190_v9 = vunpack.c.h.bf16 %v15410_v16 }
 0x129   :  { %13876 = vmatpush3.bf16.msra.mxu0 %v16101_v42 }
 0x12a   :  { %v11178_v39 = vpop.f32.mrb[22].mxu0  ;;  %1328 = vrot.lane.b32.xlu0 %v11177_v49, %s14877_s26  ;;  %1358 = vrot.lane.b32.xlu1 %v11230_v59, %s14878_s30  ;;  %v11234_v17 = vpop.f32.mrb[22].mxu1 }
 0x12b   :  { %v11179_v25 = vpop.f32.mrb[23].mxu0  ;;  %v11235_v58 = vpop.f32.mrb[23].mxu1  ;;  %2035 = vmatprep.mubr.f32.mxu0 %v19190_v9  ;;  %13878 = vmatprep.subr.bf16.mxu0 %v16111_v43 }
 0x12c   :  { %v11180_v51 = vadd.f32 %v11179_v25, %v11178_v39  ;;  %v11236_v10 = vadd.f32 %v11235_v58, %v11234_v17  ;;  %2036 = vmatmul.mubr.f32.gmra.mrb[102].mxu0 %v19191_v34  ;;  %v19193_v58 = vunpack.c.l.bf16 %v15436_v22  ;;  %v19195_v22 = vunpack.c.l.bf16 %v15462_v6 }
 0x12d   :  { %13880 = vmatpush3.bf16.msra.mxu0 %v16119_v30  ;;  %2040 = vmatprep.mubr.f32.mxu0 %v19192_v53  ;;  %v19196_v34 = vunpack.c.h.bf16 %v15488_v24 }
 0x12e   :  { %v11181_v31 = vpop.f32.mrb[24].mxu0  ;;  %1360 = vrot.lane.b32.xlu0 %v11233_v0, %s14878_s30  ;;  %1330 = vrot.lane.b32.xlu1 %v11180_v51, %s14877_s26  ;;  %v11237_v59 = vpop.f32.mrb[24].mxu1  ;;  %v19194_v51 = vunpack.c.h.bf16 %v15462_v6  ;;  %v19197_v6 = vunpack.c.l.bf16 %v15488_v24 }
 0x12f   :  { %v11182_v52 = vpop.f32.mrb[25].mxu0  ;;  %v11238_v18 = vpop.f32.mrb[25].mxu1  ;;  %13882 = vmatprep.subr.bf16.mxu0 %v16129_v14 }
 0x130   :  { %v11183_v27 = vadd.f32 %v11182_v52, %v11181_v31  ;;  %v11239_v49 = vadd.f32 %v11238_v18, %v11237_v59  ;;  %2041 = vmatmul.mubr.f32.gmra.mrb[104].mxu0 %v19193_v58  ;;  %v19198_v58 = vunpack.c.h.bf16 %v15514_v45 }
 0x131   :  { %13884 = vmatpush3.bf16.msra.mxu0 %v16137_v8  ;;  %2045 = vmatprep.mubr.f32.mxu0 %v19194_v51 }
 0x132   :  { %v11184_v39 = vpop.f32.mrb[26].mxu0  ;;  %1362 = vrot.lane.b32.xlu1 %v11236_v10, %s14878_s30  ;;  %v11240_v0 = vpop.f32.mrb[26].mxu1  ;;  %13886 = vmatprep.subr.bf16.mxu0 %v16147_v3 }
 0x133   :  { %v11185_v17 = vpop.f32.mrb[27].mxu0  ;;  %v11241_v25 = vpop.f32.mrb[27].mxu1 }
 0x134   :  { %v11186_v16 = vadd.f32 %v11185_v17, %v11184_v39  ;;  %v11242_v44 = vadd.f32 %v11241_v25, %v11240_v0  ;;  %2046 = vmatmul.mubr.f32.gmra.mrb[106].mxu0 %v19195_v22 }
 0x135   :  { %13888 = vmatpush3.bf16.msra.mxu0 %v16155_v11  ;;  %2050 = vmatprep.mubr.f32.mxu0 %v19196_v34 }
 0x136   :  { %v11187_v9 = vpop.f32.mrb[28].mxu0  ;;  %1334 = vrot.lane.b32.xlu0 %v11186_v16, %s14877_s26  ;;  %1332 = vrot.lane.b32.xlu1 %v11183_v27, %s14877_s26  ;;  %v11243_v10 = vpop.f32.mrb[28].mxu1 }
 0x137   :  { %v11188_v31 = vpop.f32.mrb[29].mxu0  ;;  %v11244_v59 = vpop.f32.mrb[29].mxu1  ;;  %13890 = vmatprep.subr.bf16.mxu0 %v16165_v5 }
 0x138   :  { %v11189_v52 = vadd.f32 %v11188_v31, %v11187_v9  ;;  %v11245_v18 = vadd.f32 %v11244_v59, %v11243_v10  ;;  %2051 = vmatmul.mubr.f32.gmra.mrb[108].mxu0 %v19197_v6  ;;  %v19200_v9 = vunpack.c.h.bf16 %v15540_v37 }
 0x139   :  { %13892 = vmatpush3.bf16.msra.mxu0 %v16173_v38  ;;  %2055 = vmatprep.mubr.f32.mxu0 %v19198_v58  ;;  %v19204_v58 = vunpack.c.h.bf16 %v15592_v29 }
 0x13a   :  { %v11190_v53 = vpop.f32.mrb[30].mxu0  ;;  %1366 = vrot.lane.b32.xlu0 %v11242_v44, %s14878_s30  ;;  %1364 = vrot.lane.b32.xlu1 %v11239_v49, %s14878_s30  ;;  %v11246_v27 = vpop.f32.mrb[30].mxu1  ;;  %v19199_v44 = vunpack.c.l.bf16 %v15514_v45  ;;  %v19201_v45 = vunpack.c.l.bf16 %v15540_v37  ;;  %v19203_v37 = vunpack.c.l.bf16 %v15566_v23 }
 0x13b   :  { %v11191_v39 = vpop.f32.mrb[31].mxu0  ;;  %v11247_v0 = vpop.f32.mrb[31].mxu1  ;;  %13894 = vmatprep.subr.bf16.mxu0 %v16183_v46 }
 0x13c   :  { %v11192_v17 = vadd.f32 %v11191_v39, %v11190_v53  ;;  %v16318_v25 = vadd.f32 %v11247_v0, %v11246_v27  ;;  %2056 = vmatmul.mubr.f32.gmra.mrb[110].mxu0 %v19199_v44  ;;  %v19202_v53 = vunpack.c.h.bf16 %v15566_v23  ;;  %v19205_v23 = vunpack.c.l.bf16 %v15592_v29 }
 0x13d   :  { %13896 = vmatpush3.bf16.msra.mxu0 %v16191_v61  ;;  %2230 = vmatprep.mubr.f32.mxu0 %v19200_v9  ;;  %v19207_v29 = vunpack.c.l.bf16 %v15617_v60 }
 0x13e   :  { %v11281_v16 = vpop.f32.mrb[32].mxu0  ;;  %1338 = vrot.lane.b32.xlu0 %v11192_v17, %s14877_s26  ;;  %1336 = vrot.lane.b32.xlu1 %v11189_v52, %s14877_s26 }
 0x13f   :  { %v11282_v49 = vpop.f32.mrb[33].mxu0  ;;  %13930 = vmatprep.subr.bf16.mxu0 %v16057_v19 }
 0x140   :  { %v11283_v24 = vadd.f32 %v11282_v49, %v11281_v16  ;;  %v11337_v51 = vpop.f32.mrb[32].mxu1  ;;  %2231 = vmatmul.mubr.f32.vlgmr.msra.gmra.mrb[112].mxu0 %v19201_v45 }
 0x141   :  { %v11338_v10 = vpop.f32.mrb[33].mxu1  ;;  %13932 = vmatpush3.bf16.msra.mxu0 %v16065_v41  ;;  %2235 = vmatprep.mubr.f32.mxu0 %v19202_v53  ;;  %v19208_v53 = vunpack.c.h.bf16 %v15643_v54 }
 0x142   :  { %v11284_v31 = vpop.f32.mrb[34].mxu0  ;;  %v11339_v59 = vadd.f32 %v11338_v10, %v11337_v51  ;;  %1388 = vrot.lane.b32.xlu0 %v11283_v24, %s14879_s18  ;;  %1368 = vrot.lane.b32.xlu1 %v11245_v18, %s14878_s30  ;;  %v19206_v10 = vunpack.c.h.bf16 %v15617_v60  ;;  %v19209_v60 = vunpack.c.l.bf16 %v15643_v54  ;;  %v19211_v54 = vunpack.c.l.bf16 %v15669_v57 }
 0x143   :  { %v11285_v22 = vpop.f32.mrb[35].mxu0  ;;  %13934 = vmatprep.subr.bf16.mxu0 %v16075_v47 }
 0x144   :  { %v11286_v52 = vadd.f32 %v11285_v22, %v11284_v31  ;;  %v11340_v34 = vpop.f32.mrb[34].mxu1  ;;  %2236 = vmatmul.mubr.f32.gmra.mrb[114].mxu0 %v19203_v37 }
 0x145   :  { %v11341_v27 = vpop.f32.mrb[35].mxu1  ;;  %13936 = vmatpush3.bf16.msra.mxu0 %v16083_v21  ;;  %2240 = vmatprep.mubr.f32.mxu0 %v19204_v58 }
 0x146   :  { %v11287_v39 = vpop.f32.mrb[36].mxu0  ;;  %v11342_v0 = vadd.f32 %v11341_v27, %v11340_v34  ;;  %1420 = vrot.lane.b32.xlu0 %v11339_v59, %s14880_s19  ;;  %1390 = vrot.lane.b32.xlu1 %v11286_v52, %s14879_s18 }
 0x147   :  { %v11288_v18 = vpop.f32.mrb[37].mxu0  ;;  %13938 = vmatprep.subr.bf16.mxu0 %v16093_v20 }
 0x148   :  { %v11289_v6 = vadd.f32 %v11288_v18, %v11287_v39  ;;  %v11343_v17 = vpop.f32.mrb[36].mxu1  ;;  %2241 = vmatmul.mubr.f32.gmra.mrb[116].mxu0 %v19205_v23 }
 0x149   :  { %v11344_v16 = vpop.f32.mrb[37].mxu1  ;;  %13940 = vmatpush3.bf16.msra.mxu0 %v16101_v42  ;;  %2245 = vmatprep.mubr.f32.mxu0 %v19206_v10 }
 0x14a   :  { %v11290_v49 = vpop.f32.mrb[38].mxu0  ;;  %v11345_v44 = vadd.f32 %v11344_v16, %v11343_v17  ;;  %1392 = vrot.lane.b32.xlu0 %v11289_v6, %s14879_s18  ;;  %1422 = vrot.lane.b32.xlu1 %v11342_v0, %s14880_s19  ;;  %v19210_v17 = vunpack.c.h.bf16 %v15669_v57  ;;  %v19213_v57 = vunpack.c.l.bf16 %v15695_v2 }
 0x14b   :  { %v11291_v24 = vpop.f32.mrb[39].mxu0  ;;  %13942 = vmatprep.subr.bf16.mxu0 %v16111_v43 }
 0x14c   :  { %v11292_v51 = vadd.f32 %v11291_v24, %v11290_v49  ;;  %v11346_v9 = vpop.f32.mrb[38].mxu1  ;;  %2246 = vmatmul.mubr.f32.gmra.mrb[118].mxu0 %v19207_v29  ;;  %v19214_v29 = vunpack.c.h.bf16 %v15721_v4 }
 0x14d   :  { %v11347_v31 = vpop.f32.mrb[39].mxu1  ;;  %13944 = vmatpush3.bf16.msra.mxu0 %v16119_v30  ;;  %2250 = vmatprep.mubr.f32.mxu0 %v19208_v53 }
 0x14e   :  { %v11293_v59 = vpop.f32.mrb[40].mxu0  ;;  %v11348_v22 = vadd.f32 %v11347_v31, %v11346_v9  ;;  %1394 = vrot.lane.b32.xlu0 %v11292_v51, %s14879_s18  ;;  %1424 = vrot.lane.b32.xlu1 %v11345_v44, %s14880_s19  ;;  %v19212_v51 = vunpack.c.h.bf16 %v15695_v2  ;;  %v121_v2 = vld [vmem:[%s18840_s2 + $0x8] sm:$0xff] }
 0x14f   :  { %v11294_v45 = vpop.f32.mrb[41].mxu0  ;;  %13946 = vmatprep.subr.bf16.mxu0 %v16129_v14 }
 0x150   :  { %v11295_v52 = vadd.f32 %v11294_v45, %v11293_v59  ;;  %v11349_v34 = vpop.f32.mrb[40].mxu1  ;;  %2251 = vmatmul.mubr.f32.gmra.mrb[120].mxu0 %v19209_v60 }
 0x151   :  { %v11350_v27 = vpop.f32.mrb[41].mxu1  ;;  %13948 = vmatpush3.bf16.msra.mxu0 %v16137_v8  ;;  %2255 = vmatprep.mubr.f32.mxu0 %v19210_v17 }
 0x152   :  { %v11296_v39 = vpop.f32.mrb[42].mxu0  ;;  %v11351_v0 = vadd.f32 %v11350_v27, %v11349_v34  ;;  %1426 = vrot.lane.b32.xlu0 %v11348_v22, %s14880_s19  ;;  %1396 = vrot.lane.b32.xlu1 %v11295_v52, %s14879_s18  ;;  %v120_v27 = vld [vmem:[%s18840_s2] sm:$0xff] }
 0x153   :  { %v11297_v18 = vpop.f32.mrb[43].mxu0  ;;  %13950 = vmatprep.subr.bf16.mxu0 %v16147_v3 }
 0x154   :  { %v11298_v37 = vadd.f32 %v11297_v18, %v11296_v39  ;;  %v11352_v6 = vpop.f32.mrb[42].mxu1  ;;  %2256 = vmatmul.mubr.f32.gmra.mrb[122].mxu0 %v19211_v54  ;;  %v16403_v18 = vpack.c.bf16 %v121_v2, %v120_v27 }
 0x155   :  { %v11353_v58 = vpop.f32.mrb[43].mxu1  ;;  %13952 = vmatpush3.bf16.msra.mxu0 %v16155_v11  ;;  %2260 = vmatprep.mubr.f32.mxu0 %v19212_v51 }
 0x156   :  { %v11299_v16 = vpop.f32.mrb[44].mxu0  ;;  %v11354_v49 = vadd.f32 %v11353_v58, %v11352_v6  ;;  %1428 = vrot.lane.b32.xlu0 %v11351_v0, %s14880_s19  ;;  %1398 = vrot.lane.b32.xlu1 %v11298_v37, %s14879_s18  ;;  %v19215_v0 = vunpack.c.l.bf16 %v15721_v4  ;;  %19216 = vst [vmem:[#allocation48_spill] sm:$0xff] %v16403_v18  ;;  %v19217_v6 = vunpack.c.h.bf16 %v15747_v62 }
 0x157   :  { %v11300_v44 = vpop.f32.mrb[45].mxu0  ;;  %13954 = vmatprep.subr.bf16.mxu0 %v16165_v5  ;;  %13734 = vmatprep.subr.bf16.mxu1 %v16403_v18 }
 0x158   :  { %v16376_v24 = vadd.f32 %v11300_v44, %v11299_v16  ;;  %v11355_v23 = vpop.f32.mrb[44].mxu1  ;;  %2261 = vmatmul.mubr.f32.gmra.mrb[124].mxu0 %v19213_v57  ;;  %13736 = vmatpush3.bf16.msra.mxu1 %v16403_v18 }
 0x159   :  { %v11356_v9 = vpop.f32.mrb[45].mxu1  ;;  %13956 = vmatpush3.bf16.msra.mxu0 %v16173_v38  ;;  %2265 = vmatprep.mubr.f32.mxu0 %v19214_v29  ;;  %v19221_v29 = vunpack.c.h.bf16 %v15799_v26 }
 0x15a   :  { %v11302_v10 = vpop.f32.mrb[46].mxu0  ;;  %v16382_v31 = vadd.f32 %v11356_v9, %v11355_v23  ;;  %1430 = vrot.lane.b32.xlu0 %v11354_v49, %s14880_s19  ;;  %13958 = vmatprep.subr.bf16.mxu0 %v16183_v46  ;;  %v19218_v49 = vunpack.c.l.bf16 %v15747_v62  ;;  %v19219_v23 = vunpack.c.h.bf16 %v15773_v56  ;;  %v19220_v62 = vunpack.c.l.bf16 %v15773_v56 }
 0x15b   :  { %v11303_v59 = vpop.f32.mrb[47].mxu0 }
 0x15c   :  { %v16387_v22 = vadd.f32 %v11303_v59, %v11302_v10  ;;  %v11358_v45 = vpop.f32.mrb[46].mxu1  ;;  %2266 = vmatmul.mubr.f32.gmra.mrb[126].mxu0 %v19215_v0 }
 0x15d   :  { %v11359_v52 = vpop.f32.mrb[47].mxu1  ;;  %13960 = vmatpush3.bf16.msra.mxu0 %v16191_v61  ;;  %2440 = vmatprep.mubr.f32.mxu0 %v19217_v6  ;;  %v122_v6 = vld [vmem:[%s18840_s2 + $0x10] sm:$0x3] }
 0x15e   :  { %v16393_v34 = vadd.f32 %v11359_v52, %v11358_v45  ;;  %v11393_v53 = vpop.f32.mrb[48].mxu0  ;;  %13994 = vmatprep.subr.bf16.mxu0 %v16057_v19  ;;  %12587 = vmatprep.subr.msk.mxu1 %vm1637_vm0, %v122_v6 }
 0x15f   :  { %v11394_v39 = vpop.f32.mrb[49].mxu0  ;;  %12588 = vmatpush3.msk.msra.mxu1 %vm1637_vm0, %v122_v6 }
 0x160   :  { %v11395_v60 = vadd.f32 %v11394_v39, %v11393_v53  ;;  %v11449_v37 = vpop.f32.mrb[48].mxu1  ;;  %2441 = vmatmul.mubr.f32.vlgmr.msra.gmra.mrb[128].mxu0 %v19218_v49  ;;  %v19222_v39 = vunpack.c.l.bf16 %v15799_v26  ;;  %13770 = vmatprep.subr.bf16.mxu1 %v16057_v19 }
 0x161   :  { %v11450_v17 = vpop.f32.mrb[49].mxu1  ;;  %13996 = vmatpush3.bf16.msra.mxu0 %v16065_v41  ;;  %2445 = vmatprep.mubr.f32.mxu0 %v19219_v23 }
 0x162   :  { %v11396_v58 = vpop.f32.mrb[50].mxu0  ;;  %v11451_v16 = vadd.f32 %v11450_v17, %v11449_v37  ;;  %1452 = vrot.lane.b32.xlu0 %v11395_v60, %s14881_s23  ;;  %13998 = vmatprep.subr.bf16.mxu0 %v16075_v47  ;;  %v19223_v60 = vunpack.c.h.bf16 %v15824_v15 }
 0x163   :  { %v11397_v4 = vpop.f32.mrb[51].mxu0 }
 0x164   :  { %v11398_v44 = vadd.f32 %v11397_v4, %v11396_v58  ;;  %v11452_v54 = vpop.f32.mrb[50].mxu1  ;;  %2446 = vmatmul.mubr.f32.gmra.mrb[130].mxu0 %v19220_v62  ;;  %v19227_v62 = vunpack.c.h.bf16 %v15872_v33 }
 0x165   :  { %v11453_v51 = vpop.f32.mrb[51].mxu1  ;;  %14000 = vmatpush3.bf16.msra.mxu0 %v16083_v21  ;;  %2450 = vmatprep.mubr.f32.mxu0 %v19221_v29 }
 0x166   :  { %v11399_v9 = vpop.f32.mrb[52].mxu0  ;;  %v11454_v10 = vadd.f32 %v11453_v51, %v11452_v54  ;;  %1484 = vrot.lane.b32.xlu0 %v11451_v16, %s14882_s24  ;;  %1454 = vrot.lane.b32.xlu1 %v11398_v44, %s14881_s23  ;;  %v19224_v16 = vunpack.c.l.bf16 %v15824_v15  ;;  %v19225_v54 = vunpack.c.h.bf16 %v15848_v63 }
 0x167   :  { %v11400_v59 = vpop.f32.mrb[53].mxu0  ;;  %14002 = vmatprep.subr.bf16.mxu0 %v16093_v20 }
 0x168   :  { %v11401_v57 = vadd.f32 %v11400_v59, %v11399_v9  ;;  %v11455_v45 = vpop.f32.mrb[52].mxu1  ;;  %2451 = vmatmul.mubr.f32.gmra.mrb[132].mxu0 %v19222_v39  ;;  %v19226_v9 = vunpack.c.l.bf16 %v15848_v63  ;;  %v19229_v39 = vunpack.c.h.bf16 %v15895_v55 }
 0x169   :  { %v11456_v52 = vpop.f32.mrb[53].mxu1  ;;  %14004 = vmatpush3.bf16.msra.mxu0 %v16101_v42  ;;  %2455 = vmatprep.mubr.f32.mxu0 %v19223_v60 }
 0x16a   :  { %v11402_v53 = vpop.f32.mrb[54].mxu0  ;;  %1486 = vrot.lane.b32.xlu1 %v11454_v10, %s14882_s24  ;;  %v11457_v27 = vadd.f32 %v11456_v52, %v11455_v45  ;;  %14006 = vmatprep.subr.bf16.mxu0 %v16111_v43  ;;  %v19228_v52 = vunpack.c.l.bf16 %v15872_v33  ;;  %v19230_v33 = vunpack.c.l.bf16 %v15895_v55 }
 0x16b   :  { %v11403_v2 = vpop.f32.mrb[55].mxu0 }
 0x16c   :  { %v11404_v56 = vadd.f32 %v11403_v2, %v11402_v53  ;;  %v11458_v0 = vpop.f32.mrb[54].mxu1  ;;  %2456 = vmatmul.mubr.f32.gmra.mrb[134].mxu0 %v19224_v16 }
 0x16d   :  { %v11459_v37 = vpop.f32.mrb[55].mxu1  ;;  %14008 = vmatpush3.bf16.msra.mxu0 %v16119_v30  ;;  %2460 = vmatprep.mubr.f32.mxu0 %v19225_v54 }
 0x16e   :  { %v11405_v17 = vpop.f32.mrb[56].mxu0  ;;  %1458 = vrot.lane.b32.xlu0 %v11404_v56, %s14881_s23  ;;  %1456 = vrot.lane.b32.xlu1 %v11401_v57, %s14881_s23  ;;  %v11460_v26 = vadd.f32 %v11459_v37, %v11458_v0 }
 0x16f   :  { %v11406_v58 = vpop.f32.mrb[57].mxu0  ;;  %14010 = vmatprep.subr.bf16.mxu0 %v16129_v14 }
 0x170   :  { %v11407_v4 = vadd.f32 %v11406_v58, %v11405_v17  ;;  %v11461_v49 = vpop.f32.mrb[56].mxu1  ;;  %2461 = vmatmul.mubr.f32.gmra.mrb[136].mxu0 %v19226_v9 }
 0x171   :  { %v11462_v44 = vpop.f32.mrb[57].mxu1  ;;  %14012 = vmatpush3.bf16.msra.mxu0 %v16137_v8  ;;  %2465 = vmatprep.mubr.f32.mxu0 %v19227_v62 }
 0x172   :  { %v11408_v23 = vpop.f32.mrb[58].mxu0  ;;  %1490 = vrot.lane.b32.xlu0 %v11460_v26, %s14882_s24  ;;  %1488 = vrot.lane.b32.xlu1 %v11457_v27, %s14882_s24  ;;  %v11463_v15 = vadd.f32 %v11462_v44, %v11461_v49  ;;  %v19231_v26 = vunpack.c.h.bf16 %v15919_v7  ;;  %v19232_v44 = vunpack.c.l.bf16 %v15919_v7 }
 0x173   :  { %v11409_v51 = vpop.f32.mrb[59].mxu0  ;;  %14014 = vmatprep.subr.bf16.mxu0 %v16147_v3 }
 0x174   :  { %v11410_v10 = vadd.f32 %v11409_v51, %v11408_v23  ;;  %v11464_v59 = vpop.f32.mrb[58].mxu1  ;;  %2466 = vmatmul.mubr.f32.gmra.mrb[138].mxu0 %v19228_v52  ;;  %v16459_v53 = vpop.permute.xlu0 %1292  ;;  %v19233_v23 = vunpack.c.h.bf16 %v15941_v13  ;;  %v19234_v51 = vunpack.c.l.bf16 %v15941_v13 }
 0x175   :  { %v11465_v57 = vpop.f32.mrb[59].mxu1  ;;  %14016 = vmatpush3.bf16.msra.mxu0 %v16155_v11  ;;  %2470 = vmatprep.mubr.f32.mxu0 %v19229_v39  ;;  %v19239_v39 = vunpack.c.h.bf16 %v15990_v35 }
 0x176   :  { %v11411_v45 = vpop.f32.mrb[60].mxu0  ;;  %1462 = vrot.lane.b32.xlu0 %v11410_v10, %s14881_s23  ;;  %1460 = vrot.lane.b32.xlu1 %v11407_v4, %s14881_s23  ;;  %v11466_v29 = vadd.f32 %v11465_v57, %v11464_v59  ;;  %v19235_v10 = vunpack.c.h.bf16 %v15960_v28  ;;  %v19236_v57 = vunpack.c.l.bf16 %v15960_v28 }
 0x177   :  { %v11412_v63 = vpop.f32.mrb[61].mxu0  ;;  %14018 = vmatprep.subr.bf16.mxu0 %v16165_v5 }
 0x178   :  { %v11413_v27 = vadd.f32 %v11412_v63, %v11411_v45  ;;  %v11467_v2 = vpop.f32.mrb[60].mxu1  ;;  %2471 = vmatmul.mubr.f32.gmra.mrb[140].mxu0 %v19230_v33  ;;  %v16472_v16 = vpop.permute.xlu0 %1294  ;;  %v19237_v45 = vunpack.c.h.bf16 %v15977_v36  ;;  %v19241_v33 = vld [vmem:[#allocation34_spill] sm:$0xff] }
 0x179   :  { %v11468_v56 = vpop.f32.mrb[61].mxu1  ;;  %14020 = vmatpush3.bf16.msra.mxu0 %v16173_v38  ;;  %2475 = vmatprep.mubr.f32.mxu0 %v19231_v26 }
 0x17a   :  { %v11414_v0 = vpop.f32.mrb[62].mxu0  ;;  %1492 = vrot.lane.b32.xlu1 %v11463_v15, %s14882_s24  ;;  %v11469_v60 = vadd.f32 %v11468_v56, %v11467_v2  ;;  %14022 = vmatprep.subr.bf16.mxu0 %v16183_v46  ;;  %v19238_v2 = vunpack.c.l.bf16 %v15977_v36  ;;  %v19249_v46 = vld [vmem:[#allocation46_spill] sm:$0xff] }
 0x17b   :  { %v11415_v37 = vpop.f32.mrb[63].mxu0  ;;  %v1541_v38 = vsel %vm1540_vm1, %v19249_v46, %v16459_v53  ;;  %v1542_v46 = vsel %vm1540_vm1, %v16204_v1, %v16472_v16 }
 0x17c   :  { %v11416_v6 = vadd.f32 %v11415_v37, %v11414_v0  ;;  %v11470_v17 = vpop.f32.mrb[62].mxu1  ;;  %2476 = vmatmul.mubr.f32.gmra.mrb[142].mxu0 %v19232_v44  ;;  %v16488_v9 = vpop.permute.xlu0 %1296 }
 0x17d   :  { %v11471_v58 = vpop.f32.mrb[63].mxu1  ;;  %14024 = vmatpush3.bf16.msra.mxu0 %v16191_v61  ;;  %2650 = vmatprep.mubr.f32.mxu0 %v19233_v23 }
 0x17e   :  { %v11505_v4 = vpop.f32.mrb[64].mxu0  ;;  %1400 = vrot.lane.b32.xlu1 %v16376_v24, %s14879_s18  ;;  %v16476_v49 = vadd.f32 %v11471_v58, %v11470_v17  ;;  %v19242_v17 = vunpack.c.h.bf16 %v19241_v33 }
 0x17f   :  { %v11506_v55 = vpop.f32.mrb[65].mxu0 }
 0x180   :  { %v11507_v54 = vadd.f32 %v11506_v55, %v11505_v4  ;;  %2651 = vmatmul.mubr.f32.vlgmr.msra.gmra.mrb[144].mxu0 %v19234_v51  ;;  %v16501_v63 = vpop.permute.xlu1 %1298  ;;  %v19244_v55 = vld [vmem:[#allocation35_spill] sm:$0xff] }
 0x181   :  { %2655 = vmatprep.mubr.f32.mxu0 %v19235_v10  ;;  %v19245_v44 = vunpack.c.h.bf16 %v19244_v55  ;;  %v19246_v23 = vunpack.c.l.bf16 %v19244_v55 }
 0x182   :  { %v11508_v15 = vpop.f32.mrb[66].mxu0  ;;  %1516 = vrot.lane.b32.xlu0 %v11507_v54, %s14883_s28  ;;  %1432 = vrot.lane.b32.xlu1 %v16382_v31, %s14880_s19 }
 0x183   :  { %v11509_v24 = vpop.f32.mrb[67].mxu0 }
 0x184   :  { %v11510_v7 = vadd.f32 %v11509_v24, %v11508_v15  ;;  %2656 = vmatmul.mubr.f32.gmra.mrb[146].mxu0 %v19236_v57  ;;  %v16517_v37 = vpop.permute.xlu1 %1300 }
 0x185   :  { %2660 = vmatprep.mubr.f32.mxu0 %v19237_v45 }
 0x186   :  { %1370 = vrot.lane.b32.xlu0 %v16318_v25, %s14878_s30  ;;  %1518 = vrot.lane.b32.xlu1 %v11510_v7, %s14883_s28  ;;  %v11511_v59 = vpop.f32.mrb[68].mxu0 }
 0x187   :  { %v11512_v62 = vpop.f32.mrb[69].mxu0 }
 0x188   :  { %v16497_v31 = vpop.permute.xlu0 %1302  ;;  %v11513_v13 = vadd.f32 %v11512_v62, %v11511_v59  ;;  %2661 = vmatmul.mubr.f32.gmra.mrb[148].mxu0 %v19238_v2 }
 0x189   :  { %2665 = vmatprep.mubr.f32.mxu0 %v19239_v39 }
 0x18a   :  { %1494 = vrot.lane.b32.xlu0 %v11466_v29, %s14882_s24  ;;  %1434 = vrot.lane.b32.xlu1 %v16393_v34, %s14880_s19  ;;  %v11514_v25 = vpop.f32.mrb[70].mxu0  ;;  %v19240_v34 = vunpack.c.l.bf16 %v15990_v35 }
 0x18b   :  { %v11515_v52 = vpop.f32.mrb[71].mxu0 }
 0x18c   :  { %v11516_v28 = vadd.f32 %v11515_v52, %v11514_v25  ;;  %v16510_v56 = vpop.permute.xlu0 %1304  ;;  %2666 = vmatmul.mubr.f32.gmra.mrb[150].mxu0 %v19240_v34 }
 0x18d   :  { %2670 = vmatprep.mubr.f32.mxu0 %v19242_v17 }
 0x18e   :  { %1402 = vrot.lane.b32.xlu0 %v16387_v22, %s14879_s18  ;;  %1466 = vrot.lane.b32.xlu1 %v11416_v6, %s14881_s23  ;;  %v11517_v29 = vpop.f32.mrb[72].mxu0  ;;  %v19243_v22 = vunpack.c.l.bf16 %v19241_v33 }
 0x18f   :  { %v11518_v0 = vpop.f32.mrb[73].mxu0 }
 0x190   :  { %v11519_v36 = vadd.f32 %v11518_v0, %v11517_v29  ;;  %2671 = vmatmul.mubr.f32.gmra.mrb[152].mxu0 %v19243_v22  ;;  %v16525_v6 = vpop.permute.xlu0 %1306 }
 0x191   :  { %2675 = vmatprep.mubr.f32.mxu0 %v19245_v44 }
 0x192   :  { %1464 = vrot.lane.b32.xlu0 %v11413_v27, %s14881_s23  ;;  %1520 = vrot.lane.b32.xlu1 %v11513_v13, %s14883_s28  ;;  %v11520_v26 = vpop.f32.mrb[74].mxu0 }
 0x193   :  { %v11521_v58 = vpop.f32.mrb[75].mxu0 }
 0x194   :  { %v1325_v4 = vpop.permute.xlu1 %1324  ;;  %v11522_v35 = vadd.f32 %v11521_v58, %v11520_v26  ;;  %2676 = vmatmul.mubr.f32.gmra.mrb[154].mxu0 %v19246_v23  ;;  %v1357_v51 = vpop.permute.xlu0 %1356 }
 0x195   :  { %v1550_v11 = vsel %vm1549_vm2, %v1541_v38, %v1325_v4 }
 0x196   :  { %1496 = vrot.lane.b32.xlu0 %v11469_v60, %s14882_s24  ;;  %1522 = vrot.lane.b32.xlu1 %v11516_v28, %s14883_s28  ;;  %v11523_v54 = vpop.f32.mrb[76].mxu0  ;;  %v1559_v3 = vsel %vm1558_vm3, %v1550_v11, %v1357_v51 }
 0x197   :  { %v11524_v27 = vpop.f32.mrb[77].mxu0 }
 0x198   :  { %v1327_v15 = vpop.permute.xlu1 %1326  ;;  %v11525_v24 = vadd.f32 %v11524_v27, %v11523_v54 }
 0x199   :  { %v1551_v38 = vsel %vm1549_vm2, %v1542_v46, %v1327_v15 }
 0x19a   :  { %1526 = vrot.lane.b32.xlu0 %v11522_v35, %s14883_s28  ;;  %1524 = vrot.lane.b32.xlu1 %v11519_v36, %s14883_s28  ;;  %v11526_v7 = vpop.f32.mrb[78].mxu0 }
 0x19b   :  { %v11527_v10 = vpop.f32.mrb[79].mxu0 }
 0x19c   :  { %v1359_v59 = vpop.permute.xlu1 %1358  ;;  %v11528_v62 = vadd.f32 %v11527_v10, %v11526_v7  ;;  %v16535_v57 = vpop.permute.xlu0 %1328 }
 0x19d   :  { %v1560_v11 = vsel %vm1558_vm3, %v1551_v38, %v1359_v59 }
 0x19e   :  { %1528 = vrot.lane.b32.xlu0 %v11525_v24, %s14883_s28  ;;  %1498 = vrot.lane.b32.xlu1 %v16476_v49, %s14882_s24 }
 0x1a0   :  { %v16540_v60 = vpop.permute.xlu1 %1330  ;;  %v16543_v13 = vpop.permute.xlu0 %1360 }
 0x1a2   :  { %1530 = vrot.lane.b32.xlu1 %v11528_v62, %s14883_s28 }
 0x1a4   :  { %v16545_v45 = vpop.permute.xlu1 %1362 }
 0x1a8   :  { %v16547_v25 = vpop.permute.xlu0 %1334  ;;  %v16549_v52 = vpop.permute.xlu1 %1332 }
 0x1ac   :  { %v16551_v2 = vpop.permute.xlu0 %1366  ;;  %v16553_v28 = vpop.permute.xlu1 %1364 }
 0x1b0   :  { %v16555_v39 = vpop.permute.xlu0 %1338  ;;  %v16557_v29 = vpop.permute.xlu1 %1336 }
 0x1b4   :  { %v1389_v49 = vpop.permute.xlu0 %1388  ;;  %v16559_v0 = vpop.permute.xlu1 %1368 }
 0x1b5   :  { %19247 = vst [vmem:[#allocation34_spill] sm:$0xff] %v16559_v0 }
 0x1b8   :  { %v1421_v34 = vpop.permute.xlu0 %1420  ;;  %v1391_v36 = vpop.permute.xlu1 %1390 }
 0x1bc   :  { %v16561_v33 = vpop.permute.xlu0 %1392  ;;  %v1423_v17 = vpop.permute.xlu1 %1422 }
 0x1c0   :  { %v16563_v26 = vpop.permute.xlu0 %1394  ;;  %v16565_v58 = vpop.permute.xlu1 %1424 }
 0x1c4   :  { %v16567_v22 = vpop.permute.xlu0 %1426  ;;  %v16569_v35 = vpop.permute.xlu1 %1396 }
 0x1c8   :  { %v16571_v55 = vpop.permute.xlu0 %1428  ;;  %v16573_v44 = vpop.permute.xlu1 %1398 }
 0x1cc   :  { %v16575_v54 = vpop.permute.xlu0 %1430 }
 0x1d4   :  { %v1453_v23 = vpop.permute.xlu0 %1452 }
 0x1d8   :  { %v1455_v27 = vpop.permute.xlu1 %1454  ;;  %v1485_v7 = vpop.permute.xlu0 %1484 }
 0x1dc   :  { %v1487_v24 = vpop.permute.xlu1 %1486 }
 0x1e0   :  { %v1457_v10 = vpop.permute.xlu1 %1456  ;;  %v16577_v62 = vpop.permute.xlu0 %1458 }
 0x1e4   :  { %v1489_v18 = vpop.permute.xlu1 %1488  ;;  %v16581_v61 = vpop.permute.xlu0 %1490 }
 0x1e8   :  { %v16579_v19 = vpop.permute.xlu1 %1460  ;;  %v16590_v0 = vpop.permute.xlu0 %1462 }
 0x1e9   :  { %19248 = vst [vmem:[#allocation35_spill] sm:$0xff] %v16579_v19  ;;  %v1568_v19 = vsel %vm1567_vm4, %v1559_v3, %v1389_v49  ;;  %v1569_v3 = vsel %vm1567_vm4, %v1560_v11, %v1391_v36 }
 0x1ea   :  { %v1577_v53 = vsel %vm1576_vm5, %v1568_v19, %v1421_v34  ;;  %v1578_v1 = vsel %vm1576_vm5, %v1569_v3, %v1423_v17  ;;  %v19254_v3 = vld [vmem:[#allocation39_spill] sm:$0xff] }
 0x1eb   :  { %v1586_v4 = vsel %vm1585_vm6, %v1577_v53, %v1453_v23  ;;  %v1587_v19 = vsel %vm1585_vm6, %v1578_v1, %v1455_v27 }
 0x1ec   :  { %v16586_v5 = vpop.permute.xlu1 %1492  ;;  %v1595_v51 = vsel %vm1594_vm7, %v1586_v4, %v1485_v7  ;;  %v1596_v16 = vsel %vm1594_vm7, %v1587_v19, %v1487_v24 }
 0x1ed   :  { %19250 = vst [vmem:[#allocation46_spill] sm:$0xff] %v16586_v5 }
 0x1f0   :  { %v16592_v8 = vpop.permute.xlu1 %1400 }
 0x1f1   :  { %19251 = vst [vmem:[#allocation49_spill] sm:$0xff] %v16592_v8 }
 0x1f4   :  { %v1517_v8 = vpop.permute.xlu0 %1516  ;;  %v16603_v5 = vpop.permute.xlu1 %1432  ;;  %v19256_v1 = vld [vmem:[#allocation46_spill] sm:$0xff] }
 0x1f5   :  { %v1604_v49 = vsel %vm1603_vm8, %v1595_v51, %v1517_v8  ;;  %v1543_v8 = vsel %vm1540_vm1, %v16213_v48, %v16488_v9  ;;  %v1544_v48 = vsel %vm1540_vm1, %v16222_v40, %v16501_v63 }
 0x1f6   :  { %12589 = vmatprep.mubr.msk.f32.mxu1 %vm1612_vm9, %v1604_v49  ;;  %v1552_v17 = vsel %vm1549_vm2, %v1543_v8, %v16535_v57  ;;  %v1553_v57 = vsel %vm1549_vm2, %v1544_v48, %v16540_v60  ;;  %v1545_v60 = vsel %vm1540_vm1, %v16231_v12, %v16517_v37  ;;  %v19255_v49 = vld [vmem:[#allocation34_spill] sm:$0xff] }
 0x1f7   :  { %v1561_v27 = vsel %vm1558_vm3, %v1552_v17, %v16543_v13  ;;  %v1562_v53 = vsel %vm1558_vm3, %v1553_v57, %v16545_v45 }
 0x1f8   :  { %v1371_v15 = vpop.permute.xlu0 %1370  ;;  %v1519_v34 = vpop.permute.xlu1 %1518  ;;  %v1570_v46 = vsel %vm1567_vm4, %v1561_v27, %v16561_v33  ;;  %v1571_v40 = vsel %vm1567_vm4, %v1562_v53, %v16563_v26  ;;  %v1554_v26 = vsel %vm1549_vm2, %v1545_v60, %v16549_v52  ;;  %v19259_v53 = vld [vmem:[#allocation41_spill] sm:$0xff] }
 0x1f9   :  { %v1605_v59 = vsel %vm1603_vm8, %v1596_v16, %v1519_v34  ;;  %v1579_v9 = vsel %vm1576_vm5, %v1570_v46, %v16565_v58  ;;  %v1546_v58 = vsel %vm1540_vm1, %v16240_v50, %v16497_v31  ;;  %v1563_v50 = vsel %vm1558_vm3, %v1554_v26, %v16553_v28  ;;  %v19252_v28 = vld [vmem:[#allocation47_spill] sm:$0xff] }
 0x1fa   :  { %12590 = vmatmul.mubr.msk.f32.vlgmr.msra.gmra.mrb[64].mxu1 %vm1612_vm9, %v1605_v59  ;;  %v1588_v13 = vsel %vm1585_vm6, %v1579_v9, %v1457_v10  ;;  %v1555_v45 = vsel %vm1549_vm2, %v1546_v58, %v16547_v25  ;;  %v1572_v25 = vsel %vm1567_vm4, %v1563_v50, %v16569_v35  ;;  %v19257_v59 = vld [vmem:[#allocation40_spill] sm:$0xff] }
 0x1fb   :  { %13772 = vmatpush3.bf16.msra.mxu1 %v16065_v41  ;;  %v1597_v38 = vsel %vm1594_vm7, %v1588_v13, %v1489_v18  ;;  %v1580_v18 = vsel %vm1576_vm5, %v1571_v40, %v16567_v22  ;;  %v1564_v12 = vsel %vm1558_vm3, %v1555_v45, %v16551_v2  ;;  %v1547_v2 = vsel %vm1540_vm1, %v16249_v32, %v16510_v56  ;;  %v19253_v56 = vld [vmem:[#allocation35_spill] sm:$0xff]  ;;  %v19260_v40 = vld [vmem:[#allocation42_spill] sm:$0xff] }
 0x1fc   :  { %v1495_v23 = vpop.permute.xlu0 %1494  ;;  %v16614_v36 = vpop.permute.xlu1 %1434  ;;  %13774 = vmatprep.subr.bf16.mxu1 %v16075_v47  ;;  %v1589_v10 = vsel %vm1585_vm6, %v1580_v18, %v16577_v62  ;;  %v1573_v52 = vsel %vm1567_vm4, %v1564_v12, %v16573_v44  ;;  %v1581_v11 = vsel %vm1576_vm5, %v1572_v25, %v16571_v55  ;;  %v1556_v44 = vsel %vm1549_vm2, %v1547_v2, %v16557_v29  ;;  %v19261_v18 = vld [vmem:[#allocation43_spill] sm:$0xff]  ;;  %v19262_v12 = vld [vmem:[#allocation44_spill] sm:$0xff] }
 0x1fd   :  { %v1598_v31 = vsel %vm1594_vm7, %v1589_v10, %v16581_v61  ;;  %v1548_v61 = vsel %vm1540_vm1, %v19252_v28, %v16525_v6  ;;  %v1582_v51 = vsel %vm1576_vm5, %v1573_v52, %v16575_v54  ;;  %v1590_v6 = vsel %vm1585_vm6, %v1581_v11, %v19253_v56  ;;  %v11572_v55 = vpop.f32.mrb[80].mxu0  ;;  %v19266_v52 = vld [vmem:[#allocation38_spill] sm:$0xff]  ;;  %v19271_v56 = vld [vmem:[#allocation4_spill] sm:$0xff] }
 0x1fe   :  { %v1557_v35 = vsel %vm1549_vm2, %v1548_v61, %v16555_v39  ;;  %v1591_v32 = vsel %vm1585_vm6, %v1582_v51, %v16590_v0  ;;  %v1565_v54 = vsel %vm1558_vm3, %v1556_v44, %v19255_v49  ;;  %v1599_v19 = vsel %vm1594_vm7, %v1590_v6, %v19256_v1  ;;  %v19258_v0 = vld [vmem:[#allocation49_spill] sm:$0xff]  ;;  %v11573_v48 = vpop.f32.mrb[81].mxu0  ;;  %v19268_v61 = vld [vmem:[#allocation3_spill] sm:$0xff] }
 0x1ff   :  { %13776 = vmatpush3.bf16.msra.mxu1 %v16083_v21  ;;  %v1566_v39 = vsel %vm1558_vm3, %v1557_v35, %v1371_v15  ;;  %v1600_v16 = vsel %vm1594_vm7, %v1591_v32, %v1495_v23  ;;  %v1574_v8 = vsel %vm1567_vm4, %v1565_v54, %v19258_v0  ;;  %v16709_v15 = vadd.f32 %v11573_v48, %v11572_v55  ;;  %v11575_v57 = vpop.f32.mrb[82].mxu0 }
 0x200   :  { %v1403_v24 = vpop.permute.xlu0 %1402  ;;  %v16625_v7 = vpop.permute.xlu1 %1466  ;;  %13778 = vmatprep.subr.bf16.mxu1 %v16093_v20  ;;  %v1583_v9 = vsel %vm1576_vm5, %v1574_v8, %v16603_v5  ;;  %v19269_v11 = vunpack.c.h.bf16 %v19268_v61  ;;  %v19270_v44 = vunpack.c.l.bf16 %v19268_v61  ;;  %v19272_v6 = vunpack.c.h.bf16 %v19271_v56 }
 0x201   :  { %v1575_v17 = vsel %vm1567_vm4, %v1566_v39, %v1403_v24 }
 0x202   :  { %v1584_v24 = vsel %vm1576_vm5, %v1575_v17, %v16614_v36 }
 0x203   :  { %13780 = vmatpush3.bf16.msra.mxu1 %v16101_v42  ;;  %v1593_v60 = vsel %vm1585_vm6, %v1584_v24, %v16625_v7  ;;  %v19265_v7 = vld [vmem:[#allocation45_spill] sm:$0xff] }
 0x204   :  { %v1465_v33 = vpop.permute.xlu0 %1464  ;;  %v1521_v4 = vpop.permute.xlu1 %1520  ;;  %13782 = vmatprep.subr.bf16.mxu1 %v16111_v43 }
 0x205   :  { %v1606_v63 = vsel %vm1603_vm8, %v1597_v38, %v1521_v4  ;;  %v1592_v23 = vsel %vm1585_vm6, %v1583_v9, %v1465_v33 }
 0x206   :  { %12592 = vmatprep.mubr.msk.f32.mxu1 %vm1612_vm9, %v1606_v63  ;;  %v11576_v63 = vpop.f32.mrb[83].mxu0 }
 0x207   :  { %13784 = vmatpush3.bf16.msra.mxu1 %v16119_v30  ;;  %v16720_v33 = vadd.f32 %v11576_v63, %v11575_v57  ;;  %v11578_v58 = vpop.f32.mrb[84].mxu0 }
 0x208   :  { %v1497_v37 = vpop.permute.xlu0 %1496  ;;  %v1523_v22 = vpop.permute.xlu1 %1522  ;;  %13786 = vmatprep.subr.bf16.mxu1 %v16129_v14 }
 0x209   :  { %v1607_v62 = vsel %vm1603_vm8, %v1598_v31, %v1523_v22  ;;  %v1601_v13 = vsel %vm1594_vm7, %v1592_v23, %v1497_v37  ;;  %v11579_v26 = vpop.f32.mrb[85].mxu0  ;;  %v19263_v31 = vld [vmem:[#allocation2_spill] sm:$0xff] }
 0x20a   :  { %12593 = vmatmul.mubr.msk.f32.gmra.mrb[66].mxu1 %vm1612_vm9, %v1607_v62  ;;  %v16728_v50 = vadd.f32 %v11579_v26, %v11578_v58  ;;  %v19264_v37 = vunpack.c.h.bf16 %v19263_v31  ;;  %v11581_v22 = vpop.f32.mrb[86].mxu0  ;;  %v19267_v2 = vunpack.c.l.bf16 %v19263_v31  ;;  %v19277_v23 = vld [vmem:[#allocation6_spill] sm:$0xff]  ;;  %v19280_v58 = vld [vmem:[#allocation7_spill] sm:$0xff] }
 0x20b   :  { %13788 = vmatpush3.bf16.msra.mxu1 %v19254_v3  ;;  %v11582_v25 = vpop.f32.mrb[87].mxu0  ;;  %v19278_v57 = vunpack.c.h.bf16 %v19277_v23 }
 0x20c   :  { %v1527_v29 = vpop.permute.xlu0 %1526  ;;  %v1525_v34 = vpop.permute.xlu1 %1524  ;;  %13790 = vmatprep.subr.bf16.mxu1 %v19257_v59  ;;  %v16735_v62 = vadd.f32 %v11582_v25, %v11581_v22 }
 0x20d   :  { %v1609_v27 = vsel %vm1603_vm8, %v1600_v16, %v1527_v29  ;;  %v1608_v46 = vsel %vm1603_vm8, %v1599_v19, %v1525_v34  ;;  %v11584_v28 = vpop.f32.mrb[88].mxu0  ;;  %v19273_v19 = vunpack.c.l.bf16 %v19271_v56  ;;  %v19274_v29 = vld [vmem:[#allocation5_spill] sm:$0xff] }
 0x20e   :  { %12595 = vmatprep.mubr.msk.f32.mxu1 %vm1612_vm9, %v1608_v46  ;;  %v11585_v51 = vpop.f32.mrb[89].mxu0  ;;  %v19275_v34 = vunpack.c.h.bf16 %v19274_v29  ;;  %v19276_v46 = vunpack.c.l.bf16 %v19274_v29 }
 0x20f   :  { %12596 = vmatmul.mubr.msk.f32.gmra.mrb[68].mxu1 %vm1612_vm9, %v1609_v27  ;;  %v16743_v35 = vadd.f32 %v11585_v51, %v11584_v28  ;;  %v11587_v32 = vpop.f32.mrb[90].mxu0 }
 0x210   :  { %13792 = vmatpush3.bf16.msra.mxu1 %v19259_v53  ;;  %v1529_v38 = vpop.permute.xlu0 %1528  ;;  %v1499_v4 = vpop.permute.xlu1 %1498 }
 0x211   :  { %v1610_v5 = vsel %vm1603_vm8, %v1601_v13, %v1529_v38  ;;  %13794 = vmatprep.subr.bf16.mxu1 %v19260_v40  ;;  %v1602_v36 = vsel %vm1594_vm7, %v1593_v60, %v1499_v4  ;;  %v11588_v55 = vpop.f32.mrb[91].mxu0 }
 0x212   :  { %12598 = vmatprep.mubr.msk.f32.mxu1 %vm1612_vm9, %v1610_v5  ;;  %v16751_v49 = vadd.f32 %v11588_v55, %v11587_v32  ;;  %v11590_v54 = vpop.f32.mrb[92].mxu0  ;;  %v19279_v5 = vunpack.c.l.bf16 %v19277_v23  ;;  %v19286_v55 = vld [vmem:[#allocation9_spill] sm:$0xff] }
 0x213   :  { %v11591_v1 = vpop.f32.mrb[93].mxu0 }
 0x214   :  { %13796 = vmatpush3.bf16.msra.mxu1 %v19261_v18  ;;  %v1531_v45 = vpop.permute.xlu1 %1530  ;;  %v16755_v39 = vadd.f32 %v11591_v1, %v11590_v54  ;;  %v11593_v16 = vpop.f32.mrb[94].mxu0  ;;  %v19287_v54 = vunpack.c.h.bf16 %v19286_v55 }
 0x215   :  { %v1611_v10 = vsel %vm1603_vm8, %v1602_v36, %v1531_v45  ;;  %13798 = vmatprep.subr.bf16.mxu1 %v19262_v12  ;;  %v11594_v0 = vpop.f32.mrb[95].mxu0  ;;  %v19281_v36 = vunpack.c.h.bf16 %v19280_v58 }
 0x216   :  { %12599 = vmatmul.mubr.msk.f32.gmra.mrb[70].mxu1 %vm1612_vm9, %v1611_v10  ;;  %v16761_v8 = vadd.f32 %v11594_v0, %v11593_v16  ;;  %v11684_v17 = vpop.f32.mrb[96].mxu0 }
 0x217   :  { %1915 = vmatprep.mubr.f32.mxu1 %v19264_v37  ;;  %v11685_v27 = vpop.f32.mrb[97].mxu0  ;;  %v19282_v37 = vunpack.c.l.bf16 %v19280_v58 }
 0x218   :  { %13800 = vmatpush3.bf16.msra.mxu1 %v19265_v7  ;;  %v11686_v48 = vadd.f32 %v11685_v27, %v11684_v17  ;;  %v11687_v9 = vpop.f32.mrb[98].mxu0  ;;  %v19289_v27 = vld [vmem:[#allocation10_spill] sm:$0xff] }
 0x219   :  { %13834 = vmatprep.subr.bf16.mxu1 %v19266_v52  ;;  %v11688_v24 = vpop.f32.mrb[99].mxu0 }
 0x21a   :  { %v11689_v13 = vadd.f32 %v11688_v24, %v11687_v9  ;;  %v11690_v38 = vpop.f32.mrb[100].mxu0  ;;  %2731 = vrot.lane.b32.xlu0 %v11686_v48, %s14877_s26  ;;  %v19291_v24 = vunpack.c.l.bf16 %v19289_v27 }
 0x21b   :  { %1916 = vmatmul.mubr.f32.vlgmr.msra.gmra.mrb[72].mxu1 %v19267_v2  ;;  %v11691_v4 = vpop.f32.mrb[101].mxu0  ;;  %v19283_v2 = vld [vmem:[#allocation8_spill] sm:$0xff] }
 0x21c   :  { %13836 = vmatpush3.bf16.msra.mxu1 %v16065_v41  ;;  %1920 = vmatprep.mubr.f32.mxu1 %v19269_v11  ;;  %v11692_v63 = vadd.f32 %v11691_v4, %v11690_v38  ;;  %v11693_v60 = vpop.f32.mrb[102].mxu0  ;;  %v19284_v28 = vunpack.c.h.bf16 %v19283_v2  ;;  %v19285_v32 = vunpack.c.l.bf16 %v19283_v2  ;;  %v19292_v4 = vld [vmem:[#allocation11_spill] sm:$0xff] }
 0x21d   :  { %13838 = vmatprep.subr.bf16.mxu1 %v16075_v47  ;;  %2733 = vrot.lane.b32.xlu1 %v11689_v13, %s14877_s26  ;;  %v11694_v45 = vpop.f32.mrb[103].mxu0 }
 0x21e   :  { %v11695_v26 = vadd.f32 %v11694_v45, %v11693_v60  ;;  %v11696_v10 = vpop.f32.mrb[104].mxu0  ;;  %v19294_v45 = vunpack.c.l.bf16 %v19292_v4 }
 0x21f   :  { %1921 = vmatmul.mubr.f32.gmra.mrb[74].mxu1 %v19270_v44  ;;  %v11697_v31 = vpop.f32.mrb[105].mxu0 }
 0x220   :  { %13840 = vmatpush3.bf16.msra.mxu1 %v16083_v21  ;;  %1925 = vmatprep.mubr.f32.mxu1 %v19272_v6  ;;  %v11698_v22 = vadd.f32 %v11697_v31, %v11696_v10  ;;  %v11699_v25 = vpop.f32.mrb[106].mxu0  ;;  %v19295_v31 = vld [vmem:[#allocation12_spill] sm:$0xff] }
 0x221   :  { %13842 = vmatprep.subr.bf16.mxu1 %v16093_v20  ;;  %2735 = vrot.lane.b32.xlu1 %v11692_v63, %s14877_s26  ;;  %v11700_v61 = vpop.f32.mrb[107].mxu0 }
 0x222   :  { %v11701_v11 = vadd.f32 %v11700_v61, %v11699_v25  ;;  %v11702_v51 = vpop.f32.mrb[108].mxu0  ;;  %2737 = vrot.lane.b32.xlu0 %v11695_v26, %s14877_s26  ;;  %v19297_v61 = vunpack.c.l.bf16 %v19295_v31 }
 0x223   :  { %1926 = vmatmul.mubr.f32.gmra.mrb[76].mxu1 %v19273_v19  ;;  %v11703_v44 = vpop.f32.mrb[109].mxu0 }
 0x224   :  { %13844 = vmatpush3.bf16.msra.mxu1 %v16101_v42  ;;  %1930 = vmatprep.mubr.f32.mxu1 %v19275_v34  ;;  %v11704_v56 = vadd.f32 %v11703_v44, %v11702_v51  ;;  %v11705_v6 = vpop.f32.mrb[110].mxu0  ;;  %v19288_v34 = vunpack.c.l.bf16 %v19286_v55  ;;  %v19298_v44 = vld [vmem:[#allocation13_spill] sm:$0xff] }
 0x225   :  { %13846 = vmatprep.subr.bf16.mxu1 %v16111_v43  ;;  %2739 = vrot.lane.b32.xlu1 %v11698_v22, %s14877_s26  ;;  %v11706_v1 = vpop.f32.mrb[111].mxu0 }
 0x226   :  { %v11707_v19 = vadd.f32 %v11706_v1, %v11705_v6  ;;  %v11796_v16 = vpop.f32.mrb[112].mxu0  ;;  %2741 = vrot.lane.b32.xlu0 %v11701_v11, %s14877_s26  ;;  %v19300_v1 = vunpack.c.l.bf16 %v19298_v44 }
 0x227   :  { %1931 = vmatmul.mubr.f32.gmra.mrb[78].mxu1 %v19276_v46  ;;  %v11797_v29 = vpop.f32.mrb[113].mxu0  ;;  %v19290_v46 = vunpack.c.h.bf16 %v19289_v27 }
 0x228   :  { %13848 = vmatpush3.bf16.msra.mxu1 %v16119_v30  ;;  %1935 = vmatprep.mubr.f32.mxu1 %v19278_v57  ;;  %v11798_v0 = vadd.f32 %v11797_v29, %v11796_v16  ;;  %v11799_v17 = vpop.f32.mrb[114].mxu0  ;;  %v19301_v29 = vld [vmem:[#allocation14_spill] sm:$0xff] }
 0x229   :  { %13850 = vmatprep.subr.bf16.mxu1 %v16129_v14  ;;  %2743 = vrot.lane.b32.xlu1 %v11704_v56, %s14877_s26  ;;  %v11800_v48 = vpop.f32.mrb[115].mxu0 }
 0x22a   :  { %v11801_v9 = vadd.f32 %v11800_v48, %v11799_v17  ;;  %v11802_v23 = vpop.f32.mrb[116].mxu0  ;;  %2745 = vrot.lane.b32.xlu0 %v11707_v19, %s14877_s26  ;;  %v19304_v17 = vld [vmem:[#allocation15_spill] sm:$0xff] }
 0x22b   :  { %1936 = vmatmul.mubr.f32.gmra.mrb[80].mxu1 %v19279_v5  ;;  %v11803_v57 = vpop.f32.mrb[117].mxu0  ;;  %v19293_v5 = vunpack.c.h.bf16 %v19292_v4  ;;  %v19305_v27 = vunpack.c.h.bf16 %v19304_v17 }
 0x22c   :  { %13852 = vmatpush3.bf16.msra.mxu1 %v19254_v3  ;;  %1940 = vmatprep.mubr.f32.mxu1 %v19281_v36  ;;  %v11804_v13 = vadd.f32 %v11803_v57, %v11802_v23  ;;  %v11805_v38 = vpop.f32.mrb[118].mxu0 }
 0x22d   :  { %13854 = vmatprep.subr.bf16.mxu1 %v19257_v59  ;;  %v11806_v63 = vpop.f32.mrb[119].mxu0 }
 0x22e   :  { %2799 = vrot.lane.b32.xlu1 %v11804_v13, %s14879_s18  ;;  %v11807_v60 = vadd.f32 %v11806_v63, %v11805_v38  ;;  %v11808_v58 = vpop.f32.mrb[120].mxu0  ;;  %2795 = vrot.lane.b32.xlu0 %v11798_v0, %s14879_s18  ;;  %v19303_v0 = vunpack.c.l.bf16 %v19301_v29 }
 0x22f   :  { %1941 = vmatmul.mubr.f32.gmra.mrb[82].mxu1 %v19282_v37  ;;  %v11809_v36 = vpop.f32.mrb[121].mxu0  ;;  %v19296_v37 = vunpack.c.h.bf16 %v19295_v31 }
 0x230   :  { %13856 = vmatpush3.bf16.msra.mxu1 %v19259_v53  ;;  %1945 = vmatprep.mubr.f32.mxu1 %v19284_v28  ;;  %v11810_v26 = vadd.f32 %v11809_v36, %v11808_v58  ;;  %v11811_v10 = vpop.f32.mrb[122].mxu0 }
 0x231   :  { %13858 = vmatprep.subr.bf16.mxu1 %v19260_v40  ;;  %v11812_v22 = vpop.f32.mrb[123].mxu0 }
 0x232   :  { %2801 = vrot.lane.b32.xlu1 %v11807_v60, %s14879_s18  ;;  %v11813_v25 = vadd.f32 %v11812_v22, %v11811_v10  ;;  %v11814_v2 = vpop.f32.mrb[124].mxu0  ;;  %2797 = vrot.lane.b32.xlu0 %v11801_v9, %s14879_s18  ;;  %v19307_v9 = vld [vmem:[#allocation16_spill] sm:$0xff]  ;;  %v19310_v60 = vld [vmem:[#allocation17_spill] sm:$0xff] }
 0x233   :  { %1946 = vmatmul.mubr.f32.gmra.mrb[84].mxu1 %v19285_v32  ;;  %v11815_v28 = vpop.f32.mrb[125].mxu0  ;;  %v19299_v32 = vunpack.c.h.bf16 %v19298_v44  ;;  %v19308_v23 = vunpack.c.h.bf16 %v19307_v9  ;;  %v19309_v38 = vunpack.c.l.bf16 %v19307_v9  ;;  %v19311_v58 = vunpack.c.h.bf16 %v19310_v60 }
 0x234   :  { %13860 = vmatpush3.bf16.msra.mxu1 %v19261_v18  ;;  %1950 = vmatprep.mubr.f32.mxu1 %v19287_v54  ;;  %v11816_v11 = vadd.f32 %v11815_v28, %v11814_v2  ;;  %v11817_v51 = vpop.f32.mrb[126].mxu0 }
 0x235   :  { %13862 = vmatprep.subr.bf16.mxu1 %v19262_v12  ;;  %v11818_v56 = vpop.f32.mrb[127].mxu0 }
 0x236   :  { %2803 = vrot.lane.b32.xlu1 %v11810_v26, %s14879_s18  ;;  %v11819_v6 = vadd.f32 %v11818_v56, %v11817_v51  ;;  %v11908_v55 = vpop.f32.mrb[128].mxu0 }
 0x237   :  { %1951 = vmatmul.mubr.f32.gmra.mrb[86].mxu1 %v19288_v34  ;;  %v11909_v54 = vpop.f32.mrb[129].mxu0  ;;  %v19302_v34 = vunpack.c.h.bf16 %v19301_v29  ;;  %v19319_v29 = vld [vmem:[#allocation20_spill] sm:$0xff] }
 0x238   :  { %13864 = vmatpush3.bf16.msra.mxu1 %v19265_v7  ;;  %2125 = vmatprep.mubr.f32.mxu1 %v19290_v46  ;;  %v11910_v19 = vadd.f32 %v11909_v54, %v11908_v55  ;;  %v11911_v16 = vpop.f32.mrb[130].mxu0  ;;  %v19306_v46 = vunpack.c.l.bf16 %v19304_v17 }
 0x239   :  { %13898 = vmatprep.subr.bf16.mxu1 %v19266_v52  ;;  %2809 = vrot.lane.b32.xlu0 %v11819_v6, %s14879_s18  ;;  %v11912_v48 = vpop.f32.mrb[131].mxu0  ;;  %v19316_v6 = vld [vmem:[#allocation19_spill] sm:$0xff] }
 0x23a   :  { %2805 = vrot.lane.b32.xlu1 %v11813_v25, %s14879_s18  ;;  %v11913_v4 = vadd.f32 %v11912_v48, %v11911_v16  ;;  %v19313_v25 = vld [vmem:[#allocation18_spill] sm:$0xff]  ;;  %v19317_v55 = vunpack.c.h.bf16 %v19316_v6  ;;  %v19322_v48 = vld [vmem:[#allocation21_spill] sm:$0xff] }
 0x23b   :  { %2126 = vmatmul.mubr.f32.vlgmr.msra.gmra.mrb[88].mxu1 %v19291_v24  ;;  %v11914_v57 = vpop.f32.mrb[132].mxu0  ;;  %v19314_v2 = vunpack.c.h.bf16 %v19313_v25  ;;  %v19323_v9 = vunpack.c.h.bf16 %v19322_v48 }
 0x23c   :  { %13900 = vmatpush3.bf16.msra.mxu1 %v16065_v41  ;;  %2130 = vmatprep.mubr.f32.mxu1 %v19293_v5  ;;  %v11915_v24 = vpop.f32.mrb[133].mxu0 }
 0x23d   :  { %13902 = vmatprep.subr.bf16.mxu1 %v16075_v47  ;;  %v11916_v5 = vadd.f32 %v11915_v24, %v11914_v57  ;;  %2861 = vrot.lane.b32.xlu0 %v11913_v4, %s14881_s23 }
 0x23e   :  { %2807 = vrot.lane.b32.xlu1 %v11816_v11, %s14879_s18 }
 0x23f   :  { %2131 = vmatmul.mubr.f32.gmra.mrb[90].mxu1 %v19294_v45  ;;  %v11917_v13 = vpop.f32.mrb[134].mxu0 }
 0x240   :  { %13904 = vmatpush3.bf16.msra.mxu1 %v16083_v21  ;;  %2135 = vmatprep.mubr.f32.mxu1 %v19296_v37  ;;  %v11918_v63 = vpop.f32.mrb[135].mxu0  ;;  %v19312_v37 = vunpack.c.l.bf16 %v19310_v60 }
 0x241   :  { %13906 = vmatprep.subr.bf16.mxu1 %v16093_v20  ;;  %v11919_v36 = vadd.f32 %v11918_v63, %v11917_v13 }
 0x242   :  { %2859 = vrot.lane.b32.xlu1 %v11910_v19, %s14881_s23  ;;  %v19318_v19 = vunpack.c.l.bf16 %v19316_v6 }
 0x243   :  { %2136 = vmatmul.mubr.f32.gmra.mrb[92].mxu1 %v19297_v61  ;;  %v11920_v45 = vpop.f32.mrb[136].mxu0  ;;  %2865 = vrot.lane.b32.xlu0 %v11919_v36, %s14881_s23 }
 0x244   :  { %13908 = vmatpush3.bf16.msra.mxu1 %v16101_v42  ;;  %2140 = vmatprep.mubr.f32.mxu1 %v19299_v32  ;;  %v11921_v26 = vpop.f32.mrb[137].mxu0  ;;  %v19315_v32 = vunpack.c.l.bf16 %v19313_v25 }
 0x245   :  { %13910 = vmatprep.subr.bf16.mxu1 %v16111_v43  ;;  %v11922_v10 = vadd.f32 %v11921_v26, %v11920_v45 }
 0x246   :  { %2863 = vrot.lane.b32.xlu1 %v11916_v5, %s14881_s23  ;;  %v19325_v5 = vld [vmem:[#allocation22_spill] sm:$0xff] }
 0x247   :  { %2141 = vmatmul.mubr.f32.gmra.mrb[94].mxu1 %v19300_v1  ;;  %v11923_v31 = vpop.f32.mrb[138].mxu0  ;;  %v19326_v63 = vunpack.c.h.bf16 %v19325_v5 }
 0x248   :  { %13912 = vmatpush3.bf16.msra.mxu1 %v16119_v30  ;;  %2145 = vmatprep.mubr.f32.mxu1 %v19302_v34  ;;  %v11924_v22 = vpop.f32.mrb[139].mxu0  ;;  %v19320_v34 = vunpack.c.h.bf16 %v19319_v29 }
 0x249   :  { %13914 = vmatprep.subr.bf16.mxu1 %v16129_v14  ;;  %v11925_v28 = vadd.f32 %v11924_v22, %v11923_v31  ;;  %v19327_v31 = vunpack.c.l.bf16 %v19325_v5  ;;  %v19328_v22 = vld [vmem:[#allocation23_spill] sm:$0xff] }
 0x24a   :  { %2867 = vrot.lane.b32.xlu1 %v11922_v10, %s14881_s23  ;;  %v19329_v25 = vunpack.c.h.bf16 %v19328_v22 }
 0x24b   :  { %2146 = vmatmul.mubr.f32.gmra.mrb[96].mxu1 %v19303_v0  ;;  %v11926_v61 = vpop.f32.mrb[140].mxu0  ;;  %2869 = vrot.lane.b32.xlu0 %v11925_v28, %s14881_s23  ;;  %v19330_v28 = vunpack.c.l.bf16 %v19328_v22 }
 0x24c   :  { %13916 = vmatpush3.bf16.msra.mxu1 %v19254_v3  ;;  %2150 = vmatprep.mubr.f32.mxu1 %v19305_v27  ;;  %v11927_v11 = vpop.f32.mrb[141].mxu0  ;;  %v19321_v27 = vunpack.c.l.bf16 %v19319_v29 }
 0x24d   :  { %13918 = vmatprep.subr.bf16.mxu1 %v19257_v59  ;;  %v11928_v51 = vadd.f32 %v11927_v11, %v11926_v61  ;;  %v19331_v61 = vld [vmem:[#allocation24_spill] sm:$0xff] }
 0x24e   :  { %v19332_v11 = vunpack.c.h.bf16 %v19331_v61 }
 0x24f   :  { %2151 = vmatmul.mubr.f32.gmra.mrb[98].mxu1 %v19306_v46  ;;  %v11929_v44 = vpop.f32.mrb[142].mxu0  ;;  %2871 = vrot.lane.b32.xlu0 %v11928_v51, %s14881_s23  ;;  %v19333_v51 = vunpack.c.l.bf16 %v19331_v61 }
 0x250   :  { %13920 = vmatpush3.bf16.msra.mxu1 %v19259_v53  ;;  %2155 = vmatprep.mubr.f32.mxu1 %v19308_v23  ;;  %v11930_v56 = vpop.f32.mrb[143].mxu0 }
 0x251   :  { %13922 = vmatprep.subr.bf16.mxu1 %v19260_v40  ;;  %v11931_v54 = vadd.f32 %v11930_v56, %v11929_v44  ;;  %v16912_v44 = vld [vmem:[%s18841_s3 + $0x8] sm:$0xff]  }
 0x252   :  { %19334 = vst [vmem:[#allocation47_spill] sm:$0xff] %v16912_v44  ;;  %v19061_v6 = vunpack.c.l.bf16 %v16912_v44 }
 0x253   :  { %2156 = vmatmul.mubr.f32.gmra.mrb[100].mxu1 %v19309_v38  ;;  %v12020_v1 = vpop.f32.mrb[144].mxu0  ;;  %2873 = vrot.lane.b32.xlu1 %v11931_v54, %s14881_s23  ;;  %v19324_v38 = vunpack.c.l.bf16 %v19322_v48  ;;  %v19338_v54 = vld [vmem:[#allocation26_spill] sm:$0xff] }
 0x254   :  { %13924 = vmatpush3.bf16.msra.mxu1 %v19261_v18  ;;  %2160 = vmatprep.mubr.f32.mxu1 %v19311_v58  ;;  %v12021_v16 = vpop.f32.mrb[145].mxu0 }
 0x255   :  { %13926 = vmatprep.subr.bf16.mxu1 %v19262_v12  ;;  %v12022_v0 = vadd.f32 %v12021_v16, %v12020_v1  ;;  %12654 = vmatprep.mubr.msk.f32.mxu0 %vm3185_vm10, %v19061_v6  ;;  %v19339_v1 = vunpack.c.h.bf16 %v19338_v54  ;;  %v19341_v16 = vld [vmem:[#allocation27_spill] sm:$0xff]  ;;  %v3174_v6 = vld [vmem:[%s18842_s4 + $0x10] sm:$0xff] }
 0x256   :  { %v19342_v29 = vunpack.c.h.bf16 %v19341_v16 }
 0x257   :  { %2161 = vmatmul.mubr.f32.gmra.mrb[102].mxu1 %v19312_v37  ;;  %v12023_v17 = vpop.f32.mrb[146].mxu0  ;;  %2923 = vrot.lane.b32.xlu1 %v12022_v0, %s14883_s28  ;;  %v19344_v0 = vld [vmem:[#allocation28_spill] sm:$0xff] }
 0x258   :  { %13928 = vmatpush3.bf16.msra.mxu1 %v19265_v7  ;;  %2335 = vmatprep.mubr.f32.mxu1 %v19314_v2  ;;  %v12024_v46 = vpop.f32.mrb[147].mxu0 }
 0x259   :  { %13962 = vmatprep.subr.bf16.mxu1 %v19266_v52  ;;  %v12025_v23 = vadd.f32 %v12024_v46, %v12023_v17  ;;  %v19345_v17 = vunpack.c.h.bf16 %v19344_v0 }
 0x25b   :  { %2336 = vmatmul.mubr.f32.vlgmr.msra.gmra.mrb[104].mxu1 %v19315_v32  ;;  %v12026_v57 = vpop.f32.mrb[148].mxu0  ;;  %2925 = vrot.lane.b32.xlu1 %v12025_v23, %s14883_s28  ;;  %v19335_v32 = vld [vmem:[#allocation25_spill] sm:$0xff] }
 0x25c   :  { %13964 = vmatpush3.bf16.msra.mxu1 %v16065_v41  ;;  %2340 = vmatprep.mubr.f32.mxu1 %v19317_v55  ;;  %v12027_v24 = vpop.f32.mrb[149].mxu0  ;;  %v19336_v56 = vunpack.c.h.bf16 %v19335_v32  ;;  %v19337_v55 = vunpack.c.l.bf16 %v19335_v32 }
 0x25d   :  { %13966 = vmatprep.subr.bf16.mxu1 %v16075_v47  ;;  %v12028_v60 = vadd.f32 %v12027_v24, %v12026_v57  ;;  %v19364_v24 = vld [vmem:[#allocation48_spill] sm:$0xff] }
 0x25f   :  { %2341 = vmatmul.mubr.f32.gmra.mrb[106].mxu1 %v19318_v19  ;;  %v12029_v13 = vpop.f32.mrb[150].mxu0  ;;  %2927 = vrot.lane.b32.xlu1 %v12028_v60, %s14883_s28  ;;  %v19340_v19 = vunpack.c.l.bf16 %v19338_v54 }
 0x260   :  { %13968 = vmatpush3.bf16.msra.mxu1 %v16083_v21  ;;  %2345 = vmatprep.mubr.f32.mxu1 %v19320_v34  ;;  %v12030_v4 = vpop.f32.mrb[151].mxu0  ;;  %v19343_v34 = vunpack.c.l.bf16 %v19341_v16 }
 0x261   :  { %13970 = vmatprep.subr.bf16.mxu1 %v16093_v20  ;;  %v12031_v58 = vadd.f32 %v12030_v4, %v12029_v13  ;;  %v19366_v13 = vld [vmem:[#allocation37_spill] sm:$0xff] }
 0x263   :  { %2346 = vmatmul.mubr.f32.gmra.mrb[108].mxu1 %v19321_v27  ;;  %v12032_v36 = vpop.f32.mrb[152].mxu0  ;;  %2929 = vrot.lane.b32.xlu1 %v12031_v58, %s14883_s28 }
 0x264   :  { %13972 = vmatpush3.bf16.msra.mxu1 %v16101_v42  ;;  %2350 = vmatprep.mubr.f32.mxu1 %v19323_v9  ;;  %v12033_v45 = vpop.f32.mrb[153].mxu0 }
 0x265   :  { %13974 = vmatprep.subr.bf16.mxu1 %v16111_v43  ;;  %v12034_v26 = vadd.f32 %v12033_v45, %v12032_v36 }
 0x267   :  { %2351 = vmatmul.mubr.f32.gmra.mrb[110].mxu1 %v19324_v38  ;;  %v12035_v10 = vpop.f32.mrb[154].mxu0  ;;  %2931 = vrot.lane.b32.xlu1 %v12034_v26, %s14883_s28 }
 0x268   :  { %13976 = vmatpush3.bf16.msra.mxu1 %v16119_v30  ;;  %2355 = vmatprep.mubr.f32.mxu1 %v19326_v63  ;;  %v12036_v37 = vpop.f32.mrb[155].mxu0 }
 0x269   :  { %13978 = vmatprep.subr.bf16.mxu1 %v16129_v14  ;;  %v12037_v2 = vadd.f32 %v12036_v37, %v12035_v10 }
 0x26b   :  { %2356 = vmatmul.mubr.f32.gmra.mrb[112].mxu1 %v19327_v31  ;;  %2933 = vrot.lane.b32.xlu0 %v12037_v2, %s14883_s28 }
 0x26c   :  { %13980 = vmatpush3.bf16.msra.mxu1 %v19254_v3  ;;  %2360 = vmatprep.mubr.f32.mxu1 %v19329_v25 }
 0x26d   :  { %13982 = vmatprep.subr.bf16.mxu1 %v19257_v59 }
 0x26f   :  { %2361 = vmatmul.mubr.f32.gmra.mrb[114].mxu1 %v19330_v28 }
 0x270   :  { %13984 = vmatpush3.bf16.msra.mxu1 %v19259_v53  ;;  %2365 = vmatprep.mubr.f32.mxu1 %v19332_v11 }
 0x271   :  { %13986 = vmatprep.subr.bf16.mxu1 %v19260_v40 }
 0x273   :  { %2366 = vmatmul.mubr.f32.gmra.mrb[116].mxu1 %v19333_v51 }
 0x274   :  { %13988 = vmatpush3.bf16.msra.mxu1 %v19261_v18  ;;  %2370 = vmatprep.mubr.f32.mxu1 %v19336_v56 }
 0x275   :  { %13990 = vmatprep.subr.bf16.mxu1 %v19262_v12 }
 0x277   :  { %2371 = vmatmul.mubr.f32.gmra.mrb[118].mxu1 %v19337_v55 }
 0x278   :  { %13992 = vmatpush3.bf16.msra.mxu1 %v19265_v7  ;;  %2545 = vmatprep.mubr.f32.mxu1 %v19339_v1 }
 0x279   :  { %14731 = vmatprep.subr.bf16.mxu1 %v19266_v52  ;;  %v19346_v52 = vunpack.c.l.bf16 %v19344_v0 }
 0x27b   :  { %2546 = vmatmul.mubr.f32.vlgmr.msra.gmra.mrb[120].mxu1 %v19340_v19 }
 0x27c   :  { %14739 = vmatpush3.bf16.msra.mxu1 %v16065_v41  ;;  %2550 = vmatprep.mubr.f32.mxu1 %v19342_v29  ;;  %v19347_v41 = vld [vmem:[#allocation29_spill] sm:$0xff] }
 0x27d   :  { %14732 = vmatprep.subr.bf16.mxu1 %v16075_v47  ;;  %v19348_v27 = vunpack.c.h.bf16 %v19347_v41  ;;  %v19349_v47 = vunpack.c.l.bf16 %v19347_v41  ;;  %v17006_v41 = vld [vmem:[%s18841_s3 + $0x18] sm:$0xff]  }
 0x27e   :  { %19369 = vst [vmem:[#allocation35_spill] sm:$0xff] %v17006_v41 }
 0x27f   :  { %2551 = vmatmul.mubr.f32.gmra.mrb[122].mxu1 %v19343_v34 }
 0x280   :  { %14740 = vmatpush3.bf16.msra.mxu1 %v16083_v21  ;;  %2555 = vmatprep.mubr.f32.mxu1 %v19345_v17  ;;  %v19350_v21 = vld [vmem:[#allocation30_spill] sm:$0xff] }
 0x281   :  { %14733 = vmatprep.subr.bf16.mxu1 %v16093_v20  ;;  %v19351_v46 = vunpack.c.h.bf16 %v19350_v21  ;;  %v19352_v20 = vunpack.c.l.bf16 %v19350_v21 }
 0x283   :  { %2556 = vmatmul.mubr.f32.gmra.mrb[124].mxu1 %v19346_v52 }
 0x284   :  { %14741 = vmatpush3.bf16.msra.mxu1 %v16101_v42  ;;  %2560 = vmatprep.mubr.f32.mxu1 %v19348_v27  ;;  %v19353_v42 = vld [vmem:[#allocation31_spill] sm:$0xff]  ;;  %v19060_v27 = vunpack.c.h.bf16 %v16912_v44 }
 0x285   :  { %14734 = vmatprep.subr.bf16.mxu1 %v16111_v43  ;;  %v19354_v48 = vunpack.c.h.bf16 %v19353_v42  ;;  %v19355_v43 = vunpack.c.l.bf16 %v19353_v42 }
 0x287   :  { %2561 = vmatmul.mubr.f32.gmra.mrb[126].mxu1 %v19349_v47 }
 0x288   :  { %14742 = vmatpush3.bf16.msra.mxu1 %v16119_v30  ;;  %2565 = vmatprep.mubr.f32.mxu1 %v19351_v46  ;;  %v19356_v30 = vld [vmem:[#allocation32_spill] sm:$0xff]  ;;  %v19059_v46 = vunpack.c.l.bf16 %v17006_v41 }
 0x289   :  { %14735 = vmatprep.subr.bf16.mxu1 %v16129_v14  ;;  %v19357_v9 = vunpack.c.h.bf16 %v19356_v30  ;;  %v19358_v14 = vunpack.c.l.bf16 %v19356_v30 }
 0x28b   :  { %2566 = vmatmul.mubr.f32.gmra.mrb[128].mxu1 %v19352_v20 }
 0x28c   :  { %14743 = vmatpush3.bf16.msra.mxu1 %v19254_v3  ;;  %2570 = vmatprep.mubr.f32.mxu1 %v19354_v48  ;;  %v19359_v3 = vld [vmem:[#allocation33_spill] sm:$0xff] }
 0x28d   :  { %14736 = vmatprep.subr.bf16.mxu1 %v19257_v59  ;;  %v19360_v23 = vunpack.c.h.bf16 %v19359_v3  ;;  %v19361_v59 = vunpack.c.l.bf16 %v19359_v3 }
 0x28f   :  { %2571 = vmatmul.mubr.f32.gmra.mrb[130].mxu1 %v19355_v43 }
 0x290   :  { %14744 = vmatpush3.bf16.msra.mxu1 %v19259_v53  ;;  %2575 = vmatprep.mubr.f32.mxu1 %v19357_v9  ;;  %v19362_v53 = vld [vmem:[#allocation36_spill] sm:$0xff] }
 0x291   :  { %14737 = vmatprep.subr.bf16.mxu1 %v19260_v40  ;;  %v19363_v57 = vunpack.c.h.bf16 %v19362_v53  ;;  %v19365_v40 = vunpack.c.l.bf16 %v19362_v53  ;;  %v17032_v53 = vld [vmem:[%s18841_s3 + $0x28] sm:$0xff]  }
 0x292   :  { %19370 = vst [vmem:[#allocation39_spill] sm:$0xff] %v17032_v53 }
 0x293   :  { %2576 = vmatmul.mubr.f32.gmra.mrb[132].mxu1 %v19358_v14 }
 0x294   :  { %14745 = vmatpush3.bf16.msra.mxu1 %v19261_v18  ;;  %2580 = vmatprep.mubr.f32.mxu1 %v19360_v23  ;;  %v19367_v18 = vunpack.c.h.bf16 %v19366_v13 }
 0x295   :  { %14738 = vmatprep.subr.bf16.mxu1 %v19262_v12  ;;  %v14875_v12 = vld [vmem:[%s18840_s2 + $0x10] sm:$0x3] }
 0x297   :  { %2581 = vmatmul.mubr.f32.gmra.mrb[134].mxu1 %v19361_v59 }
 0x298   :  { %14746 = vmatpush3.bf16.msra.mxu1 %v19265_v7  ;;  %2680 = vmatprep.mubr.f32.mxu1 %v19363_v57  ;;  %v19368_v7 = vunpack.c.l.bf16 %v19366_v13  ;;  %v19058_v57 = vunpack.c.h.bf16 %v17006_v41  ;;  %v19057_v13 = vunpack.c.l.bf16 %v17032_v53  ;;  %v3175_v41 = vld [vmem:[%s18842_s4 + $0x18] sm:$0xff] }
 0x299   :  { %14026 = vmatprep.subr.bf16.mxu1 %v19364_v24  ;;  %v17190_v44 = vpack.c.bf16 %v3175_v41, %v3174_v6 }
 0x29b   :  { %2681 = vmatmul.mubr.f32.vlgmr.msra.gmra.mrb[136].mxu1 %v19365_v40  ;;  %19379 = vst [vmem:[#allocation2_spill] sm:$0xff] %v17190_v44 }
 0x29c   :  { %2685 = vmatprep.mubr.f32.mxu1 %v19367_v18  ;;  %14028 = vmatpush3.bf16.msra.mxu1 %v19364_v24 }
 0x29d   :  { %12605 = vmatprep.subr.msk.mxu1 %vm1637_vm0, %v14875_v12 }
 0x29f   :  { %2686 = vmatmul.mubr.f32.gmra.mrb[138].mxu1 %v19368_v7 }
 0x2a0   :  { %12606 = vmatpush3.msk.msra.mxu1 %vm1637_vm0, %v14875_v12  ;;  %vm4032_vm0 = vcmask 588800  }
 0x2cd   :  { %v12591_v38 = vpop.f32.mrb[64].mxu1 }
 0x2ce   :  { %v3141_v4 = vmul.f32 0.2, %v12591_v38  ;;  %v1707_v5 = vpop.f32.mrb[65].mxu1 }
 0x2cf   :  { %v3140_v63 = vmul.f32 0.2, %v1707_v5 }
 0x2d0   :  { %v3149_v60 = vmax.f32 %v12591_v38, %v3141_v4 }
 0x2d1   :  { %v3148_v58 = vmax.f32 %v1707_v5, %v3140_v63 }
 0x2d3   :  { %v16988_v36 = vpack.c.bf16 %v3149_v60, %v3148_v58 }
 0x2d5   :  { %14030 = vmatprep.subr.bf16.mxu1 %v16988_v36  ;;  %14046 = vmatprep.subr.bf16.mxu0 %v16988_v36 }
 0x2d6   :  { %14048 = vmatpush3.bf16.msra.mxu0 %v16988_v36 }
 0x2dd   :  { %v12594_v45 = vpop.f32.mrb[66].mxu1 }
 0x2de   :  { %v3143_v26 = vmul.f32 0.2, %v12594_v45  ;;  %v1717_v10 = vpop.f32.mrb[67].mxu1 }
 0x2df   :  { %v3142_v31 = vmul.f32 0.2, %v1717_v10 }
 0x2e0   :  { %v3151_v37 = vmax.f32 %v12594_v45, %v3143_v26  ;;  %v19056_v26 = vunpack.c.h.bf16 %v17032_v53 }
 0x2e1   :  { %v3150_v22 = vmax.f32 %v1717_v10, %v3142_v31 }
 0x2e2   :  { %v12597_v25 = vpop.f32.mrb[68].mxu1 }
 0x2e3   :  { %v16993_v2 = vpack.c.bf16 %v3151_v37, %v3150_v22  ;;  %v3145_v28 = vmul.f32 0.2, %v12597_v25  ;;  %v1727_v61 = vpop.f32.mrb[69].mxu1 }
 0x2e4   :  { %v3144_v11 = vmul.f32 0.2, %v1727_v61 }
 0x2e5   :  { %v3153_v51 = vmax.f32 %v12597_v25, %v3145_v28  ;;  %14050 = vmatprep.subr.bf16.mxu0 %v16993_v2 }
 0x2e6   :  { %v3152_v32 = vmax.f32 %v1727_v61, %v3144_v11  ;;  %14052 = vmatpush3.bf16.msra.mxu0 %v16993_v2 }
 0x2e8   :  { %v16997_v56 = vpack.c.bf16 %v3153_v51, %v3152_v32 }
 0x2e9   :  { %v12600_v55 = vpop.f32.mrb[70].mxu1 }
 0x2ea   :  { %v3147_v54 = vmul.f32 0.2, %v12600_v55  ;;  %v1737_v1 = vpop.f32.mrb[71].mxu1  ;;  %14054 = vmatprep.subr.bf16.mxu0 %v16997_v56 }
 0x2eb   :  { %v3146_v19 = vmul.f32 0.2, %v1737_v1  ;;  %14056 = vmatpush3.bf16.msra.mxu0 %v16997_v56 }
 0x2ec   :  { %v3155_v16 = vmax.f32 %v12600_v55, %v3147_v54 }
 0x2ed   :  { %v3154_v29 = vmax.f32 %v1737_v1, %v3146_v19 }
 0x2ee   :  { %v11628_v34 = vpop.f32.mrb[72].mxu1 }
 0x2ef   :  { %v17001_v0 = vpack.c.bf16 %v3155_v16, %v3154_v29  ;;  %v11629_v17 = vpop.f32.mrb[73].mxu1 }
 0x2f0   :  { %v11630_v52 = vadd.f32 %v11629_v17, %v11628_v34 }
 0x2f1   :  { %14058 = vmatprep.subr.bf16.mxu0 %v17001_v0 }
 0x2f2   :  { %v11631_v47 = vpop.f32.mrb[74].mxu1  ;;  %2699 = vrot.lane.b32.xlu0 %v11630_v52, %s14876_s0  ;;  %14060 = vmatpush3.bf16.msra.mxu0 %v17001_v0 }
 0x2f3   :  { %v11632_v21 = vpop.f32.mrb[75].mxu1  ;;  %14078 = vmatprep.subr.bf16.mxu0 %v16988_v36 }
 0x2f4   :  { %v11633_v20 = vadd.f32 %v11632_v21, %v11631_v47 }
 0x2f5   :  { %12655 = vmatmul.mubr.msk.f32.vlgmr.msra.gmra.mrb[156].mxu0 %vm3185_vm10, %v19060_v27  ;;  %v3173_v27 = vld [vmem:[%s18842_s4 + $0x8] sm:$0xff] }
 0x2f6   :  { %v11634_v42 = vpop.f32.mrb[76].mxu1  ;;  %2701 = vrot.lane.b32.xlu1 %v11633_v20, %s14876_s0  ;;  %14080 = vmatpush3.bf16.msra.mxu0 %v16988_v36 }
 0x2f7   :  { %v11635_v48 = vpop.f32.mrb[77].mxu1  ;;  %14082 = vmatprep.subr.bf16.mxu0 %v16993_v2  ;;  %12692 = vmatprep.mubr.msk.f32.mxu0 %vm3185_vm10, %v19059_v46  ;;  %v3172_v46 = vld [vmem:[%s18842_s4] sm:$0xff] }
 0x2f8   :  { %v11636_v43 = vadd.f32 %v11635_v48, %v11634_v42  ;;  %v17075_v42 = vpop.permute.xlu1 %2733  ;;  %v17185_v53 = vpack.c.bf16 %v3173_v27, %v3172_v46 }
 0x2fa   :  { %v11637_v30 = vpop.f32.mrb[78].mxu1  ;;  %2703 = vrot.lane.b32.xlu1 %v11636_v43, %s14876_s0  ;;  %14084 = vmatpush3.bf16.msra.mxu0 %v16993_v2  ;;  %19378 = vst [vmem:[#allocation44_spill] sm:$0xff] %v17185_v53 }
 0x2fb   :  { %v11638_v9 = vpop.f32.mrb[79].mxu1  ;;  %14086 = vmatprep.subr.bf16.mxu0 %v16997_v56 }
 0x2fc   :  { %v11639_v14 = vadd.f32 %v11638_v9, %v11637_v30 }
 0x2fe   :  { %v11640_v3 = vpop.f32.mrb[80].mxu1  ;;  %2705 = vrot.lane.b32.xlu0 %v11639_v14, %s14876_s0  ;;  %14088 = vmatpush3.bf16.msra.mxu0 %v16997_v56 }
 0x2ff   :  { %v11641_v23 = vpop.f32.mrb[81].mxu1  ;;  %14090 = vmatprep.subr.bf16.mxu0 %v17001_v0 }
 0x300   :  { %v11642_v59 = vadd.f32 %v11641_v23, %v11640_v3  ;;  %v17078_v3 = vpop.permute.xlu1 %2735 }
 0x302   :  { %v11643_v24 = vpop.f32.mrb[82].mxu1  ;;  %2707 = vrot.lane.b32.xlu0 %v11642_v59, %s14876_s0  ;;  %14092 = vmatpush3.bf16.msra.mxu0 %v17001_v0 }
 0x303   :  { %v11644_v40 = vpop.f32.mrb[83].mxu1  ;;  %14110 = vmatprep.subr.bf16.mxu0 %v16988_v36 }
 0x304   :  { %v11645_v18 = vadd.f32 %v11644_v40, %v11643_v24  ;;  %v17081_v40 = vpop.permute.xlu0 %2731 }
 0x305   :  { %12693 = vmatmul.mubr.msk.f32.vlgmr.msra.gmra.mrb[158].mxu0 %vm3185_vm10, %v19058_v57 }
 0x306   :  { %v11646_v12 = vpop.f32.mrb[84].mxu1  ;;  %2709 = vrot.lane.b32.xlu0 %v11645_v18, %s14876_s0  ;;  %14112 = vmatpush3.bf16.msra.mxu0 %v16988_v36 }
 0x307   :  { %v11647_v7 = vpop.f32.mrb[85].mxu1  ;;  %14114 = vmatprep.subr.bf16.mxu0 %v16993_v2  ;;  %12730 = vmatprep.mubr.msk.f32.mxu0 %vm3185_vm10, %v19057_v13 }
 0x308   :  { %v11648_v38 = vadd.f32 %v11647_v7, %v11646_v12  ;;  %v17084_v12 = vpop.permute.xlu1 %2739 }
 0x30a   :  { %v11649_v4 = vpop.f32.mrb[86].mxu1  ;;  %2711 = vrot.lane.b32.xlu0 %v11648_v38, %s14876_s0  ;;  %14116 = vmatpush3.bf16.msra.mxu0 %v16993_v2 }
 0x30b   :  { %v11650_v5 = vpop.f32.mrb[87].mxu1  ;;  %14118 = vmatprep.subr.bf16.mxu0 %v16997_v56 }
 0x30c   :  { %v11651_v63 = vadd.f32 %v11650_v5, %v11649_v4  ;;  %v17086_v4 = vpop.permute.xlu0 %2737 }
 0x30e   :  { %v11740_v60 = vpop.f32.mrb[88].mxu1  ;;  %2713 = vrot.lane.b32.xlu0 %v11651_v63, %s14876_s0  ;;  %14120 = vmatpush3.bf16.msra.mxu0 %v16997_v56 }
 0x30f   :  { %v11741_v58 = vpop.f32.mrb[89].mxu1  ;;  %14122 = vmatprep.subr.bf16.mxu0 %v17001_v0 }
 0x310   :  { %v11742_v45 = vadd.f32 %v11741_v58, %v11740_v60  ;;  %v17089_v58 = vpop.permute.xlu1 %2743 }
 0x312   :  { %v11743_v10 = vpop.f32.mrb[90].mxu1  ;;  %2763 = vrot.lane.b32.xlu0 %v11742_v45, %s14878_s30  ;;  %14124 = vmatpush3.bf16.msra.mxu0 %v17001_v0  ;;  %v17091_v45 = vpop.permute.xlu0 %2741 }
 0x313   :  { %v11744_v31 = vpop.f32.mrb[91].mxu1  ;;  %14142 = vmatprep.subr.bf16.mxu0 %v16988_v36 }
 0x314   :  { %v11745_v37 = vadd.f32 %v11744_v31, %v11743_v10 }
 0x315   :  { %12731 = vmatmul.mubr.msk.f32.vlgmr.msra.gmra.mrb[160].mxu0 %vm3185_vm10, %v19056_v26 }
 0x316   :  { %v11746_v22 = vpop.f32.mrb[92].mxu1  ;;  %2765 = vrot.lane.b32.xlu1 %v11745_v37, %s14878_s30  ;;  %14144 = vmatpush3.bf16.msra.mxu0 %v16988_v36 }
 0x317   :  { %v11747_v25 = vpop.f32.mrb[93].mxu1  ;;  %14146 = vmatprep.subr.bf16.mxu0 %v16993_v2 }
 0x318   :  { %v11748_v28 = vadd.f32 %v11747_v25, %v11746_v22  ;;  %v17094_v22 = vpop.permute.xlu0 %2745 }
 0x319   :  { %19371 = vst [vmem:[#allocation34_spill] sm:$0xff] %v17094_v22 }
 0x31a   :  { %v11749_v61 = vpop.f32.mrb[94].mxu1  ;;  %2767 = vrot.lane.b32.xlu1 %v11748_v28, %s14878_s30  ;;  %14148 = vmatpush3.bf16.msra.mxu0 %v16993_v2 }
 0x31b   :  { %v11750_v11 = vpop.f32.mrb[95].mxu1  ;;  %14150 = vmatprep.subr.bf16.mxu0 %v16997_v56 }
 0x31c   :  { %v11751_v51 = vadd.f32 %v11750_v11, %v11749_v61  ;;  %v17097_v61 = vpop.permute.xlu1 %2799 }
 0x31e   :  { %v11752_v32 = vpop.f32.mrb[96].mxu1  ;;  %2769 = vrot.lane.b32.xlu0 %v11751_v51, %s14878_s30  ;;  %14152 = vmatpush3.bf16.msra.mxu0 %v16997_v56 }
 0x31f   :  { %v11753_v55 = vpop.f32.mrb[97].mxu1  ;;  %14154 = vmatprep.subr.bf16.mxu0 %v17001_v0 }
 0x320   :  { %v11754_v54 = vadd.f32 %v11753_v55, %v11752_v32  ;;  %v17100_v55 = vpop.permute.xlu0 %2795 }
 0x322   :  { %v11755_v1 = vpop.f32.mrb[98].mxu1  ;;  %2771 = vrot.lane.b32.xlu1 %v11754_v54, %s14878_s30  ;;  %14156 = vmatpush3.bf16.msra.mxu0 %v17001_v0 }
 0x323   :  { %v11756_v19 = vpop.f32.mrb[99].mxu1  ;;  %14174 = vmatprep.subr.bf16.mxu0 %v17185_v53 }
 0x324   :  { %v11757_v16 = vadd.f32 %v11756_v19, %v11755_v1  ;;  %v17102_v1 = vpop.permute.xlu1 %2801 }
 0x326   :  { %v11758_v29 = vpop.f32.mrb[100].mxu1  ;;  %2773 = vrot.lane.b32.xlu0 %v11757_v16, %s14878_s30 }
 0x327   :  { %v11759_v34 = vpop.f32.mrb[101].mxu1 }
 0x328   :  { %v11760_v17 = vadd.f32 %v11759_v34, %v11758_v29  ;;  %v17105_v34 = vpop.permute.xlu0 %2797 }
 0x32a   :  { %v11761_v52 = vpop.f32.mrb[102].mxu1  ;;  %2775 = vrot.lane.b32.xlu1 %v11760_v17, %s14878_s30 }
 0x32b   :  { %v11762_v47 = vpop.f32.mrb[103].mxu1 }
 0x32c   :  { %v11763_v21 = vadd.f32 %v11762_v47, %v11761_v52  ;;  %v17108_v47 = vpop.permute.xlu1 %2803 }
 0x32e   :  { %v11852_v20 = vpop.f32.mrb[104].mxu1  ;;  %2777 = vrot.lane.b32.xlu0 %v11763_v21, %s14878_s30  ;;  %s14885_s30 = smov 40  }
 0x32f   :  { %v11853_v48 = vpop.f32.mrb[105].mxu1 }
 0x330   :  { %v11854_v43 = vadd.f32 %v11853_v48, %v11852_v20  ;;  %v17110_v20 = vpop.permute.xlu0 %2809 }
 0x331   :  { %19372 = vst [vmem:[#allocation46_spill] sm:$0xff] %v17110_v20 }
 0x332   :  { %v11855_v30 = vpop.f32.mrb[106].mxu1  ;;  %2827 = vrot.lane.b32.xlu1 %v11854_v43, %s14880_s19 }
 0x333   :  { %v11856_v9 = vpop.f32.mrb[107].mxu1 }
 0x334   :  { %v11857_v14 = vadd.f32 %v11856_v9, %v11855_v30  ;;  %v17113_v9 = vpop.permute.xlu1 %2805 }
 0x336   :  { %v11858_v23 = vpop.f32.mrb[108].mxu1  ;;  %2829 = vrot.lane.b32.xlu0 %v11857_v14, %s14880_s19 }
 0x337   :  { %v11859_v59 = vpop.f32.mrb[109].mxu1 }
 0x338   :  { %v11860_v24 = vadd.f32 %v11859_v59, %v11858_v23  ;;  %v17116_v59 = vpop.permute.xlu0 %2861 }
 0x33a   :  { %v11861_v18 = vpop.f32.mrb[110].mxu1  ;;  %2831 = vrot.lane.b32.xlu0 %v11860_v24, %s14880_s19 }
 0x33b   :  { %v11862_v7 = vpop.f32.mrb[111].mxu1 }
 0x33c   :  { %v11863_v38 = vadd.f32 %v11862_v7, %v11861_v18 }
 0x33e   :  { %v11864_v5 = vpop.f32.mrb[112].mxu1  ;;  %2833 = vrot.lane.b32.xlu0 %v11863_v38, %s14880_s19  ;;  %v17119_v38 = vpop.permute.xlu1 %2807 }
 0x33f   :  { %v11865_v63 = vpop.f32.mrb[113].mxu1  ;;  %19373 = vst [vmem:[#allocation40_spill] sm:$0xff] %v17119_v38 }
 0x340   :  { %v11866_v60 = vadd.f32 %v11865_v63, %v11864_v5  ;;  %v17121_v63 = vpop.permute.xlu0 %2865 }
 0x342   :  { %v11867_v10 = vpop.f32.mrb[114].mxu1  ;;  %2835 = vrot.lane.b32.xlu0 %v11866_v60, %s14880_s19 }
 0x343   :  { %v11868_v31 = vpop.f32.mrb[115].mxu1 }
 0x344   :  { %v11869_v37 = vadd.f32 %v11868_v31, %v11867_v10 }
 0x346   :  { %v11870_v25 = vpop.f32.mrb[116].mxu1  ;;  %2837 = vrot.lane.b32.xlu0 %v11869_v37, %s14880_s19  ;;  %v17124_v37 = vpop.permute.xlu1 %2859 }
 0x347   :  { %v11871_v28 = vpop.f32.mrb[117].mxu1 }
 0x348   :  { %v11872_v11 = vadd.f32 %v11871_v28, %v11870_v25 }
 0x34a   :  { %v11873_v51 = vpop.f32.mrb[118].mxu1  ;;  %2839 = vrot.lane.b32.xlu1 %v11872_v11, %s14880_s19  ;;  %v17127_v11 = vpop.permute.xlu0 %2869 }
 0x34b   :  { %v11874_v32 = vpop.f32.mrb[119].mxu1 }
 0x34c   :  { %v11875_v54 = vadd.f32 %v11874_v32, %v11873_v51 }
 0x34e   :  { %v11964_v19 = vpop.f32.mrb[120].mxu1  ;;  %2841 = vrot.lane.b32.xlu1 %v11875_v54, %s14880_s19  ;;  %s14886_s19 = smov 56  }
 0x34f   :  { %v11965_v16 = vpop.f32.mrb[121].mxu1 }
 0x350   :  { %v11966_v29 = vadd.f32 %v11965_v16, %v11964_v19  ;;  %v17130_v19 = vpop.permute.xlu1 %2863 }
 0x352   :  { %v11967_v17 = vpop.f32.mrb[122].mxu1  ;;  %2891 = vrot.lane.b32.xlu1 %v11966_v29, %s14882_s24  ;;  %v17132_v29 = vpop.permute.xlu0 %2871 }
 0x353   :  { %v11968_v52 = vpop.f32.mrb[123].mxu1  ;;  %19374 = vst [vmem:[#allocation49_spill] sm:$0xff] %v17132_v29  ;;  %v3177_v29 = vld [vmem:[%s18842_s4 + $0x28] sm:$0xff] }
 0x354   :  { %v11969_v21 = vadd.f32 %v11968_v52, %v11967_v17 }
 0x356   :  { %v11970_v48 = vpop.f32.mrb[124].mxu1  ;;  %2893 = vrot.lane.b32.xlu0 %v11969_v21, %s14882_s24 }
 0x357   :  { %v11971_v43 = vpop.f32.mrb[125].mxu1 }
 0x358   :  { %v11972_v30 = vadd.f32 %v11971_v43, %v11970_v48  ;;  %v17135_v48 = vpop.permute.xlu1 %2867 }
 0x35a   :  { %v11973_v14 = vpop.f32.mrb[126].mxu1  ;;  %2895 = vrot.lane.b32.xlu1 %v11972_v30, %s14882_s24 }
 0x35b   :  { %v11974_v23 = vpop.f32.mrb[127].mxu1 }
 0x35c   :  { %v11975_v24 = vadd.f32 %v11974_v23, %v11973_v14  ;;  %v17138_v14 = vpop.permute.xlu0 %2933 }
 0x35e   :  { %v11976_v18 = vpop.f32.mrb[128].mxu1  ;;  %2897 = vrot.lane.b32.xlu0 %v11975_v24, %s14882_s24  ;;  %v17144_v24 = vld [vmem:[%s18841_s3 + $0x38] sm:$0xff]  }
 0x35f   :  { %v11977_v7 = vpop.f32.mrb[129].mxu1  ;;  %19375 = vst [vmem:[#allocation41_spill] sm:$0xff] %v17144_v24 }
 0x360   :  { %v11978_v5 = vadd.f32 %v11977_v7, %v11976_v18  ;;  %v19055_v18 = vunpack.c.l.bf16 %v17144_v24  ;;  %v17147_v7 = vpop.permute.xlu1 %2873 }
 0x361   :  { %19376 = vst [vmem:[#allocation42_spill] sm:$0xff] %v17147_v7  ;;  %v3176_v7 = vld [vmem:[%s18842_s4 + $0x20] sm:$0xff] }
 0x362   :  { %v11979_v60 = vpop.f32.mrb[130].mxu1  ;;  %2899 = vrot.lane.b32.xlu1 %v11978_v5, %s14882_s24  ;;  %v19054_v5 = vunpack.c.h.bf16 %v17144_v24  ;;  %12768 = vmatprep.mubr.msk.f32.mxu0 %vm3185_vm10, %v19055_v18  ;;  %v17203_v46 = vpack.c.bf16 %v3177_v29, %v3176_v7 }
 0x363   :  { %v11980_v10 = vpop.f32.mrb[131].mxu1 }
 0x364   :  { %v11981_v31 = vadd.f32 %v11980_v10, %v11979_v60  ;;  %v2700_v60 = vpop.permute.xlu0 %2699  ;;  %12769 = vmatmul.mubr.msk.f32.vlgmr.msra.gmra.mrb[162].mxu0 %vm3185_vm10, %v19054_v5  ;;  %v2924_v10 = vpop.permute.xlu1 %2923 }
 0x365   :  { %14176 = vmatpush3.bf16.msra.mxu0 %v17185_v53 }
 0x366   :  { %v11982_v25 = vpop.f32.mrb[132].mxu1  ;;  %2901 = vrot.lane.b32.xlu0 %v11981_v31, %s14882_s24  ;;  %14178 = vmatprep.subr.bf16.mxu0 %v17190_v44 }
 0x367   :  { %v11983_v28 = vpop.f32.mrb[133].mxu1 }
 0x368   :  { %v11984_v51 = vadd.f32 %v11983_v28, %v11982_v25  ;;  %v17156_v25 = vpop.permute.xlu1 %2925 }
 0x369   :  { %14180 = vmatpush3.bf16.msra.mxu0 %v17190_v44 }
 0x36a   :  { %v11985_v32 = vpop.f32.mrb[134].mxu1  ;;  %2903 = vrot.lane.b32.xlu0 %v11984_v51, %s14882_s24  ;;  %14182 = vmatprep.subr.bf16.mxu0 %v17203_v46 }
 0x36b   :  { %v11986_v54 = vpop.f32.mrb[135].mxu1 }
 0x36c   :  { %v11987_v16 = vadd.f32 %v11986_v54, %v11985_v32  ;;  %v17160_v51 = vpop.permute.xlu1 %2927 }
 0x36d   :  { %14184 = vmatpush3.bf16.msra.mxu0 %v17203_v46 }
 0x36e   :  { %v12038_v17 = vpop.f32.mrb[136].mxu1  ;;  %2905 = vrot.lane.b32.xlu1 %v11987_v16, %s14882_s24  ;;  %s14887_s24 = smov 32  }
 0x36f   :  { %v12039_v52 = vpop.f32.mrb[137].mxu1 }
 0x370   :  { %v12040_v21 = vadd.f32 %v12039_v52, %v12038_v17  ;;  %v2706_v31 = vpop.permute.xlu0 %2705  ;;  %v17164_v54 = vpop.permute.xlu1 %2929 }
 0x372   :  { %v12041_v43 = vpop.f32.mrb[138].mxu1  ;;  %2935 = vrot.lane.b32.xlu0 %v12040_v21, %s14883_s28 }
 0x373   :  { %v12042_v30 = vpop.f32.mrb[139].mxu1 }
 0x374   :  { %v12043_v23 = vadd.f32 %v12042_v30, %v12041_v43  ;;  %v17158_v28 = vpop.permute.xlu0 %2707  ;;  %v17168_v17 = vpop.permute.xlu1 %2931 }
 0x376   :  { %2937 = vrot.lane.b32.xlu1 %v12043_v23, %s14883_s28 }
 0x378   :  { %v17162_v32 = vpop.permute.xlu0 %2709  ;;  %v2702_v21 = vpop.permute.xlu1 %2701 }
 0x379   :  { %v2948_v29 = vsel %vm1540_vm1, %v16720_v33, %v2702_v21 }
 0x37a   :  { %v2956_v22 = vsel %vm1549_vm2, %v2948_v29, %v17075_v42 }
 0x37c   :  { %v17166_v16 = vpop.permute.xlu0 %2711  ;;  %v2704_v23 = vpop.permute.xlu1 %2703 }
 0x380   :  { %v17170_v52 = vpop.permute.xlu0 %2713 }
 0x384   :  { %v2764_v43 = vpop.permute.xlu0 %2763 }
 0x388   :  { %v2766_v18 = vpop.permute.xlu1 %2765 }
 0x38c   :  { %v2768_v13 = vpop.permute.xlu1 %2767 }
 0x390   :  { %v2770_v30 = vpop.permute.xlu0 %2769 }
 0x394   :  { %v2772_v24 = vpop.permute.xlu1 %2771 }
 0x398   :  { %v17172_v5 = vpop.permute.xlu0 %2773 }
 0x39c   :  { %v17200_v27 = vpop.permute.xlu1 %2775 }
 0x39d   :  { %19380 = vst [vmem:[#allocation45_spill] sm:$0xff] %v17200_v27 }
 0x3a0   :  { %v17174_v26 = vpop.permute.xlu0 %2777 }
 0x3a1   :  { %19377 = vst [vmem:[#allocation43_spill] sm:$0xff] %v17174_v26  ;;  %v2947_v26 = vsel %vm1540_vm1, %v16709_v15, %v2700_v60  ;;  %v2949_v60 = vsel %vm1540_vm1, %v16728_v50, %v2704_v23 }
 0x3a2   :  { %v2955_v53 = vsel %vm1549_vm2, %v2947_v26, %v17081_v40  ;;  %v2964_v26 = vsel %vm1558_vm3, %v2956_v22, %v2766_v18  ;;  %v2957_v33 = vsel %vm1549_vm2, %v2949_v60, %v17078_v3 }
 0x3a3   :  { %v2963_v7 = vsel %vm1558_vm3, %v2955_v53, %v2764_v43  ;;  %v2972_v53 = vsel %vm1567_vm4, %v2964_v26, %v17105_v34  ;;  %v2950_v43 = vsel %vm1540_vm1, %v16735_v62, %v2706_v31  ;;  %v2965_v50 = vsel %vm1558_vm3, %v2957_v33, %v2768_v13  ;;  %v19382_v33 = vld [vmem:[#allocation34_spill] sm:$0xff] }
 0x3a4   :  { %v2828_v6 = vpop.permute.xlu1 %2827  ;;  %v2971_v27 = vsel %vm1567_vm4, %v2963_v7, %v17100_v55  ;;  %v2958_v3 = vsel %vm1549_vm2, %v2950_v43, %v17086_v4  ;;  %v2973_v34 = vsel %vm1567_vm4, %v2965_v50, %v17097_v61  ;;  %v19385_v50 = vld [vmem:[#allocation46_spill] sm:$0xff] }
 0x3a5   :  { %v2979_v40 = vsel %vm1576_vm5, %v2971_v27, %v2828_v6  ;;  %v2966_v13 = vsel %vm1558_vm3, %v2958_v3, %v2770_v30 }
 0x3a6   :  { %v2987_v55 = vsel %vm1585_vm6, %v2979_v40, %v17124_v37 }
 0x3a8   :  { %v2830_v57 = vpop.permute.xlu0 %2829 }
 0x3a9   :  { %v2980_v22 = vsel %vm1576_vm5, %v2972_v53, %v2830_v57  ;;  %v2951_v57 = vsel %vm1540_vm1, %v16743_v35, %v17158_v28  ;;  %v2974_v35 = vsel %vm1567_vm4, %v2966_v13, %v17102_v1 }
 0x3aa   :  { %v2988_v37 = vsel %vm1585_vm6, %v2980_v22, %v17116_v59  ;;  %v2959_v61 = vsel %vm1549_vm2, %v2951_v57, %v17084_v12 }
 0x3ab   :  { %v2967_v28 = vsel %vm1558_vm3, %v2959_v61, %v2772_v24  ;;  %v17371_v61 = vld [vmem:[%s18841_s3 + $0x20] sm:$0xff]  }
 0x3ac   :  { %v2832_v20 = vpop.permute.xlu0 %2831 }
 0x3b0   :  { %v2834_v41 = vpop.permute.xlu0 %2833 }
 0x3b1   :  { %v2982_v30 = vsel %vm1576_vm5, %v2974_v35, %v2834_v41 }
 0x3b4   :  { %v2836_v44 = vpop.permute.xlu0 %2835 }
 0x3b8   :  { %v2838_v21 = vpop.permute.xlu0 %2837 }
 0x3bc   :  { %v17212_v38 = vpop.permute.xlu1 %2839 }
 0x3c0   :  { %v17221_v15 = vpop.permute.xlu1 %2841 }
 0x3c4   :  { %v2892_v42 = vpop.permute.xlu1 %2891 }
 0x3c5   :  { %v2995_v18 = vsel %vm1594_vm7, %v2987_v55, %v2892_v42  ;;  %v19384_v55 = vld [vmem:[#allocation43_spill] sm:$0xff] }
 0x3c6   :  { %v3003_v23 = vsel %vm1603_vm8, %v2995_v18, %v2924_v10  ;;  %v2981_v10 = vsel %vm1576_vm5, %v2973_v34, %v2832_v20 }
 0x3c7   :  { %12607 = vmatprep.mubr.msk.f32.mxu1 %vm1612_vm9, %v3003_v23  ;;  %v2989_v59 = vsel %vm1585_vm6, %v2981_v10, %v17130_v19  ;;  %v2975_v19 = vsel %vm1567_vm4, %v2967_v28, %v17108_v47  ;;  %v17347_v10 = vld [vmem:[%s18841_s3 + $0x10] sm:$0xff]  }
 0x3c8   :  { %v2894_v62 = vpop.permute.xlu0 %2893  ;;  %v12656_v31 = vpop.f32.mrb[156].mxu0  ;;  %v2983_v41 = vsel %vm1576_vm5, %v2975_v19, %v2836_v44  ;;  %v10860_v35 = vunpack.c.h.bf16 %v17347_v10  ;;  %v3179_v19 = vld [vmem:[%s18842_s4 + $0x38] sm:$0xff] }
 0x3c9   :  { %v2996_v27 = vsel %vm1594_vm7, %v2988_v37, %v2894_v62  ;;  %v3343_v6 = vpop.f32.mrb[157].mxu0  ;;  %3951 = vrot.lane.b32.xlu1 %v12656_v31, %s14879_s18  ;;  %v17336_v37 = vld [vmem:[%s18841_s3] sm:$0xff]  }
 0x3ca   :  { %v3004_v4 = vsel %vm1603_vm8, %v2996_v27, %v17156_v25  ;;  %3949 = vrot.lane.b32.xlu0 %v3343_v6, %s14879_s18  ;;  %v2952_v25 = vsel %vm1540_vm1, %v16751_v49, %v17162_v32  ;;  %v2990_v49 = vsel %vm1585_vm6, %v2982_v30, %v17121_v63  ;;  %v19387_v62 = vld [vmem:[#allocation42_spill] sm:$0xff]  ;;  %v10851_v57 = vunpack.c.l.bf16 %v17336_v37 }
 0x3cb   :  { %12608 = vmatmul.mubr.msk.f32.vlgmr.msra.gmra.mrb[140].mxu1 %vm1612_vm9, %v3004_v4  ;;  %v2960_v1 = vsel %vm1549_vm2, %v2952_v25, %v17091_v45  ;;  %v10852_v6 = vunpack.c.h.bf16 %v17336_v37  ;;  %v10859_v4 = vunpack.c.l.bf16 %v17347_v10  ;;  %v10868_v25 = vunpack.c.h.bf16 %v17371_v61  ;;  %v17413_v30 = vld [vmem:[%s18841_s3 + $0x40] sm:$0xff]  }
 0x3cc   :  { %14032 = vmatpush3.bf16.msra.mxu1 %v16988_v36  ;;  %v2896_v20 = vpop.permute.xlu1 %2895  ;;  %v2968_v32 = vsel %vm1558_vm3, %v2960_v1, %v17172_v5  ;;  %v2991_v5 = vsel %vm1585_vm6, %v2983_v41, %v17135_v48  ;;  %v3178_v1 = vld [vmem:[%s18842_s4 + $0x30] sm:$0xff] }
 0x3cd   :  { %v2997_v29 = vsel %vm1594_vm7, %v2989_v59, %v2896_v20  ;;  %14034 = vmatprep.subr.bf16.mxu1 %v16993_v2  ;;  %v2976_v47 = vsel %vm1567_vm4, %v2968_v32, %v17113_v9  ;;  %v2953_v9 = vsel %vm1540_vm1, %v16755_v39, %v17166_v16  ;;  %v2954_v39 = vsel %vm1540_vm1, %v16761_v8, %v17170_v52  ;;  %v19381_v16 = vld [vmem:[#allocation45_spill] sm:$0xff]  ;;  %v17392_v59 = vld [vmem:[%s18841_s3 + $0x30] sm:$0xff]  }
 0x3ce   :  { %v3005_v12 = vsel %vm1603_vm8, %v2997_v29, %v17160_v51  ;;  %v2984_v44 = vsel %vm1576_vm5, %v2976_v47, %v2838_v21  ;;  %v2962_v53 = vsel %vm1549_vm2, %v2954_v39, %v19382_v33  ;;  %v19383_v21 = vld [vmem:[#allocation40_spill] sm:$0xff]  ;;  %v19386_v8 = vld [vmem:[#allocation49_spill] sm:$0xff]  ;;  %v10867_v20 = vunpack.c.l.bf16 %v17371_v61 }
 0x3cf   :  { %12610 = vmatprep.mubr.msk.f32.mxu1 %vm1612_vm9, %v3005_v12  ;;  %v2992_v48 = vsel %vm1585_vm6, %v2984_v44, %v17127_v11  ;;  %v10875_v28 = vunpack.c.l.bf16 %v17392_v59  ;;  %v10876_v29 = vunpack.c.h.bf16 %v17392_v59  ;;  %v10883_v12 = vunpack.c.l.bf16 %v17413_v30 }
 0x3d0   :  { %14036 = vmatpush3.bf16.msra.mxu1 %v16993_v2  ;;  %v2898_v24 = vpop.permute.xlu0 %2897 }
 0x3d1   :  { %14038 = vmatprep.subr.bf16.mxu1 %v16997_v56  ;;  %v2998_v51 = vsel %vm1594_vm7, %v2990_v49, %v2898_v24  ;;  %v17432_v49 = vpack.c.bf16 %v3179_v19, %v3178_v1  ;;  %v10884_v24 = vunpack.c.h.bf16 %v17413_v30 }
 0x3d2   :  { %v3006_v45 = vsel %vm1603_vm8, %v2998_v51, %v17164_v54 }
 0x3d3   :  { %12611 = vmatmul.mubr.msk.f32.gmra.mrb[142].mxu1 %vm1612_vm9, %v3006_v45  ;;  %14186 = vmatprep.subr.bf16.mxu0 %v17432_v49 }
 0x3d4   :  { %14040 = vmatpush3.bf16.msra.mxu1 %v16997_v56  ;;  %v2900_v63 = vpop.permute.xlu1 %2899  ;;  %14188 = vmatpush3.bf16.msra.mxu0 %v17432_v49 }
 0x3d5   :  { %v2999_v7 = vsel %vm1594_vm7, %v2991_v5, %v2900_v63  ;;  %14042 = vmatprep.subr.bf16.mxu1 %v17001_v0 }
 0x3d6   :  { %v3007_v54 = vsel %vm1603_vm8, %v2999_v7, %v17168_v17  ;;  %v2961_v17 = vsel %vm1549_vm2, %v2953_v9, %v17089_v58  ;;  %vm5879_vm2 = vcmask 654336  }
 0x3d7   :  { %12613 = vmatprep.mubr.msk.f32.mxu1 %vm1612_vm9, %v3007_v54  ;;  %v2969_v11 = vsel %vm1558_vm3, %v2961_v17, %v19381_v16 }
 0x3d8   :  { %14044 = vmatpush3.bf16.msra.mxu1 %v17001_v0  ;;  %v2902_v60 = vpop.permute.xlu0 %2901  ;;  %v2977_v42 = vsel %vm1567_vm4, %v2969_v11, %v19383_v21 }
 0x3d9   :  { %14062 = vmatprep.subr.bf16.mxu1 %v16988_v36  ;;  %v3000_v26 = vsel %vm1594_vm7, %v2992_v48, %v2902_v60  ;;  %v2985_v58 = vsel %vm1576_vm5, %v2977_v42, %v17212_v38 }
 0x3da   :  { %v3008_v40 = vsel %vm1603_vm8, %v3000_v26, %v17138_v14  ;;  %v2970_v14 = vsel %vm1558_vm3, %v2962_v53, %v19384_v55  ;;  %v2993_v52 = vsel %vm1585_vm6, %v2985_v58, %v19386_v8  ;;  %vm5882_vm3 = vcmask 785408  }
 0x3db   :  { %12614 = vmatmul.mubr.msk.f32.gmra.mrb[144].mxu1 %vm1612_vm9, %v3008_v40  ;;  %v2978_v22 = vsel %vm1567_vm4, %v2970_v14, %v19385_v50 }
 0x3dc   :  { %v2904_v43 = vpop.permute.xlu0 %2903  ;;  %v2986_v18 = vsel %vm1576_vm5, %v2978_v22, %v17221_v15  ;;  %vm5885_vm5 = vcmask 916480  }
 0x3dd   :  { %v3001_v23 = vsel %vm1594_vm7, %v2993_v52, %v2904_v43  ;;  %v2994_v31 = vsel %vm1585_vm6, %v2986_v18, %v19387_v62 }
 0x3e0   :  { %v2906_v3 = vpop.permute.xlu1 %2905 }
 0x3e1   :  { %v3002_v15 = vsel %vm1594_vm7, %v2994_v31, %v2906_v3  ;;  %v19388_v3 = vld [vmem:[#allocation47_spill] sm:$0xff] }
 0x3e2   :  { %v19390_v37 = vunpack.c.h.bf16 %v19388_v3  ;;  %v19391_v31 = vld [vmem:[#allocation35_spill] sm:$0xff] }
 0x3e4   :  { %v2936_v34 = vpop.permute.xlu0 %2935 }
 0x3e5   :  { %v3009_v38 = vsel %vm1603_vm8, %v3001_v23, %v2936_v34  ;;  %v19389_v34 = vunpack.c.l.bf16 %v19388_v3 }
 0x3e6   :  { %12616 = vmatprep.mubr.msk.f32.mxu1 %vm1612_vm9, %v3009_v38 }
 0x3e8   :  { %v2938_v13 = vpop.permute.xlu1 %2937 }
 0x3e9   :  { %v3010_v27 = vsel %vm1603_vm8, %v3002_v15, %v2938_v13 }
 0x3ea   :  { %12617 = vmatmul.mubr.msk.f32.gmra.mrb[146].mxu1 %vm1612_vm9, %v3010_v27  ;;  %v19393_v27 = vunpack.c.h.bf16 %v19391_v31 }
 0x3eb   :  { %12635 = vmatprep.mubr.msk.f32.mxu1 %vm3185_vm10, %v10851_v57 }
 0x3ee   :  { %12636 = vmatmul.mubr.msk.f32.vlgmr.msra.gmra.mrb[148].mxu1 %vm3185_vm10, %v10852_v6 }
 0x3ef   :  { %14064 = vmatpush3.bf16.msra.mxu1 %v16988_v36  ;;  %12673 = vmatprep.mubr.msk.f32.mxu1 %vm3185_vm10, %v10859_v4 }
 0x3f0   :  { %14066 = vmatprep.subr.bf16.mxu1 %v16993_v2 }
 0x3f3   :  { %14068 = vmatpush3.bf16.msra.mxu1 %v16993_v2 }
 0x3f4   :  { %14070 = vmatprep.subr.bf16.mxu1 %v16997_v56 }
 0x3f7   :  { %14072 = vmatpush3.bf16.msra.mxu1 %v16997_v56 }
 0x3f8   :  { %14074 = vmatprep.subr.bf16.mxu1 %v17001_v0 }
 0x3fb   :  { %14076 = vmatpush3.bf16.msra.mxu1 %v17001_v0 }
 0x3fc   :  { %14094 = vmatprep.subr.bf16.mxu1 %v16988_v36 }
 0x3fe   :  { %12674 = vmatmul.mubr.msk.f32.vlgmr.msra.gmra.mrb[150].mxu1 %vm3185_vm10, %v10860_v35 }
 0x3ff   :  { %14096 = vmatpush3.bf16.msra.mxu1 %v16988_v36  ;;  %12711 = vmatprep.mubr.msk.f32.mxu1 %vm3185_vm10, %v10867_v20 }
 0x400   :  { %14098 = vmatprep.subr.bf16.mxu1 %v16993_v2 }
 0x403   :  { %14100 = vmatpush3.bf16.msra.mxu1 %v16993_v2 }
 0x404   :  { %14102 = vmatprep.subr.bf16.mxu1 %v16997_v56 }
 0x407   :  { %14104 = vmatpush3.bf16.msra.mxu1 %v16997_v56 }
 0x408   :  { %14106 = vmatprep.subr.bf16.mxu1 %v17001_v0 }
 0x40b   :  { %14108 = vmatpush3.bf16.msra.mxu1 %v17001_v0 }
 0x40c   :  { %14126 = vmatprep.subr.bf16.mxu1 %v16988_v36 }
 0x40e   :  { %12712 = vmatmul.mubr.msk.f32.vlgmr.msra.gmra.mrb[152].mxu1 %vm3185_vm10, %v10868_v25 }
 0x40f   :  { %14128 = vmatpush3.bf16.msra.mxu1 %v16988_v36  ;;  %12749 = vmatprep.mubr.msk.f32.mxu1 %vm3185_vm10, %v10875_v28 }
 0x410   :  { %14130 = vmatprep.subr.bf16.mxu1 %v16993_v2 }
 0x413   :  { %14132 = vmatpush3.bf16.msra.mxu1 %v16993_v2 }
 0x414   :  { %14134 = vmatprep.subr.bf16.mxu1 %v16997_v56 }
 0x417   :  { %14136 = vmatpush3.bf16.msra.mxu1 %v16997_v56 }
 0x418   :  { %14138 = vmatprep.subr.bf16.mxu1 %v17001_v0 }
 0x41b   :  { %14140 = vmatpush3.bf16.msra.mxu1 %v17001_v0 }
 0x41c   :  { %14158 = vmatprep.subr.bf16.mxu1 %v16988_v36 }
 0x41e   :  { %12750 = vmatmul.mubr.msk.f32.vlgmr.msra.gmra.mrb[154].mxu1 %vm3185_vm10, %v10876_v29 }
 0x41f   :  { %14160 = vmatpush3.bf16.msra.mxu1 %v16988_v36  ;;  %12787 = vmatprep.mubr.msk.f32.mxu1 %vm3185_vm10, %v10883_v12  ;;  %v17442_v36 = vld [vmem:[%s18842_s4 + $0x40] sm:$0xff]  ;;  %s14884_s4 = smov 24  }
 0x420   :  { %14162 = vmatprep.subr.bf16.mxu1 %v16993_v2  ;;  %12806 = vmatprep.subr.mxu0 %v17442_v36 }
 0x421   :  { %12807 = vmatpush3.msra.mxu0 %v17442_v36 }
 0x423   :  { %14164 = vmatpush3.bf16.msra.mxu1 %v16993_v2  ;;  %v12694_v2 = vpop.f32.mrb[158].mxu0 }
 0x424   :  { %14166 = vmatprep.subr.bf16.mxu1 %v16997_v56  ;;  %v3513_v32 = vpop.f32.mrb[159].mxu0  ;;  %3967 = vrot.lane.b32.xlu1 %v12694_v2, %s14884_s4 }
 0x425   :  { %3965 = vrot.lane.b32.xlu0 %v3513_v32, %s14884_s4 }
 0x427   :  { %14168 = vmatpush3.bf16.msra.mxu1 %v16997_v56  ;;  %v12732_v56 = vpop.f32.mrb[160].mxu0 }
 0x428   :  { %14170 = vmatprep.subr.bf16.mxu1 %v17001_v0  ;;  %v3683_v41 = vpop.f32.mrb[161].mxu0  ;;  %3983 = vrot.lane.b32.xlu1 %v12732_v56, %s14885_s30  ;;  %v19397_v56 = vld [vmem:[#allocation41_spill] sm:$0xff] }
 0x429   :  { %3981 = vrot.lane.b32.xlu0 %v3683_v41, %s14885_s30  ;;  %v19398_v41 = vunpack.c.l.bf16 %v19397_v56 }
 0x42b   :  { %14172 = vmatpush3.bf16.msra.mxu1 %v17001_v0 }
 0x42e   :  { %12788 = vmatmul.mubr.msk.f32.vlgmr.msra.gmra.mrb[156].mxu1 %vm3185_vm10, %v10884_v24 }
 0x42f   :  { %12827 = vmatprep.mubr.msk.f32.mxu1 %vm3185_vm10, %v10851_v57  ;;  %v19392_v57 = vunpack.c.l.bf16 %v19391_v31 }
 0x437   :  { %v12770_v0 = vpop.f32.mrb[162].mxu0 }
 0x438   :  { %v3853_v51 = vpop.f32.mrb[163].mxu0  ;;  %3999 = vrot.lane.b32.xlu1 %v12770_v0, %s14886_s19 }
 0x439   :  { %3997 = vrot.lane.b32.xlu0 %v3853_v51, %s14886_s19 }
 0x49e   :  { %v12609_v45 = vpop.f32.mrb[140].mxu1 }
 0x49f   :  { %v3157_v47 = vmul.f32 0.2, %v12609_v45  ;;  %v3101_v63 = vpop.f32.mrb[141].mxu1 }
 0x4a0   :  { %v3156_v5 = vmul.f32 0.2, %v3101_v63 }
 0x4a1   :  { %v3165_v44 = vmax.f32 %v12609_v45, %v3157_v47  ;;  %v19399_v45 = vld [vmem:[#allocation44_spill] sm:$0xff]  ;;  %v19400_v47 = vunpack.c.h.bf16 %v19397_v56 }
 0x4a2   :  { %v3164_v7 = vmax.f32 %v3101_v63, %v3156_v5  ;;  %v19401_v63 = vld [vmem:[#allocation2_spill] sm:$0xff]  ;;  %v3950_v5 = vpop.permute.xlu0 %3949 }
 0x4a4   :  { %v17462_v54 = vpack.c.bf16 %v3165_v44, %v3164_v7  ;;  %v3952_v44 = vpop.permute.xlu1 %3951 }
 0x4a6   :  { %v12612_v9 = vpop.f32.mrb[142].mxu1  ;;  %14190 = vmatprep.subr.bf16.mxu1 %v17462_v54  ;;  %14222 = vmatprep.subr.bf16.mxu0 %v17462_v54  ;;  %v3966_v7 = vpop.permute.xlu0 %3965 }
 0x4a7   :  { %v3159_v48 = vmul.f32 0.2, %v12612_v9  ;;  %v3111_v60 = vpop.f32.mrb[143].mxu1  ;;  %14192 = vmatpush3.bf16.msra.mxu1 %v17462_v54 }
 0x4a8   :  { %v3158_v26 = vmul.f32 0.2, %v3111_v60 }
 0x4a9   :  { %v3167_v40 = vmax.f32 %v12612_v9, %v3159_v48  ;;  %v3968_v9 = vpop.permute.xlu1 %3967 }
 0x4aa   :  { %v3166_v17 = vmax.f32 %v3111_v60, %v3158_v26  ;;  %v3982_v48 = vpop.permute.xlu0 %3981 }
 0x4ac   :  { %v17467_v39 = vpack.c.bf16 %v3167_v40, %v3166_v17 }
 0x4ad   :  { %v3984_v60 = vpop.permute.xlu1 %3983 }
 0x4ae   :  { %v12615_v16 = vpop.f32.mrb[144].mxu1  ;;  %14194 = vmatprep.subr.bf16.mxu1 %v17467_v39  ;;  %v3998_v26 = vpop.permute.xlu0 %3997 }
 0x4af   :  { %v3161_v11 = vmul.f32 0.2, %v12615_v16  ;;  %v3121_v33 = vpop.f32.mrb[145].mxu1  ;;  %14196 = vmatpush3.bf16.msra.mxu1 %v17467_v39 }
 0x4b0   :  { %v3160_v53 = vmul.f32 0.2, %v3121_v33 }
 0x4b1   :  { %v3169_v21 = vmax.f32 %v12615_v16, %v3161_v11  ;;  %v4000_v40 = vpop.permute.xlu1 %3999 }
 0x4b2   :  { %v3168_v42 = vmax.f32 %v3121_v33, %v3160_v53 }
 0x4b4   :  { %v17471_v55 = vpack.c.bf16 %v3169_v21, %v3168_v42 }
 0x4b6   :  { %14198 = vmatprep.subr.bf16.mxu1 %v17471_v55 }
 0x4b7   :  { %14200 = vmatpush3.bf16.msra.mxu1 %v17471_v55 }
 0x4bd   :  { %v12618_v14 = vpop.f32.mrb[146].mxu1 }
 0x4be   :  { %v3163_v58 = vmul.f32 0.2, %v12618_v14  ;;  %v3131_v43 = vpop.f32.mrb[147].mxu1 }
 0x4bf   :  { %v3162_v50 = vmul.f32 0.2, %v3131_v43 }
 0x4c0   :  { %v3171_v22 = vmax.f32 %v12618_v14, %v3163_v58 }
 0x4c1   :  { %v3170_v8 = vmax.f32 %v3131_v43, %v3162_v50  ;;  %v17475_v52 = vpop.f32.mrb[148].mxu1 }
 0x4c2   :  { %v17477_v18 = vpop.f32.mrb[149].mxu1 }
 0x4c3   :  { %v17479_v23 = vpack.c.bf16 %v3171_v22, %v3170_v8 }
 0x4c5   :  { %14202 = vmatprep.subr.bf16.mxu1 %v17479_v23 }
 0x4c6   :  { %14204 = vmatpush3.bf16.msra.mxu1 %v17479_v23 }
 0x4c7   :  { %14206 = vmatprep.subr.bf16.mxu1 %v17462_v54 }
 0x4c9   :  { %12828 = vmatmul.mubr.msk.f32.vlgmr.msra.gmra.mrb[158].mxu1 %vm3185_vm10, %v10852_v6  ;;  %v19394_v6 = vld [vmem:[#allocation39_spill] sm:$0xff] }
 0x4ca   :  { %14208 = vmatpush3.bf16.msra.mxu1 %v17462_v54  ;;  %12846 = vmatprep.mubr.msk.f32.mxu1 %vm3185_vm10, %v19389_v34  ;;  %v19395_v1 = vunpack.c.l.bf16 %v19394_v6  ;;  %v19396_v32 = vunpack.c.h.bf16 %v19394_v6 }
 0x4cb   :  { %14210 = vmatprep.subr.bf16.mxu1 %v17467_v39 }
 0x4ce   :  { %14212 = vmatpush3.bf16.msra.mxu1 %v17467_v39 }
 0x4cf   :  { %14214 = vmatprep.subr.bf16.mxu1 %v17471_v55 }
 0x4d1   :  { %v12675_v38 = vpop.f32.mrb[150].mxu1 }
 0x4d2   :  { %3959 = vrot.lane.b32.xlu1 %v12675_v38, %s14883_s28  ;;  %v3428_v62 = vpop.f32.mrb[151].mxu1  ;;  %14216 = vmatpush3.bf16.msra.mxu1 %v17471_v55 }
 0x4d3   :  { %3957 = vrot.lane.b32.xlu0 %v3428_v62, %s14883_s28  ;;  %14218 = vmatprep.subr.bf16.mxu1 %v17479_v23 }
 0x4d6   :  { %14220 = vmatpush3.bf16.msra.mxu1 %v17479_v23 }
 0x4d7   :  { %14238 = vmatprep.subr.bf16.mxu1 %v17462_v54 }
 0x4d9   :  { %12847 = vmatmul.mubr.msk.f32.vlgmr.msra.gmra.mrb[160].mxu1 %vm3185_vm10, %v19390_v37 }
 0x4da   :  { %14240 = vmatpush3.bf16.msra.mxu1 %v17462_v54  ;;  %12884 = vmatprep.mubr.msk.f32.mxu1 %vm3185_vm10, %v19392_v57 }
 0x4db   :  { %14242 = vmatprep.subr.bf16.mxu1 %v17467_v39 }
 0x4de   :  { %14244 = vmatpush3.bf16.msra.mxu1 %v17467_v39 }
 0x4df   :  { %14246 = vmatprep.subr.bf16.mxu1 %v17471_v55 }
 0x4e1   :  { %v12713_v15 = vpop.f32.mrb[152].mxu1 }
 0x4e2   :  { %3975 = vrot.lane.b32.xlu1 %v12713_v15, %s14887_s24  ;;  %v3598_v13 = vpop.f32.mrb[153].mxu1  ;;  %14248 = vmatpush3.bf16.msra.mxu1 %v17471_v55 }
 0x4e3   :  { %3973 = vrot.lane.b32.xlu0 %v3598_v13, %s14887_s24  ;;  %14250 = vmatprep.subr.bf16.mxu1 %v17479_v23 }
 0x4e6   :  { %14252 = vmatpush3.bf16.msra.mxu1 %v17479_v23 }
 0x4e7   :  { %14270 = vmatprep.subr.bf16.mxu1 %v17462_v54 }
 0x4e9   :  { %12885 = vmatmul.mubr.msk.f32.vlgmr.msra.gmra.mrb[162].mxu1 %vm3185_vm10, %v19393_v27 }
 0x4ea   :  { %14272 = vmatpush3.bf16.msra.mxu1 %v17462_v54  ;;  %12922 = vmatprep.mubr.msk.f32.mxu1 %vm3185_vm10, %v19395_v1 }
 0x4eb   :  { %14274 = vmatprep.subr.bf16.mxu1 %v17467_v39 }
 0x4ee   :  { %14276 = vmatpush3.bf16.msra.mxu1 %v17467_v39 }
 0x4ef   :  { %14278 = vmatprep.subr.bf16.mxu1 %v17471_v55 }
 0x4f1   :  { %v12751_v19 = vpop.f32.mrb[154].mxu1 }
 0x4f2   :  { %3991 = vrot.lane.b32.xlu1 %v12751_v19, %s14888_s25  ;;  %v3768_v2 = vpop.f32.mrb[155].mxu1  ;;  %14280 = vmatpush3.bf16.msra.mxu1 %v17471_v55 }
 0x4f3   :  { %3989 = vrot.lane.b32.xlu0 %v3768_v2, %s14888_s25  ;;  %14282 = vmatprep.subr.bf16.mxu1 %v17479_v23 }
 0x4f6   :  { %14284 = vmatpush3.bf16.msra.mxu1 %v17479_v23 }
 0x4f7   :  { %14302 = vmatprep.subr.bf16.mxu1 %v17462_v54 }
 0x4f9   :  { %12923 = vmatmul.mubr.msk.f32.vlgmr.msra.gmra.mrb[164].mxu1 %vm3185_vm10, %v19396_v32 }
 0x4fa   :  { %14304 = vmatpush3.bf16.msra.mxu1 %v17462_v54  ;;  %12960 = vmatprep.mubr.msk.f32.mxu1 %vm3185_vm10, %v19398_v41 }
 0x4fb   :  { %14306 = vmatprep.subr.bf16.mxu1 %v17467_v39 }
 0x4fe   :  { %14308 = vmatpush3.bf16.msra.mxu1 %v17467_v39 }
 0x4ff   :  { %14310 = vmatprep.subr.bf16.mxu1 %v17471_v55 }
 0x501   :  { %v12789_v0 = vpop.f32.mrb[156].mxu1 }
 0x502   :  { %4007 = vrot.lane.b32.xlu1 %v12789_v0, %s14889_s27  ;;  %v3938_v51 = vpop.f32.mrb[157].mxu1  ;;  %14312 = vmatpush3.bf16.msra.mxu1 %v17471_v55 }
 0x503   :  { %4005 = vrot.lane.b32.xlu0 %v3938_v51, %s14889_s27  ;;  %14314 = vmatprep.subr.bf16.mxu1 %v17479_v23 }
 0x506   :  { %14316 = vmatpush3.bf16.msra.mxu1 %v17479_v23 }
 0x507   :  { %14334 = vmatprep.subr.bf16.mxu1 %v19399_v45 }
 0x509   :  { %12961 = vmatmul.mubr.msk.f32.vlgmr.msra.gmra.mrb[166].mxu1 %vm3185_vm10, %v19400_v47 }
 0x50a   :  { %14336 = vmatpush3.bf16.msra.mxu1 %v19399_v45 }
 0x50b   :  { %14338 = vmatprep.subr.bf16.mxu1 %v19401_v63 }
 0x50e   :  { %14340 = vmatpush3.bf16.msra.mxu1 %v19401_v63 }
 0x50f   :  { %14342 = vmatprep.subr.bf16.mxu1 %v17203_v46 }
 0x512   :  { %14344 = vmatpush3.bf16.msra.mxu1 %v17203_v46  ;;  %v4011_v46 = vsel %vm1567_vm4, %v17477_v18, %v3950_v5 }
 0x513   :  { %14346 = vmatprep.subr.bf16.mxu1 %v17432_v49 }
 0x516   :  { %14348 = vmatpush3.bf16.msra.mxu1 %v17432_v49  ;;  %v4012_v49 = vsel %vm1567_vm4, %v17475_v52, %v3952_v44 }
 0x517   :  { %12998 = vmatprep.subr.mxu1 %v17442_v36 }
 0x51a   :  { %12999 = vmatpush3.msra.mxu1 %v17442_v36 }
 0x544   :  { %v3960_v16 = vpop.permute.xlu1 %3959 }
 0x545   :  { %v3958_v17 = vpop.permute.xlu0 %3957  ;;  %v4014_v36 = vsel %vm1603_vm8, %v4012_v49, %v3960_v16 }
 0x546   :  { %v4013_v11 = vsel %vm1603_vm8, %v4011_v46, %v3958_v17  ;;  %v4017_v42 = vsel %vm4015_vm11, %v4014_v36, %v3968_v9 }
 0x547   :  { %v4016_v21 = vsel %vm4015_vm11, %v4013_v11, %v3966_v7 }
 0x554   :  { %v3976_v53 = vpop.permute.xlu1 %3975 }
 0x555   :  { %v3974_v33 = vpop.permute.xlu0 %3973  ;;  %v4020_v58 = vsel %vm4018_vm12, %v4017_v42, %v3976_v53 }
 0x556   :  { %v4019_v14 = vsel %vm4018_vm12, %v4016_v21, %v3974_v33  ;;  %v4023_v8 = vsel %vm4021_vm13, %v4020_v58, %v3984_v60 }
 0x557   :  { %v4022_v22 = vsel %vm4021_vm13, %v4019_v14, %v3982_v48 }
 0x564   :  { %v3992_v50 = vpop.permute.xlu1 %3991 }
 0x565   :  { %v3990_v43 = vpop.permute.xlu0 %3989  ;;  %v4026_v18 = vsel %vm4024_vm14, %v4023_v8, %v3992_v50 }
 0x566   :  { %v4025_v52 = vsel %vm4024_vm14, %v4022_v22, %v3990_v43  ;;  %v4029_v62 = vsel %vm4027_vm15, %v4026_v18, %v4000_v40 }
 0x567   :  { %v4028_v34 = vsel %vm4027_vm15, %v4025_v52, %v3998_v26 }
 0x574   :  { %v4008_v3 = vpop.permute.xlu1 %4007 }
 0x575   :  { %v4006_v38 = vpop.permute.xlu0 %4005  ;;  %v4031_v31 = vsel %vm3185_vm10, %v4029_v62, %v4008_v3  ;;  %v17697_v62 = vld [vmem:[%s18843_s7 + $0x28] sm:$0xff]  }
 0x576   :  { %v4030_v37 = vsel %vm3185_vm10, %v4028_v34, %v4006_v38  ;;  %v17692_v38 = vld [vmem:[%s18843_s7] sm:$0xff]  }
 0x577   :  { %12808 = vmatprep.mubr.msk.f32.mxu0 %vm4032_vm0, %v4030_v37  ;;  %v10887_v37 = vunpack.c.l.bf16 %v17692_v38 }
 0x578   :  { %12809 = vmatmul.mubr.msk.f32.vlgmr.msra.gmra.mrb[164].mxu0 %vm4032_vm0, %v4031_v31  ;;  %v10907_v31 = vunpack.c.l.bf16 %v17697_v62 }
 0x579   :  { %14224 = vmatpush3.bf16.msra.mxu0 %v17462_v54  ;;  %12865 = vmatprep.mubr.msk.f32.mxu0 %vm3185_vm10, %v10859_v4 }
 0x57a   :  { %14226 = vmatprep.subr.bf16.mxu0 %v17467_v39 }
 0x57d   :  { %14228 = vmatpush3.bf16.msra.mxu0 %v17467_v39 }
 0x57e   :  { %14230 = vmatprep.subr.bf16.mxu0 %v17471_v55 }
 0x581   :  { %14232 = vmatpush3.bf16.msra.mxu0 %v17471_v55 }
 0x582   :  { %14234 = vmatprep.subr.bf16.mxu0 %v17479_v23 }
 0x585   :  { %14236 = vmatpush3.bf16.msra.mxu0 %v17479_v23 }
 0x586   :  { %14254 = vmatprep.subr.bf16.mxu0 %v17462_v54 }
 0x588   :  { %12866 = vmatmul.mubr.msk.f32.vlgmr.msra.gmra.mrb[166].mxu0 %vm3185_vm10, %v10860_v35 }
 0x589   :  { %14256 = vmatpush3.bf16.msra.mxu0 %v17462_v54  ;;  %12903 = vmatprep.mubr.msk.f32.mxu0 %vm3185_vm10, %v10867_v20 }
 0x58a   :  { %14258 = vmatprep.subr.bf16.mxu0 %v17467_v39 }
 0x58d   :  { %14260 = vmatpush3.bf16.msra.mxu0 %v17467_v39 }
 0x58e   :  { %14262 = vmatprep.subr.bf16.mxu0 %v17471_v55 }
 0x591   :  { %14264 = vmatpush3.bf16.msra.mxu0 %v17471_v55 }
 0x592   :  { %14266 = vmatprep.subr.bf16.mxu0 %v17479_v23 }
 0x595   :  { %14268 = vmatpush3.bf16.msra.mxu0 %v17479_v23 }
 0x596   :  { %14286 = vmatprep.subr.bf16.mxu0 %v17462_v54 }
 0x598   :  { %12904 = vmatmul.mubr.msk.f32.vlgmr.msra.gmra.mrb[168].mxu0 %vm3185_vm10, %v10868_v25 }
 0x599   :  { %14288 = vmatpush3.bf16.msra.mxu0 %v17462_v54  ;;  %12941 = vmatprep.mubr.msk.f32.mxu0 %vm3185_vm10, %v10875_v28 }
 0x59a   :  { %14290 = vmatprep.subr.bf16.mxu0 %v17467_v39 }
 0x59c   :  { %v17613_v10 = vpop.f32.mrb[158].mxu1 }
 0x59d   :  { %14292 = vmatpush3.bf16.msra.mxu0 %v17467_v39  ;;  %v17616_v4 = vpop.f32.mrb[159].mxu1 }
 0x59e   :  { %14294 = vmatprep.subr.bf16.mxu0 %v17471_v55 }
 0x5a1   :  { %14296 = vmatpush3.bf16.msra.mxu0 %v17471_v55 }
 0x5a2   :  { %14298 = vmatprep.subr.bf16.mxu0 %v17479_v23 }
 0x5a5   :  { %14300 = vmatpush3.bf16.msra.mxu0 %v17479_v23 }
 0x5a6   :  { %14318 = vmatprep.subr.bf16.mxu0 %v17462_v54 }
 0x5a8   :  { %12942 = vmatmul.mubr.msk.f32.vlgmr.msra.gmra.mrb[170].mxu0 %vm3185_vm10, %v10876_v29 }
 0x5a9   :  { %14320 = vmatpush3.bf16.msra.mxu0 %v17462_v54  ;;  %12979 = vmatprep.mubr.msk.f32.mxu0 %vm3185_vm10, %v10883_v12 }
 0x5aa   :  { %14322 = vmatprep.subr.bf16.mxu0 %v17467_v39 }
 0x5ac   :  { %v12848_v61 = vpop.f32.mrb[160].mxu1 }
 0x5ad   :  { %14324 = vmatpush3.bf16.msra.mxu0 %v17467_v39  ;;  %v4255_v35 = vpop.f32.mrb[161].mxu1  ;;  %4793 = vrot.lane.b32.xlu1 %v12848_v61, %s14879_s18 }
 0x5ae   :  { %14326 = vmatprep.subr.bf16.mxu0 %v17471_v55  ;;  %4791 = vrot.lane.b32.xlu0 %v4255_v35, %s14879_s18 }
 0x5b1   :  { %14328 = vmatpush3.bf16.msra.mxu0 %v17471_v55 }
 0x5b2   :  { %14330 = vmatprep.subr.bf16.mxu0 %v17479_v23 }
 0x5b5   :  { %14332 = vmatpush3.bf16.msra.mxu0 %v17479_v23 }
 0x5b8   :  { %12980 = vmatmul.mubr.msk.f32.vlgmr.msra.gmra.mrb[172].mxu0 %vm3185_vm10, %v10884_v24 }
 0x5b9   :  { %13007 = vmatprep.mubr.msk.f32.mxu0 %vm1603_vm8, %v10887_v37 }
 0x5bc   :  { %v12886_v20 = vpop.f32.mrb[162].mxu1 }
 0x5bd   :  { %4809 = vrot.lane.b32.xlu1 %v12886_v20, %s14884_s4  ;;  %v4405_v59 = vpop.f32.mrb[163].mxu1 }
 0x5be   :  { %4807 = vrot.lane.b32.xlu0 %v4405_v59, %s14884_s4 }
 0x5cc   :  { %v12924_v25 = vpop.f32.mrb[164].mxu1 }
 0x5cd   :  { %4825 = vrot.lane.b32.xlu1 %v12924_v25, %s14885_s30  ;;  %v4555_v28 = vpop.f32.mrb[165].mxu1 }
 0x5ce   :  { %4823 = vrot.lane.b32.xlu0 %v4555_v28, %s14885_s30 }
 0x5dc   :  { %v12962_v29 = vpop.f32.mrb[166].mxu1 }
 0x5dd   :  { %4841 = vrot.lane.b32.xlu1 %v12962_v29, %s14886_s19  ;;  %v4705_v12 = vpop.f32.mrb[167].mxu1 }
 0x5de   :  { %4839 = vrot.lane.b32.xlu0 %v4705_v12, %s14886_s19 }
 0x61f   :  { %v4794_v45 = vpop.permute.xlu1 %4793 }
 0x620   :  { %v4792_v51 = vpop.permute.xlu0 %4791  ;;  %v4854_v40 = vsel %vm1567_vm4, %v17613_v10, %v4794_v45 }
 0x621   :  { %v4853_v26 = vsel %vm1567_vm4, %v17616_v4, %v4792_v51 }
 0x62f   :  { %v4810_v63 = vpop.permute.xlu1 %4809 }
 0x630   :  { %v4808_v47 = vpop.permute.xlu0 %4807 }
 0x63f   :  { %v4826_v44 = vpop.permute.xlu1 %4825 }
 0x640   :  { %v4824_v5 = vpop.permute.xlu0 %4823 }
 0x64b   :  { %v17647_v30 = vpop.f32.mrb[164].mxu0 }
 0x64c   :  { %v4951_v24 = vsel %vm1603_vm8, %v17647_v30, 0.0  ;;  %v4960_v54 = vmul.f32 %v17647_v30, %v17647_v30  ;;  %v17653_v39 = vpop.f32.mrb[165].mxu0 }
 0x64d   :  { %v4950_v55 = vsel %vm1603_vm8, %v17653_v39, 0.0  ;;  %v4959_v23 = vmul.f32 %v17653_v39, %v17653_v39 }
 0x64e   :  { %v4962_v57 = vsel %vm1603_vm8, %v4960_v54, 0.0  ;;  %v4952_v15 = vadd.f32 %v4951_v24, %v4950_v55 }
 0x64f   :  { %v4961_v13 = vsel %vm1603_vm8, %v4959_v23, 0.0  ;;  %v4842_v9 = vpop.permute.xlu1 %4841 }
 0x650   :  { %v4963_v27 = vadd.f32 %v4962_v57, %v4961_v13  ;;  %v4840_v7 = vpop.permute.xlu0 %4839  ;;  %v4953_v10 = vrot.slane %v4952_v15, 4 }
 0x652   :  { %v4964_v4 = vrot.slane %v4963_v27, 4  ;;  %v4954_v61 = vadd.f32 %v4953_v10, %v4952_v15 }
 0x654   :  { %v4965_v20 = vadd.f32 %v4964_v4, %v4963_v27  ;;  %v4955_v24 = vrot.slane %v4954_v61, 2 }
 0x656   :  { %v4966_v57 = vrot.slane %v4965_v20, 2 }
 0x658   :  { %v4967_v27 = vadd.f32 %v4966_v57, %v4965_v20  ;;  %v17735_v57 = vld [vmem:[%s18843_s7 + $0x38] sm:$0xff]  }
 0x65a   :  { %v4968_v51 = vrot.slane %v4967_v27, 1 }
 0x65b   :  { %v12867_v6 = vpop.f32.mrb[166].mxu0 }
 0x65c   :  { %4801 = vrot.lane.b32.xlu1 %v12867_v6, %s14883_s28  ;;  %v4330_v1 = vpop.f32.mrb[167].mxu0 }
 0x65d   :  { %4799 = vrot.lane.b32.xlu0 %v4330_v1, %s14883_s28  ;;  %v4956_v1 = vadd.f32 %v4955_v24, %v4954_v61 }
 0x66b   :  { %v12905_v19 = vpop.f32.mrb[168].mxu0 }
 0x66c   :  { %4817 = vrot.lane.b32.xlu1 %v12905_v19, %s14887_s24  ;;  %v4480_v2 = vpop.f32.mrb[169].mxu0 }
 0x66d   :  { %4815 = vrot.lane.b32.xlu0 %v4480_v2, %s14887_s24 }
 0x67b   :  { %v12943_v32 = vpop.f32.mrb[170].mxu0 }
 0x67c   :  { %4833 = vrot.lane.b32.xlu1 %v12943_v32, %s14888_s25  ;;  %v4630_v56 = vpop.f32.mrb[171].mxu0 }
 0x67d   :  { %4831 = vrot.lane.b32.xlu0 %v4630_v56, %s14888_s25  ;;  %v4957_v56 = vrot.slane %v4956_v1, 1 }
 0x68b   :  { %v12981_v41 = vpop.f32.mrb[172].mxu0 }
 0x68c   :  { %4849 = vrot.lane.b32.xlu1 %v12981_v41, %s14889_s27  ;;  %v4780_v0 = vpop.f32.mrb[173].mxu0 }
 0x68d   :  { %4847 = vrot.lane.b32.xlu0 %v4780_v0, %s14889_s27 }
 0x6ce   :  { %v4802_v60 = vpop.permute.xlu1 %4801 }
 0x6cf   :  { %v4800_v48 = vpop.permute.xlu0 %4799  ;;  %v4856_v16 = vsel %vm1603_vm8, %v4854_v40, %v4802_v60 }
 0x6d0   :  { %v4855_v17 = vsel %vm1603_vm8, %v4853_v26, %v4800_v48  ;;  %v4858_v36 = vsel %vm4015_vm11, %v4856_v16, %v4810_v63  ;;  %v4958_v63 = vadd.f32 %v4957_v56, %v4956_v1  ;;  %v10915_v1 = vunpack.c.l.bf16 %v17735_v57 }
 0x6d1   :  { %v4857_v11 = vsel %vm4015_vm11, %v4855_v17, %v4808_v47 }
 0x6de   :  { %v4818_v49 = vpop.permute.xlu1 %4817 }
 0x6df   :  { %v4816_v46 = vpop.permute.xlu0 %4815  ;;  %v4860_v53 = vsel %vm4018_vm12, %v4858_v36, %v4818_v49 }
 0x6e0   :  { %v4859_v33 = vsel %vm4018_vm12, %v4857_v11, %v4816_v46  ;;  %v4862_v58 = vsel %vm4021_vm13, %v4860_v53, %v4826_v44  ;;  %v5005_v11 = vlaneseq }
 0x6e1   :  { %v4861_v14 = vsel %vm4021_vm13, %v4859_v33, %v4824_v5  ;;  %v4997_v33 = vld [vmem:[%s18844_s5] sm:$0x1]  ;;  %s14893_s5 = smov 96  }
 0x6e2   :  { %v5006_v36 = vshrl.u32 %v5005_v11, 7 }
 0x6e4   :  { %v17714_v53 = vsub.s32 0, %v5006_v36  ;;  %v5040_v36 = vld [vmem:[%s18846_s8 + $0x40] sm:$0xff] }
 0x6ee   :  { %v4834_v42 = vpop.permute.xlu1 %4833 }
 0x6ef   :  { %v4832_v21 = vpop.permute.xlu0 %4831  ;;  %v4864_v50 = vsel %vm4024_vm14, %v4862_v58, %v4834_v42 }
 0x6f0   :  { %v4863_v43 = vsel %vm4024_vm14, %v4861_v14, %v4832_v21  ;;  %v4866_v18 = vsel %vm4027_vm15, %v4864_v50, %v4842_v9  ;;  %v5001_v14 = vld [vmem:[%s18845_s6] sm:$0x1] }
 0x6f1   :  { %v4865_v8 = vsel %vm4027_vm15, %v4863_v43, %v4840_v7  ;;  %v4969_v7 = vadd.f32 %v4968_v51, %v4967_v27 }
 0x6fe   :  { %v4850_v22 = vpop.permute.xlu1 %4849 }
 0x6ff   :  { %v4848_v52 = vpop.permute.xlu0 %4847  ;;  %v4868_v34 = vsel %vm3185_vm10, %v4866_v18, %v4850_v22 }
 0x700   :  { %v4867_v3 = vsel %vm3185_vm10, %v4865_v8, %v4848_v52 }
 0x701   :  { %13000 = vmatprep.mubr.msk.f32.mxu1 %vm4032_vm0, %v4867_v3 }
 0x702   :  { %13001 = vmatmul.mubr.msk.f32.vlgmr.msra.gmra.mrb[168].mxu1 %vm4032_vm0, %v4868_v34 }
 0x703   :  { %13042 = vmatprep.mubr.msk.f32.mxu1 %vm1603_vm8, %v10907_v31 }
 0x7d5   :  { %v13002_v35 = vpop.f32.mrb[168].mxu1 }
 0x7d6   :  { %v4971_v59 = vsel %vm1603_vm8, %v13002_v35, 0.0  ;;  %v4981_v25 = vmul.f32 %v13002_v35, %v13002_v35  ;;  %v4941_v28 = vpop.f32.mrb[169].mxu1 }
 0x7d7   :  { %v4970_v29 = vsel %vm1603_vm8, %v4941_v28, 0.0  ;;  %v4980_v12 = vmul.f32 %v4941_v28, %v4941_v28 }
 0x7d8   :  { %v4983_v54 = vsel %vm1603_vm8, %v4981_v25, 0.0  ;;  %v4972_v55 = vadd.f32 %v4971_v59, %v4970_v29 }
 0x7d9   :  { %v4982_v23 = vsel %vm1603_vm8, %v4980_v12, 0.0 }
 0x7da   :  { %v4973_v13 = vrot.slane %v4972_v55, 4  ;;  %v4984_v6 = vadd.f32 %v4983_v54, %v4982_v23 }
 0x7dc   :  { %v4974_v15 = vadd.f32 %v4973_v13, %v4972_v55  ;;  %v4985_v19 = vrot.slane %v4984_v6, 4 }
 0x7de   :  { %v4975_v2 = vrot.slane %v4974_v15, 2  ;;  %v4986_v32 = vadd.f32 %v4985_v19, %v4984_v6  ;;  %v11002_v6 = vld [vmem:[%s18843_s7 + $0x10] sm:$0xff]   ;;  %v10916_v19 = vunpack.c.h.bf16 %v17735_v57 }
 0x7df   :  { %v10895_v27 = vunpack.c.l.bf16 %v11002_v6 }
 0x7e0   :  { %v4976_v41 = vadd.f32 %v4975_v2, %v4974_v15  ;;  %v4987_v0 = vrot.slane %v4986_v32, 2  ;;  %v11003_v2 = vld [vmem:[%s18843_s7 + $0x18] sm:$0xff]  }
 0x7e1   :  { %v10899_v56 = vunpack.c.l.bf16 %v11003_v2 }
 0x7e2   :  { %v4977_v45 = vrot.slane %v4976_v41, 1  ;;  %v4988_v47 = vadd.f32 %v4987_v0, %v4986_v32  ;;  %v10896_v32 = vunpack.c.h.bf16 %v11002_v6  ;;  %v10900_v0 = vunpack.c.h.bf16 %v11003_v2 }
 0x7e4   :  { %v4978_v5 = vadd.f32 %v4977_v45, %v4976_v41  ;;  %v4989_v44 = vrot.slane %v4988_v47, 1  ;;  %v11004_v41 = vld [vmem:[%s18843_s7 + $0x20] sm:$0xff]   ;;  %v11006_v45 = vld [vmem:[%s18843_s7 + $0x30] sm:$0xff]  }
 0x7e5   :  { %v10903_v51 = vunpack.c.l.bf16 %v11004_v41 }
 0x7e6   :  { %v4979_v9 = vadd.f32 %v4978_v5, %v4958_v63  ;;  %v4990_v48 = vadd.f32 %v4989_v44, %v4988_v47  ;;  %v10904_v47 = vunpack.c.h.bf16 %v11004_v41  ;;  %v10911_v63 = vunpack.c.l.bf16 %v11006_v45  ;;  %v11008_v5 = vld [vmem:[%s18843_s7 + $0x40] sm:$0xff]  }
 0x7e7   :  { %v10912_v44 = vunpack.c.h.bf16 %v11006_v45 }
 0x7e8   :  { %v4991_v60 = vadd.f32 %v4990_v48, %v4969_v7  ;;  %v4992_v26 = vmul.f32 0.03125, %v4979_v9  ;;  %v10919_v7 = vunpack.c.l.bf16 %v11008_v5  ;;  %v10920_v9 = vunpack.c.h.bf16 %v11008_v5 }
 0x7ea   :  { %v4993_v40 = vmul.f32 0.03125, %v4991_v60  ;;  %v4994_v17 = vmul.f32 %v4992_v26, %v4992_v26  ;;  %v5035_v60 = vld [vmem:[%s18846_s8 + $0x18] sm:$0xff] }
 0x7ec   :  { %v4995_v16 = vsub.f32 %v4993_v40, %v4994_v17  ;;  %v5036_v40 = vld [vmem:[%s18846_s8 + $0x20] sm:$0xff]  ;;  %v5037_v17 = vld [vmem:[%s18846_s8 + $0x28] sm:$0xff] }
 0x7ee   :  { %v4996_v46 = vmax.f32 %v4995_v16, 0.0  ;;  %v17850_v16 = vpack.c.bf16 %v5037_v17, %v5036_v40 }
 0x7f0   :  { %v4998_v49 = vadd.f32 1e-05, %v4996_v46  ;;  %v5038_v46 = vld [vmem:[%s18846_s8 + $0x30] sm:$0xff] }
 0x7f2   :  { %14861 = vrsqrt.f32 %v4998_v49  ;;  %v5039_v49 = vld [vmem:[%s18846_s8 + $0x38] sm:$0xff] }
 0x7f3   :  { %v17860_v11 = vpack.c.bf16 %v5039_v49, %v5038_v46 }
 0x7fc   :  { %v14862_v21 = vpop.eup %14861 }
 0x7fd   :  { %v5000_v42 = vmul.f32 %v14862_v21, %v4997_v33  ;;  %v5041_v33 = vld [vmem:[%s18846_s8 + $0x48] sm:$0xff] }
 0x7fe   :  { %v17871_v21 = vpack.c.bf16 %v5041_v33, %v5040_v36 }
 0x7ff   :  { %v5002_v58 = vmul.f32 %v5000_v42, %v4992_v26  ;;  %v5008_v43 = vrot.slane %v5000_v42, %v17714_v53  ;;  %v5042_v42 = vld [vmem:[%s18846_s8 + $0x50] sm:$0xff] }
 0x801   :  { %v5003_v50 = vsub.f32 %v5001_v14, %v5002_v58  ;;  %v5010_v22 = vmul.f32 %v5008_v43, %v17653_v39  ;;  %v5011_v8 = vmul.f32 %v17647_v30, %v5008_v43  ;;  %v5024_v52 = vmul.f32 %v5008_v43, %v4941_v28  ;;  %v17728_v30 = vld [vmem:[%s18843_s7 + $0x8] sm:$0xff]   ;;  %v5043_v14 = vld [vmem:[%s18846_s8 + $0x58] sm:$0xff] }
 0x802   :  { %v5025_v18 = vmul.f32 %v13002_v35, %v5008_v43  ;;  %v10888_v35 = vunpack.c.h.bf16 %v17692_v38  ;;  %v10908_v28 = vunpack.c.h.bf16 %v17697_v62  ;;  %v10891_v13 = vunpack.c.l.bf16 %v17728_v30  ;;  %v5032_v62 = vld [vmem:[%s18846_s8] sm:$0xff] }
 0x803   :  { %v5016_v3 = vrot.slane %v5003_v50, %v17714_v53  ;;  %v10892_v15 = vunpack.c.h.bf16 %v17728_v30  ;;  %v14890_v38 = vmov 0.0|0.0   ;;  %v17881_v58 = vpack.c.bf16 %v5043_v14, %v5042_v42  ;;  %v5044_v43 = vld [vmem:[%s18846_s8 + $0x60] sm:$0xff]  ;;  %v5045_v50 = vld [vmem:[%s18846_s8 + $0x68] sm:$0xff] }
 0x805   :  { %v5018_v34 = vadd.f32 %v5016_v3, %v5010_v22  ;;  %v5019_v10 = vadd.f32 %v5016_v3, %v5011_v8  ;;  %v5026_v4 = vadd.f32 %v5024_v52, %v5016_v3  ;;  %v5027_v61 = vadd.f32 %v5025_v18, %v5016_v3 }
 0x806   :  { %v17891_v22 = vpack.c.bf16 %v5045_v50, %v5044_v43 }
 0x807   :  { %v5020_v20 = vmul.f32 0.2, %v5018_v34  ;;  %v5021_v59 = vmul.f32 0.2, %v5019_v10  ;;  %v5028_v25 = vmul.f32 0.2, %v5026_v4 }
 0x808   :  { %v5029_v29 = vmul.f32 0.2, %v5027_v61 }
 0x809   :  { %v5022_v12 = vmax.f32 %v5018_v34, %v5020_v20  ;;  %v5023_v24 = vmax.f32 %v5019_v10, %v5021_v59  ;;  %v5030_v54 = vmax.f32 %v5026_v4, %v5028_v25  ;;  %v5046_v34 = vld [vmem:[%s18846_s8 + $0x70] sm:$0xff]  ;;  %v5047_v10 = vld [vmem:[%s18846_s8 + $0x78] sm:$0xff] }
 0x80a   :  { %v5031_v55 = vmax.f32 %v5027_v61, %v5029_v29  ;;  %v17908_v4 = vpack.c.bf16 %v5047_v10, %v5046_v34  ;;  %v5048_v29 = vld [vmem:[%s18846_s8 + $0x80] sm:$0xff] }
 0x80b   :  { %v14349_v23 = vpack.c.bf16 %v5023_v24, %v5022_v12  ;;  %v5049_v12 = vld [vmem:[%s18846_s8 + $0x88] sm:$0xff] }
 0x80c   :  { %v17723_v39 = vpack.c.bf16 %v5031_v55, %v5030_v54  ;;  %v17919_v24 = vpack.c.bf16 %v5049_v12, %v5048_v29 }
 0x80d   :  { %14350 = vmatprep.subr.bf16.mxu0 %v14349_v23  ;;  %14370 = vmatprep.subr.bf16.mxu1 %v14349_v23 }
 0x80e   :  { %14352 = vmatpush3.bf16.msra.mxu0 %v14349_v23  ;;  %14372 = vmatpush3.bf16.msra.mxu1 %v14349_v23 }
 0x80f   :  { %14354 = vmatprep.subr.bf16.mxu0 %v14349_v23  ;;  %14378 = vmatprep.subr.bf16.mxu1 %v14349_v23 }
 0x811   :  { %13008 = vmatmul.mubr.msk.f32.vlgmr.msra.gmra.mrb[174].mxu0 %vm1603_vm8, %v10888_v35  ;;  %13043 = vmatmul.mubr.msk.f32.vlgmr.msra.gmra.mrb[170].mxu1 %vm1603_vm8, %v10908_v28 }
 0x812   :  { %14356 = vmatpush3.bf16.msra.mxu0 %v14349_v23  ;;  %14380 = vmatpush3.bf16.msra.mxu1 %v14349_v23 }
 0x813   :  { %14358 = vmatprep.subr.bf16.mxu0 %v14349_v23  ;;  %13014 = vmatprep.mubr.msk.f32.mxu0 %vm1603_vm8, %v10891_v13 }
 0x814   :  { %13056 = vmatprep.mubr.msk.f32.mxu1 %vm1603_vm8, %v10915_v1  ;;  %14385 = vmatprep.subr.bf16.mxu1 %v14890_v38 }
 0x815   :  { %13015 = vmatmul.mubr.msk.f32.vlgmr.msra.gmra.mrb[176].mxu0 %vm1603_vm8, %v10892_v15  ;;  %13057 = vmatmul.mubr.msk.f32.vlgmr.msra.gmra.mrb[172].mxu1 %vm1603_vm8, %v10916_v19 }
 0x816   :  { %14360 = vmatpush3.bf16.msra.mxu0 %v14349_v23  ;;  %13021 = vmatprep.mubr.msk.f32.mxu0 %vm1603_vm8, %v10895_v27 }
 0x817   :  { %14362 = vmatprep.subr.bf16.mxu0 %v14349_v23 }
 0x819   :  { %13022 = vmatmul.mubr.msk.f32.vlgmr.msra.gmra.mrb[178].mxu0 %vm1603_vm8, %v10896_v32 }
 0x81a   :  { %14364 = vmatpush3.bf16.msra.mxu0 %v14349_v23  ;;  %13028 = vmatprep.mubr.msk.f32.mxu0 %vm1603_vm8, %v10899_v56 }
 0x81b   :  { %14366 = vmatprep.subr.bf16.mxu0 %v14349_v23 }
 0x81d   :  { %13029 = vmatmul.mubr.msk.f32.vlgmr.msra.gmra.mrb[180].mxu0 %vm1603_vm8, %v10900_v0 }
 0x81e   :  { %14368 = vmatpush3.bf16.msra.mxu0 %v14349_v23  ;;  %13035 = vmatprep.mubr.msk.f32.mxu0 %vm1603_vm8, %v10903_v51 }
 0x81f   :  { %14374 = vmatprep.subr.bf16.mxu0 %v14349_v23 }
 0x821   :  { %13036 = vmatmul.mubr.msk.f32.vlgmr.msra.gmra.mrb[182].mxu0 %vm1603_vm8, %v10904_v47 }
 0x822   :  { %14376 = vmatpush3.bf16.msra.mxu0 %v14349_v23  ;;  %13049 = vmatprep.mubr.msk.f32.mxu0 %vm1603_vm8, %v10911_v63 }
 0x823   :  { %14382 = vmatprep.subr.bf16.mxu0 %v14349_v23 }
 0x825   :  { %13050 = vmatmul.mubr.msk.f32.vlgmr.msra.gmra.mrb[184].mxu0 %vm1603_vm8, %v10912_v44 }
 0x826   :  { %14384 = vmatpush3.bf16.msra.mxu0 %v14349_v23  ;;  %13063 = vmatprep.mubr.msk.f32.mxu0 %vm1603_vm8, %v10919_v7 }
 0x827   :  { %14413 = vmatprep.subr.bf16.mxu0 %v17723_v39 }
 0x829   :  { %13064 = vmatmul.mubr.msk.f32.vlgmr.msra.gmra.mrb[186].mxu0 %vm1603_vm8, %v10920_v9 }
 0x82a   :  { %14415 = vmatpush3.bf16.msra.mxu0 %v17723_v39  ;;  %13070 = vmatprep.mubr.msk.f32.mxu0 %vm1603_vm8, %v10887_v37  ;;  %v5033_v37 = vld [vmem:[%s18846_s8 + $0x8] sm:$0xff] }
 0x82b   :  { %14417 = vmatprep.subr.bf16.mxu0 %v17723_v39  ;;  %v17834_v48 = vpack.c.bf16 %v5033_v37, %v5032_v62 }
 0x82d   :  { %13071 = vmatmul.mubr.msk.f32.vlgmr.msra.gmra.mrb[188].mxu0 %vm1603_vm8, %v10888_v35  ;;  %14387 = vmatpush1.bf16.msra.mxu1 %v17834_v48 }
 0x82e   :  { %14419 = vmatpush3.bf16.msra.mxu0 %v17723_v39  ;;  %13077 = vmatprep.mubr.msk.f32.mxu0 %vm1603_vm8, %v10891_v13 }
 0x82f   :  { %14421 = vmatprep.subr.bf16.mxu0 %v17723_v39  ;;  %14388 = vmatprep.subr.bf16.mxu1 %v14890_v38 }
 0x831   :  { %13078 = vmatmul.mubr.msk.f32.vlgmr.msra.gmra.mrb[190].mxu0 %vm1603_vm8, %v10892_v15 }
 0x832   :  { %14423 = vmatpush3.bf16.msra.mxu0 %v17723_v39  ;;  %13084 = vmatprep.mubr.msk.f32.mxu0 %vm1603_vm8, %v10895_v27 }
 0x833   :  { %14425 = vmatprep.subr.bf16.mxu0 %v17723_v39 }
 0x835   :  { %13085 = vmatmul.mubr.msk.f32.vlgmr.msra.gmra.mrb[192].mxu0 %vm1603_vm8, %v10896_v32 }
 0x836   :  { %14427 = vmatpush3.bf16.msra.mxu0 %v17723_v39  ;;  %13091 = vmatprep.mubr.msk.f32.mxu0 %vm1603_vm8, %v10899_v56 }
 0x837   :  { %14429 = vmatprep.subr.bf16.mxu0 %v17723_v39 }
 0x839   :  { %13092 = vmatmul.mubr.msk.f32.vlgmr.msra.gmra.mrb[194].mxu0 %vm1603_vm8, %v10900_v0 }
 0x83a   :  { %14431 = vmatpush3.bf16.msra.mxu0 %v17723_v39  ;;  %13098 = vmatprep.mubr.msk.f32.mxu0 %vm1603_vm8, %v10903_v51 }
 0x83b   :  { %14433 = vmatprep.subr.bf16.mxu0 %v17723_v39 }
 0x83d   :  { %13099 = vmatmul.mubr.msk.f32.vlgmr.msra.gmra.mrb[196].mxu0 %vm1603_vm8, %v10904_v47 }
 0x83e   :  { %14435 = vmatpush3.bf16.msra.mxu0 %v17723_v39  ;;  %13105 = vmatprep.mubr.msk.f32.mxu0 %vm1603_vm8, %v10907_v31  ;;  %v5034_v31 = vld [vmem:[%s18846_s8 + $0x10] sm:$0xff]  ;;  %s14892_s8 = smov 112  }
 0x83f   :  { %14437 = vmatprep.subr.bf16.mxu0 %v17723_v39  ;;  %v17840_v26 = vpack.c.bf16 %v5035_v60, %v5034_v31 }
 0x841   :  { %13106 = vmatmul.mubr.msk.f32.vlgmr.msra.gmra.mrb[198].mxu0 %vm1603_vm8, %v10908_v28  ;;  %14390 = vmatpush1.bf16.msra.mxu1 %v17840_v26 }
 0x842   :  { %14439 = vmatpush3.bf16.msra.mxu0 %v17723_v39  ;;  %13112 = vmatprep.mubr.msk.f32.mxu0 %vm1603_vm8, %v10911_v63 }
 0x843   :  { %14441 = vmatprep.subr.bf16.mxu0 %v17723_v39  ;;  %14391 = vmatprep.subr.bf16.mxu1 %v14890_v38 }
 0x845   :  { %13113 = vmatmul.mubr.msk.f32.vlgmr.msra.gmra.mrb[200].mxu0 %vm1603_vm8, %v10912_v44  ;;  %14393 = vmatpush1.bf16.msra.mxu1 %v17850_v16 }
 0x846   :  { %14443 = vmatpush3.bf16.msra.mxu0 %v17723_v39  ;;  %13119 = vmatprep.mubr.msk.f32.mxu0 %vm1603_vm8, %v10915_v1 }
 0x847   :  { %14445 = vmatprep.subr.bf16.mxu0 %v17723_v39  ;;  %14394 = vmatprep.subr.bf16.mxu1 %v14890_v38 }
 0x849   :  { %13120 = vmatmul.mubr.msk.f32.vlgmr.msra.gmra.mrb[202].mxu0 %vm1603_vm8, %v10916_v19  ;;  %14396 = vmatpush1.bf16.msra.mxu1 %v17860_v11 }
 0x84a   :  { %14447 = vmatpush3.bf16.msra.mxu0 %v17723_v39  ;;  %13126 = vmatprep.mubr.msk.f32.mxu0 %vm1603_vm8, %v10919_v7 }
 0x84b   :  { %14397 = vmatprep.subr.bf16.mxu1 %v14890_v38 }
 0x84d   :  { %13127 = vmatmul.mubr.msk.f32.vlgmr.msra.gmra.mrb[204].mxu0 %vm1603_vm8, %v10920_v9  ;;  %14399 = vmatpush1.bf16.msra.mxu1 %v17871_v21 }
 0x84e   :  { %14400 = vmatprep.subr.bf16.mxu1 %v14890_v38 }
 0x851   :  { %14402 = vmatpush1.bf16.msra.mxu1 %v17881_v58 }
 0x852   :  { %14403 = vmatprep.subr.bf16.mxu1 %v14890_v38 }
 0x855   :  { %14405 = vmatpush1.bf16.msra.mxu1 %v17891_v22 }
 0x856   :  { %14406 = vmatprep.subr.bf16.mxu1 %v14890_v38 }
 0x859   :  { %14408 = vmatpush1.bf16.msra.mxu1 %v17908_v4 }
 0x85a   :  { %14409 = vmatprep.subr.bf16.mxu1 %v14890_v38 }
 0x85d   :  { %14411 = vmatpush1.bf16.msra.mxu1 %v17919_v24 }
 0x85e   :  { %14448 = vmatprep.subr.bf16.mxu1 %v14890_v38 }
 0x8e4   :  { %v17893_v8 = vpop.f32.mrb[174].mxu0  ;;  %v17895_v52 = vpop.f32.mrb[170].mxu1 }
 0x8e5   :  { %v17898_v18 = vpop.f32.mrb[175].mxu0  ;;  %v5551_v3 = vpop.f32.mrb[171].mxu1 }
 0x8e6   :  { %5849 = vrot.lane.b32.xlu0 %v5551_v3, %s14891_s21 }
 0x8e8   :  { %v13016_v61 = vpop.f32.mrb[176].mxu0  ;;  %v13058_v20 = vpop.f32.mrb[172].mxu1 }
 0x8e9   :  { %v5211_v59 = vpop.f32.mrb[177].mxu0  ;;  %v5721_v25 = vpop.f32.mrb[173].mxu1 }
 0x8ea   :  { %5817 = vrot.lane.b32.xlu0 %v5211_v59, %s14883_s28 }
 0x8ec   :  { %v13023_v54 = vpop.f32.mrb[178].mxu0 }
 0x8ed   :  { %v5296_v55 = vpop.f32.mrb[179].mxu0 }
 0x8ee   :  { %5825 = vrot.lane.b32.xlu1 %v5296_v55, %s14887_s24 }
 0x8f0   :  { %v13030_v23 = vpop.f32.mrb[180].mxu0 }
 0x8f1   :  { %v5381_v39 = vpop.f32.mrb[181].mxu0 }
 0x8f2   :  { %5833 = vrot.lane.b32.xlu0 %v5381_v39, %s14888_s25 }
 0x8f4   :  { %v13037_v30 = vpop.f32.mrb[182].mxu0 }
 0x8f5   :  { %v5466_v35 = vpop.f32.mrb[183].mxu0 }
 0x8f6   :  { %5841 = vrot.lane.b32.xlu1 %v5466_v35, %s14889_s27  ;;  %5865 = vrot.lane.b32.xlu0 %v5721_v25, %s14892_s8 }
 0x8f8   :  { %v13051_v28 = vpop.f32.mrb[184].mxu0 }
 0x8f9   :  { %v5636_v57 = vpop.f32.mrb[185].mxu0 }
 0x8fa   :  { %5857 = vrot.lane.b32.xlu1 %v5636_v57, %s14893_s5 }
 0x8fc   :  { %v13065_v13 = vpop.f32.mrb[186].mxu0 }
 0x8fd   :  { %v5806_v6 = vpop.f32.mrb[187].mxu0 }
 0x8fe   :  { %10745 = vmatprep.mubr.msk.f32.mxu1 %vm1603_vm8, %v5806_v6 }
 0x900   :  { %v17929_v1 = vpop.f32.mrb[188].mxu0 }
 0x901   :  { %v17931_v15 = vpop.f32.mrb[189].mxu0 }
 0x904   :  { %v13079_v19 = vpop.f32.mrb[190].mxu0 }
 0x905   :  { %6648 = vrot.lane.b32.xlu0 %v13079_v19, %s14883_s28  ;;  %v6110_v27 = vpop.f32.mrb[191].mxu0 }
 0x906   :  { %v14766_v2 = vpack.i.bf16 %v6110_v27, %v13016_v61 }
 0x908   :  { %14767 = vrot.lane.b32.xlu1 %v14766_v2, %s14883_s28  ;;  %v13086_v32 = vpop.f32.mrb[192].mxu0 }
 0x909   :  { %v6185_v56 = vpop.f32.mrb[193].mxu0 }
 0x90a   :  { %v14771_v41 = vpack.i.bf16 %v6185_v56, %v13023_v54 }
 0x90c   :  { %6656 = vrot.lane.b32.xlu1 %v13086_v32, %s14887_s24  ;;  %14772 = vrot.lane.b32.xlu0 %v14771_v41, %s14887_s24  ;;  %v13093_v0 = vpop.f32.mrb[194].mxu0 }
 0x90d   :  { %v6260_v51 = vpop.f32.mrb[195].mxu0 }
 0x90e   :  { %v14776_v45 = vpack.i.bf16 %v6260_v51, %v13030_v23 }
 0x910   :  { %14777 = vrot.lane.b32.xlu1 %v14776_v45, %s14888_s25  ;;  %v13100_v47 = vpop.f32.mrb[196].mxu0 }
 0x911   :  { %v6335_v63 = vpop.f32.mrb[197].mxu0 }
 0x912   :  { %v14781_v5 = vpack.i.bf16 %v6335_v63, %v13037_v30 }
 0x914   :  { %14782 = vrot.lane.b32.xlu0 %v14781_v5, %s14889_s27  ;;  %v13107_v44 = vpop.f32.mrb[198].mxu0 }
 0x915   :  { %v6410_v7 = vpop.f32.mrb[199].mxu0 }
 0x916   :  { %v14786_v9 = vpack.i.bf16 %v6410_v7, %v17895_v52 }
 0x918   :  { %14787 = vrot.lane.b32.xlu1 %v14786_v9, %s14891_s21  ;;  %v13114_v62 = vpop.f32.mrb[200].mxu0 }
 0x919   :  { %v6485_v37 = vpop.f32.mrb[201].mxu0 }
 0x91a   :  { %v14791_v31 = vpack.i.bf16 %v6485_v37, %v13051_v28 }
 0x91c   :  { %14792 = vrot.lane.b32.xlu0 %v14791_v31, %s14893_s5  ;;  %v13121_v60 = vpop.f32.mrb[202].mxu0 }
 0x91d   :  { %v6560_v40 = vpop.f32.mrb[203].mxu0 }
 0x91e   :  { %v14796_v17 = vpack.i.bf16 %v6560_v40, %v13058_v20 }
 0x920   :  { %6664 = vrot.lane.b32.xlu0 %v13093_v0, %s14888_s25  ;;  %14797 = vrot.lane.b32.xlu1 %v14796_v17, %s14892_s8  ;;  %v17944_v46 = vpop.f32.mrb[204].mxu0 }
 0x921   :  { %v17946_v49 = vpop.f32.mrb[205].mxu0 }
 0x924   :  { %6680 = vrot.lane.b32.xlu0 %v13107_v44, %s14891_s21  ;;  %6672 = vrot.lane.b32.xlu1 %v13100_v47, %s14889_s27 }
 0x928   :  { %6696 = vrot.lane.b32.xlu0 %v13121_v60, %s14892_s8  ;;  %6688 = vrot.lane.b32.xlu1 %v13114_v62, %s14893_s5 }
 0x958   :  { %v5850_v36 = vpop.permute.xlu0 %5849 }
 0x95c   :  { %v5818_v33 = vpop.permute.xlu0 %5817 }
 0x95d   :  { %v5871_v43 = vsel %vm1603_vm8, %v17898_v18, %v5818_v33 }
 0x960   :  { %v5826_v42 = vpop.permute.xlu1 %5825 }
 0x961   :  { %v5873_v50 = vsel %vm4018_vm12, %v5871_v43, %v5826_v42  ;;  %v6894_v42 = vld [vmem:[%s18847_s12 + $0x88] sm:$0xff]  ;;  %v6877_v43 = vld [vmem:[%s18847_s12] sm:$0xff] }
 0x964   :  { %v5834_v14 = vpop.permute.xlu0 %5833 }
 0x965   :  { %v5875_v52 = vsel %vm4024_vm14, %v5873_v50, %v5834_v14 }
 0x968   :  { %v5842_v3 = vpop.permute.xlu1 %5841  ;;  %v5866_v10 = vpop.permute.xlu0 %5865 }
 0x969   :  { %v5877_v34 = vsel %vm3185_vm10, %v5875_v52, %v5842_v3  ;;  %v6895_v52 = vld [vmem:[%s18847_s12 + $0x90] sm:$0xff]  ;;  %v6896_v3 = vld [vmem:[%s18847_s12 + $0x98] sm:$0xff] }
 0x96a   :  { %v5880_v61 = vsel %vm5879_vm2, %v5877_v34, %v5850_v36  ;;  %v18030_v34 = vpack.c.bf16 %v6896_v3, %v6895_v52 }
 0x96c   :  { %v5858_v20 = vpop.permute.xlu1 %5857 }
 0x96d   :  { %v5883_v59 = vsel %vm5882_vm3, %v5880_v61, %v5858_v20  ;;  %v6880_v61 = vld [vmem:[%s18847_s12 + $0x18] sm:$0xff] }
 0x96e   :  { %v5886_v25 = vsel %vm5885_vm5, %v5883_v59, %v5866_v10  ;;  %v6879_v10 = vld [vmem:[%s18847_s12 + $0x10] sm:$0xff]  ;;  %v6897_v59 = vld [vmem:[%s18847_s12 + $0xa0] sm:$0xff] }
 0x96f   :  { %5959 = vmatmul.mubr.f32.vlgmr.msra.gmra.mrb[174].mxu1 %v5886_v25  ;;  %v18038_v20 = vpack.c.bf16 %v6880_v61, %v6879_v10  ;;  %v6898_v25 = vld [vmem:[%s18847_s12 + $0xa8] sm:$0xff] }
 0x970   :  { %10746 = vmatprep.mubr.msk.f32.mxu1 %vm1603_vm8, %v13065_v13  ;;  %14450 = vmatpush1.bf16.msra.mxu1 %v17834_v48 }
 0x971   :  { %14451 = vmatprep.subr.bf16.mxu1 %v14890_v38 }
 0x974   :  { %14453 = vmatpush1.bf16.msra.mxu1 %v17840_v26 }
 0x975   :  { %14454 = vmatprep.subr.bf16.mxu1 %v14890_v38 }
 0x977   :  { %v6649_v48 = vpop.permute.xlu0 %6648 }
 0x978   :  { %14456 = vmatpush1.bf16.msra.mxu1 %v17850_v16  ;;  %v6701_v41 = vsel %vm1603_vm8, %v17929_v1, %v6649_v48  ;;  %v6881_v48 = vld [vmem:[%s18847_s12 + $0x20] sm:$0xff] }
 0x979   :  { %14457 = vmatprep.subr.bf16.mxu1 %v14890_v38 }
 0x97a   :  { %v14768_v18 = vpop.permute.xlu1 %14767 }
 0x97c   :  { %14459 = vmatpush1.bf16.msra.mxu1 %v17860_v11  ;;  %v14769_v11 = vunpack.i.l.bf16 %v14768_v18 }
 0x97d   :  { %14460 = vmatprep.subr.bf16.mxu1 %v14890_v38 }
 0x97e   :  { %v6657_v29 = vpop.permute.xlu1 %6656  ;;  %v14773_v26 = vpop.permute.xlu0 %14772  ;;  %v5872_v30 = vsel %vm1603_vm8, %v17893_v8, %v14769_v11 }
 0x97f   :  { %v14774_v54 = vunpack.i.l.bf16 %v14773_v26  ;;  %v14775_v28 = vunpack.i.h.bf16 %v14773_v26  ;;  %v6703_v45 = vsel %vm4018_vm12, %v6701_v41, %v6657_v29  ;;  %v6882_v29 = vld [vmem:[%s18847_s12 + $0x28] sm:$0xff]  ;;  %v6907_v41 = vld [vmem:[%s18847_s12 + $0xf0] sm:$0xff] }
 0x980   :  { %14462 = vmatpush1.bf16.msra.mxu1 %v17871_v21  ;;  %v18056_v26 = vpack.c.bf16 %v6882_v29, %v6881_v48 }
 0x981   :  { %14463 = vmatprep.subr.bf16.mxu1 %v14890_v38 }
 0x982   :  { %v14778_v12 = vpop.permute.xlu1 %14777 }
 0x983   :  { %v14779_v21 = vunpack.i.l.bf16 %v14778_v12  ;;  %v14780_v13 = vunpack.i.h.bf16 %v14778_v12  ;;  %v6899_v12 = vld [vmem:[%s18847_s12 + $0xb0] sm:$0xff] }
 0x984   :  { %14465 = vmatpush1.bf16.msra.mxu1 %v17881_v58  ;;  %v14770_v58 = vunpack.i.h.bf16 %v14768_v18  ;;  %v18048_v18 = vpack.c.bf16 %v6898_v25, %v6897_v59 }
 0x985   :  { %14466 = vmatprep.subr.bf16.mxu1 %v14890_v38 }
 0x986   :  { %v14783_v16 = vpop.permute.xlu0 %14782  ;;  %v6700_v2 = vsel %vm1603_vm8, %v17931_v15, %v14770_v58 }
 0x987   :  { %v14784_v23 = vunpack.i.l.bf16 %v14783_v16 }
 0x988   :  { %14468 = vmatpush1.bf16.msra.mxu1 %v17891_v22  ;;  %v5874_v22 = vsel %vm4018_vm12, %v5872_v30, %v14774_v54  ;;  %v6883_v54 = vld [vmem:[%s18847_s12 + $0x30] sm:$0xff]  ;;  %v6885_v30 = vld [vmem:[%s18847_s12 + $0x40] sm:$0xff] }
 0x989   :  { %14469 = vmatprep.subr.bf16.mxu1 %v14890_v38  ;;  %v5876_v6 = vsel %vm4024_vm14, %v5874_v22, %v14779_v21  ;;  %v6903_v22 = vld [vmem:[%s18847_s12 + $0xd0] sm:$0xff] }
 0x98a   :  { %v14788_v55 = vpop.permute.xlu1 %14787  ;;  %v5878_v19 = vsel %vm3185_vm10, %v5876_v6, %v14784_v23  ;;  %v6901_v23 = vld [vmem:[%s18847_s12 + $0xc0] sm:$0xff]  ;;  %v6887_v6 = vld [vmem:[%s18847_s12 + $0x50] sm:$0xff] }
 0x98b   :  { %v14789_v35 = vunpack.i.l.bf16 %v14788_v55  ;;  %v14790_v32 = vunpack.i.h.bf16 %v14788_v55  ;;  %v6884_v55 = vld [vmem:[%s18847_s12 + $0x38] sm:$0xff] }
 0x98c   :  { %14471 = vmatpush1.bf16.msra.mxu1 %v17908_v4  ;;  %v14785_v4 = vunpack.i.h.bf16 %v14783_v16  ;;  %v6900_v16 = vld [vmem:[%s18847_s12 + $0xb8] sm:$0xff]  ;;  %v18074_v21 = vpack.c.bf16 %v6884_v55, %v6883_v54 }
 0x98d   :  { %14472 = vmatprep.subr.bf16.mxu1 %v14890_v38  ;;  %v5881_v56 = vsel %vm5879_vm2, %v5878_v19, %v14789_v35  ;;  %v18066_v11 = vpack.c.bf16 %v6900_v16, %v6899_v12  ;;  %v6886_v35 = vld [vmem:[%s18847_s12 + $0x48] sm:$0xff] }
 0x98e   :  { %v14793_v39 = vpop.permute.xlu0 %14792 }
 0x98f   :  { %v14794_v57 = vunpack.i.l.bf16 %v14793_v39  ;;  %v14795_v0 = vunpack.i.h.bf16 %v14793_v39  ;;  %v6902_v39 = vld [vmem:[%s18847_s12 + $0xc8] sm:$0xff] }
 0x990   :  { %14474 = vmatpush1.bf16.msra.mxu1 %v17919_v24  ;;  %v6702_v24 = vsel %vm4018_vm12, %v6700_v2, %v14775_v28  ;;  %v18084_v58 = vpack.c.bf16 %v6902_v39, %v6901_v23  ;;  %v18092_v28 = vpack.c.bf16 %v6886_v35, %v6885_v30 }
 0x991   :  { %v5884_v51 = vsel %vm5882_vm3, %v5881_v56, %v14794_v57  ;;  %v6704_v47 = vsel %vm4024_vm14, %v6702_v24, %v14780_v13  ;;  %v6904_v57 = vld [vmem:[%s18847_s12 + $0xd8] sm:$0xff] }
 0x992   :  { %v6665_v38 = vpop.permute.xlu0 %6664  ;;  %v14798_v27 = vpop.permute.xlu1 %14797  ;;  %v6706_v15 = vsel %vm3185_vm10, %v6704_v47, %v14785_v4  ;;  %v18102_v13 = vpack.c.bf16 %v6904_v57, %v6903_v22  ;;  %v6888_v4 = vld [vmem:[%s18847_s12 + $0x58] sm:$0xff] }
 0x993   :  { %v14799_v8 = vunpack.i.l.bf16 %v14798_v27  ;;  %v14800_v63 = vunpack.i.h.bf16 %v14798_v27  ;;  %v6705_v44 = vsel %vm4024_vm14, %v6703_v45, %v6665_v38  ;;  %v6708_v1 = vsel %vm5879_vm2, %v6706_v15, %v14790_v32  ;;  %v6905_v38 = vld [vmem:[%s18847_s12 + $0xe0] sm:$0xff]  ;;  %v6906_v27 = vld [vmem:[%s18847_s12 + $0xe8] sm:$0xff]  ;;  %v6908_v24 = vld [vmem:[%s18847_s12 + $0xf8] sm:$0xff] }
 0x994   :  { %v6710_v37 = vsel %vm5882_vm3, %v6708_v1, %v14795_v0  ;;  %v18110_v19 = vpack.c.bf16 %v6888_v4, %v6887_v6  ;;  %v18120_v2 = vpack.c.bf16 %v6906_v27, %v6905_v38  ;;  %v6889_v32 = vld [vmem:[%s18847_s12 + $0x60] sm:$0xff]  ;;  %v18138_v0 = vpack.c.bf16 %v6908_v24, %v6907_v41  ;;  %v6892_v45 = vld [vmem:[%s18847_s12 + $0x78] sm:$0xff] }
 0x995   :  { %v5887_v5 = vsel %vm5885_vm5, %v5884_v51, %v14799_v8  ;;  %v6712_v31 = vsel %vm5885_vm5, %v6710_v37, %v14800_v63  ;;  %v6890_v8 = vld [vmem:[%s18847_s12 + $0x68] sm:$0xff]  ;;  %v6891_v51 = vld [vmem:[%s18847_s12 + $0x70] sm:$0xff]  ;;  %v18153_v63 = vld [vmem:[%s18848_s11] sm:$0xff]  }
 0x996   :  { %v6681_v7 = vpop.permute.xlu0 %6680  ;;  %v6673_v9 = vpop.permute.xlu1 %6672  ;;  %5964 = vmatmul.mubr.f32.gmra.mrb[176].mxu1 %v5887_v5  ;;  %v18128_v56 = vpack.c.bf16 %v6890_v8, %v6889_v32  ;;  %v18146_v47 = vpack.c.bf16 %v6892_v45, %v6891_v51  ;;  %v10923_v5 = vunpack.c.l.bf16 %v18153_v63 }
 0x997   :  { %v6707_v62 = vsel %vm3185_vm10, %v6705_v44, %v6673_v9  ;;  %10765 = vmatprep.mubr.msk.f32.mxu1 %vm1603_vm8, %v17946_v49  ;;  %v6893_v49 = vld [vmem:[%s18847_s12 + $0x80] sm:$0xff] }
 0x998   :  { %v6709_v40 = vsel %vm5879_vm2, %v6707_v62, %v6681_v7  ;;  %v18012_v14 = vpack.c.bf16 %v6894_v42, %v6893_v49  ;;  %13133 = vmatprep.mubr.msk.f32.mxu0 %vm1603_vm8, %v10923_v5 }
 0x99a   :  { %v6697_v60 = vpop.permute.xlu0 %6696  ;;  %v6689_v17 = vpop.permute.xlu1 %6688  ;;  %6785 = vmatmul.mubr.f32.vlgmr.msra.gmra.mrb[178].mxu1 %v6712_v31  ;;  %14512 = vmatprep.subr.bf16.mxu1 %v18012_v14 }
 0x99b   :  { %v6711_v36 = vsel %vm5882_vm3, %v6709_v40, %v6689_v17  ;;  %10766 = vmatprep.mubr.msk.f32.mxu1 %vm1603_vm8, %v17944_v46  ;;  %v6878_v46 = vld [vmem:[%s18847_s12 + $0x8] sm:$0xff] }
 0x99c   :  { %v6713_v33 = vsel %vm5885_vm5, %v6711_v36, %v6697_v60  ;;  %v18020_v50 = vpack.c.bf16 %v6878_v46, %v6877_v43 }
 0x99e   :  { %6790 = vmatmul.mubr.f32.gmra.mrb[180].mxu1 %v6713_v33 }
 0x99f   :  { %14514 = vmatpush3.bf16.msra.mxu1 %v18020_v50 }
 0x9a0   :  { %14516 = vmatprep.subr.bf16.mxu1 %v18030_v34 }
 0x9a3   :  { %14518 = vmatpush3.bf16.msra.mxu1 %v18038_v20 }
 0x9a4   :  { %14520 = vmatprep.subr.bf16.mxu1 %v18048_v18 }
 0x9a7   :  { %14522 = vmatpush3.bf16.msra.mxu1 %v18056_v26 }
 0x9a8   :  { %14524 = vmatprep.subr.bf16.mxu1 %v18066_v11 }
 0x9ab   :  { %14526 = vmatpush3.bf16.msra.mxu1 %v18074_v21 }
 0x9ac   :  { %14528 = vmatprep.subr.bf16.mxu1 %v18084_v58 }
 0x9af   :  { %14530 = vmatpush3.bf16.msra.mxu1 %v18092_v28 }
 0x9b0   :  { %14532 = vmatprep.subr.bf16.mxu1 %v18102_v13 }
 0x9b3   :  { %14534 = vmatpush3.bf16.msra.mxu1 %v18110_v19 }
 0x9b4   :  { %14536 = vmatprep.subr.bf16.mxu1 %v18120_v2 }
 0x9b7   :  { %14538 = vmatpush3.bf16.msra.mxu1 %v18128_v56 }
 0x9b8   :  { %14540 = vmatprep.subr.bf16.mxu1 %v18138_v0 }
 0x9bb   :  { %14542 = vmatpush3.bf16.msra.mxu1 %v18146_v47 }
 0xa42   :  { %v18159_v15 = vpop.f32.mrb[174].mxu1 }
 0xa43   :  { %v5962_v44 = vpop.f32.mrb[175].mxu1  ;;  %v6804_v7 = vmul.f32 %v18159_v15, %v18159_v15  ;;  %v6795_v1 = vsel %vm4018_vm12, %v18159_v15, 0.0 }
 0xa45   :  { %v6806_v40 = vsel %vm4018_vm12, %v6804_v7, 0.0 }
 0xa69   :  { %v18163_v9 = vpop.f32.mrb[176].mxu1 }
 0xa6a   :  { %v6796_v62 = vsel %vm4018_vm12, %v18163_v9, 0.0  ;;  %v6805_v37 = vmul.f32 %v18163_v9, %v18163_v9  ;;  %v5967_v31 = vpop.f32.mrb[177].mxu1 }
 0xa6b   :  { %v6797_v60 = vadd.f32 %v6796_v62, %v6795_v1 }
 0xa6c   :  { %v6807_v17 = vsel %vm4018_vm12, %v6805_v37, 0.0 }
 0xa6d   :  { %v6798_v36 = vrot.slane %v6797_v60, 4  ;;  %v6808_v33 = vadd.f32 %v6807_v17, %v6806_v40  ;;  %v6786_v49 = vpop.f32.mrb[178].mxu1 }
 0xa6e   :  { %v6788_v42 = vpop.f32.mrb[179].mxu1  ;;  %v6825_v52 = vmul.f32 %v6786_v49, %v6786_v49  ;;  %v6815_v61 = vsel %vm4018_vm12, %v6786_v49, 0.0 }
 0xa6f   :  { %v6799_v43 = vadd.f32 %v6798_v36, %v6797_v60  ;;  %v6809_v46 = vrot.slane %v6808_v33, 4  ;;  %v6842_v42 = vld [vmem:[%s18849_s9] sm:$0x1] }
 0xa70   :  { %v6827_v16 = vsel %vm4018_vm12, %v6825_v52, 0.0  ;;  %v6846_v52 = vld [vmem:[%s18850_s10] sm:$0x1] }
 0xa71   :  { %v6810_v3 = vadd.f32 %v6809_v46, %v6808_v33  ;;  %v6791_v10 = vpop.f32.mrb[180].mxu1  ;;  %v6800_v29 = vrot.slane %v6799_v43, 2 }
 0xa72   :  { %v6816_v59 = vsel %vm4018_vm12, %v6791_v10, 0.0  ;;  %v6826_v25 = vmul.f32 %v6791_v10, %v6791_v10  ;;  %v6793_v48 = vpop.f32.mrb[181].mxu1 }
 0xa73   :  { %v6817_v12 = vadd.f32 %v6816_v59, %v6815_v61  ;;  %v6811_v55 = vrot.slane %v6810_v3, 2  ;;  %v6801_v30 = vadd.f32 %v6800_v29, %v6799_v43 }
 0xa74   :  { %v6828_v54 = vsel %vm4018_vm12, %v6826_v25, 0.0 }
 0xa75   :  { %v6818_v23 = vrot.slane %v6817_v12, 4  ;;  %v6829_v39 = vadd.f32 %v6828_v54, %v6827_v16  ;;  %v6812_v57 = vadd.f32 %v6811_v55, %v6810_v3  ;;  %v6802_v38 = vrot.slane %v6801_v30, 1 }
 0xa77   :  { %v6819_v35 = vadd.f32 %v6818_v23, %v6817_v12  ;;  %v6830_v22 = vrot.slane %v6829_v39, 4  ;;  %v6813_v8 = vrot.slane %v6812_v57, 1  ;;  %v6803_v51 = vadd.f32 %v6802_v38, %v6801_v30 }
 0xa79   :  { %v6820_v6 = vrot.slane %v6819_v35, 2  ;;  %v6831_v4 = vadd.f32 %v6830_v22, %v6829_v39  ;;  %v6814_v7 = vadd.f32 %v6813_v8, %v6812_v57  ;;  %v18205_v8 = vld [vmem:[%s18848_s11 + $0x10] sm:$0xff]  }
 0xa7b   :  { %v6821_v27 = vadd.f32 %v6820_v6, %v6819_v35  ;;  %v6832_v32 = vrot.slane %v6831_v4, 2 }
 0xa7d   :  { %v6822_v41 = vrot.slane %v6821_v27, 1  ;;  %v6833_v24 = vadd.f32 %v6832_v32, %v6831_v4 }
 0xa7f   :  { %v6823_v45 = vadd.f32 %v6822_v41, %v6821_v27  ;;  %v6834_v44 = vrot.slane %v6833_v24, 1 }
 0xa81   :  { %v6824_v1 = vadd.f32 %v6823_v45, %v6803_v51  ;;  %v6835_v62 = vadd.f32 %v6834_v44, %v6833_v24  ;;  %v10931_v24 = vunpack.c.l.bf16 %v18205_v8  ;;  %v18220_v51 = vld [vmem:[%s18848_s11 + $0x18] sm:$0xff]   ;;  %v10932_v45 = vunpack.c.h.bf16 %v18205_v8 }
 0xa82   :  { %v10935_v44 = vunpack.c.l.bf16 %v18220_v51 }
 0xa83   :  { %v6836_v37 = vadd.f32 %v6835_v62, %v6814_v7  ;;  %v6837_v31 = vmul.f32 0.125, %v6824_v1  ;;  %v18235_v7 = vld [vmem:[%s18848_s11 + $0x20] sm:$0xff]   ;;  %v10936_v1 = vunpack.c.h.bf16 %v18220_v51 }
 0xa84   :  { %v10939_v62 = vunpack.c.l.bf16 %v18235_v7 }
 0xa85   :  { %v6838_v60 = vmul.f32 0.125, %v6836_v37  ;;  %v6839_v40 = vmul.f32 %v6837_v31, %v6837_v31  ;;  %v18250_v37 = vld [vmem:[%s18848_s11 + $0x28] sm:$0xff]  }
 0xa87   :  { %v6840_v17 = vsub.f32 %v6838_v60, %v6839_v40  ;;  %v10943_v60 = vunpack.c.l.bf16 %v18250_v37  ;;  %v18265_v40 = vld [vmem:[%s18848_s11 + $0x30] sm:$0xff]  }
 0xa89   :  { %v6841_v36 = vmax.f32 %v6840_v17, 0.0  ;;  %v10944_v17 = vunpack.c.h.bf16 %v18250_v37 }
 0xa8b   :  { %v6843_v33 = vadd.f32 1e-05, %v6841_v36  ;;  %v19079_v36 = vunpack.c.l.bf16 %v18265_v40 }
 0xa8d   :  { %14863 = vrsqrt.f32 %v6843_v33  ;;  %v18280_v33 = vld [vmem:[%s18848_s11 + $0x38] sm:$0xff]  }
 0xa97   :  { %v14864_v43 = vpop.eup %14863 }
 0xa98   :  { %v6845_v46 = vmul.f32 %v14864_v43, %v6842_v42  ;;  %v19078_v42 = vunpack.c.h.bf16 %v18265_v40  ;;  %v19075_v43 = vunpack.c.l.bf16 %v18280_v33 }
 0xa9a   :  { %v6847_v3 = vmul.f32 %v6845_v46, %v6837_v31  ;;  %v6853_v61 = vrot.slane %v6845_v46, %v17714_v53  ;;  %v10940_v31 = vunpack.c.h.bf16 %v18235_v7  ;;  %v18295_v46 = vld [vmem:[%s18848_s11 + $0x40] sm:$0xff]  }
 0xa9c   :  { %v6848_v59 = vsub.f32 %v6846_v52, %v6847_v3  ;;  %v6855_v25 = vmul.f32 %v6853_v61, %v18159_v15  ;;  %v6856_v48 = vmul.f32 %v6853_v61, %v18163_v9  ;;  %v6869_v29 = vmul.f32 %v6853_v61, %v6786_v49  ;;  %v18192_v15 = vld [vmem:[%s18848_s11 + $0x8] sm:$0xff]   ;;  %v6909_v52 = vld [vmem:[%s18847_s12 + $0x100] sm:$0xff] }
 0xa9d   :  { %v6870_v12 = vmul.f32 %v6853_v61, %v6791_v10  ;;  %v10924_v49 = vunpack.c.h.bf16 %v18153_v63  ;;  %v10927_v10 = vunpack.c.l.bf16 %v18192_v15  ;;  %v10928_v41 = vunpack.c.h.bf16 %v18192_v15  ;;  %v6910_v3 = vld [vmem:[%s18847_s12 + $0x108] sm:$0xff] }
 0xa9e   :  { %v6861_v16 = vrot.slane %v6848_v59, %v17714_v53  ;;  %v19074_v61 = vunpack.c.h.bf16 %v18280_v33  ;;  %v19077_v59 = vunpack.c.l.bf16 %v18295_v46  ;;  %v19402_v63 = vunpack.c.l.bf16 %v18265_v40 }
 0xa9f   :  { %v19404_v15 = vunpack.c.l.bf16 %v18295_v46 }
 0xaa0   :  { %v6863_v54 = vadd.f32 %v6861_v16, %v6855_v25  ;;  %v6864_v55 = vadd.f32 %v6861_v16, %v6856_v48  ;;  %v6871_v23 = vadd.f32 %v6869_v29, %v6861_v16  ;;  %v6872_v39 = vadd.f32 %v6870_v12, %v6861_v16  ;;  %v6911_v48 = vld [vmem:[%s18847_s12 + $0x110] sm:$0xff]  ;;  %v6912_v29 = vld [vmem:[%s18847_s12 + $0x118] sm:$0xff] }
 0xaa1   :  { %v18313_v25 = vpack.c.bf16 %v6910_v3, %v6909_v52  ;;  %v19076_v12 = vunpack.c.h.bf16 %v18295_v46  ;;  %v18330_v16 = vpack.c.bf16 %v6912_v29, %v6911_v48 }
 0xaa2   :  { %v6865_v30 = vmul.f32 0.2, %v6863_v54  ;;  %v6866_v35 = vmul.f32 0.2, %v6864_v55  ;;  %v6873_v22 = vmul.f32 0.2, %v6871_v23 }
 0xaa3   :  { %v6874_v57 = vmul.f32 0.2, %v6872_v39 }
 0xaa4   :  { %v6867_v6 = vmax.f32 %v6863_v54, %v6865_v30  ;;  %v6868_v4 = vmax.f32 %v6864_v55, %v6866_v35  ;;  %v6875_v38 = vmax.f32 %v6871_v23, %v6873_v22 }
 0xaa5   :  { %v6876_v27 = vmax.f32 %v6872_v39, %v6874_v57 }
 0xaa6   :  { %v18187_v32 = vpack.c.bf16 %v6868_v4, %v6867_v6 }
 0xaa7   :  { %v18194_v9 = vpack.c.bf16 %v6876_v27, %v6875_v38 }
 0xaa8   :  { %14476 = vmatprep.subr.bf16.mxu0 %v18187_v32 }
 0xaa9   :  { %14580 = vmatprep.subr.bf16.mxu1 %v18194_v9  ;;  %14478 = vmatpush3.bf16.msra.mxu0 %v18187_v32 }
 0xaaa   :  { %14480 = vmatprep.subr.bf16.mxu0 %v18187_v32 }
 0xaac   :  { %13134 = vmatmul.mubr.msk.f32.vlgmr.msra.gmra.mrb[206].mxu0 %vm1603_vm8, %v10924_v49 }
 0xaad   :  { %14482 = vmatpush3.bf16.msra.mxu0 %v18187_v32  ;;  %13140 = vmatprep.mubr.msk.f32.mxu0 %vm1603_vm8, %v10927_v10 }
 0xaae   :  { %14484 = vmatprep.subr.bf16.mxu0 %v18187_v32 }
 0xab0   :  { %13141 = vmatmul.mubr.msk.f32.vlgmr.msra.gmra.mrb[208].mxu0 %vm1603_vm8, %v10928_v41 }
 0xab1   :  { %14486 = vmatpush3.bf16.msra.mxu0 %v18187_v32  ;;  %13147 = vmatprep.mubr.msk.f32.mxu0 %vm1603_vm8, %v10931_v24 }
 0xab2   :  { %14488 = vmatprep.subr.bf16.mxu0 %v18187_v32 }
 0xab4   :  { %13148 = vmatmul.mubr.msk.f32.vlgmr.msra.gmra.mrb[210].mxu0 %vm1603_vm8, %v10932_v45 }
 0xab5   :  { %14490 = vmatpush3.bf16.msra.mxu0 %v18187_v32  ;;  %13154 = vmatprep.mubr.msk.f32.mxu0 %vm1603_vm8, %v10935_v44 }
 0xab6   :  { %14492 = vmatprep.subr.bf16.mxu0 %v18187_v32 }
 0xab8   :  { %13155 = vmatmul.mubr.msk.f32.vlgmr.msra.gmra.mrb[212].mxu0 %vm1603_vm8, %v10936_v1 }
 0xab9   :  { %14494 = vmatpush3.bf16.msra.mxu0 %v18187_v32  ;;  %13161 = vmatprep.mubr.msk.f32.mxu0 %vm1603_vm8, %v10939_v62 }
 0xaba   :  { %14496 = vmatprep.subr.bf16.mxu0 %v18187_v32 }
 0xabc   :  { %13162 = vmatmul.mubr.msk.f32.vlgmr.msra.gmra.mrb[214].mxu0 %vm1603_vm8, %v10940_v31 }
 0xabd   :  { %14498 = vmatpush3.bf16.msra.mxu0 %v18187_v32  ;;  %13168 = vmatprep.mubr.msk.f32.mxu0 %vm1603_vm8, %v10943_v60 }
 0xabe   :  { %14500 = vmatprep.subr.bf16.mxu0 %v18187_v32 }
 0xac0   :  { %13169 = vmatmul.mubr.msk.f32.vlgmr.msra.gmra.mrb[216].mxu0 %vm1603_vm8, %v10944_v17 }
 0xac1   :  { %14502 = vmatpush3.bf16.msra.mxu0 %v18187_v32  ;;  %13175 = vmatprep.mubr.msk.f32.mxu0 %vm1603_vm8, %v19079_v36 }
 0xac2   :  { %14504 = vmatprep.subr.bf16.mxu0 %v18187_v32 }
 0xac4   :  { %13176 = vmatmul.mubr.msk.f32.vlgmr.msra.gmra.mrb[218].mxu0 %vm1603_vm8, %v19078_v42 }
 0xac5   :  { %14506 = vmatpush3.bf16.msra.mxu0 %v18187_v32  ;;  %13182 = vmatprep.mubr.msk.f32.mxu0 %vm1603_vm8, %v19075_v43 }
 0xac6   :  { %14508 = vmatprep.subr.bf16.mxu0 %v18187_v32 }
 0xac8   :  { %13183 = vmatmul.mubr.msk.f32.vlgmr.msra.gmra.mrb[220].mxu0 %vm1603_vm8, %v19074_v61 }
 0xac9   :  { %14510 = vmatpush3.bf16.msra.mxu0 %v18187_v32  ;;  %13189 = vmatprep.mubr.msk.f32.mxu0 %vm1603_vm8, %v19077_v59 }
 0xaca   :  { %14544 = vmatprep.subr.bf16.mxu0 %v18313_v25 }
 0xacc   :  { %13190 = vmatmul.mubr.msk.f32.vlgmr.msra.gmra.mrb[222].mxu0 %vm1603_vm8, %v19076_v12 }
 0xacd   :  { %14546 = vmatpush3.bf16.msra.mxu0 %v18313_v25 }
 0xace   :  { %14548 = vmatprep.subr.bf16.mxu0 %v18330_v16 }
 0xad1   :  { %14550 = vmatpush3.bf16.msra.mxu0 %v18330_v16 }
 0xad2   :  { %14552 = vmatprep.subr.bf16.mxu0 %v18194_v9 }
 0xb7f   :  { %v18339_v54 = vpop.f32.mrb[206].mxu0 }
 0xb80   :  { %v18341_v55 = vpop.f32.mrb[207].mxu0 }
 0xb83   :  { %v13142_v23 = vpop.f32.mrb[208].mxu0 }
 0xb84   :  { %v7074_v39 = vpop.f32.mrb[209].mxu0 }
 0xb87   :  { %v13149_v30 = vpop.f32.mrb[210].mxu0 }
 0xb88   :  { %v7159_v35 = vpop.f32.mrb[211].mxu0 }
 0xb8b   :  { %v13156_v22 = vpop.f32.mrb[212].mxu0 }
 0xb8c   :  { %v7244_v57 = vpop.f32.mrb[213].mxu0 }
 0xb8f   :  { %v18343_v6 = vpop.f32.mrb[214].mxu0 }
 0xb90   :  { %v18345_v4 = vpop.f32.mrb[215].mxu0 }
 0xb93   :  { %v13170_v38 = vpop.f32.mrb[216].mxu0 }
 0xb94   :  { %v14811_v27 = vpack.i.bf16 %v13142_v23, %v13170_v38  ;;  %v7414_v32 = vpop.f32.mrb[217].mxu0 }
 0xb95   :  { %v14801_v52 = vpack.i.bf16 %v7074_v39, %v7414_v32 }
 0xb97   :  { %14802 = vrot.lane.b32.xlu1 %v14801_v52, %s14887_s24  ;;  %v13177_v3 = vpop.f32.mrb[218].mxu0 }
 0xb98   :  { %v14821_v48 = vpack.i.bf16 %v13149_v30, %v13177_v3  ;;  %v7499_v29 = vpop.f32.mrb[219].mxu0 }
 0xb99   :  { %v14806_v61 = vpack.i.bf16 %v7159_v35, %v7499_v29 }
 0xb9b   :  { %14807 = vrot.lane.b32.xlu0 %v14806_v61, %s14889_s27  ;;  %v13184_v43 = vpop.f32.mrb[220].mxu0 }
 0xb9c   :  { %v14826_v12 = vpack.i.bf16 %v13156_v22, %v13184_v43  ;;  %v7584_v59 = vpop.f32.mrb[221].mxu0 }
 0xb9d   :  { %v14816_v42 = vpack.i.bf16 %v7244_v57, %v7584_v59 }
 0xb9f   :  { %14812 = vrot.lane.b32.xlu0 %v14811_v27, %s14887_s24  ;;  %14817 = vrot.lane.b32.xlu1 %v14816_v42, %s14893_s5  ;;  %v13191_v36 = vpop.f32.mrb[222].mxu0 }
 0xba0   :  { %v7669_v23 = vpop.f32.mrb[223].mxu0 }
 0xba1   :  { %13200 = vmatprep.mubr.msk.f32.mxu0 %vm4018_vm12, %v7669_v23 }
 0xba2   :  { %13201 = vmatmul.mubr.msk.f32.vlgmr.msra.gmra.mrb[224].mxu0 %vm4018_vm12, %v13191_v36 }
 0xba3   :  { %14554 = vmatpush3.bf16.msra.mxu0 %v18194_v9  ;;  %14827 = vrot.lane.b32.xlu0 %v14826_v12, %s14893_s5 }
 0xba4   :  { %14822 = vrot.lane.b32.xlu1 %v14821_v48, %s14889_s27  ;;  %14556 = vmatprep.subr.bf16.mxu0 %v18194_v9 }
 0xba5   :  { %13207 = vmatprep.mubr.msk.f32.mxu0 %vm1603_vm8, %v10923_v5  ;;  %v19403_v5 = vunpack.c.h.bf16 %v18265_v40 }
 0xba6   :  { %13208 = vmatmul.mubr.msk.f32.vlgmr.msra.gmra.mrb[226].mxu0 %vm1603_vm8, %v10924_v49  ;;  %v19405_v49 = vunpack.c.h.bf16 %v18295_v46 }
 0xba7   :  { %14558 = vmatpush3.bf16.msra.mxu0 %v18194_v9  ;;  %13214 = vmatprep.mubr.msk.f32.mxu0 %vm1603_vm8, %v10927_v10 }
 0xba8   :  { %14560 = vmatprep.subr.bf16.mxu0 %v18194_v9 }
 0xbaa   :  { %13215 = vmatmul.mubr.msk.f32.vlgmr.msra.gmra.mrb[228].mxu0 %vm1603_vm8, %v10928_v41 }
 0xbab   :  { %14562 = vmatpush3.bf16.msra.mxu0 %v18194_v9  ;;  %13221 = vmatprep.mubr.msk.f32.mxu0 %vm1603_vm8, %v10931_v24 }
 0xbac   :  { %14564 = vmatprep.subr.bf16.mxu0 %v18194_v9 }
 0xbae   :  { %13222 = vmatmul.mubr.msk.f32.vlgmr.msra.gmra.mrb[230].mxu0 %vm1603_vm8, %v10932_v45 }
 0xbaf   :  { %14566 = vmatpush3.bf16.msra.mxu0 %v18194_v9  ;;  %13228 = vmatprep.mubr.msk.f32.mxu0 %vm1603_vm8, %v10935_v44 }
 0xbb0   :  { %14568 = vmatprep.subr.bf16.mxu0 %v18194_v9 }
 0xbb2   :  { %13229 = vmatmul.mubr.msk.f32.vlgmr.msra.gmra.mrb[232].mxu0 %vm1603_vm8, %v10936_v1 }
 0xbb3   :  { %14570 = vmatpush3.bf16.msra.mxu0 %v18194_v9  ;;  %13235 = vmatprep.mubr.msk.f32.mxu0 %vm1603_vm8, %v10939_v62 }
 0xbb4   :  { %14572 = vmatprep.subr.bf16.mxu0 %v18194_v9 }
 0xbb6   :  { %13236 = vmatmul.mubr.msk.f32.vlgmr.msra.gmra.mrb[234].mxu0 %vm1603_vm8, %v10940_v31 }
 0xbb7   :  { %14574 = vmatpush3.bf16.msra.mxu0 %v18194_v9  ;;  %13242 = vmatprep.mubr.msk.f32.mxu0 %vm1603_vm8, %v10943_v60 }
 0xbb8   :  { %14576 = vmatprep.subr.bf16.mxu0 %v18194_v9 }
 0xbba   :  { %13243 = vmatmul.mubr.msk.f32.vlgmr.msra.gmra.mrb[236].mxu0 %vm1603_vm8, %v10944_v17 }
 0xbbb   :  { %14578 = vmatpush3.bf16.msra.mxu0 %v18194_v9  ;;  %13249 = vmatprep.mubr.msk.f32.mxu0 %vm1603_vm8, %v19402_v63 }
 0xbbc   :  { %14584 = vmatprep.subr.bf16.mxu0 %v18194_v9 }
 0xbbe   :  { %13250 = vmatmul.mubr.msk.f32.vlgmr.msra.gmra.mrb[238].mxu0 %vm1603_vm8, %v19403_v5 }
 0xbbf   :  { %14586 = vmatpush3.bf16.msra.mxu0 %v18194_v9  ;;  %13263 = vmatprep.mubr.msk.f32.mxu0 %vm1603_vm8, %v19404_v15 }
 0xbc0   :  { %14620 = vmatprep.subr.bf16.mxu0 %v18313_v25 }
 0xbc2   :  { %13264 = vmatmul.mubr.msk.f32.vlgmr.msra.gmra.mrb[240].mxu0 %vm1603_vm8, %v19405_v49 }
 0xbc3   :  { %14622 = vmatpush3.bf16.msra.mxu0 %v18313_v25 }
 0xbc4   :  { %14624 = vmatprep.subr.bf16.mxu0 %v18330_v16 }
 0xbc7   :  { %14626 = vmatpush3.bf16.msra.mxu0 %v18330_v16 }
 0xc09   :  { %v14803_v10 = vpop.permute.xlu1 %14802 }
 0xc0a   :  { %v14805_v41 = vunpack.i.h.bf16 %v14803_v10  ;;  %v14804_v24 = vunpack.i.l.bf16 %v14803_v10 }
 0xc0c   :  { %v7726_v1 = vsel %vm4018_vm12, %v18341_v55, %v14805_v41  ;;  %v7732_v31 = vsel %vm4018_vm12, %v18345_v4, %v14804_v24 }
 0xc0d   :  { %v14808_v8 = vpop.permute.xlu0 %14807 }
 0xc0e   :  { %v14810_v51 = vunpack.i.h.bf16 %v14808_v8  ;;  %v14809_v45 = vunpack.i.l.bf16 %v14808_v8 }
 0xc10   :  { %v7728_v60 = vsel %vm3185_vm10, %v7726_v1, %v14810_v51  ;;  %v7734_v40 = vsel %vm3185_vm10, %v7732_v31, %v14809_v45 }
 0xc11   :  { %v14813_v44 = vpop.permute.xlu0 %14812  ;;  %v14818_v7 = vpop.permute.xlu1 %14817 }
 0xc12   :  { %v14820_v62 = vunpack.i.h.bf16 %v14818_v7  ;;  %v14819_v37 = vunpack.i.l.bf16 %v14818_v7  ;;  %v14815_v17 = vunpack.i.h.bf16 %v14813_v44  ;;  %v14814_v36 = vunpack.i.l.bf16 %v14813_v44 }
 0xc14   :  { %v7736_v42 = vsel %vm5882_vm3, %v7734_v40, %v14819_v37  ;;  %v7730_v43 = vsel %vm5882_vm3, %v7728_v60, %v14820_v62  ;;  %v7733_v55 = vsel %vm4018_vm12, %v18343_v6, %v14814_v36  ;;  %v7727_v39 = vsel %vm4018_vm12, %v18339_v54, %v14815_v17 }
 0xc15   :  { %v14828_v46 = vpop.permute.xlu0 %14827  ;;  %7808 = vmatprep.mubr.f32.mxu1 %v7736_v42  ;;  %v19407_v6 = vunpack.c.h.bf16 %v18280_v33 }
 0xc16   :  { %v14830_v61 = vunpack.i.h.bf16 %v14828_v46  ;;  %v14829_v59 = vunpack.i.l.bf16 %v14828_v46  ;;  %v14823_v25 = vpop.permute.xlu1 %14822  ;;  %7809 = vmatmul.mubr.f32.vlgmr.msra.gmra.mrb[182].mxu1 %v7730_v43 }
 0xc17   :  { %v14825_v12 = vunpack.i.h.bf16 %v14823_v25  ;;  %v14824_v16 = vunpack.i.l.bf16 %v14823_v25  ;;  %14582 = vmatpush3.bf16.msra.mxu1 %v18194_v9  ;;  %v19406_v9 = vunpack.c.l.bf16 %v18280_v33 }
 0xc18   :  { %14588 = vmatprep.subr.bf16.mxu1 %v18012_v14 }
 0xc19   :  { %v7735_v30 = vsel %vm3185_vm10, %v7733_v55, %v14824_v16  ;;  %v7729_v35 = vsel %vm3185_vm10, %v7727_v39, %v14825_v12 }
 0xc1a   :  { %v7737_v22 = vsel %vm5882_vm3, %v7735_v30, %v14829_v59  ;;  %v7731_v57 = vsel %vm5882_vm3, %v7729_v35, %v14830_v61 }
 0xc1b   :  { %7813 = vmatprep.mubr.f32.mxu1 %v7737_v22 }
 0xc1c   :  { %7814 = vmatmul.mubr.f32.gmra.mrb[184].mxu1 %v7731_v57 }
 0xc1d   :  { %13256 = vmatprep.mubr.msk.f32.mxu1 %vm1603_vm8, %v19406_v9 }
 0xc20   :  { %13257 = vmatmul.mubr.msk.f32.vlgmr.msra.gmra.mrb[186].mxu1 %vm1603_vm8, %v19407_v6 }
 0xc21   :  { %14590 = vmatpush3.bf16.msra.mxu1 %v18020_v50 }
 0xc22   :  { %14592 = vmatprep.subr.bf16.mxu1 %v18030_v34 }
 0xc25   :  { %14594 = vmatpush3.bf16.msra.mxu1 %v18038_v20 }
 0xc26   :  { %14596 = vmatprep.subr.bf16.mxu1 %v18048_v18 }
 0xc29   :  { %14598 = vmatpush3.bf16.msra.mxu1 %v18056_v26 }
 0xc2a   :  { %14600 = vmatprep.subr.bf16.mxu1 %v18066_v11 }
 0xc2d   :  { %14602 = vmatpush3.bf16.msra.mxu1 %v18074_v21 }
 0xc2e   :  { %14604 = vmatprep.subr.bf16.mxu1 %v18084_v58 }
 0xc31   :  { %14606 = vmatpush3.bf16.msra.mxu1 %v18092_v28 }
 0xc32   :  { %14608 = vmatprep.subr.bf16.mxu1 %v18102_v13 }
 0xc35   :  { %14610 = vmatpush3.bf16.msra.mxu1 %v18110_v19 }
 0xc36   :  { %14612 = vmatprep.subr.bf16.mxu1 %v18120_v2 }
 0xc39   :  { %14614 = vmatpush3.bf16.msra.mxu1 %v18128_v56 }
 0xc3a   :  { %14616 = vmatprep.subr.bf16.mxu1 %v18138_v0 }
 0xc3d   :  { %14618 = vmatpush3.bf16.msra.mxu1 %v18146_v47 }
 0xc75   :  { %v13202_v14 = vpop.f32.mrb[224].mxu0 }
 0xc76   :  { %v7885_v50 = vpop.f32.mrb[225].mxu0 }
 0xc79   :  { %v18461_v34 = vpop.f32.mrb[226].mxu0 }
 0xc7a   :  { %v7960_v20 = vpop.f32.mrb[227].mxu0 }
 0xc7d   :  { %v13216_v18 = vpop.f32.mrb[228].mxu0 }
 0xc7e   :  { %v8035_v26 = vpop.f32.mrb[229].mxu0 }
 0xc81   :  { %v13223_v11 = vpop.f32.mrb[230].mxu0 }
 0xc82   :  { %v8110_v21 = vpop.f32.mrb[231].mxu0 }
 0xc85   :  { %v13230_v58 = vpop.f32.mrb[232].mxu0 }
 0xc86   :  { %v8185_v28 = vpop.f32.mrb[233].mxu0 }
 0xc89   :  { %v18463_v13 = vpop.f32.mrb[234].mxu0 }
 0xc8a   :  { %v8260_v19 = vpop.f32.mrb[235].mxu0 }
 0xc8d   :  { %v13244_v2 = vpop.f32.mrb[236].mxu0 }
 0xc8e   :  { %v14841_v56 = vpack.i.bf16 %v13216_v18, %v13244_v2  ;;  %v8335_v33 = vpop.f32.mrb[237].mxu0 }
 0xc8f   :  { %v14831_v0 = vpack.i.bf16 %v8035_v26, %v8335_v33 }
 0xc91   :  { %14832 = vrot.lane.b32.xlu1 %v14831_v0, %s14887_s24  ;;  %v13251_v47 = vpop.f32.mrb[238].mxu0 }
 0xc92   :  { %v14851_v54 = vpack.i.bf16 %v13223_v11, %v13251_v47  ;;  %v8410_v4 = vpop.f32.mrb[239].mxu0 }
 0xc93   :  { %v14836_v38 = vpack.i.bf16 %v8110_v21, %v8410_v4 }
 0xc95   :  { %14837 = vrot.lane.b32.xlu0 %v14836_v38, %s14889_s27  ;;  %v13265_v52 = vpop.f32.mrb[240].mxu0 }
 0xc96   :  { %v8560_v29 = vpop.f32.mrb[241].mxu0 }
 0xc97   :  { %13274 = vmatprep.mubr.msk.f32.mxu0 %vm4018_vm12, %v8560_v29 }
 0xc98   :  { %13275 = vmatmul.mubr.msk.f32.vlgmr.msra.gmra.mrb[242].mxu0 %vm4018_vm12, %v13265_v52 }
 0xc99   :  { %14842 = vrot.lane.b32.xlu0 %v14841_v56, %s14887_s24  ;;  %v18504_v56 = vld [vmem:[%s18851_s15] sm:$0xff]  }
 0xce9   :  { %v12397_v27 = vpop.f32.mrb[182].mxu1 }
 0xcea   :  { %v12398_v32 = vpop.f32.mrb[183].mxu1 }
 0xceb   :  { %v12399_v3 = vadd.f32 %v12398_v32, %v12397_v27 }
 0xced   :  { %v18468_v48 = vadd.f32 %v12399_v3, %v7885_v50 }
 0xcef   :  { %v12400_v23 = vpop.f32.mrb[184].mxu1  ;;  %v8794_v15 = vmul.f32 %v18468_v48, %v18468_v48  ;;  %v8785_v24 = vsel %vm1567_vm4, %v18468_v48, 0.0 }
 0xcf0   :  { %v12401_v63 = vpop.f32.mrb[185].mxu1 }
 0xcf1   :  { %v12402_v5 = vadd.f32 %v12401_v63, %v12400_v23  ;;  %v8796_v1 = vsel %vm1567_vm4, %v8794_v15, 0.0 }
 0xcf3   :  { %v18474_v49 = vadd.f32 %v13202_v14, %v12402_v5  ;;  %v13258_v10 = vpop.f32.mrb[186].mxu1 }
 0xcf4   :  { %v14856_v8 = vpack.i.bf16 %v13230_v58, %v13258_v10  ;;  %v8485_v41 = vpop.f32.mrb[187].mxu1 }
 0xcf5   :  { %v8786_v51 = vsel %vm1567_vm4, %v18474_v49, 0.0  ;;  %v8795_v45 = vmul.f32 %v18474_v49, %v18474_v49  ;;  %v14846_v44 = vpack.i.bf16 %v8185_v28, %v8485_v41 }
 0xcf6   :  { %v8787_v7 = vadd.f32 %v8786_v51, %v8785_v24  ;;  %14857 = vrot.lane.b32.xlu0 %v14856_v8, %s14893_s5 }
 0xcf7   :  { %v8797_v62 = vsel %vm1567_vm4, %v8795_v45, 0.0  ;;  %14847 = vrot.lane.b32.xlu1 %v14846_v44, %s14893_s5 }
 0xcf8   :  { %v8798_v37 = vadd.f32 %v8797_v62, %v8796_v1  ;;  %v8788_v4 = vrot.slane %v8787_v7, 4 }
 0xcfa   :  { %v8799_v32 = vrot.slane %v8798_v37, 4  ;;  %v8789_v29 = vadd.f32 %v8788_v4, %v8787_v7 }
 0xcfb   :  { %14852 = vrot.lane.b32.xlu1 %v14851_v54, %s14889_s27 }
 0xcfc   :  { %v8800_v5 = vadd.f32 %v8799_v32, %v8798_v37  ;;  %v8790_v41 = vrot.slane %v8789_v29, 2 }
 0xcfe   :  { %v8801_v44 = vrot.slane %v8800_v5, 2 }
 0xd03   :  { %v14833_v60 = vpop.permute.xlu1 %14832 }
 0xd04   :  { %v14835_v40 = vunpack.i.h.bf16 %v14833_v60  ;;  %v14834_v17 = vunpack.i.l.bf16 %v14833_v60 }
 0xd06   :  { %v8617_v61 = vsel %vm4018_vm12, %v7960_v20, %v14835_v40  ;;  %v8623_v12 = vsel %vm4018_vm12, %v8260_v19, %v14834_v17  ;;  %v8802_v40 = vadd.f32 %v8801_v44, %v8800_v5  ;;  %v8869_v44 = vld [vmem:[%s18854_s16 + $0x10] sm:$0xff] }
 0xd07   :  { %v14838_v31 = vpop.permute.xlu0 %14837 }
 0xd08   :  { %v14840_v36 = vunpack.i.h.bf16 %v14838_v31  ;;  %v14839_v42 = vunpack.i.l.bf16 %v14838_v31  ;;  %v8791_v31 = vadd.f32 %v8790_v41, %v8789_v29 }
 0xd0a   :  { %v8625_v39 = vsel %vm3185_vm10, %v8623_v12, %v14839_v42  ;;  %v8619_v30 = vsel %vm3185_vm10, %v8617_v61, %v14840_v36  ;;  %v8792_v36 = vrot.slane %v8791_v31, 1 }
 0xd0b   :  { %v14843_v43 = vpop.permute.xlu0 %14842 }
 0xd0c   :  { %v14845_v16 = vunpack.i.h.bf16 %v14843_v43  ;;  %v14844_v55 = vunpack.i.l.bf16 %v14843_v43 }
 0xd0e   :  { %v8624_v18 = vsel %vm4018_vm12, %v18463_v13, %v14844_v55  ;;  %v8618_v26 = vsel %vm4018_vm12, %v18461_v34, %v14845_v16  ;;  %v18509_v34 = vld [vmem:[%s18851_s15 + $0x38] sm:$0xff]   ;;  %v10959_v13 = vunpack.c.l.bf16 %v18504_v56 }
 0xd0f   :  { %v10987_v33 = vunpack.c.l.bf16 %v18509_v34 }
 0xd10   :  { %13281 = vmatprep.mubr.msk.f32.mxu0 %vm1603_vm8, %v10959_v13 }
 0xd68   :  { %v14858_v35 = vpop.permute.xlu0 %14857 }
 0xd69   :  { %v14848_v46 = vpop.permute.xlu1 %14847  ;;  %v14860_v50 = vunpack.i.h.bf16 %v14858_v35  ;;  %v14859_v20 = vunpack.i.l.bf16 %v14858_v35 }
 0xd6a   :  { %v14850_v59 = vunpack.i.h.bf16 %v14848_v46  ;;  %v14849_v25 = vunpack.i.l.bf16 %v14848_v46  ;;  %v8803_v46 = vrot.slane %v8802_v40, 1 }
 0xd6b   :  { %v13276_v19 = vpop.f32.mrb[242].mxu0 }
 0xd6c   :  { %v8627_v22 = vsel %vm5882_vm3, %v8625_v39, %v14849_v25  ;;  %v8621_v57 = vsel %vm5882_vm3, %v8619_v30, %v14850_v59  ;;  %v8776_v2 = vpop.f32.mrb[243].mxu0  ;;  %v8793_v25 = vadd.f32 %v8792_v36, %v8791_v31  ;;  %v8804_v55 = vadd.f32 %v8803_v46, %v8802_v40  ;;  %v8871_v40 = vld [vmem:[%s18854_s16 + $0x20] sm:$0xff]  ;;  %v8873_v46 = vld [vmem:[%s18854_s16 + $0x30] sm:$0xff] }
 0xd6d   :  { %v14853_v9 = vpop.permute.xlu1 %14852  ;;  %8699 = vmatprep.mubr.f32.mxu1 %v8627_v22 }
 0xd6e   :  { %v14855_v6 = vunpack.i.h.bf16 %v14853_v9  ;;  %v14854_v14 = vunpack.i.l.bf16 %v14853_v9  ;;  %8700 = vmatmul.mubr.f32.vlgmr.msra.gmra.mrb[188].mxu1 %v8621_v57 }
 0xd70   :  { %v8626_v11 = vsel %vm3185_vm10, %v8624_v18, %v14854_v14  ;;  %v8620_v21 = vsel %vm3185_vm10, %v8618_v26, %v14855_v6 }
 0xd71   :  { %v8628_v58 = vsel %vm5882_vm3, %v8626_v11, %v14859_v20  ;;  %v8622_v28 = vsel %vm5882_vm3, %v8620_v21, %v14860_v50  ;;  %v8832_v20 = vld [vmem:[%s18852_s13] sm:$0x1] }
 0xd72   :  { %8704 = vmatprep.mubr.f32.mxu1 %v8628_v58  ;;  %v8836_v11 = vld [vmem:[%s18853_s14] sm:$0x1] }
 0xd73   :  { %8705 = vmatmul.mubr.f32.gmra.mrb[190].mxu1 %v8622_v28 }
 0xd74   :  { %13330 = vmatprep.mubr.msk.f32.mxu1 %vm1603_vm8, %v10987_v33 }
 0xe41   :  { %v12477_v0 = vpop.f32.mrb[188].mxu1 }
 0xe42   :  { %v12478_v47 = vpop.f32.mrb[189].mxu1 }
 0xe43   :  { %v12479_v54 = vadd.f32 %v12478_v47, %v12477_v0 }
 0xe45   :  { %v8777_v38 = vadd.f32 %v12479_v54, %v8776_v2 }
 0xe46   :  { %v12480_v27 = vpop.f32.mrb[190].mxu1 }
 0xe47   :  { %v12481_v52 = vpop.f32.mrb[191].mxu1  ;;  %v8815_v23 = vmul.f32 %v8777_v38, %v8777_v38  ;;  %v8805_v15 = vsel %vm1567_vm4, %v8777_v38, 0.0 }
 0xe48   :  { %v12482_v3 = vadd.f32 %v12481_v52, %v12480_v27 }
 0xe49   :  { %v8817_v51 = vsel %vm1567_vm4, %v8815_v23, 0.0 }
 0xe4a   :  { %v8782_v63 = vadd.f32 %v13276_v19, %v12482_v3 }
 0xe4c   :  { %v8806_v10 = vsel %vm1567_vm4, %v8782_v63, 0.0  ;;  %v8816_v8 = vmul.f32 %v8782_v63, %v8782_v63 }
 0xe4d   :  { %v8807_v24 = vadd.f32 %v8806_v10, %v8805_v15  ;;  %v8867_v15 = vld [vmem:[%s18854_s16] sm:$0xff] }
 0xe4e   :  { %v8818_v45 = vsel %vm1567_vm4, %v8816_v8, 0.0 }
 0xe4f   :  { %v8808_v1 = vrot.slane %v8807_v24, 4  ;;  %v8819_v62 = vadd.f32 %v8818_v45, %v8817_v51  ;;  %v10960_v51 = vunpack.c.h.bf16 %v18504_v56  ;;  %v10988_v45 = vunpack.c.h.bf16 %v18509_v34 }
 0xe51   :  { %v8809_v60 = vadd.f32 %v8808_v1, %v8807_v24  ;;  %v8820_v7 = vrot.slane %v8819_v62, 4  ;;  %v18548_v24 = vld [vmem:[%s18851_s15 + $0x8] sm:$0xff]   ;;  %v8870_v1 = vld [vmem:[%s18854_s16 + $0x18] sm:$0xff] }
 0xe52   :  { %v18565_v31 = vpack.c.bf16 %v8870_v1, %v8869_v44 }
 0xe53   :  { %v8810_v17 = vrot.slane %v8809_v60, 2  ;;  %v8821_v37 = vadd.f32 %v8820_v7, %v8819_v62  ;;  %v10963_v62 = vunpack.c.l.bf16 %v18548_v24  ;;  %v10964_v7 = vunpack.c.h.bf16 %v18548_v24 }
 0xe55   :  { %v8811_v42 = vadd.f32 %v8810_v17, %v8809_v60  ;;  %v8822_v43 = vrot.slane %v8821_v37, 2  ;;  %v18570_v60 = vld [vmem:[%s18851_s15 + $0x10] sm:$0xff]   ;;  %v8872_v17 = vld [vmem:[%s18854_s16 + $0x28] sm:$0xff] }
 0xe56   :  { %v18593_v36 = vpack.c.bf16 %v8872_v17, %v8871_v40 }
 0xe57   :  { %v8812_v61 = vrot.slane %v8811_v42, 1  ;;  %v8823_v59 = vadd.f32 %v8822_v43, %v8821_v37  ;;  %v10967_v37 = vunpack.c.l.bf16 %v18570_v60  ;;  %v10968_v43 = vunpack.c.h.bf16 %v18570_v60 }
 0xe59   :  { %v8813_v12 = vadd.f32 %v8812_v61, %v8811_v42  ;;  %v8824_v16 = vrot.slane %v8823_v59, 1  ;;  %v18598_v42 = vld [vmem:[%s18851_s15 + $0x18] sm:$0xff]  }
 0xe5a   :  { %v8874_v61 = vld [vmem:[%s18854_s16 + $0x38] sm:$0xff] }
 0xe5b   :  { %v8814_v39 = vadd.f32 %v8813_v12, %v8793_v25  ;;  %v8825_v30 = vadd.f32 %v8824_v16, %v8823_v59  ;;  %v10971_v59 = vunpack.c.l.bf16 %v18598_v42  ;;  %v18618_v25 = vpack.c.bf16 %v8874_v61, %v8873_v46  ;;  %v18623_v12 = vld [vmem:[%s18851_s15 + $0x20] sm:$0xff]  }
 0xe5c   :  { %v10972_v16 = vunpack.c.h.bf16 %v18598_v42 }
 0xe5d   :  { %v8826_v35 = vadd.f32 %v8825_v30, %v8804_v55  ;;  %v8827_v22 = vmul.f32 0.5, %v8814_v39  ;;  %v10975_v55 = vunpack.c.l.bf16 %v18623_v12  ;;  %v10976_v39 = vunpack.c.h.bf16 %v18623_v12  ;;  %v8875_v30 = vld [vmem:[%s18854_s16 + $0x40] sm:$0xff] }
 0xe5f   :  { %v8828_v57 = vmul.f32 0.5, %v8826_v35  ;;  %v8829_v9 = vmul.f32 %v8827_v22, %v8827_v22  ;;  %v11021_v35 = vld [vmem:[%s18851_s15 + $0x28] sm:$0xff]  }
 0xe61   :  { %v8830_v6 = vsub.f32 %v8828_v57, %v8829_v9  ;;  %v10979_v57 = vunpack.c.l.bf16 %v11021_v35  ;;  %v10980_v9 = vunpack.c.h.bf16 %v11021_v35 }
 0xe63   :  { %v8831_v14 = vmax.f32 %v8830_v6, 0.0 }
 0xe65   :  { %v8833_v50 = vadd.f32 1e-05, %v8831_v14  ;;  %v18662_v14 = vld [vmem:[%s18851_s15 + $0x40] sm:$0xff]  }
 0xe67   :  { %14865 = vrsqrt.f32 %v8833_v50 }
 0xe71   :  { %v14866_v18 = vpop.eup %14865 }
 0xe72   :  { %v8835_v26 = vmul.f32 %v14866_v18, %v8832_v20  ;;  %v10991_v20 = vunpack.c.l.bf16 %v18662_v14  ;;  %v10992_v18 = vunpack.c.h.bf16 %v18662_v14 }
 0xe74   :  { %v8837_v21 = vmul.f32 %v8835_v26, %v8827_v22  ;;  %v8843_v58 = vrot.slane %v8835_v26, %v17714_v53  ;;  %v18650_v22 = vld [vmem:[%s18851_s15 + $0x30] sm:$0xff]   ;;  %s14894_s15 = smov 1  }
 0xe75   :  { %v10983_v6 = vunpack.c.l.bf16 %v18650_v22  ;;  %v10984_v50 = vunpack.c.h.bf16 %v18650_v22 }
 0xe76   :  { %v8838_v28 = vsub.f32 %v8836_v11, %v8837_v21  ;;  %v8845_v19 = vmul.f32 %v8843_v58, %v18468_v48  ;;  %v8846_v2 = vmul.f32 %v8843_v58, %v18474_v49  ;;  %v8859_v0 = vmul.f32 %v8843_v58, %v8777_v38  ;;  %v8868_v48 = vld [vmem:[%s18854_s16 + $0x8] sm:$0xff] }
 0xe77   :  { %v8860_v47 = vmul.f32 %v8843_v58, %v8782_v63  ;;  %v18541_v8 = vpack.c.bf16 %v8868_v48, %v8867_v15 }
 0xe78   :  { %v8851_v54 = vrot.slane %v8838_v28, %v17714_v53 }
 0xe7a   :  { %v8853_v4 = vadd.f32 %v8851_v54, %v8845_v19  ;;  %v8854_v27 = vadd.f32 %v8851_v54, %v8846_v2  ;;  %v8861_v32 = vadd.f32 %v8859_v0, %v8851_v54  ;;  %v8862_v52 = vadd.f32 %v8860_v47, %v8851_v54 }
 0xe7c   :  { %v8855_v3 = vmul.f32 0.2, %v8853_v4  ;;  %v8856_v29 = vmul.f32 0.2, %v8854_v27  ;;  %v8863_v23 = vmul.f32 0.2, %v8861_v32 }
 0xe7d   :  { %v8864_v5 = vmul.f32 0.2, %v8862_v52 }
 0xe7e   :  { %v8857_v49 = vmax.f32 %v8853_v4, %v8855_v3  ;;  %v8858_v38 = vmax.f32 %v8854_v27, %v8856_v29  ;;  %v8865_v63 = vmax.f32 %v8861_v32, %v8863_v23 }
 0xe7f   :  { %v8866_v53 = vmax.f32 %v8862_v52, %v8864_v5 }
 0xe80   :  { %v18539_v10 = vpack.c.bf16 %v8858_v38, %v8857_v49 }
 0xe81   :  { %v18543_v41 = vpack.c.bf16 %v8866_v53, %v8865_v63 }
 0xe82   :  { %14628 = vmatprep.subr.bf16.mxu0 %v18539_v10  ;;  %14656 = vmatprep.subr.bf16.mxu1 %v18539_v10 }
 0xe83   :  { %14630 = vmatpush3.bf16.msra.mxu0 %v18539_v10  ;;  %14658 = vmatpush3.bf16.msra.mxu1 %v18539_v10 }
 0xe84   :  { %14632 = vmatprep.subr.bf16.mxu0 %v18539_v10  ;;  %14664 = vmatprep.subr.bf16.mxu1 %v18541_v8 }
 0xe86   :  { %13282 = vmatmul.mubr.msk.f32.vlgmr.msra.gmra.mrb[244].mxu0 %vm1603_vm8, %v10960_v51  ;;  %13331 = vmatmul.mubr.msk.f32.vlgmr.msra.gmra.mrb[192].mxu1 %vm1603_vm8, %v10988_v45 }
 0xe87   :  { %14634 = vmatpush3.bf16.msra.mxu0 %v18539_v10  ;;  %14666 = vmatpush3.bf16.msra.mxu1 %v18541_v8 }
 0xe88   :  { %14636 = vmatprep.subr.bf16.mxu0 %v18539_v10  ;;  %13288 = vmatprep.mubr.msk.f32.mxu0 %vm1603_vm8, %v10963_v62 }
 0xe89   :  { %14668 = vmatprep.subr.bf16.mxu1 %v18565_v31 }
 0xe8a   :  { %13289 = vmatmul.mubr.msk.f32.vlgmr.msra.gmra.mrb[246].mxu0 %vm1603_vm8, %v10964_v7 }
 0xe8b   :  { %14638 = vmatpush3.bf16.msra.mxu0 %v18539_v10  ;;  %14670 = vmatpush3.bf16.msra.mxu1 %v18565_v31 }
 0xe8c   :  { %14640 = vmatprep.subr.bf16.mxu0 %v18539_v10  ;;  %13295 = vmatprep.mubr.msk.f32.mxu0 %vm1603_vm8, %v10967_v37 }
 0xe8d   :  { %14672 = vmatprep.subr.bf16.mxu1 %v18593_v36 }
 0xe8e   :  { %13296 = vmatmul.mubr.msk.f32.vlgmr.msra.gmra.mrb[248].mxu0 %vm1603_vm8, %v10968_v43 }
 0xe8f   :  { %14642 = vmatpush3.bf16.msra.mxu0 %v18539_v10  ;;  %14674 = vmatpush3.bf16.msra.mxu1 %v18593_v36 }
 0xe90   :  { %14644 = vmatprep.subr.bf16.mxu0 %v18539_v10  ;;  %13302 = vmatprep.mubr.msk.f32.mxu0 %vm1603_vm8, %v10971_v59 }
 0xe91   :  { %14676 = vmatprep.subr.bf16.mxu1 %v18618_v25 }
 0xe92   :  { %13303 = vmatmul.mubr.msk.f32.vlgmr.msra.gmra.mrb[250].mxu0 %vm1603_vm8, %v10972_v16 }
 0xe93   :  { %14646 = vmatpush3.bf16.msra.mxu0 %v18539_v10  ;;  %14678 = vmatpush3.bf16.msra.mxu1 %v18618_v25 }
 0xe94   :  { %14648 = vmatprep.subr.bf16.mxu0 %v18539_v10  ;;  %13309 = vmatprep.mubr.msk.f32.mxu0 %vm1603_vm8, %v10975_v55 }
 0xe95   :  { %13356 = vmatprep.subr.mxu1 %v8875_v30 }
 0xe96   :  { %13310 = vmatmul.mubr.msk.f32.vlgmr.msra.gmra.mrb[252].mxu0 %vm1603_vm8, %v10976_v39 }
 0xe97   :  { %14650 = vmatpush3.bf16.msra.mxu0 %v18539_v10  ;;  %13357 = vmatpush3.msra.mxu1 %v8875_v30 }
 0xe98   :  { %14652 = vmatprep.subr.bf16.mxu0 %v18539_v10  ;;  %14696 = vmatprep.subr.bf16.mxu1 %v18543_v41 }
 0xe99   :  { %13316 = vmatprep.mubr.msk.f32.mxu0 %vm1603_vm8, %v10979_v57 }
 0xe9a   :  { %13317 = vmatmul.mubr.msk.f32.vlgmr.msra.gmra.mrb[254].mxu0 %vm1603_vm8, %v10980_v9 }
 0xe9b   :  { %14654 = vmatpush3.bf16.msra.mxu0 %v18539_v10  ;;  %13323 = vmatprep.mubr.msk.f32.mxu0 %vm1603_vm8, %v10983_v6 }
 0xe9c   :  { %14660 = vmatprep.subr.bf16.mxu0 %v18539_v10 }
 0xe9e   :  { %13324 = vmatmul.mubr.msk.f32.vlgmr.msra.gmra.mrb[0].mxu0 %vm1603_vm8, %v10984_v50 }
 0xe9f   :  { %14662 = vmatpush3.bf16.msra.mxu0 %v18539_v10  ;;  %13337 = vmatprep.mubr.msk.f32.mxu0 %vm1603_vm8, %v10991_v20 }
 0xea0   :  { %14680 = vmatprep.subr.bf16.mxu0 %v18543_v41 }
 0xea2   :  { %13338 = vmatmul.mubr.msk.f32.vlgmr.msra.gmra.mrb[2].mxu0 %vm1603_vm8, %v10992_v18 }
 0xea3   :  { %14682 = vmatpush3.bf16.msra.mxu0 %v18543_v41  ;;  %13365 = vmatprep.mubr.msk.f32.mxu0 %vm1603_vm8, %v10959_v13 }
 0xea4   :  { %14684 = vmatprep.subr.bf16.mxu0 %v18543_v41 }
 0xea6   :  { %13366 = vmatmul.mubr.msk.f32.vlgmr.msra.gmra.mrb[4].mxu0 %vm1603_vm8, %v10960_v51 }
 0xea7   :  { %14686 = vmatpush3.bf16.msra.mxu0 %v18543_v41  ;;  %13372 = vmatprep.mubr.msk.f32.mxu0 %vm1603_vm8, %v10963_v62 }
 0xea8   :  { %14688 = vmatprep.subr.bf16.mxu0 %v18543_v41 }
 0xeaa   :  { %13373 = vmatmul.mubr.msk.f32.vlgmr.msra.gmra.mrb[6].mxu0 %vm1603_vm8, %v10964_v7 }
 0xeab   :  { %14690 = vmatpush3.bf16.msra.mxu0 %v18543_v41  ;;  %13379 = vmatprep.mubr.msk.f32.mxu0 %vm1603_vm8, %v10967_v37 }
 0xeac   :  { %14692 = vmatprep.subr.bf16.mxu0 %v18543_v41 }
 0xeae   :  { %13380 = vmatmul.mubr.msk.f32.vlgmr.msra.gmra.mrb[8].mxu0 %vm1603_vm8, %v10968_v43 }
 0xeaf   :  { %14694 = vmatpush3.bf16.msra.mxu0 %v18543_v41  ;;  %13386 = vmatprep.mubr.msk.f32.mxu0 %vm1603_vm8, %v10971_v59 }
 0xeb0   :  { %14700 = vmatprep.subr.bf16.mxu0 %v18543_v41 }
 0xeb2   :  { %13387 = vmatmul.mubr.msk.f32.vlgmr.msra.gmra.mrb[10].mxu0 %vm1603_vm8, %v10972_v16 }
 0xeb3   :  { %14702 = vmatpush3.bf16.msra.mxu0 %v18543_v41  ;;  %13400 = vmatprep.mubr.msk.f32.mxu0 %vm1603_vm8, %v10979_v57 }
 0xeb4   :  { %14708 = vmatprep.subr.bf16.mxu0 %v18543_v41 }
 0xeb6   :  { %13401 = vmatmul.mubr.msk.f32.vlgmr.msra.gmra.mrb[12].mxu0 %vm1603_vm8, %v10980_v9 }
 0xeb7   :  { %14710 = vmatpush3.bf16.msra.mxu0 %v18543_v41  ;;  %13414 = vmatprep.mubr.msk.f32.mxu0 %vm1603_vm8, %v10987_v33 }
 0xeb8   :  { %14716 = vmatprep.subr.bf16.mxu0 %v18541_v8 }
 0xeba   :  { %13415 = vmatmul.mubr.msk.f32.vlgmr.msra.gmra.mrb[14].mxu0 %vm1603_vm8, %v10988_v45 }
 0xebb   :  { %14718 = vmatpush3.bf16.msra.mxu0 %v18541_v8 }
 0xebc   :  { %14720 = vmatprep.subr.bf16.mxu0 %v18565_v31 }
 0xebf   :  { %14722 = vmatpush3.bf16.msra.mxu0 %v18565_v31 }
 0xec0   :  { %14724 = vmatprep.subr.bf16.mxu0 %v18593_v36 }
 0xec3   :  { %14726 = vmatpush3.bf16.msra.mxu0 %v18593_v36 }
 0xec4   :  { %14728 = vmatprep.subr.bf16.mxu0 %v18618_v25 }
 0xec7   :  { %14730 = vmatpush3.bf16.msra.mxu0 %v18618_v25 }
 0xec8   :  { %13440 = vmatprep.subr.mxu0 %v8875_v30 }
 0xecb   :  { %13441 = vmatpush3.msra.mxu0 %v8875_v30 }
 0xf59   :  { %v13332_v56 = vpop.f32.mrb[192].mxu1  ;;  %v18730_v34 = vpop.f32.mrb[244].mxu0 }
 0xf5a   :  { %9693 = vrot.lane.b32.xlu0 %v13332_v56, %s14886_s19  ;;  %v9547_v13 = vpop.f32.mrb[193].mxu1  ;;  %v8952_v33 = vpop.f32.mrb[245].mxu0 }
 0xf5b   :  { %9691 = vrot.lane.b32.xlu1 %v9547_v13, %s14886_s19 }
 0xf5d   :  { %v13290_v26 = vpop.f32.mrb[246].mxu0 }
 0xf5e   :  { %9645 = vrot.lane.b32.xlu0 %v13290_v26, %s14879_s18  ;;  %v9037_v11 = vpop.f32.mrb[247].mxu0 }
 0xf5f   :  { %9643 = vrot.lane.b32.xlu1 %v9037_v11, %s14879_s18 }
 0xf61   :  { %v13297_v21 = vpop.f32.mrb[248].mxu0 }
 0xf62   :  { %9653 = vrot.lane.b32.xlu0 %v13297_v21, %s14883_s28  ;;  %v9122_v58 = vpop.f32.mrb[249].mxu0 }
 0xf63   :  { %9651 = vrot.lane.b32.xlu1 %v9122_v58, %s14883_s28 }
 0xf65   :  { %v13304_v28 = vpop.f32.mrb[250].mxu0 }
 0xf66   :  { %9661 = vrot.lane.b32.xlu0 %v13304_v28, %s14884_s4  ;;  %v9207_v19 = vpop.f32.mrb[251].mxu0 }
 0xf67   :  { %9659 = vrot.lane.b32.xlu1 %v9207_v19, %s14884_s4 }
 0xf69   :  { %v13311_v2 = vpop.f32.mrb[252].mxu0 }
 0xf6a   :  { %9669 = vrot.lane.b32.xlu0 %v13311_v2, %s14887_s24  ;;  %v9292_v0 = vpop.f32.mrb[253].mxu0 }
 0xf6b   :  { %9667 = vrot.lane.b32.xlu1 %v9292_v0, %s14887_s24 }
 0xf6d   :  { %v13318_v47 = vpop.f32.mrb[254].mxu0 }
 0xf6e   :  { %9677 = vrot.lane.b32.xlu0 %v13318_v47, %s14885_s30  ;;  %v9377_v54 = vpop.f32.mrb[255].mxu0 }
 0xf6f   :  { %9675 = vrot.lane.b32.xlu1 %v9377_v54, %s14885_s30 }
 0xf71   :  { %v13325_v4 = vpop.f32.mrb[0].mxu0 }
 0xf72   :  { %9685 = vrot.lane.b32.xlu0 %v13325_v4, %s14888_s25  ;;  %v9462_v27 = vpop.f32.mrb[1].mxu0 }
 0xf73   :  { %9683 = vrot.lane.b32.xlu1 %v9462_v27, %s14888_s25 }
 0xf75   :  { %v13339_v32 = vpop.f32.mrb[2].mxu0 }
 0xf76   :  { %9701 = vrot.lane.b32.xlu0 %v13339_v32, %s14889_s27  ;;  %v9632_v52 = vpop.f32.mrb[3].mxu0 }
 0xf77   :  { %9699 = vrot.lane.b32.xlu1 %v9632_v52, %s14889_s27 }
 0xf79   :  { %v18748_v3 = vpop.f32.mrb[4].mxu0 }
 0xf7a   :  { %v18750_v29 = vpop.f32.mrb[5].mxu0 }
 0xf7d   :  { %v13374_v23 = vpop.f32.mrb[6].mxu0 }
 0xf7e   :  { %v9943_v5 = vpop.f32.mrb[7].mxu0  ;;  %10481 = vrot.lane.b32.xlu0 %v13374_v23, %s14879_s18 }
 0xf7f   :  { %10479 = vrot.lane.b32.xlu1 %v9943_v5, %s14879_s18 }
 0xf81   :  { %v13381_v15 = vpop.f32.mrb[8].mxu0 }
 0xf82   :  { %v10018_v48 = vpop.f32.mrb[9].mxu0  ;;  %10489 = vrot.lane.b32.xlu0 %v13381_v15, %s14883_s28 }
 0xf83   :  { %10487 = vrot.lane.b32.xlu1 %v10018_v48, %s14883_s28 }
 0xf85   :  { %v13388_v49 = vpop.f32.mrb[10].mxu0 }
 0xf86   :  { %v10093_v38 = vpop.f32.mrb[11].mxu0  ;;  %10497 = vrot.lane.b32.xlu0 %v13388_v49, %s14884_s4 }
 0xf87   :  { %10495 = vrot.lane.b32.xlu1 %v10093_v38, %s14884_s4 }
 0xf89   :  { %v13402_v63 = vpop.f32.mrb[12].mxu0 }
 0xf8a   :  { %10513 = vrot.lane.b32.xlu0 %v13402_v63, %s14885_s30  ;;  %v10243_v53 = vpop.f32.mrb[13].mxu0 }
 0xf8b   :  { %10511 = vrot.lane.b32.xlu1 %v10243_v53, %s14885_s30 }
 0xf8d   :  { %v13416_v12 = vpop.f32.mrb[14].mxu0 }
 0xf8e   :  { %10529 = vrot.lane.b32.xlu0 %v13416_v12, %s14886_s19 }
 0xfcc   :  { %v9694_v10 = vpop.permute.xlu0 %9693 }
 0xfcd   :  { %v9692_v8 = vpop.permute.xlu1 %9691 }
 0xfd0   :  { %v9646_v24 = vpop.permute.xlu0 %9645 }
 0xfd1   :  { %v9644_v51 = vpop.permute.xlu1 %9643  ;;  %v9706_v37 = vsel %vm1567_vm4, %v18730_v34, %v9646_v24 }
 0xfd2   :  { %v9705_v40 = vsel %vm1567_vm4, %v8952_v33, %v9644_v51 }
 0xfd4   :  { %v9654_v45 = vpop.permute.xlu0 %9653 }
 0xfd5   :  { %v9652_v44 = vpop.permute.xlu1 %9651  ;;  %v9708_v42 = vsel %vm1603_vm8, %v9706_v37, %v9654_v45 }
 0xfd6   :  { %v9707_v36 = vsel %vm1603_vm8, %v9705_v40, %v9652_v44 }
 0xfd8   :  { %v9662_v1 = vpop.permute.xlu0 %9661 }
 0xfd9   :  { %v9660_v62 = vpop.permute.xlu1 %9659  ;;  %v9710_v46 = vsel %vm4015_vm11, %v9708_v42, %v9662_v1 }
 0xfda   :  { %v9709_v43 = vsel %vm4015_vm11, %v9707_v36, %v9660_v62 }
 0xfdc   :  { %v9670_v31 = vpop.permute.xlu0 %9669 }
 0xfdd   :  { %v9668_v60 = vpop.permute.xlu1 %9667  ;;  %v9712_v25 = vsel %vm4018_vm12, %v9710_v46, %v9670_v31 }
 0xfde   :  { %v9711_v61 = vsel %vm4018_vm12, %v9709_v43, %v9668_v60 }
 0xfe0   :  { %v9678_v7 = vpop.permute.xlu0 %9677 }
 0xfe1   :  { %v9676_v17 = vpop.permute.xlu1 %9675  ;;  %v9714_v35 = vsel %vm4021_vm13, %v9712_v25, %v9678_v7 }
 0xfe2   :  { %v9713_v16 = vsel %vm4021_vm13, %v9711_v61, %v9676_v17 }
 0xfe4   :  { %v9686_v59 = vpop.permute.xlu0 %9685 }
 0xfe5   :  { %v9684_v30 = vpop.permute.xlu1 %9683  ;;  %v9716_v9 = vsel %vm4024_vm14, %v9714_v35, %v9686_v59 }
 0xfe6   :  { %v9715_v57 = vsel %vm4024_vm14, %v9713_v16, %v9684_v30  ;;  %v9718_v33 = vsel %vm4027_vm15, %v9716_v9, %v9694_v10 }
 0xfe7   :  { %v9717_v34 = vsel %vm4027_vm15, %v9715_v57, %v9692_v8 }
 0xfe8   :  { %v9702_v56 = vpop.permute.xlu0 %9701 }
 0xfe9   :  { %v9700_v13 = vpop.permute.xlu1 %9699  ;;  %v9720_v11 = vsel %vm3185_vm10, %v9718_v33, %v9702_v56 }
 0xfea   :  { %v9719_v26 = vsel %vm3185_vm10, %v9717_v34, %v9700_v13 }
 0xfeb   :  { %13358 = vmatprep.mubr.msk.f32.mxu1 %vm4032_vm0, %v9719_v26 }
 0xfec   :  { %13359 = vmatmul.mubr.msk.f32.vlgmr.msra.gmra.mrb[194].mxu1 %vm4032_vm0, %v9720_v11 }
 0xfed   :  { %14698 = vmatpush3.bf16.msra.mxu1 %v18543_v41  ;;  %13393 = vmatprep.mubr.msk.f32.mxu1 %vm1603_vm8, %v10975_v55  ;;  %v10393_v55 = vpop.f32.mrb[15].mxu0 }
 0xfee   :  { %14704 = vmatprep.subr.bf16.mxu1 %v18543_v41  ;;  %10527 = vrot.lane.b32.xlu1 %v10393_v55, %s14886_s19 }
 0xff0   :  { %13394 = vmatmul.mubr.msk.f32.vlgmr.msra.gmra.mrb[196].mxu1 %vm1603_vm8, %v10976_v39  ;;  %v10482_v21 = vpop.permute.xlu0 %10481 }
 0xff1   :  { %14706 = vmatpush3.bf16.msra.mxu1 %v18543_v41  ;;  %13407 = vmatprep.mubr.msk.f32.mxu1 %vm1603_vm8, %v10983_v6  ;;  %v10480_v58 = vpop.permute.xlu1 %10479  ;;  %v10542_v52 = vsel %vm1567_vm4, %v18748_v3, %v10482_v21 }
 0xff2   :  { %14712 = vmatprep.subr.bf16.mxu1 %v18543_v41  ;;  %v10541_v27 = vsel %vm1567_vm4, %v18750_v29, %v10480_v58  ;;  %vm10646_vm4 = vcmask 7168  }
 0xff4   :  { %13408 = vmatmul.mubr.msk.f32.vlgmr.msra.gmra.mrb[198].mxu1 %vm1603_vm8, %v10984_v50  ;;  %v10490_v28 = vpop.permute.xlu0 %10489 }
 0xff5   :  { %14714 = vmatpush3.bf16.msra.mxu1 %v18543_v41  ;;  %13421 = vmatprep.mubr.msk.f32.mxu1 %vm1603_vm8, %v10991_v20  ;;  %v10488_v19 = vpop.permute.xlu1 %10487  ;;  %v10544_v5 = vsel %vm1603_vm8, %v10542_v52, %v10490_v28 }
 0xff6   :  { %v10543_v23 = vsel %vm1603_vm8, %v10541_v27, %v10488_v19 }
 0xff8   :  { %13422 = vmatmul.mubr.msk.f32.vlgmr.msra.gmra.mrb[200].mxu1 %vm1603_vm8, %v10992_v18  ;;  %v10498_v2 = vpop.permute.xlu0 %10497 }
 0xff9   :  { %v10496_v0 = vpop.permute.xlu1 %10495  ;;  %v10546_v38 = vsel %vm4015_vm11, %v10544_v5, %v10498_v2 }
 0xffa   :  { %v10545_v48 = vsel %vm4015_vm11, %v10543_v23, %v10496_v0 }
 0xffc   :  { %v10514_v47 = vpop.permute.xlu0 %10513 }
 0xffd   :  { %v10512_v54 = vpop.permute.xlu1 %10511 }
0x1000   :  { %v10530_v4 = vpop.permute.xlu0 %10529 }
0x1060   :  { %v10528_v32 = vpop.permute.xlu1 %10527 }
0x10bf   :  { %v13360_v39 = vpop.f32.mrb[194].mxu1 }
0x10c0   :  { %v9793_v22 = vpop.f32.mrb[195].mxu1 }
0x10c3   :  { %v13395_v6 = vpop.f32.mrb[196].mxu1 }
0x10c4   :  { %v10168_v50 = vpop.f32.mrb[197].mxu1  ;;  %10505 = vrot.lane.b32.xlu0 %v13395_v6, %s14887_s24 }
0x10c5   :  { %10503 = vrot.lane.b32.xlu1 %v10168_v50, %s14887_s24 }
0x10c7   :  { %v13409_v41 = vpop.f32.mrb[198].mxu1 }
0x10c8   :  { %v10318_v20 = vpop.f32.mrb[199].mxu1  ;;  %10521 = vrot.lane.b32.xlu0 %v13409_v41, %s14888_s25 }
0x10c9   :  { %10519 = vrot.lane.b32.xlu1 %v10318_v20, %s14888_s25 }
0x10cb   :  { %v13423_v14 = vpop.f32.mrb[200].mxu1 }
0x10cc   :  { %v10468_v18 = vpop.f32.mrb[201].mxu1  ;;  %10537 = vrot.lane.b32.xlu0 %v13423_v14, %s14889_s27 }
0x10cd   :  { %10535 = vrot.lane.b32.xlu1 %v10468_v18, %s14889_s27 }
0x1136   :  { %v10506_v15 = vpop.permute.xlu0 %10505 }
0x1137   :  { %v10504_v49 = vpop.permute.xlu1 %10503  ;;  %v10548_v53 = vsel %vm4018_vm12, %v10546_v38, %v10506_v15 }
0x1138   :  { %v10547_v63 = vsel %vm4018_vm12, %v10545_v48, %v10504_v49  ;;  %v10550_v3 = vsel %vm4021_vm13, %v10548_v53, %v10514_v47 }
0x1139   :  { %v10549_v29 = vsel %vm4021_vm13, %v10547_v63, %v10512_v54 }
0x113a   :  { %v10522_v10 = vpop.permute.xlu0 %10521 }
0x113b   :  { %v10520_v8 = vpop.permute.xlu1 %10519  ;;  %v10552_v51 = vsel %vm4024_vm14, %v10550_v3, %v10522_v10 }
0x113c   :  { %v10551_v24 = vsel %vm4024_vm14, %v10549_v29, %v10520_v8  ;;  %v10554_v62 = vsel %vm4027_vm15, %v10552_v51, %v10530_v4 }
0x113d   :  { %v10553_v44 = vsel %vm4027_vm15, %v10551_v24, %v10528_v32 }
0x113e   :  { %v10538_v45 = vpop.permute.xlu0 %10537 }
0x113f   :  { %v10536_v1 = vpop.permute.xlu1 %10535  ;;  %v10556_v60 = vsel %vm3185_vm10, %v10554_v62, %v10538_v45 }
0x1140   :  { %v10555_v31 = vsel %vm3185_vm10, %v10553_v44, %v10536_v1 }
0x1141   :  { %13442 = vmatprep.mubr.msk.f32.mxu0 %vm4032_vm0, %v10555_v31 }
0x1142   :  { %13443 = vmatmul.mubr.msk.f32.vlgmr.msra.gmra.mrb[16].mxu0 %vm4032_vm0, %v10556_v60 }
0x1215   :  { %v13444_v7 = vpop.f32.mrb[16].mxu0 }
0x1216   :  { %10642 = vrot.lane.b32.xlu0 %v13444_v7, %s14894_s15  ;;  %v10629_v40 = vpop.f32.mrb[17].mxu0 }
0x1217   :  { %10640 = vrot.lane.b32.xlu1 %v10629_v40, %s14894_s15 }
0x1288   :  { %v10643_v17 = vpop.permute.xlu0 %10642 }
0x1289   :  { %v10648_v37 = vsel %vm10646_vm4, %v13360_v39, %v10643_v17  ;;  %v10641_v36 = vpop.permute.xlu1 %10640 }
0x128a   :  { %v10848_v42 = vmul.f32 -1.442695, %v10648_v37  ;;  %v10647_v43 = vsel %vm10646_vm4, %v9793_v22, %v10641_v36 }
0x128b   :  { %v10847_v46 = vmul.f32 -1.442695, %v10647_v43 }
0x128c   :  { %14867 = vpow2.f32 %v10848_v42 }
0x128d   :  { %14869 = vpow2.f32 %v10847_v46 }
0x1296   :  { %v14868_v61 = vpop.eup %14867 }
0x1297   :  { %v14870_v59 = vpop.eup %14869  ;;  %v10656_v25 = vadd.f32 1.0, %v14868_v61 }
0x1298   :  { %v10655_v16 = vadd.f32 1.0, %v14870_v59 }
0x1299   :  { %14871 = vrcp.f32 %v10656_v25 }
0x129a   :  { %14873 = vrcp.f32 %v10655_v16 }
0x12a3   :  { %v14872_v30 = vpop.eup %14871 }
0x12a4   :  { %v14874_v35 = vpop.eup %14873  ;;  %v10662_v57 = vsel %vm1540_vm1, %v14872_v30, 0.0 }
0x12a5   :  { %10664 = vst [vmem:[%s18855_s17 + $0x8] sm:$0xff] %v10662_v57  ;;  %v10661_v9 = vsel %vm1540_vm1, %v14874_v35, 0.0 }
0x12a6   :  { %10663 = vst [vmem:[%s18855_s17] sm:$0xff] %v10661_v9 }

</bundles_post_ra>
